<compile_context>
chip_gen: v6e
topology: v6e:2x2x1
jax: 0.10.0
libtpu: 0.0.40
codegen_flags: <defaults>
</compile_context>

<pallas_src>
import functools
import random

import jax
import jax.numpy as jnp
from jax import lax
from jax.experimental import pallas as pl
from jax.experimental.pallas import tpu as pltpu

_LANE = 128
_SUBLANE = 8


def _round_up(x, m):
    return (x + m - 1) // m * m


def _sigmoid(x):
    # sigmoid(x) = 0.5 * (1 + tanh(0.5 x)): one EUP push instead of exp + reciprocal.
    return 0.5 * (jnp.tanh(0.5 * x) + 1.0)


def _lstm_math(xh_bf16, c, w, b, hp):
    """One LSTM cell step on padded tiles.

    xh_bf16: [Bp, Ep+Hp] bf16 (x | h in adjacent lane slices), c: [Bp, Hp] f32,
    w: [Ep+Hp, 4*Hp] bf16 (gate order i,f,g,o), b: [1, 4*Hp] f32 (= b_ih + b_hh).
    Single fused matmul; gate/elementwise math in f32.  Shared by the Pallas kernel
    and the plain-JAX reference so numerics match.
    """
    gates = jnp.dot(xh_bf16, w, preferred_element_type=jnp.float32) + b
    i_g = _sigmoid(gates[:, 0 * hp:1 * hp])
    f_g = _sigmoid(gates[:, 1 * hp:2 * hp])
    g_g = jnp.tanh(gates[:, 2 * hp:3 * hp])
    o_g = _sigmoid(gates[:, 3 * hp:4 * hp])
    c_new = f_g * c + i_g * g_g
    h_new = o_g * jnp.tanh(c_new)
    return h_new, c_new


# ----------------------------------------------------------------------------
# Single fused kernel: encoder time loop + decoder autoregressive loop
# ----------------------------------------------------------------------------
def _seq2seq_kernel(tf_ref,                         # SMEM int32 [T-1] (scalar prefetch)
                    enc_x_ref,                      # [S, Bp, Ep]   bf16  encoder inputs
                    tf_x_ref,                       # [T-1, Bp, Ep] bf16  teacher embeddings
                    emb_ref,                        # [Vp, Ep]      bf16  dec embedding table
                    enc_w_ref, enc_b_ref,           # [Ep+Hp, 4Hp] bf16, [1, 4Hp] f32
                    dec_w_ref, dec_b_ref,
                    fcw_ref, fcb_ref,               # [Hp, Vp] bf16, [1, Vp] f32
                    out_ref,                        # [T, Bp, Vp]   f32
                    xh_scr,                         # [Bp, Ep+Hp]   bf16  (x | h)
                    c_scr,                          # [Bp, Hp]      f32
                    *, src_len, n_dec, ep, hp, out_v):
    bp = xh_scr.shape[0]
    vp = out_ref.shape[-1]

    # Constants hoisted out of the loops (JAX does not CSE broadcast_in_dim).
    lane_i = lax.broadcasted_iota(jnp.int32, (bp, vp), 1)
    lane_f = lane_i.astype(jnp.float32)
    vocab_mask = lane_i < out_v

    # Init: zero state, zero outputs[0] (never written by the decode loop).
    xh_scr[...] = jnp.zeros_like(xh_scr)
    c_scr[...] = jnp.zeros_like(c_scr)
    out_ref[0] = jnp.zeros((bp, vp), jnp.float32)

    # ---------------- encoder phase ----------------
    def enc_body(t, carry):
        xh_scr[:, :ep] = enc_x_ref[t]
        h_new, c_new = _lstm_math(xh_scr[...], c_scr[...],
                                  enc_w_ref[...], enc_b_ref[...], hp)
        xh_scr[:, ep:] = h_new.astype(jnp.bfloat16)
        c_scr[...] = c_new
        return carry

    lax.fori_loop(0, src_len, enc_body, 0, unroll=True)

    # ---------------- decoder phase ----------------
    # h (bf16) and c (f32) from the encoder stay resident in xh_scr / c_scr.
    def dec_body(s, carry):
        # Teacher forcing: overwrite the carried greedy embedding with emb(trg[:, s]).
        # tf_ref[0] is always 1 (input = trg[:, 0]).
        @pl.when(tf_ref[s] != 0)
        def _teacher():
            xh_scr[:, :ep] = tf_x_ref[s]

        h_new, c_new = _lstm_math(xh_scr[...], c_scr[...],
                                  dec_w_ref[...], dec_b_ref[...], hp)
        h_bf = h_new.astype(jnp.bfloat16)
        xh_scr[:, ep:] = h_bf
        c_scr[...] = c_new

        logits = jnp.dot(h_bf, fcw_ref[...],
                         preferred_element_type=jnp.float32) + fcb_ref[...]
        out_ref[s + 1] = logits

        # Greedy feedback: first-argmax over the real vocab, then one-hot @ embedding
        # table (MXU gather), so the next decoder input is produced in-kernel.
        # TODO(synk): original code feeds raw logits back into the decoder when not
        # teacher forcing (invalid for an embedding decoder); we feed the argmax token.
        masked = jnp.where(vocab_mask, logits, -3.0e38)         # mask padded vocab lanes
        mx = jnp.max(masked, axis=-1, keepdims=True)
        cand = jnp.where(masked == mx, lane_f, float(vp))
        idx = jnp.min(cand, axis=-1, keepdims=True)             # first argmax index
        one_hot = (lane_f == idx).astype(jnp.bfloat16)
        xh_scr[:, :ep] = jnp.dot(one_hot, emb_ref[...],
                                 preferred_element_type=jnp.float32).astype(jnp.bfloat16)
        return carry

    lax.fori_loop(0, n_dec, dec_body, 0, unroll=True)


def _run_seq2seq(tf_use, enc_x, tf_x, emb_tbl, enc_w, enc_b, dec_w, dec_b,
                 fc_w, fc_b, *, out_v):
    S, Bp, Ep = enc_x.shape
    T1 = tf_x.shape[0]
    T = T1 + 1
    Hp = enc_w.shape[1] // 4
    Vp = fc_w.shape[-1]

    kernel = functools.partial(_seq2seq_kernel, src_len=S, n_dec=T1,
                               ep=Ep, hp=Hp, out_v=out_v)

    grid_spec = pltpu.PrefetchScalarGridSpec(
        num_scalar_prefetch=1,                                   # tf_use -> SMEM
        grid=(1,),                                               # whole seq in one step
        in_specs=[
            pl.BlockSpec(enc_x.shape, lambda i, tf: (0, 0, 0)),  # full encoder stream
            pl.BlockSpec(tf_x.shape, lambda i, tf: (0, 0, 0)),   # full teacher stream
            pl.BlockSpec(emb_tbl.shape, lambda i, tf: (0, 0)),   # dec embedding table
            pl.BlockSpec(enc_w.shape, lambda i, tf: (0, 0)),     # encoder LSTM weights
            pl.BlockSpec(enc_b.shape, lambda i, tf: (0, 0)),
            pl.BlockSpec(dec_w.shape, lambda i, tf: (0, 0)),     # decoder LSTM weights
            pl.BlockSpec(dec_b.shape, lambda i, tf: (0, 0)),
            pl.BlockSpec(fc_w.shape, lambda i, tf: (0, 0)),      # FC weights
            pl.BlockSpec(fc_b.shape, lambda i, tf: (0, 0)),
        ],
        out_specs=pl.BlockSpec((T, Bp, Vp), lambda i, tf: (0, 0, 0)),
        scratch_shapes=[
            pltpu.VMEM((Bp, Ep + Hp), jnp.bfloat16),             # [x | h] packed input
            pltpu.VMEM((Bp, Hp), jnp.float32),                   # c state
        ],
    )
    return pl.pallas_call(
        kernel,
        out_shape=jax.ShapeDtypeStruct((T, Bp, Vp), jnp.float32),
        grid_spec=grid_spec,
        compiler_params=pltpu.CompilerParams(
            dimension_semantics=("arbitrary",),
            vmem_limit_bytes=8 * 1024 * 1024),                   # actual footprint << 8 MiB
    )(tf_use, enc_x, tf_x, emb_tbl, enc_w, enc_b, dec_w, dec_b, fc_w, fc_b)


# ----------------------------------------------------------------------------
# Parameters (synthetic, deterministic) and padding/packing for the kernel
# ----------------------------------------------------------------------------
def make_params(key, input_dim, output_dim, emb_dim, hid_dim):
    # TODO(synk): single-layer LSTMs with a single combined bias (= b_ih + b_hh);
    # dropout layers are identity (eval semantics).
    ks = jax.random.split(key, 10)
    s = 0.1
    return {
        "enc_emb": s * jax.random.normal(ks[0], (input_dim, emb_dim), jnp.float32),
        "enc_wih": s * jax.random.normal(ks[1], (emb_dim, 4 * hid_dim), jnp.float32),
        "enc_whh": s * jax.random.normal(ks[2], (hid_dim, 4 * hid_dim), jnp.float32),
        "enc_b":   s * jax.random.normal(ks[3], (4 * hid_dim,), jnp.float32),
        "dec_emb": s * jax.random.normal(ks[4], (output_dim, emb_dim), jnp.float32),
        "dec_wih": s * jax.random.normal(ks[5], (emb_dim, 4 * hid_dim), jnp.float32),
        "dec_whh": s * jax.random.normal(ks[6], (hid_dim, 4 * hid_dim), jnp.float32),
        "dec_b":   s * jax.random.normal(ks[7], (4 * hid_dim,), jnp.float32),
        "fc_w":    s * jax.random.normal(ks[8], (hid_dim, output_dim), jnp.float32),
        "fc_b":    s * jax.random.normal(ks[9], (output_dim,), jnp.float32),
    }


def pack_params(p, emb_dim, hid_dim, out_v):
    """Pad to (8,128)-aligned tiles, stack (W_ih; W_hh) into one matmul weight per cell,
    and store matmul weights / embeddings in bf16 (MXU-native).  Zero padding keeps
    results on the real sub-block identical to the unpadded model."""
    Ep = _round_up(emb_dim, _LANE)
    Hp = _round_up(hid_dim, _LANE)
    Vp = _round_up(out_v, _LANE)

    def pack_lstm(wih, whh, b):
        E, H = wih.shape[0], whh.shape[0]
        wih_p = jnp.pad(wih.reshape(E, 4, H), ((0, Ep - E), (0, 0), (0, Hp - H)))
        whh_p = jnp.pad(whh.reshape(H, 4, H), ((0, Hp - H), (0, 0), (0, Hp - H)))
        w = jnp.concatenate([wih_p.reshape(Ep, 4 * Hp), whh_p.reshape(Hp, 4 * Hp)], axis=0)
        bb = jnp.pad(b.reshape(4, H), ((0, 0), (0, Hp - H))).reshape(1, 4 * Hp)
        return w.astype(jnp.bfloat16), bb.astype(jnp.float32)

    enc_w, enc_b = pack_lstm(p["enc_wih"], p["enc_whh"], p["enc_b"])
    dec_w, dec_b = pack_lstm(p["dec_wih"], p["dec_whh"], p["dec_b"])
    return {
        "enc_emb": jnp.pad(p["enc_emb"],
                           ((0, 0), (0, Ep - emb_dim))).astype(jnp.bfloat16),
        "enc_w": enc_w, "enc_b": enc_b,
        "dec_emb": jnp.pad(p["dec_emb"],
                           ((0, Vp - out_v), (0, Ep - emb_dim))).astype(jnp.bfloat16),
        "dec_w": dec_w, "dec_b": dec_b,
        "fc_w": jnp.pad(p["fc_w"], ((0, Hp - hid_dim), (0, Vp - out_v))).astype(jnp.bfloat16),
        "fc_b": jnp.pad(p["fc_b"], (0, Vp - out_v)).reshape(1, Vp).astype(jnp.float32),
    }


# ----------------------------------------------------------------------------
# Forward pass (jit'ted) and host-side teacher-forcing replay
# ----------------------------------------------------------------------------
def build_forward(out_v):
    @jax.jit
    def forward(packed, src, trg, tf_use):
        B = src.shape[0]
        T = trg.shape[1]
        Bp = _round_up(B, _SUBLANE)

        # Time-major embedding gathers (no transpose), padded batch, bf16 streams.
        enc_x = jnp.take(packed["enc_emb"], src.T, axis=0)             # [S, B, Ep]
        enc_x = jnp.pad(enc_x, ((0, 0), (0, Bp - B), (0, 0)))
        tf_x = jnp.take(packed["dec_emb"], trg[:, :T - 1].T, axis=0)   # [T-1, B, Ep]
        tf_x = jnp.pad(tf_x, ((0, 0), (0, Bp - B), (0, 0)))

        out = _run_seq2seq(tf_use, enc_x, tf_x, packed["dec_emb"],
                           packed["enc_w"], packed["enc_b"],
                           packed["dec_w"], packed["dec_b"],
                           packed["fc_w"], packed["fc_b"], out_v=out_v)  # [T, Bp, Vp]
        return out[:, :B, :out_v]                                        # [T, B, out_v]
    return forward


def make_teacher_forcing(trg_len, teacher_forcing_ratio, seed):
    """Replays the original loop's random.random() draws (one per decode step).
    tf_use[s] == 1 -> the input of fused step s is trg[:, s]; step 0 always is."""
    rng = random.Random(seed)
    coins = [rng.random() < teacher_forcing_ratio for _ in range(1, trg_len)]
    tf_use = [1] + [int(coins[s - 1]) for s in range(1, trg_len - 1)]
    return jnp.asarray(tf_use, dtype=jnp.int32)


def reference_forward(packed, src, trg, tf_use, out_v):
    """Plain-JAX (non-Pallas) replica using the exact same packed bf16 weights and the
    exact same bf16 x/h rounding as the kernel."""
    B, S = src.shape
    T = trg.shape[1]
    Bp = _round_up(B, _SUBLANE)
    Hp = packed["enc_w"].shape[1] // 4
    Vp = packed["fc_w"].shape[-1]

    def step(x_bf, h_bf, c, w, b):
        xh = jnp.concatenate([x_bf, h_bf], axis=-1)
        return _lstm_math(xh, c, w, b, Hp)

    enc_x = jnp.take(packed["enc_emb"], src.T, axis=0)
    enc_x = jnp.pad(enc_x, ((0, 0), (0, Bp - B), (0, 0)))
    h = jnp.zeros((Bp, Hp), jnp.bfloat16)
    c = jnp.zeros((Bp, Hp), jnp.float32)
    for t in range(S):
        h_f, c = step(enc_x[t], h, c, packed["enc_w"], packed["enc_b"])
        h = h_f.astype(jnp.bfloat16)

    tf_x = jnp.take(packed["dec_emb"], trg[:, :T - 1].T, axis=0)
    tf_x = jnp.pad(tf_x, ((0, 0), (0, Bp - B), (0, 0)))
    outs = [jnp.zeros((Bp, Vp), jnp.float32)]
    x = tf_x[0]
    for s in range(T - 1):
        if s > 0 and int(tf_use[s]):
            x = tf_x[s]
        h_f, c = step(x, h, c, packed["dec_w"], packed["dec_b"])
        h = h_f.astype(jnp.bfloat16)
        logits = jnp.dot(h, packed["fc_w"],
                         preferred_element_type=jnp.float32) + packed["fc_b"]
        outs.append(logits)
        tok = jnp.argmax(logits[:, :out_v], axis=-1)
        x = jnp.take(packed["dec_emb"], tok, axis=0)
    out = jnp.stack(outs, axis=0)
    return out[:, :B, :out_v]


# ----------------------------------------------------------------------------
if __name__ == "__main__":
    INPUT_DIM = 16     # src vocab
    OUTPUT_DIM = 16    # trg vocab
    EMB_DIM = 32
    HID_DIM = 32
    BATCH = 2
    SRC_LEN = 8
    TRG_LEN = 8

    key = jax.random.PRNGKey(0)
    kp, ks, kt = jax.random.split(key, 3)

    params = make_params(kp, INPUT_DIM, OUTPUT_DIM, EMB_DIM, HID_DIM)
    packed = pack_params(params, EMB_DIM, HID_DIM, OUTPUT_DIM)
    src = jax.random.randint(ks, (BATCH, SRC_LEN), 0, INPUT_DIM, dtype=jnp.int32)
    trg = jax.random.randint(kt, (BATCH, TRG_LEN), 0, OUTPUT_DIM, dtype=jnp.int32)
    tf_use = make_teacher_forcing(TRG_LEN, teacher_forcing_ratio=0.5, seed=0)

    forward = build_forward(OUTPUT_DIM)
    outputs = forward(packed, src, trg, tf_use)
    jax.block_until_ready(outputs)

    assert outputs.shape == (TRG_LEN, BATCH, OUTPUT_DIM)
    assert bool(jnp.all(outputs[0] == 0.0))
    assert bool(jnp.all(jnp.isfinite(outputs)))

    ref = reference_forward(packed, src, trg, tf_use, OUTPUT_DIM)
    max_err = float(jnp.max(jnp.abs(outputs - ref)))
    assert bool(jnp.allclose(outputs, ref, atol=2e-3, rtol=2e-3)), max_err

    print("KERNEL_OK")
</pallas_src>

<mosaic_0001>
module attributes {stable_mosaic.version = 11 : i64} {
  func.func @_seq2seq_kernel(%arg0: i32, %arg1: memref<7xi32, #tpu.memory_space<smem>>, %arg2: memref<8x8x128xbf16, #tpu.memory_space<vmem>>, %arg3: memref<7x8x128xbf16, #tpu.memory_space<vmem>>, %arg4: memref<128x128xbf16, #tpu.memory_space<vmem>>, %arg5: memref<256x512xbf16, #tpu.memory_space<vmem>>, %arg6: memref<1x512xf32, #tpu.memory_space<vmem>>, %arg7: memref<256x512xbf16, #tpu.memory_space<vmem>>, %arg8: memref<1x512xf32, #tpu.memory_space<vmem>>, %arg9: memref<128x128xbf16, #tpu.memory_space<vmem>>, %arg10: memref<1x128xf32, #tpu.memory_space<vmem>>, %arg11: memref<8x8x128xf32, #tpu.memory_space<vmem>>, %arg12: memref<8x256xbf16, #tpu.memory_space<vmem>>, %arg13: memref<8x128xf32, #tpu.memory_space<vmem>>) attributes {dimension_semantics = [#tpu.dimension_semantics<arbitrary>], iteration_bounds = array<i64: 1>, scalar_prefetch = 1 : i64, scratch_operands = 2 : i64, tpu.core_type = #tpu.core_type<tc>, window_params = [{pipeline_mode = #tpu.pipeline_mode<synchronous>, transform_indices = @transform_0, window_bounds = array<i64: 8, 8, 128>}, {pipeline_mode = #tpu.pipeline_mode<synchronous>, transform_indices = @transform_1, window_bounds = array<i64: 7, 8, 128>}, {pipeline_mode = #tpu.pipeline_mode<synchronous>, transform_indices = @transform_2, window_bounds = array<i64: 128, 128>}, {pipeline_mode = #tpu.pipeline_mode<synchronous>, transform_indices = @transform_3, window_bounds = array<i64: 256, 512>}, {pipeline_mode = #tpu.pipeline_mode<synchronous>, transform_indices = @transform_4, window_bounds = array<i64: 1, 512>}, {pipeline_mode = #tpu.pipeline_mode<synchronous>, transform_indices = @transform_5, window_bounds = array<i64: 256, 512>}, {pipeline_mode = #tpu.pipeline_mode<synchronous>, transform_indices = @transform_6, window_bounds = array<i64: 1, 512>}, {pipeline_mode = #tpu.pipeline_mode<synchronous>, transform_indices = @transform_7, window_bounds = array<i64: 128, 128>}, {pipeline_mode = #tpu.pipeline_mode<synchronous>, transform_indices = @transform_8, window_bounds = array<i64: 1, 128>}, {pipeline_mode = #tpu.pipeline_mode<synchronous>, transform_indices = @transform_9, window_bounds = array<i64: 8, 8, 128>}]} {
    %0 = tpu.iota {dimensions = array<i32: 1>} : vector<8x128xi32>
    %1 = arith.sitofp %0 : vector<8x128xi32> to vector<8x128xf32>
    %c16_i32 = arith.constant 16 : i32
    %2 = vector.broadcast %c16_i32 : i32 to vector<8x128xi32>
    %3 = arith.cmpi slt, %0, %2 : vector<8x128xi32>
    %cst = arith.constant 0.000000e+00 : bf16
    %4 = vector.broadcast %cst : bf16 to vector<8x256xbf16>
    %c0 = arith.constant 0 : index
    %c0_0 = arith.constant 0 : index
    %5 = vector.load %arg12[%c0, %c0_0] : memref<8x256xbf16, #tpu.memory_space<vmem>>, vector<8x256xbf16>
    tpu.vector_store %arg12[%c0, %c0_0], %4 {strides = array<i32>} : memref<8x256xbf16, #tpu.memory_space<vmem>>, vector<8x256xbf16>,
    %cst_1 = arith.constant 0.000000e+00 : f32
    %6 = vector.broadcast %cst_1 : f32 to vector<8x128xf32>
    %c0_2 = arith.constant 0 : index
    %c0_3 = arith.constant 0 : index
    %7 = vector.load %arg13[%c0_2, %c0_3] : memref<8x128xf32, #tpu.memory_space<vmem>>, vector<8x128xf32>
    tpu.vector_store %arg13[%c0_2, %c0_3], %6 {strides = array<i32>} : memref<8x128xf32, #tpu.memory_space<vmem>>, vector<8x128xf32>,
    %cst_4 = arith.constant 0.000000e+00 : f32
    %8 = vector.broadcast %cst_4 : f32 to vector<8x128xf32>
    %c0_5 = arith.constant 0 : index
    %c0_6 = arith.constant 0 : index
    %c0_7 = arith.constant 0 : index
    %9 = vector.load %arg11[%c0_5, %c0_6, %c0_7] : memref<8x8x128xf32, #tpu.memory_space<vmem>>, vector<1x8x128xf32>
    %10 = vector.shape_cast %9 : vector<1x8x128xf32> to vector<8x128xf32>
    %11 = vector.shape_cast %8 : vector<8x128xf32> to vector<1x8x128xf32>
    tpu.vector_store %arg11[%c0_5, %c0_6, %c0_7], %11 {strides = array<i32>} : memref<8x8x128xf32, #tpu.memory_space<vmem>>, vector<1x8x128xf32>,
    %c0_i32 = arith.constant 0 : i32
    %12 = arith.index_cast %c0_i32 : i32 to index
    %c0_8 = arith.constant 0 : index
    %c0_9 = arith.constant 0 : index
    %13 = vector.load %arg2[%12, %c0_8, %c0_9] : memref<8x8x128xbf16, #tpu.memory_space<vmem>>, vector<1x8x128xbf16>
    %14 = vector.shape_cast %13 : vector<1x8x128xbf16> to vector<8x128xbf16>
    %c0_10 = arith.constant 0 : index
    %c0_11 = arith.constant 0 : index
    %15 = vector.load %arg12[%c0_10, %c0_11] : memref<8x256xbf16, #tpu.memory_space<vmem>>, vector<8x128xbf16>
    tpu.vector_store %arg12[%c0_10, %c0_11], %14 {strides = array<i32>} : memref<8x256xbf16, #tpu.memory_space<vmem>>, vector<8x128xbf16>,
    %c0_12 = arith.constant 0 : index
    %c0_13 = arith.constant 0 : index
    %16 = vector.load %arg12[%c0_12, %c0_13] : memref<8x256xbf16, #tpu.memory_space<vmem>>, vector<8x256xbf16>
    %c0_14 = arith.constant 0 : index
    %c0_15 = arith.constant 0 : index
    %17 = vector.load %arg13[%c0_14, %c0_15] : memref<8x128xf32, #tpu.memory_space<vmem>>, vector<8x128xf32>
    %c0_16 = arith.constant 0 : index
    %c0_17 = arith.constant 0 : index
    %18 = vector.load %arg5[%c0_16, %c0_17] : memref<256x512xbf16, #tpu.memory_space<vmem>>, vector<256x512xbf16>
    %c0_18 = arith.constant 0 : index
    %c0_19 = arith.constant 0 : index
    %19 = vector.load %arg6[%c0_18, %c0_19] : memref<1x512xf32, #tpu.memory_space<vmem>>, vector<1x512xf32>
    %cst_20 = arith.constant dense<0.000000e+00> : vector<8x512xf32>
    %20 = tpu.matmul %16, %18, %cst_20 {dimension_numbers = #tpu.dot_dimension_numbers<[1], [0], [0], [1], [0, 0, 1, 1], [], []>} : vector<8x256xbf16>, vector<256x512xbf16>, vector<8x512xf32> -> vector<8x512xf32>
    %21 = vector.broadcast %19 : vector<1x512xf32> to vector<8x512xf32>
    %22 = arith.addf %20, %21 : vector<8x512xf32>
    %23 = vector.extract_strided_slice %22 {offsets = [0, 0], sizes = [8, 128], strides = [1, 1]} : vector<8x512xf32> to vector<8x128xf32>
    %cst_21 = arith.constant 5.000000e-01 : f32
    %24 = vector.broadcast %cst_21 : f32 to vector<8x128xf32>
    %25 = arith.mulf %24, %23 : vector<8x128xf32>
    %26 = math.tanh %25 : vector<8x128xf32>
    %cst_22 = arith.constant 1.000000e+00 : f32
    %27 = vector.broadcast %cst_22 : f32 to vector<8x128xf32>
    %28 = arith.addf %26, %27 : vector<8x128xf32>
    %cst_23 = arith.constant 5.000000e-01 : f32
    %29 = vector.broadcast %cst_23 : f32 to vector<8x128xf32>
    %30 = arith.mulf %29, %28 : vector<8x128xf32>
    %31 = vector.extract_strided_slice %22 {offsets = [0, 128], sizes = [8, 128], strides = [1, 1]} : vector<8x512xf32> to vector<8x128xf32>
    %cst_24 = arith.constant 5.000000e-01 : f32
    %32 = vector.broadcast %cst_24 : f32 to vector<8x128xf32>
    %33 = arith.mulf %32, %31 : vector<8x128xf32>
    %34 = math.tanh %33 : vector<8x128xf32>
    %cst_25 = arith.constant 1.000000e+00 : f32
    %35 = vector.broadcast %cst_25 : f32 to vector<8x128xf32>
    %36 = arith.addf %34, %35 : vector<8x128xf32>
    %cst_26 = arith.constant 5.000000e-01 : f32
    %37 = vector.broadcast %cst_26 : f32 to vector<8x128xf32>
    %38 = arith.mulf %37, %36 : vector<8x128xf32>
    %39 = vector.extract_strided_slice %22 {offsets = [0, 256], sizes = [8, 128], strides = [1, 1]} : vector<8x512xf32> to vector<8x128xf32>
    %40 = math.tanh %39 : vector<8x128xf32>
    %41 = vector.extract_strided_slice %22 {offsets = [0, 384], sizes = [8, 128], strides = [1, 1]} : vector<8x512xf32> to vector<8x128xf32>
    %cst_27 = arith.constant 5.000000e-01 : f32
    %42 = vector.broadcast %cst_27 : f32 to vector<8x128xf32>
    %43 = arith.mulf %42, %41 : vector<8x128xf32>
    %44 = math.tanh %43 : vector<8x128xf32>
    %cst_28 = arith.constant 1.000000e+00 : f32
    %45 = vector.broadcast %cst_28 : f32 to vector<8x128xf32>
    %46 = arith.addf %44, %45 : vector<8x128xf32>
    %cst_29 = arith.constant 5.000000e-01 : f32
    %47 = vector.broadcast %cst_29 : f32 to vector<8x128xf32>
    %48 = arith.mulf %47, %46 : vector<8x128xf32>
    %49 = arith.mulf %38, %17 : vector<8x128xf32>
    %50 = arith.mulf %30, %40 : vector<8x128xf32>
    %51 = arith.addf %49, %50 : vector<8x128xf32>
    %52 = math.tanh %51 : vector<8x128xf32>
    %53 = arith.mulf %48, %52 : vector<8x128xf32>
    %54 = arith.truncf %53 : vector<8x128xf32> to vector<8x128xbf16>
    %c0_30 = arith.constant 0 : index
    %c128 = arith.constant 128 : index
    %55 = vector.load %arg12[%c0_30, %c128] : memref<8x256xbf16, #tpu.memory_space<vmem>>, vector<8x128xbf16>
    tpu.vector_store %arg12[%c0_30, %c128], %54 {strides = array<i32>} : memref<8x256xbf16, #tpu.memory_space<vmem>>, vector<8x128xbf16>,
    %c0_31 = arith.constant 0 : index
    %c0_32 = arith.constant 0 : index
    %56 = vector.load %arg13[%c0_31, %c0_32] : memref<8x128xf32, #tpu.memory_space<vmem>>, vector<8x128xf32>
    tpu.vector_store %arg13[%c0_31, %c0_32], %51 {strides = array<i32>} : memref<8x128xf32, #tpu.memory_space<vmem>>, vector<8x128xf32>,
    %c1_i32 = arith.constant 1 : i32
    %57 = arith.index_cast %c1_i32 : i32 to index
    %c0_33 = arith.constant 0 : index
    %c0_34 = arith.constant 0 : index
    %58 = vector.load %arg2[%57, %c0_33, %c0_34] : memref<8x8x128xbf16, #tpu.memory_space<vmem>>, vector<1x8x128xbf16>
    %59 = vector.shape_cast %58 : vector<1x8x128xbf16> to vector<8x128xbf16>
    %c0_35 = arith.constant 0 : index
    %c0_36 = arith.constant 0 : index
    %60 = vector.load %arg12[%c0_35, %c0_36] : memref<8x256xbf16, #tpu.memory_space<vmem>>, vector<8x128xbf16>
    tpu.vector_store %arg12[%c0_35, %c0_36], %59 {strides = array<i32>} : memref<8x256xbf16, #tpu.memory_space<vmem>>, vector<8x128xbf16>,
    %c0_37 = arith.constant 0 : index
    %c0_38 = arith.constant 0 : index
    %61 = vector.load %arg12[%c0_37, %c0_38] : memref<8x256xbf16, #tpu.memory_space<vmem>>, vector<8x256xbf16>
    %c0_39 = arith.constant 0 : index
    %c0_40 = arith.constant 0 : index
    %62 = vector.load %arg13[%c0_39, %c0_40] : memref<8x128xf32, #tpu.memory_space<vmem>>, vector<8x128xf32>
    %c0_41 = arith.constant 0 : index
    %c0_42 = arith.constant 0 : index
    %63 = vector.load %arg5[%c0_41, %c0_42] : memref<256x512xbf16, #tpu.memory_space<vmem>>, vector<256x512xbf16>
    %c0_43 = arith.constant 0 : index
    %c0_44 = arith.constant 0 : index
    %64 = vector.load %arg6[%c0_43, %c0_44] : memref<1x512xf32, #tpu.memory_space<vmem>>, vector<1x512xf32>
    %cst_45 = arith.constant dense<0.000000e+00> : vector<8x512xf32>
    %65 = tpu.matmul %61, %63, %cst_45 {dimension_numbers = #tpu.dot_dimension_numbers<[1], [0], [0], [1], [0, 0, 1, 1], [], []>} : vector<8x256xbf16>, vector<256x512xbf16>, vector<8x512xf32> -> vector<8x512xf32>
    %66 = vector.broadcast %64 : vector<1x512xf32> to vector<8x512xf32>
    %67 = arith.addf %65, %66 : vector<8x512xf32>
    %68 = vector.extract_strided_slice %67 {offsets = [0, 0], sizes = [8, 128], strides = [1, 1]} : vector<8x512xf32> to vector<8x128xf32>
    %cst_46 = arith.constant 5.000000e-01 : f32
    %69 = vector.broadcast %cst_46 : f32 to vector<8x128xf32>
    %70 = arith.mulf %69, %68 : vector<8x128xf32>
    %71 = math.tanh %70 : vector<8x128xf32>
    %cst_47 = arith.constant 1.000000e+00 : f32
    %72 = vector.broadcast %cst_47 : f32 to vector<8x128xf32>
    %73 = arith.addf %71, %72 : vector<8x128xf32>
    %cst_48 = arith.constant 5.000000e-01 : f32
    %74 = vector.broadcast %cst_48 : f32 to vector<8x128xf32>
    %75 = arith.mulf %74, %73 : vector<8x128xf32>
    %76 = vector.extract_strided_slice %67 {offsets = [0, 128], sizes = [8, 128], strides = [1, 1]} : vector<8x512xf32> to vector<8x128xf32>
    %cst_49 = arith.constant 5.000000e-01 : f32
    %77 = vector.broadcast %cst_49 : f32 to vector<8x128xf32>
    %78 = arith.mulf %77, %76 : vector<8x128xf32>
    %79 = math.tanh %78 : vector<8x128xf32>
    %cst_50 = arith.constant 1.000000e+00 : f32
    %80 = vector.broadcast %cst_50 : f32 to vector<8x128xf32>
    %81 = arith.addf %79, %80 : vector<8x128xf32>
    %cst_51 = arith.constant 5.000000e-01 : f32
    %82 = vector.broadcast %cst_51 : f32 to vector<8x128xf32>
    %83 = arith.mulf %82, %81 : vector<8x128xf32>
    %84 = vector.extract_strided_slice %67 {offsets = [0, 256], sizes = [8, 128], strides = [1, 1]} : vector<8x512xf32> to vector<8x128xf32>
    %85 = math.tanh %84 : vector<8x128xf32>
    %86 = vector.extract_strided_slice %67 {offsets = [0, 384], sizes = [8, 128], strides = [1, 1]} : vector<8x512xf32> to vector<8x128xf32>
    %cst_52 = arith.constant 5.000000e-01 : f32
    %87 = vector.broadcast %cst_52 : f32 to vector<8x128xf32>
    %88 = arith.mulf %87, %86 : vector<8x128xf32>
    %89 = math.tanh %88 : vector<8x128xf32>
    %cst_53 = arith.constant 1.000000e+00 : f32
    %90 = vector.broadcast %cst_53 : f32 to vector<8x128xf32>
    %91 = arith.addf %89, %90 : vector<8x128xf32>
    %cst_54 = arith.constant 5.000000e-01 : f32
    %92 = vector.broadcast %cst_54 : f32 to vector<8x128xf32>
    %93 = arith.mulf %92, %91 : vector<8x128xf32>
    %94 = arith.mulf %83, %62 : vector<8x128xf32>
    %95 = arith.mulf %75, %85 : vector<8x128xf32>
    %96 = arith.addf %94, %95 : vector<8x128xf32>
    %97 = math.tanh %96 : vector<8x128xf32>
    %98 = arith.mulf %93, %97 : vector<8x128xf32>
    %99 = arith.truncf %98 : vector<8x128xf32> to vector<8x128xbf16>
    %c0_55 = arith.constant 0 : index
    %c128_56 = arith.constant 128 : index
    %100 = vector.load %arg12[%c0_55, %c128_56] : memref<8x256xbf16, #tpu.memory_space<vmem>>, vector<8x128xbf16>
    tpu.vector_store %arg12[%c0_55, %c128_56], %99 {strides = array<i32>} : memref<8x256xbf16, #tpu.memory_space<vmem>>, vector<8x128xbf16>,
    %c0_57 = arith.constant 0 : index
    %c0_58 = arith.constant 0 : index
    %101 = vector.load %arg13[%c0_57, %c0_58] : memref<8x128xf32, #tpu.memory_space<vmem>>, vector<8x128xf32>
    tpu.vector_store %arg13[%c0_57, %c0_58], %96 {strides = array<i32>} : memref<8x128xf32, #tpu.memory_space<vmem>>, vector<8x128xf32>,
    %c2_i32 = arith.constant 2 : i32
    %102 = arith.index_cast %c2_i32 : i32 to index
    %c0_59 = arith.constant 0 : index
    %c0_60 = arith.constant 0 : index
    %103 = vector.load %arg2[%102, %c0_59, %c0_60] : memref<8x8x128xbf16, #tpu.memory_space<vmem>>, vector<1x8x128xbf16>
    %104 = vector.shape_cast %103 : vector<1x8x128xbf16> to vector<8x128xbf16>
    %c0_61 = arith.constant 0 : index
    %c0_62 = arith.constant 0 : index
    %105 = vector.load %arg12[%c0_61, %c0_62] : memref<8x256xbf16, #tpu.memory_space<vmem>>, vector<8x128xbf16>
    tpu.vector_store %arg12[%c0_61, %c0_62], %104 {strides = array<i32>} : memref<8x256xbf16, #tpu.memory_space<vmem>>, vector<8x128xbf16>,
    %c0_63 = arith.constant 0 : index
    %c0_64 = arith.constant 0 : index
    %106 = vector.load %arg12[%c0_63, %c0_64] : memref<8x256xbf16, #tpu.memory_space<vmem>>, vector<8x256xbf16>
    %c0_65 = arith.constant 0 : index
    %c0_66 = arith.constant 0 : index
    %107 = vector.load %arg13[%c0_65, %c0_66] : memref<8x128xf32, #tpu.memory_space<vmem>>, vector<8x128xf32>
    %c0_67 = arith.constant 0 : index
    %c0_68 = arith.constant 0 : index
    %108 = vector.load %arg5[%c0_67, %c0_68] : memref<256x512xbf16, #tpu.memory_space<vmem>>, vector<256x512xbf16>
    %c0_69 = arith.constant 0 : index
    %c0_70 = arith.constant 0 : index
    %109 = vector.load %arg6[%c0_69, %c0_70] : memref<1x512xf32, #tpu.memory_space<vmem>>, vector<1x512xf32>
    %cst_71 = arith.constant dense<0.000000e+00> : vector<8x512xf32>
    %110 = tpu.matmul %106, %108, %cst_71 {dimension_numbers = #tpu.dot_dimension_numbers<[1], [0], [0], [1], [0, 0, 1, 1], [], []>} : vector<8x256xbf16>, vector<256x512xbf16>, vector<8x512xf32> -> vector<8x512xf32>
    %111 = vector.broadcast %109 : vector<1x512xf32> to vector<8x512xf32>
    %112 = arith.addf %110, %111 : vector<8x512xf32>
    %113 = vector.extract_strided_slice %112 {offsets = [0, 0], sizes = [8, 128], strides = [1, 1]} : vector<8x512xf32> to vector<8x128xf32>
    %cst_72 = arith.constant 5.000000e-01 : f32
    %114 = vector.broadcast %cst_72 : f32 to vector<8x128xf32>
    %115 = arith.mulf %114, %113 : vector<8x128xf32>
    %116 = math.tanh %115 : vector<8x128xf32>
    %cst_73 = arith.constant 1.000000e+00 : f32
    %117 = vector.broadcast %cst_73 : f32 to vector<8x128xf32>
    %118 = arith.addf %116, %117 : vector<8x128xf32>
    %cst_74 = arith.constant 5.000000e-01 : f32
    %119 = vector.broadcast %cst_74 : f32 to vector<8x128xf32>
    %120 = arith.mulf %119, %118 : vector<8x128xf32>
    %121 = vector.extract_strided_slice %112 {offsets = [0, 128], sizes = [8, 128], strides = [1, 1]} : vector<8x512xf32> to vector<8x128xf32>
    %cst_75 = arith.constant 5.000000e-01 : f32
    %122 = vector.broadcast %cst_75 : f32 to vector<8x128xf32>
    %123 = arith.mulf %122, %121 : vector<8x128xf32>
    %124 = math.tanh %123 : vector<8x128xf32>
    %cst_76 = arith.constant 1.000000e+00 : f32
    %125 = vector.broadcast %cst_76 : f32 to vector<8x128xf32>
    %126 = arith.addf %124, %125 : vector<8x128xf32>
    %cst_77 = arith.constant 5.000000e-01 : f32
    %127 = vector.broadcast %cst_77 : f32 to vector<8x128xf32>
    %128 = arith.mulf %127, %126 : vector<8x128xf32>
    %129 = vector.extract_strided_slice %112 {offsets = [0, 256], sizes = [8, 128], strides = [1, 1]} : vector<8x512xf32> to vector<8x128xf32>
    %130 = math.tanh %129 : vector<8x128xf32>
    %131 = vector.extract_strided_slice %112 {offsets = [0, 384], sizes = [8, 128], strides = [1, 1]} : vector<8x512xf32> to vector<8x128xf32>
    %cst_78 = arith.constant 5.000000e-01 : f32
    %132 = vector.broadcast %cst_78 : f32 to vector<8x128xf32>
    %133 = arith.mulf %132, %131 : vector<8x128xf32>
    %134 = math.tanh %133 : vector<8x128xf32>
    %cst_79 = arith.constant 1.000000e+00 : f32
    %135 = vector.broadcast %cst_79 : f32 to vector<8x128xf32>
    %136 = arith.addf %134, %135 : vector<8x128xf32>
    %cst_80 = arith.constant 5.000000e-01 : f32
    %137 = vector.broadcast %cst_80 : f32 to vector<8x128xf32>
    %138 = arith.mulf %137, %136 : vector<8x128xf32>
    %139 = arith.mulf %128, %107 : vector<8x128xf32>
    %140 = arith.mulf %120, %130 : vector<8x128xf32>
    %141 = arith.addf %139, %140 : vector<8x128xf32>
    %142 = math.tanh %141 : vector<8x128xf32>
    %143 = arith.mulf %138, %142 : vector<8x128xf32>
    %144 = arith.truncf %143 : vector<8x128xf32> to vector<8x128xbf16>
    %c0_81 = arith.constant 0 : index
    %c128_82 = arith.constant 128 : index
    %145 = vector.load %arg12[%c0_81, %c128_82] : memref<8x256xbf16, #tpu.memory_space<vmem>>, vector<8x128xbf16>
    tpu.vector_store %arg12[%c0_81, %c128_82], %144 {strides = array<i32>} : memref<8x256xbf16, #tpu.memory_space<vmem>>, vector<8x128xbf16>,
    %c0_83 = arith.constant 0 : index
    %c0_84 = arith.constant 0 : index
    %146 = vector.load %arg13[%c0_83, %c0_84] : memref<8x128xf32, #tpu.memory_space<vmem>>, vector<8x128xf32>
    tpu.vector_store %arg13[%c0_83, %c0_84], %141 {strides = array<i32>} : memref<8x128xf32, #tpu.memory_space<vmem>>, vector<8x128xf32>,
    %c3_i32 = arith.constant 3 : i32
    %147 = arith.index_cast %c3_i32 : i32 to index
    %c0_85 = arith.constant 0 : index
    %c0_86 = arith.constant 0 : index
    %148 = vector.load %arg2[%147, %c0_85, %c0_86] : memref<8x8x128xbf16, #tpu.memory_space<vmem>>, vector<1x8x128xbf16>
    %149 = vector.shape_cast %148 : vector<1x8x128xbf16> to vector<8x128xbf16>
    %c0_87 = arith.constant 0 : index
    %c0_88 = arith.constant 0 : index
    %150 = vector.load %arg12[%c0_87, %c0_88] : memref<8x256xbf16, #tpu.memory_space<vmem>>, vector<8x128xbf16>
    tpu.vector_store %arg12[%c0_87, %c0_88], %149 {strides = array<i32>} : memref<8x256xbf16, #tpu.memory_space<vmem>>, vector<8x128xbf16>,
    %c0_89 = arith.constant 0 : index
    %c0_90 = arith.constant 0 : index
    %151 = vector.load %arg12[%c0_89, %c0_90] : memref<8x256xbf16, #tpu.memory_space<vmem>>, vector<8x256xbf16>
    %c0_91 = arith.constant 0 : index
    %c0_92 = arith.constant 0 : index
    %152 = vector.load %arg13[%c0_91, %c0_92] : memref<8x128xf32, #tpu.memory_space<vmem>>, vector<8x128xf32>
    %c0_93 = arith.constant 0 : index
    %c0_94 = arith.constant 0 : index
    %153 = vector.load %arg5[%c0_93, %c0_94] : memref<256x512xbf16, #tpu.memory_space<vmem>>, vector<256x512xbf16>
    %c0_95 = arith.constant 0 : index
    %c0_96 = arith.constant 0 : index
    %154 = vector.load %arg6[%c0_95, %c0_96] : memref<1x512xf32, #tpu.memory_space<vmem>>, vector<1x512xf32>
    %cst_97 = arith.constant dense<0.000000e+00> : vector<8x512xf32>
    %155 = tpu.matmul %151, %153, %cst_97 {dimension_numbers = #tpu.dot_dimension_numbers<[1], [0], [0], [1], [0, 0, 1, 1], [], []>} : vector<8x256xbf16>, vector<256x512xbf16>, vector<8x512xf32> -> vector<8x512xf32>
    %156 = vector.broadcast %154 : vector<1x512xf32> to vector<8x512xf32>
    %157 = arith.addf %155, %156 : vector<8x512xf32>
    %158 = vector.extract_strided_slice %157 {offsets = [0, 0], sizes = [8, 128], strides = [1, 1]} : vector<8x512xf32> to vector<8x128xf32>
    %cst_98 = arith.constant 5.000000e-01 : f32
    %159 = vector.broadcast %cst_98 : f32 to vector<8x128xf32>
    %160 = arith.mulf %159, %158 : vector<8x128xf32>
    %161 = math.tanh %160 : vector<8x128xf32>
    %cst_99 = arith.constant 1.000000e+00 : f32
    %162 = vector.broadcast %cst_99 : f32 to vector<8x128xf32>
    %163 = arith.addf %161, %162 : vector<8x128xf32>
    %cst_100 = arith.constant 5.000000e-01 : f32
    %164 = vector.broadcast %cst_100 : f32 to vector<8x128xf32>
    %165 = arith.mulf %164, %163 : vector<8x128xf32>
    %166 = vector.extract_strided_slice %157 {offsets = [0, 128], sizes = [8, 128], strides = [1, 1]} : vector<8x512xf32> to vector<8x128xf32>
    %cst_101 = arith.constant 5.000000e-01 : f32
    %167 = vector.broadcast %cst_101 : f32 to vector<8x128xf32>
    %168 = arith.mulf %167, %166 : vector<8x128xf32>
    %169 = math.tanh %168 : vector<8x128xf32>
    %cst_102 = arith.constant 1.000000e+00 : f32
    %170 = vector.broadcast %cst_102 : f32 to vector<8x128xf32>
    %171 = arith.addf %169, %170 : vector<8x128xf32>
    %cst_103 = arith.constant 5.000000e-01 : f32
    %172 = vector.broadcast %cst_103 : f32 to vector<8x128xf32>
    %173 = arith.mulf %172, %171 : vector<8x128xf32>
    %174 = vector.extract_strided_slice %157 {offsets = [0, 256], sizes = [8, 128], strides = [1, 1]} : vector<8x512xf32> to vector<8x128xf32>
    %175 = math.tanh %174 : vector<8x128xf32>
    %176 = vector.extract_strided_slice %157 {offsets = [0, 384], sizes = [8, 128], strides = [1, 1]} : vector<8x512xf32> to vector<8x128xf32>
    %cst_104 = arith.constant 5.000000e-01 : f32
    %177 = vector.broadcast %cst_104 : f32 to vector<8x128xf32>
    %178 = arith.mulf %177, %176 : vector<8x128xf32>
    %179 = math.tanh %178 : vector<8x128xf32>
    %cst_105 = arith.constant 1.000000e+00 : f32
    %180 = vector.broadcast %cst_105 : f32 to vector<8x128xf32>
    %181 = arith.addf %179, %180 : vector<8x128xf32>
    %cst_106 = arith.constant 5.000000e-01 : f32
    %182 = vector.broadcast %cst_106 : f32 to vector<8x128xf32>
    %183 = arith.mulf %182, %181 : vector<8x128xf32>
    %184 = arith.mulf %173, %152 : vector<8x128xf32>
    %185 = arith.mulf %165, %175 : vector<8x128xf32>
    %186 = arith.addf %184, %185 : vector<8x128xf32>
    %187 = math.tanh %186 : vector<8x128xf32>
    %188 = arith.mulf %183, %187 : vector<8x128xf32>
    %189 = arith.truncf %188 : vector<8x128xf32> to vector<8x128xbf16>
    %c0_107 = arith.constant 0 : index
    %c128_108 = arith.constant 128 : index
    %190 = vector.load %arg12[%c0_107, %c128_108] : memref<8x256xbf16, #tpu.memory_space<vmem>>, vector<8x128xbf16>
    tpu.vector_store %arg12[%c0_107, %c128_108], %189 {strides = array<i32>} : memref<8x256xbf16, #tpu.memory_space<vmem>>, vector<8x128xbf16>,
    %c0_109 = arith.constant 0 : index
    %c0_110 = arith.constant 0 : index
    %191 = vector.load %arg13[%c0_109, %c0_110] : memref<8x128xf32, #tpu.memory_space<vmem>>, vector<8x128xf32>
    tpu.vector_store %arg13[%c0_109, %c0_110], %186 {strides = array<i32>} : memref<8x128xf32, #tpu.memory_space<vmem>>, vector<8x128xf32>,
    %c4_i32 = arith.constant 4 : i32
    %192 = arith.index_cast %c4_i32 : i32 to index
    %c0_111 = arith.constant 0 : index
    %c0_112 = arith.constant 0 : index
    %193 = vector.load %arg2[%192, %c0_111, %c0_112] : memref<8x8x128xbf16, #tpu.memory_space<vmem>>, vector<1x8x128xbf16>
    %194 = vector.shape_cast %193 : vector<1x8x128xbf16> to vector<8x128xbf16>
    %c0_113 = arith.constant 0 : index
    %c0_114 = arith.constant 0 : index
    %195 = vector.load %arg12[%c0_113, %c0_114] : memref<8x256xbf16, #tpu.memory_space<vmem>>, vector<8x128xbf16>
    tpu.vector_store %arg12[%c0_113, %c0_114], %194 {strides = array<i32>} : memref<8x256xbf16, #tpu.memory_space<vmem>>, vector<8x128xbf16>,
    %c0_115 = arith.constant 0 : index
    %c0_116 = arith.constant 0 : index
    %196 = vector.load %arg12[%c0_115, %c0_116] : memref<8x256xbf16, #tpu.memory_space<vmem>>, vector<8x256xbf16>
    %c0_117 = arith.constant 0 : index
    %c0_118 = arith.constant 0 : index
    %197 = vector.load %arg13[%c0_117, %c0_118] : memref<8x128xf32, #tpu.memory_space<vmem>>, vector<8x128xf32>
    %c0_119 = arith.constant 0 : index
    %c0_120 = arith.constant 0 : index
    %198 = vector.load %arg5[%c0_119, %c0_120] : memref<256x512xbf16, #tpu.memory_space<vmem>>, vector<256x512xbf16>
    %c0_121 = arith.constant 0 : index
    %c0_122 = arith.constant 0 : index
    %199 = vector.load %arg6[%c0_121, %c0_122] : memref<1x512xf32, #tpu.memory_space<vmem>>, vector<1x512xf32>
    %cst_123 = arith.constant dense<0.000000e+00> : vector<8x512xf32>
    %200 = tpu.matmul %196, %198, %cst_123 {dimension_numbers = #tpu.dot_dimension_numbers<[1], [0], [0], [1], [0, 0, 1, 1], [], []>} : vector<8x256xbf16>, vector<256x512xbf16>, vector<8x512xf32> -> vector<8x512xf32>
    %201 = vector.broadcast %199 : vector<1x512xf32> to vector<8x512xf32>
    %202 = arith.addf %200, %201 : vector<8x512xf32>
    %203 = vector.extract_strided_slice %202 {offsets = [0, 0], sizes = [8, 128], strides = [1, 1]} : vector<8x512xf32> to vector<8x128xf32>
    %cst_124 = arith.constant 5.000000e-01 : f32
    %204 = vector.broadcast %cst_124 : f32 to vector<8x128xf32>
    %205 = arith.mulf %204, %203 : vector<8x128xf32>
    %206 = math.tanh %205 : vector<8x128xf32>
    %cst_125 = arith.constant 1.000000e+00 : f32
    %207 = vector.broadcast %cst_125 : f32 to vector<8x128xf32>
    %208 = arith.addf %206, %207 : vector<8x128xf32>
    %cst_126 = arith.constant 5.000000e-01 : f32
    %209 = vector.broadcast %cst_126 : f32 to vector<8x128xf32>
    %210 = arith.mulf %209, %208 : vector<8x128xf32>
    %211 = vector.extract_strided_slice %202 {offsets = [0, 128], sizes = [8, 128], strides = [1, 1]} : vector<8x512xf32> to vector<8x128xf32>
    %cst_127 = arith.constant 5.000000e-01 : f32
    %212 = vector.broadcast %cst_127 : f32 to vector<8x128xf32>
    %213 = arith.mulf %212, %211 : vector<8x128xf32>
    %214 = math.tanh %213 : vector<8x128xf32>
    %cst_128 = arith.constant 1.000000e+00 : f32
    %215 = vector.broadcast %cst_128 : f32 to vector<8x128xf32>
    %216 = arith.addf %214, %215 : vector<8x128xf32>
    %cst_129 = arith.constant 5.000000e-01 : f32
    %217 = vector.broadcast %cst_129 : f32 to vector<8x128xf32>
    %218 = arith.mulf %217, %216 : vector<8x128xf32>
    %219 = vector.extract_strided_slice %202 {offsets = [0, 256], sizes = [8, 128], strides = [1, 1]} : vector<8x512xf32> to vector<8x128xf32>
    %220 = math.tanh %219 : vector<8x128xf32>
    %221 = vector.extract_strided_slice %202 {offsets = [0, 384], sizes = [8, 128], strides = [1, 1]} : vector<8x512xf32> to vector<8x128xf32>
    %cst_130 = arith.constant 5.000000e-01 : f32
    %222 = vector.broadcast %cst_130 : f32 to vector<8x128xf32>
    %223 = arith.mulf %222, %221 : vector<8x128xf32>
    %224 = math.tanh %223 : vector<8x128xf32>
    %cst_131 = arith.constant 1.000000e+00 : f32
    %225 = vector.broadcast %cst_131 : f32 to vector<8x128xf32>
    %226 = arith.addf %224, %225 : vector<8x128xf32>
    %cst_132 = arith.constant 5.000000e-01 : f32
    %227 = vector.broadcast %cst_132 : f32 to vector<8x128xf32>
    %228 = arith.mulf %227, %226 : vector<8x128xf32>
    %229 = arith.mulf %218, %197 : vector<8x128xf32>
    %230 = arith.mulf %210, %220 : vector<8x128xf32>
    %231 = arith.addf %229, %230 : vector<8x128xf32>
    %232 = math.tanh %231 : vector<8x128xf32>
    %233 = arith.mulf %228, %232 : vector<8x128xf32>
    %234 = arith.truncf %233 : vector<8x128xf32> to vector<8x128xbf16>
    %c0_133 = arith.constant 0 : index
    %c128_134 = arith.constant 128 : index
    %235 = vector.load %arg12[%c0_133, %c128_134] : memref<8x256xbf16, #tpu.memory_space<vmem>>, vector<8x128xbf16>
    tpu.vector_store %arg12[%c0_133, %c128_134], %234 {strides = array<i32>} : memref<8x256xbf16, #tpu.memory_space<vmem>>, vector<8x128xbf16>,
    %c0_135 = arith.constant 0 : index
    %c0_136 = arith.constant 0 : index
    %236 = vector.load %arg13[%c0_135, %c0_136] : memref<8x128xf32, #tpu.memory_space<vmem>>, vector<8x128xf32>
    tpu.vector_store %arg13[%c0_135, %c0_136], %231 {strides = array<i32>} : memref<8x128xf32, #tpu.memory_space<vmem>>, vector<8x128xf32>,
    %c5_i32 = arith.constant 5 : i32
    %237 = arith.index_cast %c5_i32 : i32 to index
    %c0_137 = arith.constant 0 : index
    %c0_138 = arith.constant 0 : index
    %238 = vector.load %arg2[%237, %c0_137, %c0_138] : memref<8x8x128xbf16, #tpu.memory_space<vmem>>, vector<1x8x128xbf16>
    %239 = vector.shape_cast %238 : vector<1x8x128xbf16> to vector<8x128xbf16>
    %c0_139 = arith.constant 0 : index
    %c0_140 = arith.constant 0 : index
    %240 = vector.load %arg12[%c0_139, %c0_140] : memref<8x256xbf16, #tpu.memory_space<vmem>>, vector<8x128xbf16>
    tpu.vector_store %arg12[%c0_139, %c0_140], %239 {strides = array<i32>} : memref<8x256xbf16, #tpu.memory_space<vmem>>, vector<8x128xbf16>,
    %c0_141 = arith.constant 0 : index
    %c0_142 = arith.constant 0 : index
    %241 = vector.load %arg12[%c0_141, %c0_142] : memref<8x256xbf16, #tpu.memory_space<vmem>>, vector<8x256xbf16>
    %c0_143 = arith.constant 0 : index
    %c0_144 = arith.constant 0 : index
    %242 = vector.load %arg13[%c0_143, %c0_144] : memref<8x128xf32, #tpu.memory_space<vmem>>, vector<8x128xf32>
    %c0_145 = arith.constant 0 : index
    %c0_146 = arith.constant 0 : index
    %243 = vector.load %arg5[%c0_145, %c0_146] : memref<256x512xbf16, #tpu.memory_space<vmem>>, vector<256x512xbf16>
    %c0_147 = arith.constant 0 : index
    %c0_148 = arith.constant 0 : index
    %244 = vector.load %arg6[%c0_147, %c0_148] : memref<1x512xf32, #tpu.memory_space<vmem>>, vector<1x512xf32>
    %cst_149 = arith.constant dense<0.000000e+00> : vector<8x512xf32>
    %245 = tpu.matmul %241, %243, %cst_149 {dimension_numbers = #tpu.dot_dimension_numbers<[1], [0], [0], [1], [0, 0, 1, 1], [], []>} : vector<8x256xbf16>, vector<256x512xbf16>, vector<8x512xf32> -> vector<8x512xf32>
    %246 = vector.broadcast %244 : vector<1x512xf32> to vector<8x512xf32>
    %247 = arith.addf %245, %246 : vector<8x512xf32>
    %248 = vector.extract_strided_slice %247 {offsets = [0, 0], sizes = [8, 128], strides = [1, 1]} : vector<8x512xf32> to vector<8x128xf32>
    %cst_150 = arith.constant 5.000000e-01 : f32
    %249 = vector.broadcast %cst_150 : f32 to vector<8x128xf32>
    %250 = arith.mulf %249, %248 : vector<8x128xf32>
    %251 = math.tanh %250 : vector<8x128xf32>
    %cst_151 = arith.constant 1.000000e+00 : f32
    %252 = vector.broadcast %cst_151 : f32 to vector<8x128xf32>
    %253 = arith.addf %251, %252 : vector<8x128xf32>
    %cst_152 = arith.constant 5.000000e-01 : f32
    %254 = vector.broadcast %cst_152 : f32 to vector<8x128xf32>
    %255 = arith.mulf %254, %253 : vector<8x128xf32>
    %256 = vector.extract_strided_slice %247 {offsets = [0, 128], sizes = [8, 128], strides = [1, 1]} : vector<8x512xf32> to vector<8x128xf32>
    %cst_153 = arith.constant 5.000000e-01 : f32
    %257 = vector.broadcast %cst_153 : f32 to vector<8x128xf32>
    %258 = arith.mulf %257, %256 : vector<8x128xf32>
    %259 = math.tanh %258 : vector<8x128xf32>
    %cst_154 = arith.constant 1.000000e+00 : f32
    %260 = vector.broadcast %cst_154 : f32 to vector<8x128xf32>
    %261 = arith.addf %259, %260 : vector<8x128xf32>
    %cst_155 = arith.constant 5.000000e-01 : f32
    %262 = vector.broadcast %cst_155 : f32 to vector<8x128xf32>
    %263 = arith.mulf %262, %261 : vector<8x128xf32>
    %264 = vector.extract_strided_slice %247 {offsets = [0, 256], sizes = [8, 128], strides = [1, 1]} : vector<8x512xf32> to vector<8x128xf32>
    %265 = math.tanh %264 : vector<8x128xf32>
    %266 = vector.extract_strided_slice %247 {offsets = [0, 384], sizes = [8, 128], strides = [1, 1]} : vector<8x512xf32> to vector<8x128xf32>
    %cst_156 = arith.constant 5.000000e-01 : f32
    %267 = vector.broadcast %cst_156 : f32 to vector<8x128xf32>
    %268 = arith.mulf %267, %266 : vector<8x128xf32>
    %269 = math.tanh %268 : vector<8x128xf32>
    %cst_157 = arith.constant 1.000000e+00 : f32
    %270 = vector.broadcast %cst_157 : f32 to vector<8x128xf32>
    %271 = arith.addf %269, %270 : vector<8x128xf32>
    %cst_158 = arith.constant 5.000000e-01 : f32
    %272 = vector.broadcast %cst_158 : f32 to vector<8x128xf32>
    %273 = arith.mulf %272, %271 : vector<8x128xf32>
    %274 = arith.mulf %263, %242 : vector<8x128xf32>
    %275 = arith.mulf %255, %265 : vector<8x128xf32>
    %276 = arith.addf %274, %275 : vector<8x128xf32>
    %277 = math.tanh %276 : vector<8x128xf32>
    %278 = arith.mulf %273, %277 : vector<8x128xf32>
    %279 = arith.truncf %278 : vector<8x128xf32> to vector<8x128xbf16>
    %c0_159 = arith.constant 0 : index
    %c128_160 = arith.constant 128 : index
    %280 = vector.load %arg12[%c0_159, %c128_160] : memref<8x256xbf16, #tpu.memory_space<vmem>>, vector<8x128xbf16>
    tpu.vector_store %arg12[%c0_159, %c128_160], %279 {strides = array<i32>} : memref<8x256xbf16, #tpu.memory_space<vmem>>, vector<8x128xbf16>,
    %c0_161 = arith.constant 0 : index
    %c0_162 = arith.constant 0 : index
    %281 = vector.load %arg13[%c0_161, %c0_162] : memref<8x128xf32, #tpu.memory_space<vmem>>, vector<8x128xf32>
    tpu.vector_store %arg13[%c0_161, %c0_162], %276 {strides = array<i32>} : memref<8x128xf32, #tpu.memory_space<vmem>>, vector<8x128xf32>,
    %c6_i32 = arith.constant 6 : i32
    %282 = arith.index_cast %c6_i32 : i32 to index
    %c0_163 = arith.constant 0 : index
    %c0_164 = arith.constant 0 : index
    %283 = vector.load %arg2[%282, %c0_163, %c0_164] : memref<8x8x128xbf16, #tpu.memory_space<vmem>>, vector<1x8x128xbf16>
    %284 = vector.shape_cast %283 : vector<1x8x128xbf16> to vector<8x128xbf16>
    %c0_165 = arith.constant 0 : index
    %c0_166 = arith.constant 0 : index
    %285 = vector.load %arg12[%c0_165, %c0_166] : memref<8x256xbf16, #tpu.memory_space<vmem>>, vector<8x128xbf16>
    tpu.vector_store %arg12[%c0_165, %c0_166], %284 {strides = array<i32>} : memref<8x256xbf16, #tpu.memory_space<vmem>>, vector<8x128xbf16>,
    %c0_167 = arith.constant 0 : index
    %c0_168 = arith.constant 0 : index
    %286 = vector.load %arg12[%c0_167, %c0_168] : memref<8x256xbf16, #tpu.memory_space<vmem>>, vector<8x256xbf16>
    %c0_169 = arith.constant 0 : index
    %c0_170 = arith.constant 0 : index
    %287 = vector.load %arg13[%c0_169, %c0_170] : memref<8x128xf32, #tpu.memory_space<vmem>>, vector<8x128xf32>
    %c0_171 = arith.constant 0 : index
    %c0_172 = arith.constant 0 : index
    %288 = vector.load %arg5[%c0_171, %c0_172] : memref<256x512xbf16, #tpu.memory_space<vmem>>, vector<256x512xbf16>
    %c0_173 = arith.constant 0 : index
    %c0_174 = arith.constant 0 : index
    %289 = vector.load %arg6[%c0_173, %c0_174] : memref<1x512xf32, #tpu.memory_space<vmem>>, vector<1x512xf32>
    %cst_175 = arith.constant dense<0.000000e+00> : vector<8x512xf32>
    %290 = tpu.matmul %286, %288, %cst_175 {dimension_numbers = #tpu.dot_dimension_numbers<[1], [0], [0], [1], [0, 0, 1, 1], [], []>} : vector<8x256xbf16>, vector<256x512xbf16>, vector<8x512xf32> -> vector<8x512xf32>
    %291 = vector.broadcast %289 : vector<1x512xf32> to vector<8x512xf32>
    %292 = arith.addf %290, %291 : vector<8x512xf32>
    %293 = vector.extract_strided_slice %292 {offsets = [0, 0], sizes = [8, 128], strides = [1, 1]} : vector<8x512xf32> to vector<8x128xf32>
    %cst_176 = arith.constant 5.000000e-01 : f32
    %294 = vector.broadcast %cst_176 : f32 to vector<8x128xf32>
    %295 = arith.mulf %294, %293 : vector<8x128xf32>
    %296 = math.tanh %295 : vector<8x128xf32>
    %cst_177 = arith.constant 1.000000e+00 : f32
    %297 = vector.broadcast %cst_177 : f32 to vector<8x128xf32>
    %298 = arith.addf %296, %297 : vector<8x128xf32>
    %cst_178 = arith.constant 5.000000e-01 : f32
    %299 = vector.broadcast %cst_178 : f32 to vector<8x128xf32>
    %300 = arith.mulf %299, %298 : vector<8x128xf32>
    %301 = vector.extract_strided_slice %292 {offsets = [0, 128], sizes = [8, 128], strides = [1, 1]} : vector<8x512xf32> to vector<8x128xf32>
    %cst_179 = arith.constant 5.000000e-01 : f32
    %302 = vector.broadcast %cst_179 : f32 to vector<8x128xf32>
    %303 = arith.mulf %302, %301 : vector<8x128xf32>
    %304 = math.tanh %303 : vector<8x128xf32>
    %cst_180 = arith.constant 1.000000e+00 : f32
    %305 = vector.broadcast %cst_180 : f32 to vector<8x128xf32>
    %306 = arith.addf %304, %305 : vector<8x128xf32>
    %cst_181 = arith.constant 5.000000e-01 : f32
    %307 = vector.broadcast %cst_181 : f32 to vector<8x128xf32>
    %308 = arith.mulf %307, %306 : vector<8x128xf32>
    %309 = vector.extract_strided_slice %292 {offsets = [0, 256], sizes = [8, 128], strides = [1, 1]} : vector<8x512xf32> to vector<8x128xf32>
    %310 = math.tanh %309 : vector<8x128xf32>
    %311 = vector.extract_strided_slice %292 {offsets = [0, 384], sizes = [8, 128], strides = [1, 1]} : vector<8x512xf32> to vector<8x128xf32>
    %cst_182 = arith.constant 5.000000e-01 : f32
    %312 = vector.broadcast %cst_182 : f32 to vector<8x128xf32>
    %313 = arith.mulf %312, %311 : vector<8x128xf32>
    %314 = math.tanh %313 : vector<8x128xf32>
    %cst_183 = arith.constant 1.000000e+00 : f32
    %315 = vector.broadcast %cst_183 : f32 to vector<8x128xf32>
    %316 = arith.addf %314, %315 : vector<8x128xf32>
    %cst_184 = arith.constant 5.000000e-01 : f32
    %317 = vector.broadcast %cst_184 : f32 to vector<8x128xf32>
    %318 = arith.mulf %317, %316 : vector<8x128xf32>
    %319 = arith.mulf %308, %287 : vector<8x128xf32>
    %320 = arith.mulf %300, %310 : vector<8x128xf32>
    %321 = arith.addf %319, %320 : vector<8x128xf32>
    %322 = math.tanh %321 : vector<8x128xf32>
    %323 = arith.mulf %318, %322 : vector<8x128xf32>
    %324 = arith.truncf %323 : vector<8x128xf32> to vector<8x128xbf16>
    %c0_185 = arith.constant 0 : index
    %c128_186 = arith.constant 128 : index
    %325 = vector.load %arg12[%c0_185, %c128_186] : memref<8x256xbf16, #tpu.memory_space<vmem>>, vector<8x128xbf16>
    tpu.vector_store %arg12[%c0_185, %c128_186], %324 {strides = array<i32>} : memref<8x256xbf16, #tpu.memory_space<vmem>>, vector<8x128xbf16>,
    %c0_187 = arith.constant 0 : index
    %c0_188 = arith.constant 0 : index
    %326 = vector.load %arg13[%c0_187, %c0_188] : memref<8x128xf32, #tpu.memory_space<vmem>>, vector<8x128xf32>
    tpu.vector_store %arg13[%c0_187, %c0_188], %321 {strides = array<i32>} : memref<8x128xf32, #tpu.memory_space<vmem>>, vector<8x128xf32>,
    %c7_i32 = arith.constant 7 : i32
    %327 = arith.index_cast %c7_i32 : i32 to index
    %c0_189 = arith.constant 0 : index
    %c0_190 = arith.constant 0 : index
    %328 = vector.load %arg2[%327, %c0_189, %c0_190] : memref<8x8x128xbf16, #tpu.memory_space<vmem>>, vector<1x8x128xbf16>
    %329 = vector.shape_cast %328 : vector<1x8x128xbf16> to vector<8x128xbf16>
    %c0_191 = arith.constant 0 : index
    %c0_192 = arith.constant 0 : index
    %330 = vector.load %arg12[%c0_191, %c0_192] : memref<8x256xbf16, #tpu.memory_space<vmem>>, vector<8x128xbf16>
    tpu.vector_store %arg12[%c0_191, %c0_192], %329 {strides = array<i32>} : memref<8x256xbf16, #tpu.memory_space<vmem>>, vector<8x128xbf16>,
    %c0_193 = arith.constant 0 : index
    %c0_194 = arith.constant 0 : index
    %331 = vector.load %arg12[%c0_193, %c0_194] : memref<8x256xbf16, #tpu.memory_space<vmem>>, vector<8x256xbf16>
    %c0_195 = arith.constant 0 : index
    %c0_196 = arith.constant 0 : index
    %332 = vector.load %arg13[%c0_195, %c0_196] : memref<8x128xf32, #tpu.memory_space<vmem>>, vector<8x128xf32>
    %c0_197 = arith.constant 0 : index
    %c0_198 = arith.constant 0 : index
    %333 = vector.load %arg5[%c0_197, %c0_198] : memref<256x512xbf16, #tpu.memory_space<vmem>>, vector<256x512xbf16>
    %c0_199 = arith.constant 0 : index
    %c0_200 = arith.constant 0 : index
    %334 = vector.load %arg6[%c0_199, %c0_200] : memref<1x512xf32, #tpu.memory_space<vmem>>, vector<1x512xf32>
    %cst_201 = arith.constant dense<0.000000e+00> : vector<8x512xf32>
    %335 = tpu.matmul %331, %333, %cst_201 {dimension_numbers = #tpu.dot_dimension_numbers<[1], [0], [0], [1], [0, 0, 1, 1], [], []>} : vector<8x256xbf16>, vector<256x512xbf16>, vector<8x512xf32> -> vector<8x512xf32>
    %336 = vector.broadcast %334 : vector<1x512xf32> to vector<8x512xf32>
    %337 = arith.addf %335, %336 : vector<8x512xf32>
    %338 = vector.extract_strided_slice %337 {offsets = [0, 0], sizes = [8, 128], strides = [1, 1]} : vector<8x512xf32> to vector<8x128xf32>
    %cst_202 = arith.constant 5.000000e-01 : f32
    %339 = vector.broadcast %cst_202 : f32 to vector<8x128xf32>
    %340 = arith.mulf %339, %338 : vector<8x128xf32>
    %341 = math.tanh %340 : vector<8x128xf32>
    %cst_203 = arith.constant 1.000000e+00 : f32
    %342 = vector.broadcast %cst_203 : f32 to vector<8x128xf32>
    %343 = arith.addf %341, %342 : vector<8x128xf32>
    %cst_204 = arith.constant 5.000000e-01 : f32
    %344 = vector.broadcast %cst_204 : f32 to vector<8x128xf32>
    %345 = arith.mulf %344, %343 : vector<8x128xf32>
    %346 = vector.extract_strided_slice %337 {offsets = [0, 128], sizes = [8, 128], strides = [1, 1]} : vector<8x512xf32> to vector<8x128xf32>
    %cst_205 = arith.constant 5.000000e-01 : f32
    %347 = vector.broadcast %cst_205 : f32 to vector<8x128xf32>
    %348 = arith.mulf %347, %346 : vector<8x128xf32>
    %349 = math.tanh %348 : vector<8x128xf32>
    %cst_206 = arith.constant 1.000000e+00 : f32
    %350 = vector.broadcast %cst_206 : f32 to vector<8x128xf32>
    %351 = arith.addf %349, %350 : vector<8x128xf32>
    %cst_207 = arith.constant 5.000000e-01 : f32
    %352 = vector.broadcast %cst_207 : f32 to vector<8x128xf32>
    %353 = arith.mulf %352, %351 : vector<8x128xf32>
    %354 = vector.extract_strided_slice %337 {offsets = [0, 256], sizes = [8, 128], strides = [1, 1]} : vector<8x512xf32> to vector<8x128xf32>
    %355 = math.tanh %354 : vector<8x128xf32>
    %356 = vector.extract_strided_slice %337 {offsets = [0, 384], sizes = [8, 128], strides = [1, 1]} : vector<8x512xf32> to vector<8x128xf32>
    %cst_208 = arith.constant 5.000000e-01 : f32
    %357 = vector.broadcast %cst_208 : f32 to vector<8x128xf32>
    %358 = arith.mulf %357, %356 : vector<8x128xf32>
    %359 = math.tanh %358 : vector<8x128xf32>
    %cst_209 = arith.constant 1.000000e+00 : f32
    %360 = vector.broadcast %cst_209 : f32 to vector<8x128xf32>
    %361 = arith.addf %359, %360 : vector<8x128xf32>
    %cst_210 = arith.constant 5.000000e-01 : f32
    %362 = vector.broadcast %cst_210 : f32 to vector<8x128xf32>
    %363 = arith.mulf %362, %361 : vector<8x128xf32>
    %364 = arith.mulf %353, %332 : vector<8x128xf32>
    %365 = arith.mulf %345, %355 : vector<8x128xf32>
    %366 = arith.addf %364, %365 : vector<8x128xf32>
    %367 = math.tanh %366 : vector<8x128xf32>
    %368 = arith.mulf %363, %367 : vector<8x128xf32>
    %369 = arith.truncf %368 : vector<8x128xf32> to vector<8x128xbf16>
    %c0_211 = arith.constant 0 : index
    %c128_212 = arith.constant 128 : index
    %370 = vector.load %arg12[%c0_211, %c128_212] : memref<8x256xbf16, #tpu.memory_space<vmem>>, vector<8x128xbf16>
    tpu.vector_store %arg12[%c0_211, %c128_212], %369 {strides = array<i32>} : memref<8x256xbf16, #tpu.memory_space<vmem>>, vector<8x128xbf16>,
    %c0_213 = arith.constant 0 : index
    %c0_214 = arith.constant 0 : index
    %371 = vector.load %arg13[%c0_213, %c0_214] : memref<8x128xf32, #tpu.memory_space<vmem>>, vector<8x128xf32>
    tpu.vector_store %arg13[%c0_213, %c0_214], %366 {strides = array<i32>} : memref<8x128xf32, #tpu.memory_space<vmem>>, vector<8x128xf32>,
    %c8_i32 = arith.constant 8 : i32
    %c0_i32_215 = arith.constant 0 : i32
    %372 = arith.index_cast %c0_i32_215 : i32 to index
    %373 = memref.load %arg1[%372] : memref<7xi32, #tpu.memory_space<smem>>
    %c0_i32_216 = arith.constant 0 : i32
    %374 = arith.cmpi ne, %373, %c0_i32_216 : i32
    %375 = arith.extui %374 : i1 to i32
    %c0_i32_217 = arith.constant 0 : i32
    %376 = arith.cmpi ne, %375, %c0_i32_217 : i32
    scf.if %376 {
      %897 = arith.index_cast %c0_i32_215 : i32 to index
      %c0_510 = arith.constant 0 : index
      %c0_511 = arith.constant 0 : index
      %898 = vector.load %arg3[%897, %c0_510, %c0_511] : memref<7x8x128xbf16, #tpu.memory_space<vmem>>, vector<1x8x128xbf16>
      %899 = vector.shape_cast %898 : vector<1x8x128xbf16> to vector<8x128xbf16>
      %c0_512 = arith.constant 0 : index
      %c0_513 = arith.constant 0 : index
      %900 = vector.load %arg12[%c0_512, %c0_513] : memref<8x256xbf16, #tpu.memory_space<vmem>>, vector<8x128xbf16>
      tpu.vector_store %arg12[%c0_512, %c0_513], %899 {strides = array<i32>} : memref<8x256xbf16, #tpu.memory_space<vmem>>, vector<8x128xbf16>,
    } else {
    }
    %c0_218 = arith.constant 0 : index
    %c0_219 = arith.constant 0 : index
    %377 = vector.load %arg12[%c0_218, %c0_219] : memref<8x256xbf16, #tpu.memory_space<vmem>>, vector<8x256xbf16>
    %c0_220 = arith.constant 0 : index
    %c0_221 = arith.constant 0 : index
    %378 = vector.load %arg13[%c0_220, %c0_221] : memref<8x128xf32, #tpu.memory_space<vmem>>, vector<8x128xf32>
    %c0_222 = arith.constant 0 : index
    %c0_223 = arith.constant 0 : index
    %379 = vector.load %arg7[%c0_222, %c0_223] : memref<256x512xbf16, #tpu.memory_space<vmem>>, vector<256x512xbf16>
    %c0_224 = arith.constant 0 : index
    %c0_225 = arith.constant 0 : index
    %380 = vector.load %arg8[%c0_224, %c0_225] : memref<1x512xf32, #tpu.memory_space<vmem>>, vector<1x512xf32>
    %cst_226 = arith.constant dense<0.000000e+00> : vector<8x512xf32>
    %381 = tpu.matmul %377, %379, %cst_226 {dimension_numbers = #tpu.dot_dimension_numbers<[1], [0], [0], [1], [0, 0, 1, 1], [], []>} : vector<8x256xbf16>, vector<256x512xbf16>, vector<8x512xf32> -> vector<8x512xf32>
    %382 = vector.broadcast %380 : vector<1x512xf32> to vector<8x512xf32>
    %383 = arith.addf %381, %382 : vector<8x512xf32>
    %384 = vector.extract_strided_slice %383 {offsets = [0, 0], sizes = [8, 128], strides = [1, 1]} : vector<8x512xf32> to vector<8x128xf32>
    %cst_227 = arith.constant 5.000000e-01 : f32
    %385 = vector.broadcast %cst_227 : f32 to vector<8x128xf32>
    %386 = arith.mulf %385, %384 : vector<8x128xf32>
    %387 = math.tanh %386 : vector<8x128xf32>
    %cst_228 = arith.constant 1.000000e+00 : f32
    %388 = vector.broadcast %cst_228 : f32 to vector<8x128xf32>
    %389 = arith.addf %387, %388 : vector<8x128xf32>
    %cst_229 = arith.constant 5.000000e-01 : f32
    %390 = vector.broadcast %cst_229 : f32 to vector<8x128xf32>
    %391 = arith.mulf %390, %389 : vector<8x128xf32>
    %392 = vector.extract_strided_slice %383 {offsets = [0, 128], sizes = [8, 128], strides = [1, 1]} : vector<8x512xf32> to vector<8x128xf32>
    %cst_230 = arith.constant 5.000000e-01 : f32
    %393 = vector.broadcast %cst_230 : f32 to vector<8x128xf32>
    %394 = arith.mulf %393, %392 : vector<8x128xf32>
    %395 = math.tanh %394 : vector<8x128xf32>
    %cst_231 = arith.constant 1.000000e+00 : f32
    %396 = vector.broadcast %cst_231 : f32 to vector<8x128xf32>
    %397 = arith.addf %395, %396 : vector<8x128xf32>
    %cst_232 = arith.constant 5.000000e-01 : f32
    %398 = vector.broadcast %cst_232 : f32 to vector<8x128xf32>
    %399 = arith.mulf %398, %397 : vector<8x128xf32>
    %400 = vector.extract_strided_slice %383 {offsets = [0, 256], sizes = [8, 128], strides = [1, 1]} : vector<8x512xf32> to vector<8x128xf32>
    %401 = math.tanh %400 : vector<8x128xf32>
    %402 = vector.extract_strided_slice %383 {offsets = [0, 384], sizes = [8, 128], strides = [1, 1]} : vector<8x512xf32> to vector<8x128xf32>
    %cst_233 = arith.constant 5.000000e-01 : f32
    %403 = vector.broadcast %cst_233 : f32 to vector<8x128xf32>
    %404 = arith.mulf %403, %402 : vector<8x128xf32>
    %405 = math.tanh %404 : vector<8x128xf32>
    %cst_234 = arith.constant 1.000000e+00 : f32
    %406 = vector.broadcast %cst_234 : f32 to vector<8x128xf32>
    %407 = arith.addf %405, %406 : vector<8x128xf32>
    %cst_235 = arith.constant 5.000000e-01 : f32
    %408 = vector.broadcast %cst_235 : f32 to vector<8x128xf32>
    %409 = arith.mulf %408, %407 : vector<8x128xf32>
    %410 = arith.mulf %399, %378 : vector<8x128xf32>
    %411 = arith.mulf %391, %401 : vector<8x128xf32>
    %412 = arith.addf %410, %411 : vector<8x128xf32>
    %413 = math.tanh %412 : vector<8x128xf32>
    %414 = arith.mulf %409, %413 : vector<8x128xf32>
    %415 = arith.truncf %414 : vector<8x128xf32> to vector<8x128xbf16>
    %c0_236 = arith.constant 0 : index
    %c128_237 = arith.constant 128 : index
    %416 = vector.load %arg12[%c0_236, %c128_237] : memref<8x256xbf16, #tpu.memory_space<vmem>>, vector<8x128xbf16>
    tpu.vector_store %arg12[%c0_236, %c128_237], %415 {strides = array<i32>} : memref<8x256xbf16, #tpu.memory_space<vmem>>, vector<8x128xbf16>,
    %c0_238 = arith.constant 0 : index
    %c0_239 = arith.constant 0 : index
    %417 = vector.load %arg13[%c0_238, %c0_239] : memref<8x128xf32, #tpu.memory_space<vmem>>, vector<8x128xf32>
    tpu.vector_store %arg13[%c0_238, %c0_239], %412 {strides = array<i32>} : memref<8x128xf32, #tpu.memory_space<vmem>>, vector<8x128xf32>,
    %c0_240 = arith.constant 0 : index
    %c0_241 = arith.constant 0 : index
    %418 = vector.load %arg9[%c0_240, %c0_241] : memref<128x128xbf16, #tpu.memory_space<vmem>>, vector<128x128xbf16>
    %cst_242 = arith.constant dense<0.000000e+00> : vector<8x128xf32>
    %419 = tpu.matmul %415, %418, %cst_242 {dimension_numbers = #tpu.dot_dimension_numbers<[1], [0], [0], [1], [0, 0, 1, 1], [], []>} : vector<8x128xbf16>, vector<128x128xbf16>, vector<8x128xf32> -> vector<8x128xf32>
    %c0_243 = arith.constant 0 : index
    %c0_244 = arith.constant 0 : index
    %420 = vector.load %arg10[%c0_243, %c0_244] : memref<1x128xf32, #tpu.memory_space<vmem>>, vector<1x128xf32>
    %421 = vector.broadcast %420 : vector<1x128xf32> to vector<8x128xf32>
    %422 = arith.addf %419, %421 : vector<8x128xf32>
    %c1_i32_245 = arith.constant 1 : i32
    %423 = arith.addi %c0_i32_215, %c1_i32_245 : i32
    %424 = arith.index_cast %423 : i32 to index
    %c0_246 = arith.constant 0 : index
    %c0_247 = arith.constant 0 : index
    %425 = vector.load %arg11[%424, %c0_246, %c0_247] : memref<8x8x128xf32, #tpu.memory_space<vmem>>, vector<1x8x128xf32>
    %426 = vector.shape_cast %425 : vector<1x8x128xf32> to vector<8x128xf32>
    %427 = vector.shape_cast %422 : vector<8x128xf32> to vector<1x8x128xf32>
    tpu.vector_store %arg11[%424, %c0_246, %c0_247], %427 {strides = array<i32>} : memref<8x8x128xf32, #tpu.memory_space<vmem>>, vector<1x8x128xf32>,
    %cst_248 = arith.constant -3.000000e+38 : f32
    %428 = vector.broadcast %cst_248 : f32 to vector<8x128xf32>
    %429 = arith.select %3, %422, %428 : vector<8x128xi1>, vector<8x128xf32>
    %cst_249 = arith.constant dense<0xFF800000> : vector<8xf32>
    %430 = vector.multi_reduction <maximumf>, %429, %cst_249 [1] : vector<8x128xf32> to vector<8xf32>
    %431 = vector.shape_cast %430 : vector<8xf32> to vector<8x1xf32>
    %432 = vector.broadcast %431 : vector<8x1xf32> to vector<8x128xf32>
    %433 = arith.cmpf oeq, %429, %432 : vector<8x128xf32>
    %cst_250 = arith.constant 1.280000e+02 : f32
    %434 = vector.broadcast %cst_250 : f32 to vector<8x128xf32>
    %435 = arith.select %433, %1, %434 : vector<8x128xi1>, vector<8x128xf32>
    %cst_251 = arith.constant dense<0x7F800000> : vector<8xf32>
    %436 = vector.multi_reduction <minimumf>, %435, %cst_251 [1] : vector<8x128xf32> to vector<8xf32>
    %437 = vector.shape_cast %436 : vector<8xf32> to vector<8x1xf32>
    %438 = vector.broadcast %437 : vector<8x1xf32> to vector<8x128xf32>
    %439 = arith.cmpf oeq, %1, %438 : vector<8x128xf32>
    %440 = arith.extui %439 : vector<8x128xi1> to vector<8x128xi32>
    %441 = arith.sitofp %440 : vector<8x128xi32> to vector<8x128xf32>
    %442 = arith.truncf %441 : vector<8x128xf32> to vector<8x128xbf16>
    %c0_252 = arith.constant 0 : index
    %c0_253 = arith.constant 0 : index
    %443 = vector.load %arg4[%c0_252, %c0_253] : memref<128x128xbf16, #tpu.memory_space<vmem>>, vector<128x128xbf16>
    %cst_254 = arith.constant dense<0.000000e+00> : vector<8x128xf32>
    %444 = tpu.matmul %442, %443, %cst_254 {dimension_numbers = #tpu.dot_dimension_numbers<[1], [0], [0], [1], [0, 0, 1, 1], [], []>} : vector<8x128xbf16>, vector<128x128xbf16>, vector<8x128xf32> -> vector<8x128xf32>
    %445 = arith.truncf %444 : vector<8x128xf32> to vector<8x128xbf16>
    %c0_255 = arith.constant 0 : index
    %c0_256 = arith.constant 0 : index
    %446 = vector.load %arg12[%c0_255, %c0_256] : memref<8x256xbf16, #tpu.memory_space<vmem>>, vector<8x128xbf16>
    tpu.vector_store %arg12[%c0_255, %c0_256], %445 {strides = array<i32>} : memref<8x256xbf16, #tpu.memory_space<vmem>>, vector<8x128xbf16>,
    %c1_i32_257 = arith.constant 1 : i32
    %447 = arith.index_cast %c1_i32_257 : i32 to index
    %448 = memref.load %arg1[%447] : memref<7xi32, #tpu.memory_space<smem>>
    %c0_i32_258 = arith.constant 0 : i32
    %449 = arith.cmpi ne, %448, %c0_i32_258 : i32
    %450 = arith.extui %449 : i1 to i32
    %c0_i32_259 = arith.constant 0 : i32
    %451 = arith.cmpi ne, %450, %c0_i32_259 : i32
    scf.if %451 {
      %897 = arith.index_cast %c1_i32_257 : i32 to index
      %c0_510 = arith.constant 0 : index
      %c0_511 = arith.constant 0 : index
      %898 = vector.load %arg3[%897, %c0_510, %c0_511] : memref<7x8x128xbf16, #tpu.memory_space<vmem>>, vector<1x8x128xbf16>
      %899 = vector.shape_cast %898 : vector<1x8x128xbf16> to vector<8x128xbf16>
      %c0_512 = arith.constant 0 : index
      %c0_513 = arith.constant 0 : index
      %900 = vector.load %arg12[%c0_512, %c0_513] : memref<8x256xbf16, #tpu.memory_space<vmem>>, vector<8x128xbf16>
      tpu.vector_store %arg12[%c0_512, %c0_513], %899 {strides = array<i32>} : memref<8x256xbf16, #tpu.memory_space<vmem>>, vector<8x128xbf16>,
    } else {
    }
    %c0_260 = arith.constant 0 : index
    %c0_261 = arith.constant 0 : index
    %452 = vector.load %arg12[%c0_260, %c0_261] : memref<8x256xbf16, #tpu.memory_space<vmem>>, vector<8x256xbf16>
    %c0_262 = arith.constant 0 : index
    %c0_263 = arith.constant 0 : index
    %453 = vector.load %arg13[%c0_262, %c0_263] : memref<8x128xf32, #tpu.memory_space<vmem>>, vector<8x128xf32>
    %c0_264 = arith.constant 0 : index
    %c0_265 = arith.constant 0 : index
    %454 = vector.load %arg7[%c0_264, %c0_265] : memref<256x512xbf16, #tpu.memory_space<vmem>>, vector<256x512xbf16>
    %c0_266 = arith.constant 0 : index
    %c0_267 = arith.constant 0 : index
    %455 = vector.load %arg8[%c0_266, %c0_267] : memref<1x512xf32, #tpu.memory_space<vmem>>, vector<1x512xf32>
    %cst_268 = arith.constant dense<0.000000e+00> : vector<8x512xf32>
    %456 = tpu.matmul %452, %454, %cst_268 {dimension_numbers = #tpu.dot_dimension_numbers<[1], [0], [0], [1], [0, 0, 1, 1], [], []>} : vector<8x256xbf16>, vector<256x512xbf16>, vector<8x512xf32> -> vector<8x512xf32>
    %457 = vector.broadcast %455 : vector<1x512xf32> to vector<8x512xf32>
    %458 = arith.addf %456, %457 : vector<8x512xf32>
    %459 = vector.extract_strided_slice %458 {offsets = [0, 0], sizes = [8, 128], strides = [1, 1]} : vector<8x512xf32> to vector<8x128xf32>
    %cst_269 = arith.constant 5.000000e-01 : f32
    %460 = vector.broadcast %cst_269 : f32 to vector<8x128xf32>
    %461 = arith.mulf %460, %459 : vector<8x128xf32>
    %462 = math.tanh %461 : vector<8x128xf32>
    %cst_270 = arith.constant 1.000000e+00 : f32
    %463 = vector.broadcast %cst_270 : f32 to vector<8x128xf32>
    %464 = arith.addf %462, %463 : vector<8x128xf32>
    %cst_271 = arith.constant 5.000000e-01 : f32
    %465 = vector.broadcast %cst_271 : f32 to vector<8x128xf32>
    %466 = arith.mulf %465, %464 : vector<8x128xf32>
    %467 = vector.extract_strided_slice %458 {offsets = [0, 128], sizes = [8, 128], strides = [1, 1]} : vector<8x512xf32> to vector<8x128xf32>
    %cst_272 = arith.constant 5.000000e-01 : f32
    %468 = vector.broadcast %cst_272 : f32 to vector<8x128xf32>
    %469 = arith.mulf %468, %467 : vector<8x128xf32>
    %470 = math.tanh %469 : vector<8x128xf32>
    %cst_273 = arith.constant 1.000000e+00 : f32
    %471 = vector.broadcast %cst_273 : f32 to vector<8x128xf32>
    %472 = arith.addf %470, %471 : vector<8x128xf32>
    %cst_274 = arith.constant 5.000000e-01 : f32
    %473 = vector.broadcast %cst_274 : f32 to vector<8x128xf32>
    %474 = arith.mulf %473, %472 : vector<8x128xf32>
    %475 = vector.extract_strided_slice %458 {offsets = [0, 256], sizes = [8, 128], strides = [1, 1]} : vector<8x512xf32> to vector<8x128xf32>
    %476 = math.tanh %475 : vector<8x128xf32>
    %477 = vector.extract_strided_slice %458 {offsets = [0, 384], sizes = [8, 128], strides = [1, 1]} : vector<8x512xf32> to vector<8x128xf32>
    %cst_275 = arith.constant 5.000000e-01 : f32
    %478 = vector.broadcast %cst_275 : f32 to vector<8x128xf32>
    %479 = arith.mulf %478, %477 : vector<8x128xf32>
    %480 = math.tanh %479 : vector<8x128xf32>
    %cst_276 = arith.constant 1.000000e+00 : f32
    %481 = vector.broadcast %cst_276 : f32 to vector<8x128xf32>
    %482 = arith.addf %480, %481 : vector<8x128xf32>
    %cst_277 = arith.constant 5.000000e-01 : f32
    %483 = vector.broadcast %cst_277 : f32 to vector<8x128xf32>
    %484 = arith.mulf %483, %482 : vector<8x128xf32>
    %485 = arith.mulf %474, %453 : vector<8x128xf32>
    %486 = arith.mulf %466, %476 : vector<8x128xf32>
    %487 = arith.addf %485, %486 : vector<8x128xf32>
    %488 = math.tanh %487 : vector<8x128xf32>
    %489 = arith.mulf %484, %488 : vector<8x128xf32>
    %490 = arith.truncf %489 : vector<8x128xf32> to vector<8x128xbf16>
    %c0_278 = arith.constant 0 : index
    %c128_279 = arith.constant 128 : index
    %491 = vector.load %arg12[%c0_278, %c128_279] : memref<8x256xbf16, #tpu.memory_space<vmem>>, vector<8x128xbf16>
    tpu.vector_store %arg12[%c0_278, %c128_279], %490 {strides = array<i32>} : memref<8x256xbf16, #tpu.memory_space<vmem>>, vector<8x128xbf16>,
    %c0_280 = arith.constant 0 : index
    %c0_281 = arith.constant 0 : index
    %492 = vector.load %arg13[%c0_280, %c0_281] : memref<8x128xf32, #tpu.memory_space<vmem>>, vector<8x128xf32>
    tpu.vector_store %arg13[%c0_280, %c0_281], %487 {strides = array<i32>} : memref<8x128xf32, #tpu.memory_space<vmem>>, vector<8x128xf32>,
    %c0_282 = arith.constant 0 : index
    %c0_283 = arith.constant 0 : index
    %493 = vector.load %arg9[%c0_282, %c0_283] : memref<128x128xbf16, #tpu.memory_space<vmem>>, vector<128x128xbf16>
    %cst_284 = arith.constant dense<0.000000e+00> : vector<8x128xf32>
    %494 = tpu.matmul %490, %493, %cst_284 {dimension_numbers = #tpu.dot_dimension_numbers<[1], [0], [0], [1], [0, 0, 1, 1], [], []>} : vector<8x128xbf16>, vector<128x128xbf16>, vector<8x128xf32> -> vector<8x128xf32>
    %c0_285 = arith.constant 0 : index
    %c0_286 = arith.constant 0 : index
    %495 = vector.load %arg10[%c0_285, %c0_286] : memref<1x128xf32, #tpu.memory_space<vmem>>, vector<1x128xf32>
    %496 = vector.broadcast %495 : vector<1x128xf32> to vector<8x128xf32>
    %497 = arith.addf %494, %496 : vector<8x128xf32>
    %c1_i32_287 = arith.constant 1 : i32
    %498 = arith.addi %c1_i32_257, %c1_i32_287 : i32
    %499 = arith.index_cast %498 : i32 to index
    %c0_288 = arith.constant 0 : index
    %c0_289 = arith.constant 0 : index
    %500 = vector.load %arg11[%499, %c0_288, %c0_289] : memref<8x8x128xf32, #tpu.memory_space<vmem>>, vector<1x8x128xf32>
    %501 = vector.shape_cast %500 : vector<1x8x128xf32> to vector<8x128xf32>
    %502 = vector.shape_cast %497 : vector<8x128xf32> to vector<1x8x128xf32>
    tpu.vector_store %arg11[%499, %c0_288, %c0_289], %502 {strides = array<i32>} : memref<8x8x128xf32, #tpu.memory_space<vmem>>, vector<1x8x128xf32>,
    %cst_290 = arith.constant -3.000000e+38 : f32
    %503 = vector.broadcast %cst_290 : f32 to vector<8x128xf32>
    %504 = arith.select %3, %497, %503 : vector<8x128xi1>, vector<8x128xf32>
    %cst_291 = arith.constant dense<0xFF800000> : vector<8xf32>
    %505 = vector.multi_reduction <maximumf>, %504, %cst_291 [1] : vector<8x128xf32> to vector<8xf32>
    %506 = vector.shape_cast %505 : vector<8xf32> to vector<8x1xf32>
    %507 = vector.broadcast %506 : vector<8x1xf32> to vector<8x128xf32>
    %508 = arith.cmpf oeq, %504, %507 : vector<8x128xf32>
    %cst_292 = arith.constant 1.280000e+02 : f32
    %509 = vector.broadcast %cst_292 : f32 to vector<8x128xf32>
    %510 = arith.select %508, %1, %509 : vector<8x128xi1>, vector<8x128xf32>
    %cst_293 = arith.constant dense<0x7F800000> : vector<8xf32>
    %511 = vector.multi_reduction <minimumf>, %510, %cst_293 [1] : vector<8x128xf32> to vector<8xf32>
    %512 = vector.shape_cast %511 : vector<8xf32> to vector<8x1xf32>
    %513 = vector.broadcast %512 : vector<8x1xf32> to vector<8x128xf32>
    %514 = arith.cmpf oeq, %1, %513 : vector<8x128xf32>
    %515 = arith.extui %514 : vector<8x128xi1> to vector<8x128xi32>
    %516 = arith.sitofp %515 : vector<8x128xi32> to vector<8x128xf32>
    %517 = arith.truncf %516 : vector<8x128xf32> to vector<8x128xbf16>
    %c0_294 = arith.constant 0 : index
    %c0_295 = arith.constant 0 : index
    %518 = vector.load %arg4[%c0_294, %c0_295] : memref<128x128xbf16, #tpu.memory_space<vmem>>, vector<128x128xbf16>
    %cst_296 = arith.constant dense<0.000000e+00> : vector<8x128xf32>
    %519 = tpu.matmul %517, %518, %cst_296 {dimension_numbers = #tpu.dot_dimension_numbers<[1], [0], [0], [1], [0, 0, 1, 1], [], []>} : vector<8x128xbf16>, vector<128x128xbf16>, vector<8x128xf32> -> vector<8x128xf32>
    %520 = arith.truncf %519 : vector<8x128xf32> to vector<8x128xbf16>
    %c0_297 = arith.constant 0 : index
    %c0_298 = arith.constant 0 : index
    %521 = vector.load %arg12[%c0_297, %c0_298] : memref<8x256xbf16, #tpu.memory_space<vmem>>, vector<8x128xbf16>
    tpu.vector_store %arg12[%c0_297, %c0_298], %520 {strides = array<i32>} : memref<8x256xbf16, #tpu.memory_space<vmem>>, vector<8x128xbf16>,
    %c2_i32_299 = arith.constant 2 : i32
    %522 = arith.index_cast %c2_i32_299 : i32 to index
    %523 = memref.load %arg1[%522] : memref<7xi32, #tpu.memory_space<smem>>
    %c0_i32_300 = arith.constant 0 : i32
    %524 = arith.cmpi ne, %523, %c0_i32_300 : i32
    %525 = arith.extui %524 : i1 to i32
    %c0_i32_301 = arith.constant 0 : i32
    %526 = arith.cmpi ne, %525, %c0_i32_301 : i32
    scf.if %526 {
      %897 = arith.index_cast %c2_i32_299 : i32 to index
      %c0_510 = arith.constant 0 : index
      %c0_511 = arith.constant 0 : index
      %898 = vector.load %arg3[%897, %c0_510, %c0_511] : memref<7x8x128xbf16, #tpu.memory_space<vmem>>, vector<1x8x128xbf16>
      %899 = vector.shape_cast %898 : vector<1x8x128xbf16> to vector<8x128xbf16>
      %c0_512 = arith.constant 0 : index
      %c0_513 = arith.constant 0 : index
      %900 = vector.load %arg12[%c0_512, %c0_513] : memref<8x256xbf16, #tpu.memory_space<vmem>>, vector<8x128xbf16>
      tpu.vector_store %arg12[%c0_512, %c0_513], %899 {strides = array<i32>} : memref<8x256xbf16, #tpu.memory_space<vmem>>, vector<8x128xbf16>,
    } else {
    }
    %c0_302 = arith.constant 0 : index
    %c0_303 = arith.constant 0 : index
    %527 = vector.load %arg12[%c0_302, %c0_303] : memref<8x256xbf16, #tpu.memory_space<vmem>>, vector<8x256xbf16>
    %c0_304 = arith.constant 0 : index
    %c0_305 = arith.constant 0 : index
    %528 = vector.load %arg13[%c0_304, %c0_305] : memref<8x128xf32, #tpu.memory_space<vmem>>, vector<8x128xf32>
    %c0_306 = arith.constant 0 : index
    %c0_307 = arith.constant 0 : index
    %529 = vector.load %arg7[%c0_306, %c0_307] : memref<256x512xbf16, #tpu.memory_space<vmem>>, vector<256x512xbf16>
    %c0_308 = arith.constant 0 : index
    %c0_309 = arith.constant 0 : index
    %530 = vector.load %arg8[%c0_308, %c0_309] : memref<1x512xf32, #tpu.memory_space<vmem>>, vector<1x512xf32>
    %cst_310 = arith.constant dense<0.000000e+00> : vector<8x512xf32>
    %531 = tpu.matmul %527, %529, %cst_310 {dimension_numbers = #tpu.dot_dimension_numbers<[1], [0], [0], [1], [0, 0, 1, 1], [], []>} : vector<8x256xbf16>, vector<256x512xbf16>, vector<8x512xf32> -> vector<8x512xf32>
    %532 = vector.broadcast %530 : vector<1x512xf32> to vector<8x512xf32>
    %533 = arith.addf %531, %532 : vector<8x512xf32>
    %534 = vector.extract_strided_slice %533 {offsets = [0, 0], sizes = [8, 128], strides = [1, 1]} : vector<8x512xf32> to vector<8x128xf32>
    %cst_311 = arith.constant 5.000000e-01 : f32
    %535 = vector.broadcast %cst_311 : f32 to vector<8x128xf32>
    %536 = arith.mulf %535, %534 : vector<8x128xf32>
    %537 = math.tanh %536 : vector<8x128xf32>
    %cst_312 = arith.constant 1.000000e+00 : f32
    %538 = vector.broadcast %cst_312 : f32 to vector<8x128xf32>
    %539 = arith.addf %537, %538 : vector<8x128xf32>
    %cst_313 = arith.constant 5.000000e-01 : f32
    %540 = vector.broadcast %cst_313 : f32 to vector<8x128xf32>
    %541 = arith.mulf %540, %539 : vector<8x128xf32>
    %542 = vector.extract_strided_slice %533 {offsets = [0, 128], sizes = [8, 128], strides = [1, 1]} : vector<8x512xf32> to vector<8x128xf32>
    %cst_314 = arith.constant 5.000000e-01 : f32
    %543 = vector.broadcast %cst_314 : f32 to vector<8x128xf32>
    %544 = arith.mulf %543, %542 : vector<8x128xf32>
    %545 = math.tanh %544 : vector<8x128xf32>
    %cst_315 = arith.constant 1.000000e+00 : f32
    %546 = vector.broadcast %cst_315 : f32 to vector<8x128xf32>
    %547 = arith.addf %545, %546 : vector<8x128xf32>
    %cst_316 = arith.constant 5.000000e-01 : f32
    %548 = vector.broadcast %cst_316 : f32 to vector<8x128xf32>
    %549 = arith.mulf %548, %547 : vector<8x128xf32>
    %550 = vector.extract_strided_slice %533 {offsets = [0, 256], sizes = [8, 128], strides = [1, 1]} : vector<8x512xf32> to vector<8x128xf32>
    %551 = math.tanh %550 : vector<8x128xf32>
    %552 = vector.extract_strided_slice %533 {offsets = [0, 384], sizes = [8, 128], strides = [1, 1]} : vector<8x512xf32> to vector<8x128xf32>
    %cst_317 = arith.constant 5.000000e-01 : f32
    %553 = vector.broadcast %cst_317 : f32 to vector<8x128xf32>
    %554 = arith.mulf %553, %552 : vector<8x128xf32>
    %555 = math.tanh %554 : vector<8x128xf32>
    %cst_318 = arith.constant 1.000000e+00 : f32
    %556 = vector.broadcast %cst_318 : f32 to vector<8x128xf32>
    %557 = arith.addf %555, %556 : vector<8x128xf32>
    %cst_319 = arith.constant 5.000000e-01 : f32
    %558 = vector.broadcast %cst_319 : f32 to vector<8x128xf32>
    %559 = arith.mulf %558, %557 : vector<8x128xf32>
    %560 = arith.mulf %549, %528 : vector<8x128xf32>
    %561 = arith.mulf %541, %551 : vector<8x128xf32>
    %562 = arith.addf %560, %561 : vector<8x128xf32>
    %563 = math.tanh %562 : vector<8x128xf32>
    %564 = arith.mulf %559, %563 : vector<8x128xf32>
    %565 = arith.truncf %564 : vector<8x128xf32> to vector<8x128xbf16>
    %c0_320 = arith.constant 0 : index
    %c128_321 = arith.constant 128 : index
    %566 = vector.load %arg12[%c0_320, %c128_321] : memref<8x256xbf16, #tpu.memory_space<vmem>>, vector<8x128xbf16>
    tpu.vector_store %arg12[%c0_320, %c128_321], %565 {strides = array<i32>} : memref<8x256xbf16, #tpu.memory_space<vmem>>, vector<8x128xbf16>,
    %c0_322 = arith.constant 0 : index
    %c0_323 = arith.constant 0 : index
    %567 = vector.load %arg13[%c0_322, %c0_323] : memref<8x128xf32, #tpu.memory_space<vmem>>, vector<8x128xf32>
    tpu.vector_store %arg13[%c0_322, %c0_323], %562 {strides = array<i32>} : memref<8x128xf32, #tpu.memory_space<vmem>>, vector<8x128xf32>,
    %c0_324 = arith.constant 0 : index
    %c0_325 = arith.constant 0 : index
    %568 = vector.load %arg9[%c0_324, %c0_325] : memref<128x128xbf16, #tpu.memory_space<vmem>>, vector<128x128xbf16>
    %cst_326 = arith.constant dense<0.000000e+00> : vector<8x128xf32>
    %569 = tpu.matmul %565, %568, %cst_326 {dimension_numbers = #tpu.dot_dimension_numbers<[1], [0], [0], [1], [0, 0, 1, 1], [], []>} : vector<8x128xbf16>, vector<128x128xbf16>, vector<8x128xf32> -> vector<8x128xf32>
    %c0_327 = arith.constant 0 : index
    %c0_328 = arith.constant 0 : index
    %570 = vector.load %arg10[%c0_327, %c0_328] : memref<1x128xf32, #tpu.memory_space<vmem>>, vector<1x128xf32>
    %571 = vector.broadcast %570 : vector<1x128xf32> to vector<8x128xf32>
    %572 = arith.addf %569, %571 : vector<8x128xf32>
    %c1_i32_329 = arith.constant 1 : i32
    %573 = arith.addi %c2_i32_299, %c1_i32_329 : i32
    %574 = arith.index_cast %573 : i32 to index
    %c0_330 = arith.constant 0 : index
    %c0_331 = arith.constant 0 : index
    %575 = vector.load %arg11[%574, %c0_330, %c0_331] : memref<8x8x128xf32, #tpu.memory_space<vmem>>, vector<1x8x128xf32>
    %576 = vector.shape_cast %575 : vector<1x8x128xf32> to vector<8x128xf32>
    %577 = vector.shape_cast %572 : vector<8x128xf32> to vector<1x8x128xf32>
    tpu.vector_store %arg11[%574, %c0_330, %c0_331], %577 {strides = array<i32>} : memref<8x8x128xf32, #tpu.memory_space<vmem>>, vector<1x8x128xf32>,
    %cst_332 = arith.constant -3.000000e+38 : f32
    %578 = vector.broadcast %cst_332 : f32 to vector<8x128xf32>
    %579 = arith.select %3, %572, %578 : vector<8x128xi1>, vector<8x128xf32>
    %cst_333 = arith.constant dense<0xFF800000> : vector<8xf32>
    %580 = vector.multi_reduction <maximumf>, %579, %cst_333 [1] : vector<8x128xf32> to vector<8xf32>
    %581 = vector.shape_cast %580 : vector<8xf32> to vector<8x1xf32>
    %582 = vector.broadcast %581 : vector<8x1xf32> to vector<8x128xf32>
    %583 = arith.cmpf oeq, %579, %582 : vector<8x128xf32>
    %cst_334 = arith.constant 1.280000e+02 : f32
    %584 = vector.broadcast %cst_334 : f32 to vector<8x128xf32>
    %585 = arith.select %583, %1, %584 : vector<8x128xi1>, vector<8x128xf32>
    %cst_335 = arith.constant dense<0x7F800000> : vector<8xf32>
    %586 = vector.multi_reduction <minimumf>, %585, %cst_335 [1] : vector<8x128xf32> to vector<8xf32>
    %587 = vector.shape_cast %586 : vector<8xf32> to vector<8x1xf32>
    %588 = vector.broadcast %587 : vector<8x1xf32> to vector<8x128xf32>
    %589 = arith.cmpf oeq, %1, %588 : vector<8x128xf32>
    %590 = arith.extui %589 : vector<8x128xi1> to vector<8x128xi32>
    %591 = arith.sitofp %590 : vector<8x128xi32> to vector<8x128xf32>
    %592 = arith.truncf %591 : vector<8x128xf32> to vector<8x128xbf16>
    %c0_336 = arith.constant 0 : index
    %c0_337 = arith.constant 0 : index
    %593 = vector.load %arg4[%c0_336, %c0_337] : memref<128x128xbf16, #tpu.memory_space<vmem>>, vector<128x128xbf16>
    %cst_338 = arith.constant dense<0.000000e+00> : vector<8x128xf32>
    %594 = tpu.matmul %592, %593, %cst_338 {dimension_numbers = #tpu.dot_dimension_numbers<[1], [0], [0], [1], [0, 0, 1, 1], [], []>} : vector<8x128xbf16>, vector<128x128xbf16>, vector<8x128xf32> -> vector<8x128xf32>
    %595 = arith.truncf %594 : vector<8x128xf32> to vector<8x128xbf16>
    %c0_339 = arith.constant 0 : index
    %c0_340 = arith.constant 0 : index
    %596 = vector.load %arg12[%c0_339, %c0_340] : memref<8x256xbf16, #tpu.memory_space<vmem>>, vector<8x128xbf16>
    tpu.vector_store %arg12[%c0_339, %c0_340], %595 {strides = array<i32>} : memref<8x256xbf16, #tpu.memory_space<vmem>>, vector<8x128xbf16>,
    %c3_i32_341 = arith.constant 3 : i32
    %597 = arith.index_cast %c3_i32_341 : i32 to index
    %598 = memref.load %arg1[%597] : memref<7xi32, #tpu.memory_space<smem>>
    %c0_i32_342 = arith.constant 0 : i32
    %599 = arith.cmpi ne, %598, %c0_i32_342 : i32
    %600 = arith.extui %599 : i1 to i32
    %c0_i32_343 = arith.constant 0 : i32
    %601 = arith.cmpi ne, %600, %c0_i32_343 : i32
    scf.if %601 {
      %897 = arith.index_cast %c3_i32_341 : i32 to index
      %c0_510 = arith.constant 0 : index
      %c0_511 = arith.constant 0 : index
      %898 = vector.load %arg3[%897, %c0_510, %c0_511] : memref<7x8x128xbf16, #tpu.memory_space<vmem>>, vector<1x8x128xbf16>
      %899 = vector.shape_cast %898 : vector<1x8x128xbf16> to vector<8x128xbf16>
      %c0_512 = arith.constant 0 : index
      %c0_513 = arith.constant 0 : index
      %900 = vector.load %arg12[%c0_512, %c0_513] : memref<8x256xbf16, #tpu.memory_space<vmem>>, vector<8x128xbf16>
      tpu.vector_store %arg12[%c0_512, %c0_513], %899 {strides = array<i32>} : memref<8x256xbf16, #tpu.memory_space<vmem>>, vector<8x128xbf16>,
    } else {
    }
    %c0_344 = arith.constant 0 : index
    %c0_345 = arith.constant 0 : index
    %602 = vector.load %arg12[%c0_344, %c0_345] : memref<8x256xbf16, #tpu.memory_space<vmem>>, vector<8x256xbf16>
    %c0_346 = arith.constant 0 : index
    %c0_347 = arith.constant 0 : index
    %603 = vector.load %arg13[%c0_346, %c0_347] : memref<8x128xf32, #tpu.memory_space<vmem>>, vector<8x128xf32>
    %c0_348 = arith.constant 0 : index
    %c0_349 = arith.constant 0 : index
    %604 = vector.load %arg7[%c0_348, %c0_349] : memref<256x512xbf16, #tpu.memory_space<vmem>>, vector<256x512xbf16>
    %c0_350 = arith.constant 0 : index
    %c0_351 = arith.constant 0 : index
    %605 = vector.load %arg8[%c0_350, %c0_351] : memref<1x512xf32, #tpu.memory_space<vmem>>, vector<1x512xf32>
    %cst_352 = arith.constant dense<0.000000e+00> : vector<8x512xf32>
    %606 = tpu.matmul %602, %604, %cst_352 {dimension_numbers = #tpu.dot_dimension_numbers<[1], [0], [0], [1], [0, 0, 1, 1], [], []>} : vector<8x256xbf16>, vector<256x512xbf16>, vector<8x512xf32> -> vector<8x512xf32>
    %607 = vector.broadcast %605 : vector<1x512xf32> to vector<8x512xf32>
    %608 = arith.addf %606, %607 : vector<8x512xf32>
    %609 = vector.extract_strided_slice %608 {offsets = [0, 0], sizes = [8, 128], strides = [1, 1]} : vector<8x512xf32> to vector<8x128xf32>
    %cst_353 = arith.constant 5.000000e-01 : f32
    %610 = vector.broadcast %cst_353 : f32 to vector<8x128xf32>
    %611 = arith.mulf %610, %609 : vector<8x128xf32>
    %612 = math.tanh %611 : vector<8x128xf32>
    %cst_354 = arith.constant 1.000000e+00 : f32
    %613 = vector.broadcast %cst_354 : f32 to vector<8x128xf32>
    %614 = arith.addf %612, %613 : vector<8x128xf32>
    %cst_355 = arith.constant 5.000000e-01 : f32
    %615 = vector.broadcast %cst_355 : f32 to vector<8x128xf32>
    %616 = arith.mulf %615, %614 : vector<8x128xf32>
    %617 = vector.extract_strided_slice %608 {offsets = [0, 128], sizes = [8, 128], strides = [1, 1]} : vector<8x512xf32> to vector<8x128xf32>
    %cst_356 = arith.constant 5.000000e-01 : f32
    %618 = vector.broadcast %cst_356 : f32 to vector<8x128xf32>
    %619 = arith.mulf %618, %617 : vector<8x128xf32>
    %620 = math.tanh %619 : vector<8x128xf32>
    %cst_357 = arith.constant 1.000000e+00 : f32
    %621 = vector.broadcast %cst_357 : f32 to vector<8x128xf32>
    %622 = arith.addf %620, %621 : vector<8x128xf32>
    %cst_358 = arith.constant 5.000000e-01 : f32
    %623 = vector.broadcast %cst_358 : f32 to vector<8x128xf32>
    %624 = arith.mulf %623, %622 : vector<8x128xf32>
    %625 = vector.extract_strided_slice %608 {offsets = [0, 256], sizes = [8, 128], strides = [1, 1]} : vector<8x512xf32> to vector<8x128xf32>
    %626 = math.tanh %625 : vector<8x128xf32>
    %627 = vector.extract_strided_slice %608 {offsets = [0, 384], sizes = [8, 128], strides = [1, 1]} : vector<8x512xf32> to vector<8x128xf32>
    %cst_359 = arith.constant 5.000000e-01 : f32
    %628 = vector.broadcast %cst_359 : f32 to vector<8x128xf32>
    %629 = arith.mulf %628, %627 : vector<8x128xf32>
    %630 = math.tanh %629 : vector<8x128xf32>
    %cst_360 = arith.constant 1.000000e+00 : f32
    %631 = vector.broadcast %cst_360 : f32 to vector<8x128xf32>
    %632 = arith.addf %630, %631 : vector<8x128xf32>
    %cst_361 = arith.constant 5.000000e-01 : f32
    %633 = vector.broadcast %cst_361 : f32 to vector<8x128xf32>
    %634 = arith.mulf %633, %632 : vector<8x128xf32>
    %635 = arith.mulf %624, %603 : vector<8x128xf32>
    %636 = arith.mulf %616, %626 : vector<8x128xf32>
    %637 = arith.addf %635, %636 : vector<8x128xf32>
    %638 = math.tanh %637 : vector<8x128xf32>
    %639 = arith.mulf %634, %638 : vector<8x128xf32>
    %640 = arith.truncf %639 : vector<8x128xf32> to vector<8x128xbf16>
    %c0_362 = arith.constant 0 : index
    %c128_363 = arith.constant 128 : index
    %641 = vector.load %arg12[%c0_362, %c128_363] : memref<8x256xbf16, #tpu.memory_space<vmem>>, vector<8x128xbf16>
    tpu.vector_store %arg12[%c0_362, %c128_363], %640 {strides = array<i32>} : memref<8x256xbf16, #tpu.memory_space<vmem>>, vector<8x128xbf16>,
    %c0_364 = arith.constant 0 : index
    %c0_365 = arith.constant 0 : index
    %642 = vector.load %arg13[%c0_364, %c0_365] : memref<8x128xf32, #tpu.memory_space<vmem>>, vector<8x128xf32>
    tpu.vector_store %arg13[%c0_364, %c0_365], %637 {strides = array<i32>} : memref<8x128xf32, #tpu.memory_space<vmem>>, vector<8x128xf32>,
    %c0_366 = arith.constant 0 : index
    %c0_367 = arith.constant 0 : index
    %643 = vector.load %arg9[%c0_366, %c0_367] : memref<128x128xbf16, #tpu.memory_space<vmem>>, vector<128x128xbf16>
    %cst_368 = arith.constant dense<0.000000e+00> : vector<8x128xf32>
    %644 = tpu.matmul %640, %643, %cst_368 {dimension_numbers = #tpu.dot_dimension_numbers<[1], [0], [0], [1], [0, 0, 1, 1], [], []>} : vector<8x128xbf16>, vector<128x128xbf16>, vector<8x128xf32> -> vector<8x128xf32>
    %c0_369 = arith.constant 0 : index
    %c0_370 = arith.constant 0 : index
    %645 = vector.load %arg10[%c0_369, %c0_370] : memref<1x128xf32, #tpu.memory_space<vmem>>, vector<1x128xf32>
    %646 = vector.broadcast %645 : vector<1x128xf32> to vector<8x128xf32>
    %647 = arith.addf %644, %646 : vector<8x128xf32>
    %c1_i32_371 = arith.constant 1 : i32
    %648 = arith.addi %c3_i32_341, %c1_i32_371 : i32
    %649 = arith.index_cast %648 : i32 to index
    %c0_372 = arith.constant 0 : index
    %c0_373 = arith.constant 0 : index
    %650 = vector.load %arg11[%649, %c0_372, %c0_373] : memref<8x8x128xf32, #tpu.memory_space<vmem>>, vector<1x8x128xf32>
    %651 = vector.shape_cast %650 : vector<1x8x128xf32> to vector<8x128xf32>
    %652 = vector.shape_cast %647 : vector<8x128xf32> to vector<1x8x128xf32>
    tpu.vector_store %arg11[%649, %c0_372, %c0_373], %652 {strides = array<i32>} : memref<8x8x128xf32, #tpu.memory_space<vmem>>, vector<1x8x128xf32>,
    %cst_374 = arith.constant -3.000000e+38 : f32
    %653 = vector.broadcast %cst_374 : f32 to vector<8x128xf32>
    %654 = arith.select %3, %647, %653 : vector<8x128xi1>, vector<8x128xf32>
    %cst_375 = arith.constant dense<0xFF800000> : vector<8xf32>
    %655 = vector.multi_reduction <maximumf>, %654, %cst_375 [1] : vector<8x128xf32> to vector<8xf32>
    %656 = vector.shape_cast %655 : vector<8xf32> to vector<8x1xf32>
    %657 = vector.broadcast %656 : vector<8x1xf32> to vector<8x128xf32>
    %658 = arith.cmpf oeq, %654, %657 : vector<8x128xf32>
    %cst_376 = arith.constant 1.280000e+02 : f32
    %659 = vector.broadcast %cst_376 : f32 to vector<8x128xf32>
    %660 = arith.select %658, %1, %659 : vector<8x128xi1>, vector<8x128xf32>
    %cst_377 = arith.constant dense<0x7F800000> : vector<8xf32>
    %661 = vector.multi_reduction <minimumf>, %660, %cst_377 [1] : vector<8x128xf32> to vector<8xf32>
    %662 = vector.shape_cast %661 : vector<8xf32> to vector<8x1xf32>
    %663 = vector.broadcast %662 : vector<8x1xf32> to vector<8x128xf32>
    %664 = arith.cmpf oeq, %1, %663 : vector<8x128xf32>
    %665 = arith.extui %664 : vector<8x128xi1> to vector<8x128xi32>
    %666 = arith.sitofp %665 : vector<8x128xi32> to vector<8x128xf32>
    %667 = arith.truncf %666 : vector<8x128xf32> to vector<8x128xbf16>
    %c0_378 = arith.constant 0 : index
    %c0_379 = arith.constant 0 : index
    %668 = vector.load %arg4[%c0_378, %c0_379] : memref<128x128xbf16, #tpu.memory_space<vmem>>, vector<128x128xbf16>
    %cst_380 = arith.constant dense<0.000000e+00> : vector<8x128xf32>
    %669 = tpu.matmul %667, %668, %cst_380 {dimension_numbers = #tpu.dot_dimension_numbers<[1], [0], [0], [1], [0, 0, 1, 1], [], []>} : vector<8x128xbf16>, vector<128x128xbf16>, vector<8x128xf32> -> vector<8x128xf32>
    %670 = arith.truncf %669 : vector<8x128xf32> to vector<8x128xbf16>
    %c0_381 = arith.constant 0 : index
    %c0_382 = arith.constant 0 : index
    %671 = vector.load %arg12[%c0_381, %c0_382] : memref<8x256xbf16, #tpu.memory_space<vmem>>, vector<8x128xbf16>
    tpu.vector_store %arg12[%c0_381, %c0_382], %670 {strides = array<i32>} : memref<8x256xbf16, #tpu.memory_space<vmem>>, vector<8x128xbf16>,
    %c4_i32_383 = arith.constant 4 : i32
    %672 = arith.index_cast %c4_i32_383 : i32 to index
    %673 = memref.load %arg1[%672] : memref<7xi32, #tpu.memory_space<smem>>
    %c0_i32_384 = arith.constant 0 : i32
    %674 = arith.cmpi ne, %673, %c0_i32_384 : i32
    %675 = arith.extui %674 : i1 to i32
    %c0_i32_385 = arith.constant 0 : i32
    %676 = arith.cmpi ne, %675, %c0_i32_385 : i32
    scf.if %676 {
      %897 = arith.index_cast %c4_i32_383 : i32 to index
      %c0_510 = arith.constant 0 : index
      %c0_511 = arith.constant 0 : index
      %898 = vector.load %arg3[%897, %c0_510, %c0_511] : memref<7x8x128xbf16, #tpu.memory_space<vmem>>, vector<1x8x128xbf16>
      %899 = vector.shape_cast %898 : vector<1x8x128xbf16> to vector<8x128xbf16>
      %c0_512 = arith.constant 0 : index
      %c0_513 = arith.constant 0 : index
      %900 = vector.load %arg12[%c0_512, %c0_513] : memref<8x256xbf16, #tpu.memory_space<vmem>>, vector<8x128xbf16>
      tpu.vector_store %arg12[%c0_512, %c0_513], %899 {strides = array<i32>} : memref<8x256xbf16, #tpu.memory_space<vmem>>, vector<8x128xbf16>,
    } else {
    }
    %c0_386 = arith.constant 0 : index
    %c0_387 = arith.constant 0 : index
    %677 = vector.load %arg12[%c0_386, %c0_387] : memref<8x256xbf16, #tpu.memory_space<vmem>>, vector<8x256xbf16>
    %c0_388 = arith.constant 0 : index
    %c0_389 = arith.constant 0 : index
    %678 = vector.load %arg13[%c0_388, %c0_389] : memref<8x128xf32, #tpu.memory_space<vmem>>, vector<8x128xf32>
    %c0_390 = arith.constant 0 : index
    %c0_391 = arith.constant 0 : index
    %679 = vector.load %arg7[%c0_390, %c0_391] : memref<256x512xbf16, #tpu.memory_space<vmem>>, vector<256x512xbf16>
    %c0_392 = arith.constant 0 : index
    %c0_393 = arith.constant 0 : index
    %680 = vector.load %arg8[%c0_392, %c0_393] : memref<1x512xf32, #tpu.memory_space<vmem>>, vector<1x512xf32>
    %cst_394 = arith.constant dense<0.000000e+00> : vector<8x512xf32>
    %681 = tpu.matmul %677, %679, %cst_394 {dimension_numbers = #tpu.dot_dimension_numbers<[1], [0], [0], [1], [0, 0, 1, 1], [], []>} : vector<8x256xbf16>, vector<256x512xbf16>, vector<8x512xf32> -> vector<8x512xf32>
    %682 = vector.broadcast %680 : vector<1x512xf32> to vector<8x512xf32>
    %683 = arith.addf %681, %682 : vector<8x512xf32>
    %684 = vector.extract_strided_slice %683 {offsets = [0, 0], sizes = [8, 128], strides = [1, 1]} : vector<8x512xf32> to vector<8x128xf32>
    %cst_395 = arith.constant 5.000000e-01 : f32
    %685 = vector.broadcast %cst_395 : f32 to vector<8x128xf32>
    %686 = arith.mulf %685, %684 : vector<8x128xf32>
    %687 = math.tanh %686 : vector<8x128xf32>
    %cst_396 = arith.constant 1.000000e+00 : f32
    %688 = vector.broadcast %cst_396 : f32 to vector<8x128xf32>
    %689 = arith.addf %687, %688 : vector<8x128xf32>
    %cst_397 = arith.constant 5.000000e-01 : f32
    %690 = vector.broadcast %cst_397 : f32 to vector<8x128xf32>
    %691 = arith.mulf %690, %689 : vector<8x128xf32>
    %692 = vector.extract_strided_slice %683 {offsets = [0, 128], sizes = [8, 128], strides = [1, 1]} : vector<8x512xf32> to vector<8x128xf32>
    %cst_398 = arith.constant 5.000000e-01 : f32
    %693 = vector.broadcast %cst_398 : f32 to vector<8x128xf32>
    %694 = arith.mulf %693, %692 : vector<8x128xf32>
    %695 = math.tanh %694 : vector<8x128xf32>
    %cst_399 = arith.constant 1.000000e+00 : f32
    %696 = vector.broadcast %cst_399 : f32 to vector<8x128xf32>
    %697 = arith.addf %695, %696 : vector<8x128xf32>
    %cst_400 = arith.constant 5.000000e-01 : f32
    %698 = vector.broadcast %cst_400 : f32 to vector<8x128xf32>
    %699 = arith.mulf %698, %697 : vector<8x128xf32>
    %700 = vector.extract_strided_slice %683 {offsets = [0, 256], sizes = [8, 128], strides = [1, 1]} : vector<8x512xf32> to vector<8x128xf32>
    %701 = math.tanh %700 : vector<8x128xf32>
    %702 = vector.extract_strided_slice %683 {offsets = [0, 384], sizes = [8, 128], strides = [1, 1]} : vector<8x512xf32> to vector<8x128xf32>
    %cst_401 = arith.constant 5.000000e-01 : f32
    %703 = vector.broadcast %cst_401 : f32 to vector<8x128xf32>
    %704 = arith.mulf %703, %702 : vector<8x128xf32>
    %705 = math.tanh %704 : vector<8x128xf32>
    %cst_402 = arith.constant 1.000000e+00 : f32
    %706 = vector.broadcast %cst_402 : f32 to vector<8x128xf32>
    %707 = arith.addf %705, %706 : vector<8x128xf32>
    %cst_403 = arith.constant 5.000000e-01 : f32
    %708 = vector.broadcast %cst_403 : f32 to vector<8x128xf32>
    %709 = arith.mulf %708, %707 : vector<8x128xf32>
    %710 = arith.mulf %699, %678 : vector<8x128xf32>
    %711 = arith.mulf %691, %701 : vector<8x128xf32>
    %712 = arith.addf %710, %711 : vector<8x128xf32>
    %713 = math.tanh %712 : vector<8x128xf32>
    %714 = arith.mulf %709, %713 : vector<8x128xf32>
    %715 = arith.truncf %714 : vector<8x128xf32> to vector<8x128xbf16>
    %c0_404 = arith.constant 0 : index
    %c128_405 = arith.constant 128 : index
    %716 = vector.load %arg12[%c0_404, %c128_405] : memref<8x256xbf16, #tpu.memory_space<vmem>>, vector<8x128xbf16>
    tpu.vector_store %arg12[%c0_404, %c128_405], %715 {strides = array<i32>} : memref<8x256xbf16, #tpu.memory_space<vmem>>, vector<8x128xbf16>,
    %c0_406 = arith.constant 0 : index
    %c0_407 = arith.constant 0 : index
    %717 = vector.load %arg13[%c0_406, %c0_407] : memref<8x128xf32, #tpu.memory_space<vmem>>, vector<8x128xf32>
    tpu.vector_store %arg13[%c0_406, %c0_407], %712 {strides = array<i32>} : memref<8x128xf32, #tpu.memory_space<vmem>>, vector<8x128xf32>,
    %c0_408 = arith.constant 0 : index
    %c0_409 = arith.constant 0 : index
    %718 = vector.load %arg9[%c0_408, %c0_409] : memref<128x128xbf16, #tpu.memory_space<vmem>>, vector<128x128xbf16>
    %cst_410 = arith.constant dense<0.000000e+00> : vector<8x128xf32>
    %719 = tpu.matmul %715, %718, %cst_410 {dimension_numbers = #tpu.dot_dimension_numbers<[1], [0], [0], [1], [0, 0, 1, 1], [], []>} : vector<8x128xbf16>, vector<128x128xbf16>, vector<8x128xf32> -> vector<8x128xf32>
    %c0_411 = arith.constant 0 : index
    %c0_412 = arith.constant 0 : index
    %720 = vector.load %arg10[%c0_411, %c0_412] : memref<1x128xf32, #tpu.memory_space<vmem>>, vector<1x128xf32>
    %721 = vector.broadcast %720 : vector<1x128xf32> to vector<8x128xf32>
    %722 = arith.addf %719, %721 : vector<8x128xf32>
    %c1_i32_413 = arith.constant 1 : i32
    %723 = arith.addi %c4_i32_383, %c1_i32_413 : i32
    %724 = arith.index_cast %723 : i32 to index
    %c0_414 = arith.constant 0 : index
    %c0_415 = arith.constant 0 : index
    %725 = vector.load %arg11[%724, %c0_414, %c0_415] : memref<8x8x128xf32, #tpu.memory_space<vmem>>, vector<1x8x128xf32>
    %726 = vector.shape_cast %725 : vector<1x8x128xf32> to vector<8x128xf32>
    %727 = vector.shape_cast %722 : vector<8x128xf32> to vector<1x8x128xf32>
    tpu.vector_store %arg11[%724, %c0_414, %c0_415], %727 {strides = array<i32>} : memref<8x8x128xf32, #tpu.memory_space<vmem>>, vector<1x8x128xf32>,
    %cst_416 = arith.constant -3.000000e+38 : f32
    %728 = vector.broadcast %cst_416 : f32 to vector<8x128xf32>
    %729 = arith.select %3, %722, %728 : vector<8x128xi1>, vector<8x128xf32>
    %cst_417 = arith.constant dense<0xFF800000> : vector<8xf32>
    %730 = vector.multi_reduction <maximumf>, %729, %cst_417 [1] : vector<8x128xf32> to vector<8xf32>
    %731 = vector.shape_cast %730 : vector<8xf32> to vector<8x1xf32>
    %732 = vector.broadcast %731 : vector<8x1xf32> to vector<8x128xf32>
    %733 = arith.cmpf oeq, %729, %732 : vector<8x128xf32>
    %cst_418 = arith.constant 1.280000e+02 : f32
    %734 = vector.broadcast %cst_418 : f32 to vector<8x128xf32>
    %735 = arith.select %733, %1, %734 : vector<8x128xi1>, vector<8x128xf32>
    %cst_419 = arith.constant dense<0x7F800000> : vector<8xf32>
    %736 = vector.multi_reduction <minimumf>, %735, %cst_419 [1] : vector<8x128xf32> to vector<8xf32>
    %737 = vector.shape_cast %736 : vector<8xf32> to vector<8x1xf32>
    %738 = vector.broadcast %737 : vector<8x1xf32> to vector<8x128xf32>
    %739 = arith.cmpf oeq, %1, %738 : vector<8x128xf32>
    %740 = arith.extui %739 : vector<8x128xi1> to vector<8x128xi32>
    %741 = arith.sitofp %740 : vector<8x128xi32> to vector<8x128xf32>
    %742 = arith.truncf %741 : vector<8x128xf32> to vector<8x128xbf16>
    %c0_420 = arith.constant 0 : index
    %c0_421 = arith.constant 0 : index
    %743 = vector.load %arg4[%c0_420, %c0_421] : memref<128x128xbf16, #tpu.memory_space<vmem>>, vector<128x128xbf16>
    %cst_422 = arith.constant dense<0.000000e+00> : vector<8x128xf32>
    %744 = tpu.matmul %742, %743, %cst_422 {dimension_numbers = #tpu.dot_dimension_numbers<[1], [0], [0], [1], [0, 0, 1, 1], [], []>} : vector<8x128xbf16>, vector<128x128xbf16>, vector<8x128xf32> -> vector<8x128xf32>
    %745 = arith.truncf %744 : vector<8x128xf32> to vector<8x128xbf16>
    %c0_423 = arith.constant 0 : index
    %c0_424 = arith.constant 0 : index
    %746 = vector.load %arg12[%c0_423, %c0_424] : memref<8x256xbf16, #tpu.memory_space<vmem>>, vector<8x128xbf16>
    tpu.vector_store %arg12[%c0_423, %c0_424], %745 {strides = array<i32>} : memref<8x256xbf16, #tpu.memory_space<vmem>>, vector<8x128xbf16>,
    %c5_i32_425 = arith.constant 5 : i32
    %747 = arith.index_cast %c5_i32_425 : i32 to index
    %748 = memref.load %arg1[%747] : memref<7xi32, #tpu.memory_space<smem>>
    %c0_i32_426 = arith.constant 0 : i32
    %749 = arith.cmpi ne, %748, %c0_i32_426 : i32
    %750 = arith.extui %749 : i1 to i32
    %c0_i32_427 = arith.constant 0 : i32
    %751 = arith.cmpi ne, %750, %c0_i32_427 : i32
    scf.if %751 {
      %897 = arith.index_cast %c5_i32_425 : i32 to index
      %c0_510 = arith.constant 0 : index
      %c0_511 = arith.constant 0 : index
      %898 = vector.load %arg3[%897, %c0_510, %c0_511] : memref<7x8x128xbf16, #tpu.memory_space<vmem>>, vector<1x8x128xbf16>
      %899 = vector.shape_cast %898 : vector<1x8x128xbf16> to vector<8x128xbf16>
      %c0_512 = arith.constant 0 : index
      %c0_513 = arith.constant 0 : index
      %900 = vector.load %arg12[%c0_512, %c0_513] : memref<8x256xbf16, #tpu.memory_space<vmem>>, vector<8x128xbf16>
      tpu.vector_store %arg12[%c0_512, %c0_513], %899 {strides = array<i32>} : memref<8x256xbf16, #tpu.memory_space<vmem>>, vector<8x128xbf16>,
    } else {
    }
    %c0_428 = arith.constant 0 : index
    %c0_429 = arith.constant 0 : index
    %752 = vector.load %arg12[%c0_428, %c0_429] : memref<8x256xbf16, #tpu.memory_space<vmem>>, vector<8x256xbf16>
    %c0_430 = arith.constant 0 : index
    %c0_431 = arith.constant 0 : index
    %753 = vector.load %arg13[%c0_430, %c0_431] : memref<8x128xf32, #tpu.memory_space<vmem>>, vector<8x128xf32>
    %c0_432 = arith.constant 0 : index
    %c0_433 = arith.constant 0 : index
    %754 = vector.load %arg7[%c0_432, %c0_433] : memref<256x512xbf16, #tpu.memory_space<vmem>>, vector<256x512xbf16>
    %c0_434 = arith.constant 0 : index
    %c0_435 = arith.constant 0 : index
    %755 = vector.load %arg8[%c0_434, %c0_435] : memref<1x512xf32, #tpu.memory_space<vmem>>, vector<1x512xf32>
    %cst_436 = arith.constant dense<0.000000e+00> : vector<8x512xf32>
    %756 = tpu.matmul %752, %754, %cst_436 {dimension_numbers = #tpu.dot_dimension_numbers<[1], [0], [0], [1], [0, 0, 1, 1], [], []>} : vector<8x256xbf16>, vector<256x512xbf16>, vector<8x512xf32> -> vector<8x512xf32>
    %757 = vector.broadcast %755 : vector<1x512xf32> to vector<8x512xf32>
    %758 = arith.addf %756, %757 : vector<8x512xf32>
    %759 = vector.extract_strided_slice %758 {offsets = [0, 0], sizes = [8, 128], strides = [1, 1]} : vector<8x512xf32> to vector<8x128xf32>
    %cst_437 = arith.constant 5.000000e-01 : f32
    %760 = vector.broadcast %cst_437 : f32 to vector<8x128xf32>
    %761 = arith.mulf %760, %759 : vector<8x128xf32>
    %762 = math.tanh %761 : vector<8x128xf32>
    %cst_438 = arith.constant 1.000000e+00 : f32
    %763 = vector.broadcast %cst_438 : f32 to vector<8x128xf32>
    %764 = arith.addf %762, %763 : vector<8x128xf32>
    %cst_439 = arith.constant 5.000000e-01 : f32
    %765 = vector.broadcast %cst_439 : f32 to vector<8x128xf32>
    %766 = arith.mulf %765, %764 : vector<8x128xf32>
    %767 = vector.extract_strided_slice %758 {offsets = [0, 128], sizes = [8, 128], strides = [1, 1]} : vector<8x512xf32> to vector<8x128xf32>
    %cst_440 = arith.constant 5.000000e-01 : f32
    %768 = vector.broadcast %cst_440 : f32 to vector<8x128xf32>
    %769 = arith.mulf %768, %767 : vector<8x128xf32>
    %770 = math.tanh %769 : vector<8x128xf32>
    %cst_441 = arith.constant 1.000000e+00 : f32
    %771 = vector.broadcast %cst_441 : f32 to vector<8x128xf32>
    %772 = arith.addf %770, %771 : vector<8x128xf32>
    %cst_442 = arith.constant 5.000000e-01 : f32
    %773 = vector.broadcast %cst_442 : f32 to vector<8x128xf32>
    %774 = arith.mulf %773, %772 : vector<8x128xf32>
    %775 = vector.extract_strided_slice %758 {offsets = [0, 256], sizes = [8, 128], strides = [1, 1]} : vector<8x512xf32> to vector<8x128xf32>
    %776 = math.tanh %775 : vector<8x128xf32>
    %777 = vector.extract_strided_slice %758 {offsets = [0, 384], sizes = [8, 128], strides = [1, 1]} : vector<8x512xf32> to vector<8x128xf32>
    %cst_443 = arith.constant 5.000000e-01 : f32
    %778 = vector.broadcast %cst_443 : f32 to vector<8x128xf32>
    %779 = arith.mulf %778, %777 : vector<8x128xf32>
    %780 = math.tanh %779 : vector<8x128xf32>
    %cst_444 = arith.constant 1.000000e+00 : f32
    %781 = vector.broadcast %cst_444 : f32 to vector<8x128xf32>
    %782 = arith.addf %780, %781 : vector<8x128xf32>
    %cst_445 = arith.constant 5.000000e-01 : f32
    %783 = vector.broadcast %cst_445 : f32 to vector<8x128xf32>
    %784 = arith.mulf %783, %782 : vector<8x128xf32>
    %785 = arith.mulf %774, %753 : vector<8x128xf32>
    %786 = arith.mulf %766, %776 : vector<8x128xf32>
    %787 = arith.addf %785, %786 : vector<8x128xf32>
    %788 = math.tanh %787 : vector<8x128xf32>
    %789 = arith.mulf %784, %788 : vector<8x128xf32>
    %790 = arith.truncf %789 : vector<8x128xf32> to vector<8x128xbf16>
    %c0_446 = arith.constant 0 : index
    %c128_447 = arith.constant 128 : index
    %791 = vector.load %arg12[%c0_446, %c128_447] : memref<8x256xbf16, #tpu.memory_space<vmem>>, vector<8x128xbf16>
    tpu.vector_store %arg12[%c0_446, %c128_447], %790 {strides = array<i32>} : memref<8x256xbf16, #tpu.memory_space<vmem>>, vector<8x128xbf16>,
    %c0_448 = arith.constant 0 : index
    %c0_449 = arith.constant 0 : index
    %792 = vector.load %arg13[%c0_448, %c0_449] : memref<8x128xf32, #tpu.memory_space<vmem>>, vector<8x128xf32>
    tpu.vector_store %arg13[%c0_448, %c0_449], %787 {strides = array<i32>} : memref<8x128xf32, #tpu.memory_space<vmem>>, vector<8x128xf32>,
    %c0_450 = arith.constant 0 : index
    %c0_451 = arith.constant 0 : index
    %793 = vector.load %arg9[%c0_450, %c0_451] : memref<128x128xbf16, #tpu.memory_space<vmem>>, vector<128x128xbf16>
    %cst_452 = arith.constant dense<0.000000e+00> : vector<8x128xf32>
    %794 = tpu.matmul %790, %793, %cst_452 {dimension_numbers = #tpu.dot_dimension_numbers<[1], [0], [0], [1], [0, 0, 1, 1], [], []>} : vector<8x128xbf16>, vector<128x128xbf16>, vector<8x128xf32> -> vector<8x128xf32>
    %c0_453 = arith.constant 0 : index
    %c0_454 = arith.constant 0 : index
    %795 = vector.load %arg10[%c0_453, %c0_454] : memref<1x128xf32, #tpu.memory_space<vmem>>, vector<1x128xf32>
    %796 = vector.broadcast %795 : vector<1x128xf32> to vector<8x128xf32>
    %797 = arith.addf %794, %796 : vector<8x128xf32>
    %c1_i32_455 = arith.constant 1 : i32
    %798 = arith.addi %c5_i32_425, %c1_i32_455 : i32
    %799 = arith.index_cast %798 : i32 to index
    %c0_456 = arith.constant 0 : index
    %c0_457 = arith.constant 0 : index
    %800 = vector.load %arg11[%799, %c0_456, %c0_457] : memref<8x8x128xf32, #tpu.memory_space<vmem>>, vector<1x8x128xf32>
    %801 = vector.shape_cast %800 : vector<1x8x128xf32> to vector<8x128xf32>
    %802 = vector.shape_cast %797 : vector<8x128xf32> to vector<1x8x128xf32>
    tpu.vector_store %arg11[%799, %c0_456, %c0_457], %802 {strides = array<i32>} : memref<8x8x128xf32, #tpu.memory_space<vmem>>, vector<1x8x128xf32>,
    %cst_458 = arith.constant -3.000000e+38 : f32
    %803 = vector.broadcast %cst_458 : f32 to vector<8x128xf32>
    %804 = arith.select %3, %797, %803 : vector<8x128xi1>, vector<8x128xf32>
    %cst_459 = arith.constant dense<0xFF800000> : vector<8xf32>
    %805 = vector.multi_reduction <maximumf>, %804, %cst_459 [1] : vector<8x128xf32> to vector<8xf32>
    %806 = vector.shape_cast %805 : vector<8xf32> to vector<8x1xf32>
    %807 = vector.broadcast %806 : vector<8x1xf32> to vector<8x128xf32>
    %808 = arith.cmpf oeq, %804, %807 : vector<8x128xf32>
    %cst_460 = arith.constant 1.280000e+02 : f32
    %809 = vector.broadcast %cst_460 : f32 to vector<8x128xf32>
    %810 = arith.select %808, %1, %809 : vector<8x128xi1>, vector<8x128xf32>
    %cst_461 = arith.constant dense<0x7F800000> : vector<8xf32>
    %811 = vector.multi_reduction <minimumf>, %810, %cst_461 [1] : vector<8x128xf32> to vector<8xf32>
    %812 = vector.shape_cast %811 : vector<8xf32> to vector<8x1xf32>
    %813 = vector.broadcast %812 : vector<8x1xf32> to vector<8x128xf32>
    %814 = arith.cmpf oeq, %1, %813 : vector<8x128xf32>
    %815 = arith.extui %814 : vector<8x128xi1> to vector<8x128xi32>
    %816 = arith.sitofp %815 : vector<8x128xi32> to vector<8x128xf32>
    %817 = arith.truncf %816 : vector<8x128xf32> to vector<8x128xbf16>
    %c0_462 = arith.constant 0 : index
    %c0_463 = arith.constant 0 : index
    %818 = vector.load %arg4[%c0_462, %c0_463] : memref<128x128xbf16, #tpu.memory_space<vmem>>, vector<128x128xbf16>
    %cst_464 = arith.constant dense<0.000000e+00> : vector<8x128xf32>
    %819 = tpu.matmul %817, %818, %cst_464 {dimension_numbers = #tpu.dot_dimension_numbers<[1], [0], [0], [1], [0, 0, 1, 1], [], []>} : vector<8x128xbf16>, vector<128x128xbf16>, vector<8x128xf32> -> vector<8x128xf32>
    %820 = arith.truncf %819 : vector<8x128xf32> to vector<8x128xbf16>
    %c0_465 = arith.constant 0 : index
    %c0_466 = arith.constant 0 : index
    %821 = vector.load %arg12[%c0_465, %c0_466] : memref<8x256xbf16, #tpu.memory_space<vmem>>, vector<8x128xbf16>
    tpu.vector_store %arg12[%c0_465, %c0_466], %820 {strides = array<i32>} : memref<8x256xbf16, #tpu.memory_space<vmem>>, vector<8x128xbf16>,
    %c6_i32_467 = arith.constant 6 : i32
    %822 = arith.index_cast %c6_i32_467 : i32 to index
    %823 = memref.load %arg1[%822] : memref<7xi32, #tpu.memory_space<smem>>
    %c0_i32_468 = arith.constant 0 : i32
    %824 = arith.cmpi ne, %823, %c0_i32_468 : i32
    %825 = arith.extui %824 : i1 to i32
    %c0_i32_469 = arith.constant 0 : i32
    %826 = arith.cmpi ne, %825, %c0_i32_469 : i32
    scf.if %826 {
      %897 = arith.index_cast %c6_i32_467 : i32 to index
      %c0_510 = arith.constant 0 : index
      %c0_511 = arith.constant 0 : index
      %898 = vector.load %arg3[%897, %c0_510, %c0_511] : memref<7x8x128xbf16, #tpu.memory_space<vmem>>, vector<1x8x128xbf16>
      %899 = vector.shape_cast %898 : vector<1x8x128xbf16> to vector<8x128xbf16>
      %c0_512 = arith.constant 0 : index
      %c0_513 = arith.constant 0 : index
      %900 = vector.load %arg12[%c0_512, %c0_513] : memref<8x256xbf16, #tpu.memory_space<vmem>>, vector<8x128xbf16>
      tpu.vector_store %arg12[%c0_512, %c0_513], %899 {strides = array<i32>} : memref<8x256xbf16, #tpu.memory_space<vmem>>, vector<8x128xbf16>,
    } else {
    }
    %c0_470 = arith.constant 0 : index
    %c0_471 = arith.constant 0 : index
    %827 = vector.load %arg12[%c0_470, %c0_471] : memref<8x256xbf16, #tpu.memory_space<vmem>>, vector<8x256xbf16>
    %c0_472 = arith.constant 0 : index
    %c0_473 = arith.constant 0 : index
    %828 = vector.load %arg13[%c0_472, %c0_473] : memref<8x128xf32, #tpu.memory_space<vmem>>, vector<8x128xf32>
    %c0_474 = arith.constant 0 : index
    %c0_475 = arith.constant 0 : index
    %829 = vector.load %arg7[%c0_474, %c0_475] : memref<256x512xbf16, #tpu.memory_space<vmem>>, vector<256x512xbf16>
    %c0_476 = arith.constant 0 : index
    %c0_477 = arith.constant 0 : index
    %830 = vector.load %arg8[%c0_476, %c0_477] : memref<1x512xf32, #tpu.memory_space<vmem>>, vector<1x512xf32>
    %cst_478 = arith.constant dense<0.000000e+00> : vector<8x512xf32>
    %831 = tpu.matmul %827, %829, %cst_478 {dimension_numbers = #tpu.dot_dimension_numbers<[1], [0], [0], [1], [0, 0, 1, 1], [], []>} : vector<8x256xbf16>, vector<256x512xbf16>, vector<8x512xf32> -> vector<8x512xf32>
    %832 = vector.broadcast %830 : vector<1x512xf32> to vector<8x512xf32>
    %833 = arith.addf %831, %832 : vector<8x512xf32>
    %834 = vector.extract_strided_slice %833 {offsets = [0, 0], sizes = [8, 128], strides = [1, 1]} : vector<8x512xf32> to vector<8x128xf32>
    %cst_479 = arith.constant 5.000000e-01 : f32
    %835 = vector.broadcast %cst_479 : f32 to vector<8x128xf32>
    %836 = arith.mulf %835, %834 : vector<8x128xf32>
    %837 = math.tanh %836 : vector<8x128xf32>
    %cst_480 = arith.constant 1.000000e+00 : f32
    %838 = vector.broadcast %cst_480 : f32 to vector<8x128xf32>
    %839 = arith.addf %837, %838 : vector<8x128xf32>
    %cst_481 = arith.constant 5.000000e-01 : f32
    %840 = vector.broadcast %cst_481 : f32 to vector<8x128xf32>
    %841 = arith.mulf %840, %839 : vector<8x128xf32>
    %842 = vector.extract_strided_slice %833 {offsets = [0, 128], sizes = [8, 128], strides = [1, 1]} : vector<8x512xf32> to vector<8x128xf32>
    %cst_482 = arith.constant 5.000000e-01 : f32
    %843 = vector.broadcast %cst_482 : f32 to vector<8x128xf32>
    %844 = arith.mulf %843, %842 : vector<8x128xf32>
    %845 = math.tanh %844 : vector<8x128xf32>
    %cst_483 = arith.constant 1.000000e+00 : f32
    %846 = vector.broadcast %cst_483 : f32 to vector<8x128xf32>
    %847 = arith.addf %845, %846 : vector<8x128xf32>
    %cst_484 = arith.constant 5.000000e-01 : f32
    %848 = vector.broadcast %cst_484 : f32 to vector<8x128xf32>
    %849 = arith.mulf %848, %847 : vector<8x128xf32>
    %850 = vector.extract_strided_slice %833 {offsets = [0, 256], sizes = [8, 128], strides = [1, 1]} : vector<8x512xf32> to vector<8x128xf32>
    %851 = math.tanh %850 : vector<8x128xf32>
    %852 = vector.extract_strided_slice %833 {offsets = [0, 384], sizes = [8, 128], strides = [1, 1]} : vector<8x512xf32> to vector<8x128xf32>
    %cst_485 = arith.constant 5.000000e-01 : f32
    %853 = vector.broadcast %cst_485 : f32 to vector<8x128xf32>
    %854 = arith.mulf %853, %852 : vector<8x128xf32>
    %855 = math.tanh %854 : vector<8x128xf32>
    %cst_486 = arith.constant 1.000000e+00 : f32
    %856 = vector.broadcast %cst_486 : f32 to vector<8x128xf32>
    %857 = arith.addf %855, %856 : vector<8x128xf32>
    %cst_487 = arith.constant 5.000000e-01 : f32
    %858 = vector.broadcast %cst_487 : f32 to vector<8x128xf32>
    %859 = arith.mulf %858, %857 : vector<8x128xf32>
    %860 = arith.mulf %849, %828 : vector<8x128xf32>
    %861 = arith.mulf %841, %851 : vector<8x128xf32>
    %862 = arith.addf %860, %861 : vector<8x128xf32>
    %863 = math.tanh %862 : vector<8x128xf32>
    %864 = arith.mulf %859, %863 : vector<8x128xf32>
    %865 = arith.truncf %864 : vector<8x128xf32> to vector<8x128xbf16>
    %c0_488 = arith.constant 0 : index
    %c128_489 = arith.constant 128 : index
    %866 = vector.load %arg12[%c0_488, %c128_489] : memref<8x256xbf16, #tpu.memory_space<vmem>>, vector<8x128xbf16>
    tpu.vector_store %arg12[%c0_488, %c128_489], %865 {strides = array<i32>} : memref<8x256xbf16, #tpu.memory_space<vmem>>, vector<8x128xbf16>,
    %c0_490 = arith.constant 0 : index
    %c0_491 = arith.constant 0 : index
    %867 = vector.load %arg13[%c0_490, %c0_491] : memref<8x128xf32, #tpu.memory_space<vmem>>, vector<8x128xf32>
    tpu.vector_store %arg13[%c0_490, %c0_491], %862 {strides = array<i32>} : memref<8x128xf32, #tpu.memory_space<vmem>>, vector<8x128xf32>,
    %c0_492 = arith.constant 0 : index
    %c0_493 = arith.constant 0 : index
    %868 = vector.load %arg9[%c0_492, %c0_493] : memref<128x128xbf16, #tpu.memory_space<vmem>>, vector<128x128xbf16>
    %cst_494 = arith.constant dense<0.000000e+00> : vector<8x128xf32>
    %869 = tpu.matmul %865, %868, %cst_494 {dimension_numbers = #tpu.dot_dimension_numbers<[1], [0], [0], [1], [0, 0, 1, 1], [], []>} : vector<8x128xbf16>, vector<128x128xbf16>, vector<8x128xf32> -> vector<8x128xf32>
    %c0_495 = arith.constant 0 : index
    %c0_496 = arith.constant 0 : index
    %870 = vector.load %arg10[%c0_495, %c0_496] : memref<1x128xf32, #tpu.memory_space<vmem>>, vector<1x128xf32>
    %871 = vector.broadcast %870 : vector<1x128xf32> to vector<8x128xf32>
    %872 = arith.addf %869, %871 : vector<8x128xf32>
    %c1_i32_497 = arith.constant 1 : i32
    %873 = arith.addi %c6_i32_467, %c1_i32_497 : i32
    %874 = arith.index_cast %873 : i32 to index
    %c0_498 = arith.constant 0 : index
    %c0_499 = arith.constant 0 : index
    %875 = vector.load %arg11[%874, %c0_498, %c0_499] : memref<8x8x128xf32, #tpu.memory_space<vmem>>, vector<1x8x128xf32>
    %876 = vector.shape_cast %875 : vector<1x8x128xf32> to vector<8x128xf32>
    %877 = vector.shape_cast %872 : vector<8x128xf32> to vector<1x8x128xf32>
    tpu.vector_store %arg11[%874, %c0_498, %c0_499], %877 {strides = array<i32>} : memref<8x8x128xf32, #tpu.memory_space<vmem>>, vector<1x8x128xf32>,
    %cst_500 = arith.constant -3.000000e+38 : f32
    %878 = vector.broadcast %cst_500 : f32 to vector<8x128xf32>
    %879 = arith.select %3, %872, %878 : vector<8x128xi1>, vector<8x128xf32>
    %cst_501 = arith.constant dense<0xFF800000> : vector<8xf32>
    %880 = vector.multi_reduction <maximumf>, %879, %cst_501 [1] : vector<8x128xf32> to vector<8xf32>
    %881 = vector.shape_cast %880 : vector<8xf32> to vector<8x1xf32>
    %882 = vector.broadcast %881 : vector<8x1xf32> to vector<8x128xf32>
    %883 = arith.cmpf oeq, %879, %882 : vector<8x128xf32>
    %cst_502 = arith.constant 1.280000e+02 : f32
    %884 = vector.broadcast %cst_502 : f32 to vector<8x128xf32>
    %885 = arith.select %883, %1, %884 : vector<8x128xi1>, vector<8x128xf32>
    %cst_503 = arith.constant dense<0x7F800000> : vector<8xf32>
    %886 = vector.multi_reduction <minimumf>, %885, %cst_503 [1] : vector<8x128xf32> to vector<8xf32>
    %887 = vector.shape_cast %886 : vector<8xf32> to vector<8x1xf32>
    %888 = vector.broadcast %887 : vector<8x1xf32> to vector<8x128xf32>
    %889 = arith.cmpf oeq, %1, %888 : vector<8x128xf32>
    %890 = arith.extui %889 : vector<8x128xi1> to vector<8x128xi32>
    %891 = arith.sitofp %890 : vector<8x128xi32> to vector<8x128xf32>
    %892 = arith.truncf %891 : vector<8x128xf32> to vector<8x128xbf16>
    %c0_504 = arith.constant 0 : index
    %c0_505 = arith.constant 0 : index
    %893 = vector.load %arg4[%c0_504, %c0_505] : memref<128x128xbf16, #tpu.memory_space<vmem>>, vector<128x128xbf16>
    %cst_506 = arith.constant dense<0.000000e+00> : vector<8x128xf32>
    %894 = tpu.matmul %892, %893, %cst_506 {dimension_numbers = #tpu.dot_dimension_numbers<[1], [0], [0], [1], [0, 0, 1, 1], [], []>} : vector<8x128xbf16>, vector<128x128xbf16>, vector<8x128xf32> -> vector<8x128xf32>
    %895 = arith.truncf %894 : vector<8x128xf32> to vector<8x128xbf16>
    %c0_507 = arith.constant 0 : index
    %c0_508 = arith.constant 0 : index
    %896 = vector.load %arg12[%c0_507, %c0_508] : memref<8x256xbf16, #tpu.memory_space<vmem>>, vector<8x128xbf16>
    tpu.vector_store %arg12[%c0_507, %c0_508], %895 {strides = array<i32>} : memref<8x256xbf16, #tpu.memory_space<vmem>>, vector<8x128xbf16>,
    %c7_i32_509 = arith.constant 7 : i32
    return
  }
  func.func @transform_0(%arg0: i32, %arg1: memref<7xi32, #tpu.memory_space<smem>>) -> (i32, i32, i32) {
    %c0_i32 = arith.constant 0 : i32
    %c0_i32_0 = arith.constant 0 : i32
    %c0_i32_1 = arith.constant 0 : i32
    %c0_i32_2 = arith.constant 0 : i32
    return %c0_i32, %c0_i32_0, %c0_i32_1 : i32, i32, i32
  }
  func.func @transform_1(%arg0: i32, %arg1: memref<7xi32, #tpu.memory_space<smem>>) -> (i32, i32, i32) {
    %c0_i32 = arith.constant 0 : i32
    %c0_i32_0 = arith.constant 0 : i32
    %c0_i32_1 = arith.constant 0 : i32
    %c0_i32_2 = arith.constant 0 : i32
    return %c0_i32, %c0_i32_0, %c0_i32_1 : i32, i32, i32
  }
  func.func @transform_2(%arg0: i32, %arg1: memref<7xi32, #tpu.memory_space<smem>>) -> (i32, i32) {
    %c0_i32 = arith.constant 0 : i32
    %c0_i32_0 = arith.constant 0 : i32
    %c0_i32_1 = arith.constant 0 : i32
    return %c0_i32, %c0_i32_0 : i32, i32
  }
  func.func @transform_3(%arg0: i32, %arg1: memref<7xi32, #tpu.memory_space<smem>>) -> (i32, i32) {
    %c0_i32 = arith.constant 0 : i32
    %c0_i32_0 = arith.constant 0 : i32
    %c0_i32_1 = arith.constant 0 : i32
    return %c0_i32, %c0_i32_0 : i32, i32
  }
  func.func @transform_4(%arg0: i32, %arg1: memref<7xi32, #tpu.memory_space<smem>>) -> (i32, i32) {
    %c0_i32 = arith.constant 0 : i32
    %c0_i32_0 = arith.constant 0 : i32
    %c0_i32_1 = arith.constant 0 : i32
    return %c0_i32, %c0_i32_0 : i32, i32
  }
  func.func @transform_5(%arg0: i32, %arg1: memref<7xi32, #tpu.memory_space<smem>>) -> (i32, i32) {
    %c0_i32 = arith.constant 0 : i32
    %c0_i32_0 = arith.constant 0 : i32
    %c0_i32_1 = arith.constant 0 : i32
    return %c0_i32, %c0_i32_0 : i32, i32
  }
  func.func @transform_6(%arg0: i32, %arg1: memref<7xi32, #tpu.memory_space<smem>>) -> (i32, i32) {
    %c0_i32 = arith.constant 0 : i32
    %c0_i32_0 = arith.constant 0 : i32
    %c0_i32_1 = arith.constant 0 : i32
    return %c0_i32, %c0_i32_0 : i32, i32
  }
  func.func @transform_7(%arg0: i32, %arg1: memref<7xi32, #tpu.memory_space<smem>>) -> (i32, i32) {
    %c0_i32 = arith.constant 0 : i32
    %c0_i32_0 = arith.constant 0 : i32
    %c0_i32_1 = arith.constant 0 : i32
    return %c0_i32, %c0_i32_0 : i32, i32
  }
  func.func @transform_8(%arg0: i32, %arg1: memref<7xi32, #tpu.memory_space<smem>>) -> (i32, i32) {
    %c0_i32 = arith.constant 0 : i32
    %c0_i32_0 = arith.constant 0 : i32
    %c0_i32_1 = arith.constant 0 : i32
    return %c0_i32, %c0_i32_0 : i32, i32
  }
  func.func @transform_9(%arg0: i32, %arg1: memref<7xi32, #tpu.memory_space<smem>>) -> (i32, i32, i32) {
    %c0_i32 = arith.constant 0 : i32
    %c0_i32_0 = arith.constant 0 : i32
    %c0_i32_1 = arith.constant 0 : i32
    %c0_i32_2 = arith.constant 0 : i32
    return %c0_i32, %c0_i32_0, %c0_i32_1 : i32, i32, i32
  }
}

</mosaic_0001>

<bundles_post_ra>
// kernel: forward.1
= control target key start
LH: loop header
LB: loop body
LE: loop exit
PB: predicated region body
PF: predicated region fallthrough
CT: control target
= control target key end

     0   :  { %s14143_s0 = inlined_call_operand.vmem [shape: s32[7], index: 0, kind: input, shape index: {}]   ;;  %s14144_s1 = inlined_call_operand.vmem [shape: bf16[8,8,128], index: 1, kind: input, shape index: {}]   ;;  %s14145_s2 = inlined_call_operand.vmem [shape: bf16[7,8,128], index: 2, kind: input, shape index: {}]   ;;  %s14146_s3 = inlined_call_operand.vmem [shape: bf16[128,128], index: 3, kind: input, shape index: {}]   ;;  %s14147_s4 = inlined_call_operand.hbm [shape: bf16[256,512], index: 4, kind: input, shape index: {}]   ;;  %s14148_s5 = inlined_call_operand.vmem [shape: f32[1,512], index: 5, kind: input, shape index: {}]   ;;  %s14149_s6 = inlined_call_operand.hbm [shape: bf16[256,512], index: 6, kind: input, shape index: {}]   ;;  %s14150_s7 = inlined_call_operand.vmem [shape: f32[1,512], index: 7, kind: input, shape index: {}]   ;;  %s14151_s8 = inlined_call_operand.vmem [shape: bf16[128,128], index: 8, kind: input, shape index: {}]   ;;  %s14152_s9 = inlined_call_operand.vmem [shape: f32[1,128], index: 9, kind: input, shape index: {}]   ;;  %s14153_s10 = inlined_call_operand.vmem [shape: f32[8,8,128], index: 10, kind: output, shape index: {}]  }
   0x1   :  { %s15_s15 = sshll.u32 %s14143_s0, 4  ;;  %s16_s15 = int_to_ptr.vmem [resolvable:$true] %s15_s15 }
   0x2   :  { %s12366_s16 = scalar_lea.vmem %s16_s15, 16  ;;  %p12371_p1 = scmp.lt.s32.totalorder %s16_s15, %s16_s15 }
   0x3   :  { %p12367_p0 = scmp.ne.s32.totalorder %s16_s15, %s12366_s16  ;;  %p12372_p2 = scmp.lt.s32.totalorder %s12366_s16, %s12366_s16 }
   0x5   :  { %p12373_p3 = por %p12372_p2, %p12371_p1 }
   0x7   :  { %p12374_p4 = pnand %p12373_p3, %p12367_p0 }
   0x9   :  { %12377 = shalt.err (!%p12374_p4)  }
   0xa   :  { %s12424_s17 = smov [#allocation5]  }
   0xb   :  { %18 = dma.vmem_to_smem %s16_s15, 16, %s12424_s17, [#allocation4] }
   0xc   :  { %12418 = dma.done.wait [#allocation4], 16 }
   0xd   :  { %12419 = vsyncadd [#allocation4], 4294967280 }
   0xe   :  { %20 = sfence }
   0xf   :  { %21 = vsyncpa [#allocation7], 0 }
  0x10   :  { %22 = vsyncpa [#allocation9], 0  ;;  %s12425_s18 = smov [#allocation6]  }
  0x11   :  { %s34_s19 = sshll.u32 %s12425_s18, 4  ;;  %s35_s19 = int_to_ptr.vmem [resolvable:$true] %s34_s19 }
  0x12   :  { %s12386_s20 = scalar_lea.vmem %s35_s19, 8192  ;;  %p12391_p6 = scmp.lt.s32.totalorder %s35_s19, %s35_s19 }
  0x13   :  { %p12387_p5 = scmp.ne.s32.totalorder %s35_s19, %s12386_s20  ;;  %p12392_p7 = scmp.lt.s32.totalorder %s12386_s20, %s12386_s20 }
  0x15   :  { %p12393_p8 = por %p12392_p7, %p12391_p6 }
  0x17   :  { %p12394_p9 = pnand %p12393_p8, %p12387_p5 }
  0x19   :  { %12397 = shalt.err (!%p12394_p9)
}
  0x1a   :  { %s12426_s0 = smov 256   ;;  %s12427_s21 = smov 16  }
  0x1b   :  { %40 = dma.hbm_to_vmem [thread:$0]  %s14147_s4, 8192, %s35_s19, [#allocation7], %s12426_s0, %s12426_s0, %s12427_s21  }
  0x1c   :  { %s12428_s24 = smov [#allocation8]  }
  0x1d   :  { %s48_s25 = sshll.u32 %s12428_s24, 4  ;;  %s49_s25 = int_to_ptr.vmem [resolvable:$true] %s48_s25 }
  0x1e   :  { %s12406_s26 = scalar_lea.vmem %s49_s25, 8192  ;;  %p12411_p11 = scmp.lt.s32.totalorder %s49_s25, %s49_s25 }
  0x1f   :  { %p12407_p10 = scmp.ne.s32.totalorder %s49_s25, %s12406_s26  ;;  %p12412_p12 = scmp.lt.s32.totalorder %s12406_s26, %s12406_s26 }
  0x21   :  { %p12413_p13 = por %p12412_p12, %p12411_p11 }
  0x23   :  { %p12414_p0 = pnand %p12413_p13, %p12407_p10 }
  0x25   :  { %12417 = shalt.err (!%p12414_p0)
}
  0x26   :  { %54 = dma.hbm_to_vmem [thread:$0]  %s14149_s6, 8192, %s49_s25, [#allocation9], %s12426_s0, %s12426_s0, %s12427_s21  }
  0x27   :  { %12420 = dma.done.wait [#allocation7], 8192  }
  0x28   :  { %12421 = vsyncadd [#allocation7], 4294959104 }
  0x29   :  { %12422 = dma.done.wait [#allocation9], 8192  }
  0x2a   :  { %12423 = vsyncadd [#allocation9], 4294959104  ;;  %v14154_v0 = vlaneseq  ;;  %s12497_s4 = sld [smem:[#allocation5]]  ;;  %v12429_v1 = vmov 0   ;;  %v12506_v4 = vld [vmem:[#allocation6 + $0xe4] ss:$16 sps:$4 sm:$0xff]  }
  0x2b   :  { %72 = vst [vmem:[#allocation2] sm:$0xff] %v12429_v1  ;;  %v12508_v5 = vld [vmem:[#allocation6 + $0xe0] ss:$16 sps:$4 sm:$0xff]   ;;  %492 = vmatprep.subr.bf16.mxu0 %v12506_v4  ;;  %v12511_v6 = vld [vmem:[#allocation6 + $0xec] ss:$16 sps:$4 sm:$0xff]  }
  0x2c   :  { %v12500_v2 = vand.u32 127, %v14154_v0  ;;  %v12513_v7 = vld [vmem:[#allocation6 + $0xe8] ss:$16 sps:$4 sm:$0xff]   ;;  %493 = vmatpush1.bf16.msra.mxu0 %v12508_v5  ;;  %v12516_v8 = vld [vmem:[#allocation6 + $0xc4] ss:$16 sps:$4 sm:$0xff]   ;;  %533 = vmatprep.subr.bf16.mxu1 %v12511_v6 }
  0x2d   :  { %v12518_v9 = vld [vmem:[#allocation6 + $0xc0] ss:$16 sps:$4 sm:$0xff]   ;;  %v12521_v10 = vld [vmem:[#allocation6 + $0xcc] ss:$16 sps:$4 sm:$0xff]   ;;  %534 = vmatpush1.bf16.msra.mxu1 %v12513_v7  ;;  %494 = vmatprep.subr.bf16.mxu0 %v12516_v8  ;;  %v12525_v11 = vld [vmem:[#allocation6 + $0xc8] ss:$16 sps:$4 sm:$0xff]  }
  0x2e   :  { %14274 = vst [vmem:[#allocation13_spill] sm:$0xff] %v12500_v2  ;;  %v12503_v3 = vcvt.s32.f32 %v12500_v2  ;;  %vm71_vm0 = vcmp.lt.s32.totalorder %v12500_v2, 16  ;;  %535 = vmatprep.subr.bf16.mxu1 %v12521_v10  ;;  %v12528_v12 = vld [vmem:[#allocation6 + $0xa4] ss:$16 sps:$4 sm:$0xff]   ;;  %v12531_v13 = vld [vmem:[#allocation6 + $0xa0] ss:$16 sps:$4 sm:$0xff]  }
  0x2f   :  { %v12533_v14 = vld [vmem:[#allocation6 + $0xac] ss:$16 sps:$4 sm:$0xff]   ;;  %v12536_v15 = vld [vmem:[#allocation6 + $0x84] ss:$16 sps:$4 sm:$0xff]   ;;  %v12539_v16 = vld [vmem:[#allocation6 + $0xa8] ss:$16 sps:$4 sm:$0xff]  }
  0x30   :  { %14275 = vst [vmem:[#allocation14_spill] sm:$0xff] %v12503_v3  ;;  %495 = vmatpush1.bf16.msra.mxu0 %v12518_v9  ;;  %v12542_v17 = vld [vmem:[#allocation6 + $0x8c] ss:$16 sps:$4 sm:$0xff]   ;;  %v12545_v18 = vld [vmem:[#allocation6 + $0x80] ss:$16 sps:$4 sm:$0xff]   ;;  %p10074_p1 = scmp.eq.s32.totalorder %s12497_s4, 0 }
  0x31   :  { %496 = vmatprep.subr.bf16.mxu0 %v12528_v12  ;;  %536 = vmatpush1.bf16.msra.mxu1 %v12525_v11  ;;  %v12548_v19 = vld [vmem:[#allocation6 + $0x64] ss:$16 sps:$4 sm:$0xff]   ;;  %v12551_v20 = vld [vmem:[#allocation6 + $0x88] ss:$16 sps:$4 sm:$0xff]   ;;  %v12554_v21 = vld [vmem:[#allocation6 + $0x6c] ss:$16 sps:$4 sm:$0xff]  }
  0x32   :  { %537 = vmatprep.subr.bf16.mxu1 %v12533_v14  ;;  %v12557_v22 = vld [vmem:[#allocation6 + $0x60] ss:$16 sps:$4 sm:$0xff]   ;;  %v12560_v23 = vld [vmem:[#allocation6 + $0x44] ss:$16 sps:$4 sm:$0xff]   ;;  %v12563_v24 = vld [vmem:[#allocation6 + $0x68] ss:$16 sps:$4 sm:$0xff]  }
  0x33   :  { %v12566_v25 = vld [vmem:[#allocation6 + $0x4c] ss:$16 sps:$4 sm:$0xff]   ;;  %v12569_v26 = vld [vmem:[#allocation6 + $0x40] ss:$16 sps:$4 sm:$0xff]   ;;  %v12572_v27 = vld [vmem:[#allocation6 + $0x24] ss:$16 sps:$4 sm:$0xff]  }
  0x34   :  { %497 = vmatpush1.bf16.msra.mxu0 %v12531_v13  ;;  %v12575_v28 = vld [vmem:[#allocation6 + $0x48] ss:$16 sps:$4 sm:$0xff]   ;;  %v12578_v29 = vld [vmem:[#allocation6 + $0x2c] ss:$16 sps:$4 sm:$0xff]   ;;  %v12581_v30 = vld [vmem:[#allocation6 + $0x20] ss:$16 sps:$4 sm:$0xff]  }
  0x35   :  { %498 = vmatprep.subr.bf16.mxu0 %v12536_v15  ;;  %538 = vmatpush1.bf16.msra.mxu1 %v12539_v16  ;;  %v12584_v31 = vld [vmem:[#allocation6 + $0x4] ss:$16 sps:$4 sm:$0xff]   ;;  %v12587_v32 = vld [vmem:[#allocation6 + $0x28] ss:$16 sps:$4 sm:$0xff]   ;;  %v12590_v33 = vld [vmem:[#allocation6 + $0xc] ss:$16 sps:$4 sm:$0xff]  }
  0x36   :  { %539 = vmatprep.subr.bf16.mxu1 %v12542_v17  ;;  %v12593_v34 = vld [vmem:[#allocation6] ss:$16 sps:$4 sm:$0xff]   ;;  %v12596_v35 = vld [vmem:[#allocation6 + $0x1e4] ss:$16 sps:$4 sm:$0xff]   ;;  %v12599_v36 = vld [vmem:[#allocation6 + $0x8] ss:$16 sps:$4 sm:$0xff]  }
  0x37   :  { %v12602_v37 = vld [vmem:[#allocation6 + $0x1ec] ss:$16 sps:$4 sm:$0xff]   ;;  %v12605_v38 = vld [vmem:[#allocation6 + $0x1e0] ss:$16 sps:$4 sm:$0xff]   ;;  %v12608_v39 = vld [vmem:[#allocation6 + $0x1c4] ss:$16 sps:$4 sm:$0xff]  }
  0x38   :  { %499 = vmatpush1.bf16.msra.mxu0 %v12545_v18  ;;  %v12611_v40 = vld [vmem:[#allocation6 + $0x1e8] ss:$16 sps:$4 sm:$0xff]   ;;  %v12614_v41 = vld [vmem:[#allocation6 + $0x1cc] ss:$16 sps:$4 sm:$0xff]   ;;  %v12617_v42 = vld [vmem:[#allocation6 + $0x1c0] ss:$16 sps:$4 sm:$0xff]  }
  0x39   :  { %500 = vmatprep.subr.bf16.mxu0 %v12548_v19  ;;  %540 = vmatpush1.bf16.msra.mxu1 %v12551_v20  ;;  %v12620_v43 = vld [vmem:[#allocation6 + $0x1a4] ss:$16 sps:$4 sm:$0xff]   ;;  %v12623_v44 = vld [vmem:[#allocation6 + $0x1c8] ss:$16 sps:$4 sm:$0xff]   ;;  %v12626_v45 = vld [vmem:[#allocation6 + $0x1ac] ss:$16 sps:$4 sm:$0xff]  }
  0x3a   :  { %541 = vmatprep.subr.bf16.mxu1 %v12554_v21  ;;  %v12629_v46 = vld [vmem:[#allocation6 + $0x1a0] ss:$16 sps:$4 sm:$0xff]   ;;  %v12632_v47 = vld [vmem:[#allocation6 + $0x184] ss:$16 sps:$4 sm:$0xff]   ;;  %v12635_v48 = vld [vmem:[#allocation6 + $0x1a8] ss:$16 sps:$4 sm:$0xff]  }
  0x3b   :  { %14276 = vst [vmem:[#allocation15_spill] sm:$0xff] %v12632_v47  ;;  %v12638_v49 = vld [vmem:[#allocation6 + $0x180] ss:$16 sps:$4 sm:$0xff]   ;;  %v12640_v50 = vld [vmem:[#allocation6 + $0x18c] ss:$16 sps:$4 sm:$0xff]  }
  0x3c   :  { %501 = vmatpush1.bf16.msra.mxu0 %v12557_v22  ;;  %14277 = vst [vmem:[#allocation16_spill] sm:$0xff] %v12638_v49  ;;  %14278 = vst [vmem:[#allocation17_spill] sm:$0xff] %v12640_v50  ;;  %v75_v51 = vld [vmem:[%s14144_s1] sm:$0xf]  ;;  %v12646_v52 = vld [vmem:[#allocation6 + $0x188] ss:$16 sps:$4 sm:$0xff]  }
  0x3d   :  { %502 = vmatprep.subr.bf16.mxu0 %v12560_v23  ;;  %542 = vmatpush1.bf16.msra.mxu1 %v12563_v24  ;;  %14279 = vst [vmem:[#allocation18_spill] sm:$0xff] %v12646_v52  ;;  %v12648_v53 = vld [vmem:[#allocation6 + $0x164] ss:$16 sps:$4 sm:$0xff]   ;;  %76 = vst [vmem:[#allocation2] sm:$0xf] %v75_v51 }
  0x3e   :  { %543 = vmatprep.subr.bf16.mxu1 %v12566_v25  ;;  %14280 = vst [vmem:[#allocation19_spill] sm:$0xff] %v12648_v53  ;;  %v12651_v54 = vld [vmem:[#allocation6 + $0x16c] ss:$16 sps:$4 sm:$0xff]   ;;  %v12654_v55 = vld [vmem:[#allocation6 + $0x160] ss:$16 sps:$4 sm:$0xff]  }
  0x3f   :  { %14281 = vst [vmem:[#allocation20_spill] sm:$0xff] %v12651_v54  ;;  %14282 = vst [vmem:[#allocation21_spill] sm:$0xff] %v12654_v55  ;;  %v12657_v56 = vld [vmem:[#allocation6 + $0x144] ss:$16 sps:$4 sm:$0xff]   ;;  %v12660_v57 = vld [vmem:[#allocation6 + $0x168] ss:$16 sps:$4 sm:$0xff]  }
  0x40   :  { %503 = vmatpush1.bf16.msra.mxu0 %v12569_v26  ;;  %14283 = vst [vmem:[#allocation22_spill] sm:$0xff] %v12657_v56  ;;  %14284 = vst [vmem:[#allocation23_spill] sm:$0xff] %v12660_v57  ;;  %v12663_v58 = vld [vmem:[#allocation6 + $0x14c] ss:$16 sps:$4 sm:$0xff]   ;;  %v12666_v59 = vld [vmem:[#allocation6 + $0x140] ss:$16 sps:$4 sm:$0xff]  }
  0x41   :  { %504 = vmatprep.subr.bf16.mxu0 %v12572_v27  ;;  %544 = vmatpush1.bf16.msra.mxu1 %v12575_v28  ;;  %14285 = vst [vmem:[#allocation24_spill] sm:$0xff] %v12663_v58  ;;  %14286 = vst [vmem:[#allocation25_spill] sm:$0xff] %v12666_v59  ;;  %v12669_v60 = vld [vmem:[#allocation6 + $0x124] ss:$16 sps:$4 sm:$0xff]   ;;  %v12672_v62 = vld [vmem:[#allocation6 + $0x148] ss:$16 sps:$4 sm:$0xff]  }
  0x42   :  { %545 = vmatprep.subr.bf16.mxu1 %v12578_v29  ;;  %14287 = vst [vmem:[#allocation26_spill] sm:$0xff] %v12669_v60  ;;  %14288 = vst [vmem:[#allocation27_spill] sm:$0xff] %v12672_v62  ;;  %v12675_v1 = vld [vmem:[#allocation6 + $0x12c] ss:$16 sps:$4 sm:$0xff]   ;;  %v12678_v51 = vld [vmem:[#allocation6 + $0x120] ss:$16 sps:$4 sm:$0xff]  }
  0x43   :  { %14289 = vst [vmem:[#allocation28_spill] sm:$0xff] %v12675_v1  ;;  %14290 = vst [vmem:[#allocation29_spill] sm:$0xff] %v12678_v51  ;;  %v12681_v0 = vld [vmem:[#allocation6 + $0x104] ss:$16 sps:$4 sm:$0xff]   ;;  %v12684_v3 = vld [vmem:[#allocation6 + $0x128] ss:$16 sps:$4 sm:$0xff]  }
  0x44   :  { %505 = vmatpush1.bf16.msra.mxu0 %v12581_v30  ;;  %v77_v61 = vld [vmem:[#allocation2] sm:$0xff]  ;;  %14291 = vst [vmem:[#allocation30_spill] sm:$0xff] %v12681_v0  ;;  %14292 = vst [vmem:[#allocation31_spill] sm:$0xff] %v12684_v3  ;;  %v12687_v2 = vld [vmem:[#allocation6 + $0x10c] ss:$16 sps:$4 sm:$0xff]  }
  0x45   :  { %506 = vmatprep.subr.bf16.mxu0 %v12584_v31  ;;  %546 = vmatpush1.bf16.msra.mxu1 %v12587_v32  ;;  %v9540_v63 = vcombine.high %v77_v61, %v77_v61  ;;  %14293 = vst [vmem:[#allocation32_spill] sm:$0xff] %v12687_v2 }
  0x46   :  { %547 = vmatprep.subr.bf16.mxu1 %v12590_v33 }
  0x47   :  { %524 = vmatprep.mubr.bf16.mxu0 %v9540_v63  ;;  %565 = vmatprep.mubr.bf16.mxu1 %v9540_v63  ;;  %v9539_v63 = vcombine.low %v77_v61, %v77_v61  ;;  %v14296_v61 = vld [vmem:[#allocation22_spill] sm:$0xff] }
  0x48   :  { %507 = vmatpush1.bf16.msra.mxu0 %v12593_v34 }
  0x49   :  { %508 = vmatprep.subr.bf16.mxu0 %v12596_v35  ;;  %548 = vmatpush1.bf16.msra.mxu1 %v12599_v36 }
  0x4a   :  { %549 = vmatprep.subr.bf16.mxu1 %v12602_v37 }
  0x4c   :  { %509 = vmatpush2.bf16.msra.mxu0 %v12605_v38 }
  0x4d   :  { %510 = vmatprep.subr.bf16.mxu0 %v12608_v39  ;;  %550 = vmatpush2.bf16.msra.mxu1 %v12611_v40 }
  0x4e   :  { %551 = vmatprep.subr.bf16.mxu1 %v12614_v41 }
  0x50   :  { %511 = vmatpush2.bf16.msra.mxu0 %v12617_v42 }
  0x51   :  { %512 = vmatprep.subr.bf16.mxu0 %v12620_v43  ;;  %552 = vmatpush2.bf16.msra.mxu1 %v12623_v44 }
  0x52   :  { %553 = vmatprep.subr.bf16.mxu1 %v12626_v45 }
  0x54   :  { %513 = vmatpush2.bf16.msra.mxu0 %v12629_v46 }
  0x55   :  { %514 = vmatprep.subr.bf16.mxu0 %v12632_v47  ;;  %554 = vmatpush2.bf16.msra.mxu1 %v12635_v48 }
  0x56   :  { %555 = vmatprep.subr.bf16.mxu1 %v12640_v50 }
  0x58   :  { %515 = vmatpush2.bf16.msra.mxu0 %v12638_v49 }
  0x59   :  { %516 = vmatprep.subr.bf16.mxu0 %v12648_v53  ;;  %556 = vmatpush2.bf16.msra.mxu1 %v12646_v52 }
  0x5a   :  { %557 = vmatprep.subr.bf16.mxu1 %v12651_v54 }
  0x5c   :  { %517 = vmatpush2.bf16.msra.mxu0 %v12654_v55 }
  0x5d   :  { %518 = vmatprep.subr.bf16.mxu0 %v12657_v56  ;;  %558 = vmatpush2.bf16.msra.mxu1 %v12660_v57  ;;  %v12690_v56 = vld [vmem:[#allocation6 + $0x100] ss:$16 sps:$4 sm:$0xff]  }
  0x5e   :  { %559 = vmatprep.subr.bf16.mxu1 %v12663_v58  ;;  %14294 = vst [vmem:[#allocation33_spill] sm:$0xff] %v12690_v56  ;;  %v12694_v58 = vld [vmem:[#allocation6 + $0x108] ss:$16 sps:$4 sm:$0xff]  }
  0x5f   :  { %14295 = vst [vmem:[#allocation34_spill] sm:$0xff] %v12694_v58 }
  0x60   :  { %519 = vmatpush2.bf16.msra.mxu0 %v12666_v59 }
  0x61   :  { %520 = vmatprep.subr.bf16.mxu0 %v12669_v60  ;;  %560 = vmatpush2.bf16.msra.mxu1 %v12672_v62 }
  0x62   :  { %561 = vmatprep.subr.bf16.mxu1 %v12675_v1 }
  0x64   :  { %521 = vmatpush2.bf16.msra.mxu0 %v12678_v51 }
  0x65   :  { %522 = vmatprep.subr.bf16.mxu0 %v12681_v0  ;;  %562 = vmatpush2.bf16.msra.mxu1 %v12684_v3 }
  0x66   :  { %563 = vmatprep.subr.bf16.mxu1 %v12687_v2 }
  0x68   :  { %523 = vmatpush2.bf16.msra.mxu0 %v12690_v56 }
  0x69   :  { %1013 = vmatprep.subr.bf16.mxu0 %v12506_v4  ;;  %564 = vmatpush2.bf16.msra.mxu1 %v12694_v58 }
  0x6a   :  { %1054 = vmatprep.subr.bf16.mxu1 %v12511_v6 }
  0x6b   :  { %525 = vmatmul.mubr.bf16.vlgmr.msra.gmra.mxu0 %v9539_v63 }
  0x6c   :  { %1014 = vmatpush1.bf16.msra.mxu0 %v12508_v5  ;;  %566 = vmatmul.mubr.bf16.vlgmr.msra.gmra.mxu1 %v9539_v63  ;;  %v14297_v63 = vld [vmem:[#allocation24_spill] sm:$0xff] }
  0x6d   :  { %1015 = vmatprep.subr.bf16.mxu0 %v12516_v8  ;;  %1055 = vmatpush1.bf16.msra.mxu1 %v12513_v7 }
  0x6e   :  { %1056 = vmatprep.subr.bf16.mxu1 %v12521_v10 }
  0x70   :  { %1016 = vmatpush1.bf16.msra.mxu0 %v12518_v9 }
  0x71   :  { %1017 = vmatprep.subr.bf16.mxu0 %v12528_v12  ;;  %1057 = vmatpush1.bf16.msra.mxu1 %v12525_v11 }
  0x72   :  { %1058 = vmatprep.subr.bf16.mxu1 %v12533_v14 }
  0x74   :  { %1018 = vmatpush1.bf16.msra.mxu0 %v12531_v13 }
  0x75   :  { %1019 = vmatprep.subr.bf16.mxu0 %v12536_v15  ;;  %1059 = vmatpush1.bf16.msra.mxu1 %v12539_v16 }
  0x76   :  { %1060 = vmatprep.subr.bf16.mxu1 %v12542_v17 }
  0x78   :  { %1020 = vmatpush1.bf16.msra.mxu0 %v12545_v18 }
  0x79   :  { %1021 = vmatprep.subr.bf16.mxu0 %v12548_v19  ;;  %1061 = vmatpush1.bf16.msra.mxu1 %v12551_v20 }
  0x7a   :  { %1062 = vmatprep.subr.bf16.mxu1 %v12554_v21 }
  0x7c   :  { %1022 = vmatpush1.bf16.msra.mxu0 %v12557_v22 }
  0x7d   :  { %1023 = vmatprep.subr.bf16.mxu0 %v12560_v23  ;;  %1063 = vmatpush1.bf16.msra.mxu1 %v12563_v24 }
  0x7e   :  { %1064 = vmatprep.subr.bf16.mxu1 %v12566_v25 }
  0x80   :  { %1024 = vmatpush1.bf16.msra.mxu0 %v12569_v26 }
  0x81   :  { %1025 = vmatprep.subr.bf16.mxu0 %v12572_v27  ;;  %1065 = vmatpush1.bf16.msra.mxu1 %v12575_v28 }
  0x82   :  { %1066 = vmatprep.subr.bf16.mxu1 %v12578_v29 }
  0x84   :  { %1026 = vmatpush1.bf16.msra.mxu0 %v12581_v30 }
  0x85   :  { %1027 = vmatprep.subr.bf16.mxu0 %v12584_v31  ;;  %1067 = vmatpush1.bf16.msra.mxu1 %v12587_v32 }
  0x86   :  { %1068 = vmatprep.subr.bf16.mxu1 %v12590_v33 }
  0x88   :  { %1028 = vmatpush1.bf16.msra.mxu0 %v12593_v34 }
  0x89   :  { %1029 = vmatprep.subr.bf16.mxu0 %v12596_v35  ;;  %1069 = vmatpush1.bf16.msra.mxu1 %v12599_v36 }
  0x8a   :  { %1070 = vmatprep.subr.bf16.mxu1 %v12602_v37 }
  0x8c   :  { %1030 = vmatpush2.bf16.msra.mxu0 %v12605_v38 }
  0x8d   :  { %1031 = vmatprep.subr.bf16.mxu0 %v12608_v39  ;;  %1071 = vmatpush2.bf16.msra.mxu1 %v12611_v40 }
  0x8e   :  { %1072 = vmatprep.subr.bf16.mxu1 %v12614_v41 }
  0x90   :  { %1032 = vmatpush2.bf16.msra.mxu0 %v12617_v42 }
  0x91   :  { %1033 = vmatprep.subr.bf16.mxu0 %v12620_v43  ;;  %1073 = vmatpush2.bf16.msra.mxu1 %v12623_v44 }
  0x92   :  { %1074 = vmatprep.subr.bf16.mxu1 %v12626_v45 }
  0x94   :  { %1034 = vmatpush2.bf16.msra.mxu0 %v12629_v46 }
  0x95   :  { %1035 = vmatprep.subr.bf16.mxu0 %v12632_v47  ;;  %1075 = vmatpush2.bf16.msra.mxu1 %v12635_v48 }
  0x96   :  { %1076 = vmatprep.subr.bf16.mxu1 %v12640_v50 }
  0x98   :  { %1036 = vmatpush2.bf16.msra.mxu0 %v12638_v49 }
  0x99   :  { %1037 = vmatprep.subr.bf16.mxu0 %v12648_v53  ;;  %1077 = vmatpush2.bf16.msra.mxu1 %v12646_v52 }
  0x9a   :  { %1078 = vmatprep.subr.bf16.mxu1 %v12651_v54 }
  0x9c   :  { %1038 = vmatpush2.bf16.msra.mxu0 %v12654_v55 }
  0x9d   :  { %1039 = vmatprep.subr.bf16.mxu0 %v14296_v61  ;;  %1079 = vmatpush2.bf16.msra.mxu1 %v12660_v57 }
  0x9e   :  { %1080 = vmatprep.subr.bf16.mxu1 %v14297_v63 }
  0xa0   :  { %1040 = vmatpush2.bf16.msra.mxu0 %v12666_v59 }
  0xa1   :  { %1041 = vmatprep.subr.bf16.mxu0 %v12669_v60  ;;  %1081 = vmatpush2.bf16.msra.mxu1 %v12672_v62  ;;  %v14174_v60 = vmov 0.0  }
  0xa2   :  { %1082 = vmatprep.subr.bf16.mxu1 %v12675_v1  ;;  %74 = vst [vmem:[%s14153_s10] sm:$0xff] %v14174_v60 }
  0xa4   :  { %1042 = vmatpush2.bf16.msra.mxu0 %v12678_v51 }
  0xa5   :  { %1043 = vmatprep.subr.bf16.mxu0 %v12681_v0  ;;  %1083 = vmatpush2.bf16.msra.mxu1 %v12684_v3  ;;  %v9605_v0 = vld [vmem:[%s14144_s1 + $0x4] sm:$0xf] }
  0xa6   :  { %1084 = vmatprep.subr.bf16.mxu1 %v12687_v2  ;;  %597 = vst [vmem:[#allocation2] sm:$0xf] %v9605_v0  ;;  %v14298_v2 = vlaneseq }
  0xa8   :  { %1044 = vmatpush2.bf16.msra.mxu0 %v12690_v56  ;;  %v146_v3 = vshrl.u32 %v14298_v2, 7 }
  0xa9   :  { %1534 = vmatprep.subr.bf16.mxu0 %v12506_v4  ;;  %1085 = vmatpush2.bf16.msra.mxu1 %v12694_v58  ;;  %v143_v4 = vld [vmem:[%s14148_s5] sm:$0xf] }
  0xaa   :  { %1575 = vmatprep.subr.bf16.mxu1 %v12511_v6  ;;  %v12775_v56 = vsub.s32 0, %v146_v3  ;;  %v12780_v6 = vsub.s32 1, %v146_v3  ;;  %v12783_v51 = vsub.s32 2, %v146_v3  ;;  %v12787_v52 = vsub.s32 3, %v146_v3 }
  0xac   :  { %14299 = vst [vmem:[#allocation35_spill] sm:$0xff] %v12775_v56  ;;  %14300 = vst [vmem:[#allocation36_spill] sm:$0xff] %v12780_v6  ;;  %v148_v58 = vrot.slane %v143_v4, %v12775_v56  ;;  %v152_v60 = vrot.slane %v143_v4, %v12780_v6  ;;  %v156_v0 = vrot.slane %v143_v4, %v12783_v51 }
  0xad   :  { %14301 = vst [vmem:[#allocation37_spill] sm:$0xff] %v12783_v51 }
 0x12b   :  { %v526_v1 = vpop.f32.mrf.mxu0 }
 0x12c   :  { %v527_v62 = vadd.f32 %v526_v1, %v148_v58  ;;  %v567_v2 = vpop.f32.mrf.mxu1  ;;  %v160_v58 = vrot.slane %v143_v4, %v12787_v52 }
 0x12d   :  { %v528_v59 = vpop.f32.mrf.mxu0  ;;  %v568_v53 = vadd.f32 %v567_v2, %v156_v0 }
 0x12e   :  { %v574_v63 = vmul.f32 0.5, %v527_v62  ;;  %v529_v61 = vadd.f32 %v528_v59, %v152_v60  ;;  %v569_v55 = vpop.f32.mrf.mxu1 }
 0x12f   :  { %v530_v57 = vpop.f32.mrf.mxu0  ;;  %v570_v1 = vadd.f32 %v569_v55, %v160_v58 }
 0x130   :  { %11418 = vtanh.f32 %v574_v63  ;;  %v578_v54 = vmul.f32 0.5, %v529_v61  ;;  %v571_v49 = vpop.f32.mrf.mxu1 }
 0x131   :  { %v531_v56 = vpop.f32.mrf.mxu0  ;;  %v583_v51 = vmul.f32 0.5, %v570_v1 }
 0x132   :  { %11420 = vtanh.f32 %v578_v54  ;;  %v572_v50 = vpop.f32.mrf.mxu1 }
 0x133   :  { %11422 = vtanh.f32 %v568_v53 }
 0x134   :  { %11424 = vtanh.f32 %v583_v51 }
 0x13d   :  { %v11419_v6 = vpop.eup %11418 }
 0x13e   :  { %v576_v47 = vadd.f32 1.0, %v11419_v6 }
 0x13f   :  { %v11421_v62 = vpop.eup %11420 }
 0x140   :  { %v577_v59 = vmul.f32 0.5, %v576_v47  ;;  %v580_v57 = vadd.f32 1.0, %v11421_v62  ;;  %v11423_v60 = vpop.eup %11422 }
 0x141   :  { %v11425_v49 = vpop.eup %11424 }
 0x142   :  { %v581_v61 = vmul.f32 0.5, %v580_v57  ;;  %v588_v3 = vmul.f32 %v11423_v60, %v577_v59  ;;  %v585_v50 = vadd.f32 1.0, %v11425_v49 }
 0x144   :  { %v587_v63 = vmul.f32 0.0, %v581_v61  ;;  %v586_v53 = vmul.f32 0.5, %v585_v50 }
 0x146   :  { %v12790_v0 = vadd.f32 %v588_v3, %v587_v63 }
 0x148   :  { %11426 = vtanh.f32 %v12790_v0 }
 0x155   :  { %v11427_v54 = vpop.eup %11426 }
 0x156   :  { %v591_v55 = vmul.f32 %v11427_v54, %v586_v53 }
 0x158   :  { %v592_v56 = vpack.c.bf16 %v591_v55, %v591_v55 }
 0x15a   :  { %593 = vst [vmem:[#allocation2 + $0x4] sm:$0xf] %v592_v56 }
 0x161   :  { %v598_v4 = vld [vmem:[#allocation2] sm:$0xff] }
 0x162   :  { %v9607_v6 = vcombine.high %v598_v4, %v598_v4  ;;  %v9606_v47 = vcombine.low %v598_v4, %v598_v4 }
 0x164   :  { %1045 = vmatprep.mubr.bf16.mxu0 %v9607_v6  ;;  %1086 = vmatprep.mubr.bf16.mxu1 %v9607_v6 }
 0x165   :  { %1046 = vmatmul.mubr.bf16.vlgmr.msra.gmra.mxu0 %v9606_v47  ;;  %1087 = vmatmul.mubr.bf16.vlgmr.msra.gmra.mxu1 %v9606_v47 }
 0x166   :  { %1535 = vmatpush1.bf16.msra.mxu0 %v12508_v5  ;;  %1576 = vmatpush1.bf16.msra.mxu1 %v12513_v7  ;;  %v14302_v5 = vld [vmem:[#allocation15_spill] sm:$0xff]  ;;  %v14303_v7 = vld [vmem:[#allocation17_spill] sm:$0xff] }
 0x167   :  { %1536 = vmatprep.subr.bf16.mxu0 %v12516_v8  ;;  %1577 = vmatprep.subr.bf16.mxu1 %v12521_v10  ;;  %v14304_v8 = vld [vmem:[#allocation16_spill] sm:$0xff]  ;;  %v14306_v10 = vld [vmem:[#allocation19_spill] sm:$0xff] }
 0x16a   :  { %1537 = vmatpush1.bf16.msra.mxu0 %v12518_v9  ;;  %1578 = vmatpush1.bf16.msra.mxu1 %v12525_v11  ;;  %v14305_v9 = vld [vmem:[#allocation18_spill] sm:$0xff]  ;;  %v14307_v11 = vld [vmem:[#allocation20_spill] sm:$0xff] }
 0x16b   :  { %1538 = vmatprep.subr.bf16.mxu0 %v12528_v12  ;;  %1579 = vmatprep.subr.bf16.mxu1 %v12533_v14  ;;  %v14308_v12 = vld [vmem:[#allocation21_spill] sm:$0xff]  ;;  %v14310_v14 = vld [vmem:[#allocation22_spill] sm:$0xff] }
 0x16e   :  { %1539 = vmatpush1.bf16.msra.mxu0 %v12531_v13  ;;  %1580 = vmatpush1.bf16.msra.mxu1 %v12539_v16  ;;  %v14309_v13 = vld [vmem:[#allocation23_spill] sm:$0xff]  ;;  %v14312_v16 = vld [vmem:[#allocation25_spill] sm:$0xff] }
 0x16f   :  { %1540 = vmatprep.subr.bf16.mxu0 %v12536_v15  ;;  %1581 = vmatprep.subr.bf16.mxu1 %v12542_v17  ;;  %v14311_v15 = vld [vmem:[#allocation24_spill] sm:$0xff]  ;;  %v14313_v17 = vld [vmem:[#allocation27_spill] sm:$0xff] }
 0x172   :  { %1541 = vmatpush1.bf16.msra.mxu0 %v12545_v18  ;;  %1582 = vmatpush1.bf16.msra.mxu1 %v12551_v20  ;;  %v14314_v18 = vld [vmem:[#allocation26_spill] sm:$0xff]  ;;  %v14316_v20 = vld [vmem:[#allocation29_spill] sm:$0xff] }
 0x173   :  { %1542 = vmatprep.subr.bf16.mxu0 %v12548_v19  ;;  %1583 = vmatprep.subr.bf16.mxu1 %v12554_v21  ;;  %v14315_v19 = vld [vmem:[#allocation28_spill] sm:$0xff]  ;;  %v14317_v21 = vld [vmem:[#allocation31_spill] sm:$0xff] }
 0x176   :  { %1543 = vmatpush1.bf16.msra.mxu0 %v12557_v22  ;;  %1584 = vmatpush1.bf16.msra.mxu1 %v12563_v24  ;;  %v14318_v22 = vld [vmem:[#allocation30_spill] sm:$0xff]  ;;  %v14320_v24 = vld [vmem:[#allocation33_spill] sm:$0xff] }
 0x177   :  { %1544 = vmatprep.subr.bf16.mxu0 %v12560_v23  ;;  %1585 = vmatprep.subr.bf16.mxu1 %v12566_v25  ;;  %v14319_v23 = vld [vmem:[#allocation32_spill] sm:$0xff]  ;;  %v14321_v25 = vld [vmem:[#allocation34_spill] sm:$0xff] }
 0x17a   :  { %1545 = vmatpush1.bf16.msra.mxu0 %v12569_v26  ;;  %1586 = vmatpush1.bf16.msra.mxu1 %v12575_v28  ;;  %v9672_v26 = vld [vmem:[%s14144_s1 + $0x8] sm:$0xf]  ;;  %v12860_v28 = vld [vmem:[#allocation6 + $0xec] ss:$16 sps:$4 sm:$0xff]  }
 0x17b   :  { %1546 = vmatprep.subr.bf16.mxu0 %v12572_v27  ;;  %1587 = vmatprep.subr.bf16.mxu1 %v12578_v29  ;;  %1118 = vst [vmem:[#allocation2] sm:$0xf] %v9672_v26  ;;  %v12858_v27 = vld [vmem:[#allocation6 + $0xe4] ss:$16 sps:$4 sm:$0xff]   ;;  %14323 = vst [vmem:[#allocation17_spill] sm:$0xff] %v12860_v28 }
 0x17c   :  { %14322 = vst [vmem:[#allocation15_spill] sm:$0xff] %v12858_v27  ;;  %v664_v29 = vld [vmem:[%s14148_s5] sm:$0xf]  ;;  %v12929_v26 = vld [vmem:[#allocation6 + $0x44] ss:$16 sps:$4 sm:$0xff]  }
 0x17d   :  { %v681_v2 = vrot.slane %v664_v29, %v12787_v52 }
 0x17e   :  { %1547 = vmatpush1.bf16.msra.mxu0 %v12581_v30  ;;  %1588 = vmatpush1.bf16.msra.mxu1 %v12587_v32  ;;  %v14324_v30 = vld [vmem:[#allocation35_spill] sm:$0xff]  ;;  %v14325_v32 = vld [vmem:[#allocation36_spill] sm:$0xff] }
 0x17f   :  { %1548 = vmatprep.subr.bf16.mxu0 %v12584_v31  ;;  %1589 = vmatprep.subr.bf16.mxu1 %v12590_v33  ;;  %v669_v31 = vrot.slane %v664_v29, %v14324_v30  ;;  %v673_v33 = vrot.slane %v664_v29, %v14325_v32 }
 0x182   :  { %1549 = vmatpush1.bf16.msra.mxu0 %v12593_v34  ;;  %1590 = vmatpush1.bf16.msra.mxu1 %v12599_v36 }
 0x183   :  { %1550 = vmatprep.subr.bf16.mxu0 %v12596_v35  ;;  %1591 = vmatprep.subr.bf16.mxu1 %v12602_v37 }
 0x186   :  { %1551 = vmatpush2.bf16.msra.mxu0 %v12605_v38  ;;  %1592 = vmatpush2.bf16.msra.mxu1 %v12611_v40  ;;  %v14326_v40 = vld [vmem:[#allocation37_spill] sm:$0xff] }
 0x187   :  { %1552 = vmatprep.subr.bf16.mxu0 %v12608_v39  ;;  %1593 = vmatprep.subr.bf16.mxu1 %v12614_v41  ;;  %v677_v41 = vrot.slane %v664_v29, %v14326_v40  ;;  %v12931_v29 = vld [vmem:[#allocation6 + $0x4c] ss:$16 sps:$4 sm:$0xff]  }
 0x18a   :  { %1553 = vmatpush2.bf16.msra.mxu0 %v12617_v42  ;;  %1594 = vmatpush2.bf16.msra.mxu1 %v12623_v44 }
 0x18b   :  { %1554 = vmatprep.subr.bf16.mxu0 %v12620_v43  ;;  %1595 = vmatprep.subr.bf16.mxu1 %v12626_v45 }
 0x18e   :  { %1555 = vmatpush2.bf16.msra.mxu0 %v12629_v46  ;;  %1596 = vmatpush2.bf16.msra.mxu1 %v12635_v48 }
 0x18f   :  { %1556 = vmatprep.subr.bf16.mxu0 %v14302_v5  ;;  %1597 = vmatprep.subr.bf16.mxu1 %v14303_v7 }
 0x192   :  { %1557 = vmatpush2.bf16.msra.mxu0 %v14304_v8  ;;  %1598 = vmatpush2.bf16.msra.mxu1 %v14305_v9  ;;  %v12875_v9 = vld [vmem:[#allocation6 + $0xe0] ss:$16 sps:$4 sm:$0xff]  }
 0x193   :  { %1558 = vmatprep.subr.bf16.mxu0 %v14306_v10  ;;  %1599 = vmatprep.subr.bf16.mxu1 %v14307_v11  ;;  %v12877_v10 = vld [vmem:[#allocation6 + $0xe8] ss:$16 sps:$4 sm:$0xff]   ;;  %v12881_v11 = vld [vmem:[#allocation6 + $0xcc] ss:$16 sps:$4 sm:$0xff]  }
 0x196   :  { %1559 = vmatpush2.bf16.msra.mxu0 %v14308_v12  ;;  %1600 = vmatpush2.bf16.msra.mxu1 %v14309_v13  ;;  %v12885_v12 = vld [vmem:[#allocation6 + $0xc0] ss:$16 sps:$4 sm:$0xff]   ;;  %v12887_v13 = vld [vmem:[#allocation6 + $0xc8] ss:$16 sps:$4 sm:$0xff]  }
 0x197   :  { %1560 = vmatprep.subr.bf16.mxu0 %v14310_v14  ;;  %1601 = vmatprep.subr.bf16.mxu1 %v14311_v15  ;;  %v12893_v14 = vld [vmem:[#allocation6 + $0xa4] ss:$16 sps:$4 sm:$0xff]   ;;  %v12895_v15 = vld [vmem:[#allocation6 + $0xac] ss:$16 sps:$4 sm:$0xff]  }
 0x19a   :  { %1561 = vmatpush2.bf16.msra.mxu0 %v14312_v16  ;;  %1602 = vmatpush2.bf16.msra.mxu1 %v14313_v17  ;;  %v12897_v16 = vld [vmem:[#allocation6 + $0xa0] ss:$16 sps:$4 sm:$0xff]   ;;  %v12899_v17 = vld [vmem:[#allocation6 + $0xa8] ss:$16 sps:$4 sm:$0xff]  }
 0x19b   :  { %1562 = vmatprep.subr.bf16.mxu0 %v14314_v18  ;;  %1603 = vmatprep.subr.bf16.mxu1 %v14315_v19  ;;  %v12905_v18 = vld [vmem:[#allocation6 + $0x84] ss:$16 sps:$4 sm:$0xff]   ;;  %v12907_v19 = vld [vmem:[#allocation6 + $0x8c] ss:$16 sps:$4 sm:$0xff]  }
 0x19e   :  { %1563 = vmatpush2.bf16.msra.mxu0 %v14316_v20  ;;  %1604 = vmatpush2.bf16.msra.mxu1 %v14317_v21  ;;  %v12909_v20 = vld [vmem:[#allocation6 + $0x80] ss:$16 sps:$4 sm:$0xff]   ;;  %v12911_v21 = vld [vmem:[#allocation6 + $0x88] ss:$16 sps:$4 sm:$0xff]  }
 0x19f   :  { %1564 = vmatprep.subr.bf16.mxu0 %v14318_v22  ;;  %1605 = vmatprep.subr.bf16.mxu1 %v14319_v23  ;;  %v12917_v22 = vld [vmem:[#allocation6 + $0x64] ss:$16 sps:$4 sm:$0xff]   ;;  %v12919_v23 = vld [vmem:[#allocation6 + $0x6c] ss:$16 sps:$4 sm:$0xff]  }
 0x1a2   :  { %1565 = vmatpush2.bf16.msra.mxu0 %v14320_v24  ;;  %1606 = vmatpush2.bf16.msra.mxu1 %v14321_v25  ;;  %v12921_v24 = vld [vmem:[#allocation6 + $0x60] ss:$16 sps:$4 sm:$0xff]   ;;  %v12923_v25 = vld [vmem:[#allocation6 + $0x68] ss:$16 sps:$4 sm:$0xff]  }
 0x1a3   :  { %2055 = vmatprep.subr.bf16.mxu0 %v12858_v27  ;;  %2096 = vmatprep.subr.bf16.mxu1 %v12860_v28 }
 0x225   :  { %v1047_v34 = vpop.f32.mrf.mxu0  ;;  %v1088_v35 = vpop.f32.mrf.mxu1 }
 0x226   :  { %v1048_v36 = vadd.f32 %v1047_v34, %v669_v31  ;;  %v1089_v51 = vadd.f32 %v1088_v35, %v677_v41  ;;  %v12933_v31 = vld [vmem:[#allocation6 + $0x40] ss:$16 sps:$4 sm:$0xff]   ;;  %v12941_v34 = vld [vmem:[#allocation6 + $0x24] ss:$16 sps:$4 sm:$0xff]   ;;  %v12943_v35 = vld [vmem:[#allocation6 + $0x2c] ss:$16 sps:$4 sm:$0xff]  }
 0x227   :  { %v1049_v37 = vpop.f32.mrf.mxu0  ;;  %v1090_v38 = vpop.f32.mrf.mxu1  ;;  %v12957_v41 = vld [vmem:[#allocation6] ss:$16 sps:$4 sm:$0xff]  }
 0x228   :  { %v1095_v39 = vmul.f32 0.5, %v1048_v36  ;;  %v1050_v42 = vadd.f32 %v1049_v37, %v673_v33  ;;  %v1091_v58 = vadd.f32 %v1090_v38, %v681_v2  ;;  %v12935_v33 = vld [vmem:[#allocation6 + $0x48] ss:$16 sps:$4 sm:$0xff]   ;;  %v12945_v36 = vld [vmem:[#allocation6 + $0x20] ss:$16 sps:$4 sm:$0xff]  }
 0x229   :  { %v1051_v43 = vpop.f32.mrf.mxu0  ;;  %v1092_v44 = vpop.f32.mrf.mxu1  ;;  %v12947_v37 = vld [vmem:[#allocation6 + $0x28] ss:$16 sps:$4 sm:$0xff]   ;;  %v12953_v38 = vld [vmem:[#allocation6 + $0x4] ss:$16 sps:$4 sm:$0xff]   ;;  %v12981_v2 = vld [vmem:[#allocation6 + $0x1c0] ss:$16 sps:$4 sm:$0xff]  }
 0x22a   :  { %11428 = vtanh.f32 %v1095_v39  ;;  %v1099_v45 = vmul.f32 0.5, %v1050_v42  ;;  %v1104_v1 = vmul.f32 0.5, %v1091_v58  ;;  %v12955_v39 = vld [vmem:[#allocation6 + $0xc] ss:$16 sps:$4 sm:$0xff]   ;;  %v12959_v42 = vld [vmem:[#allocation6 + $0x8] ss:$16 sps:$4 sm:$0xff]  }
 0x22b   :  { %v1052_v46 = vpop.f32.mrf.mxu0  ;;  %v1093_v48 = vpop.f32.mrf.mxu1  ;;  %v12965_v43 = vld [vmem:[#allocation6 + $0x1e4] ss:$16 sps:$4 sm:$0xff]   ;;  %v12967_v44 = vld [vmem:[#allocation6 + $0x1ec] ss:$16 sps:$4 sm:$0xff]   ;;  %v12983_v58 = vld [vmem:[#allocation6 + $0x1c8] ss:$16 sps:$4 sm:$0xff]  }
 0x22c   :  { %11430 = vtanh.f32 %v1099_v45  ;;  %v12969_v45 = vld [vmem:[#allocation6 + $0x1e0] ss:$16 sps:$4 sm:$0xff]   ;;  %v12971_v46 = vld [vmem:[#allocation6 + $0x1e8] ss:$16 sps:$4 sm:$0xff]   ;;  %v12977_v48 = vld [vmem:[#allocation6 + $0x1c4] ss:$16 sps:$4 sm:$0xff]  }
 0x22d   :  { %11432 = vtanh.f32 %v1089_v51  ;;  %v12979_v51 = vld [vmem:[#allocation6 + $0x1cc] ss:$16 sps:$4 sm:$0xff]  }
 0x22e   :  { %11434 = vtanh.f32 %v1104_v1  ;;  %v12989_v1 = vld [vmem:[#allocation6 + $0x1a4] ss:$16 sps:$4 sm:$0xff]  }
 0x237   :  { %v11429_v62 = vpop.eup %11428 }
 0x238   :  { %v1097_v59 = vadd.f32 1.0, %v11429_v62  ;;  %v12991_v62 = vld [vmem:[#allocation6 + $0x1ac] ss:$16 sps:$4 sm:$0xff]  }
 0x239   :  { %v11431_v57 = vpop.eup %11430  ;;  %14327 = vst [vmem:[#allocation16_spill] sm:$0xff] %v12991_v62 }
 0x23a   :  { %v1098_v60 = vmul.f32 0.5, %v1097_v59  ;;  %v1101_v61 = vadd.f32 1.0, %v11431_v57  ;;  %v11433_v3 = vpop.eup %11432  ;;  %v12993_v59 = vld [vmem:[#allocation6 + $0x1a0] ss:$16 sps:$4 sm:$0xff]   ;;  %v12995_v57 = vld [vmem:[#allocation6 + $0x1a8] ss:$16 sps:$4 sm:$0xff]  }
 0x23b   :  { %v11435_v54 = vpop.eup %11434  ;;  %14328 = vst [vmem:[#allocation18_spill] sm:$0xff] %v12993_v59  ;;  %14329 = vst [vmem:[#allocation19_spill] sm:$0xff] %v12995_v57 }
 0x23c   :  { %v1102_v63 = vmul.f32 0.5, %v1101_v61  ;;  %v1109_v50 = vmul.f32 %v11433_v3, %v1098_v60  ;;  %v1106_v55 = vadd.f32 1.0, %v11435_v54  ;;  %v13001_v60 = vld [vmem:[#allocation6 + $0x184] ss:$16 sps:$4 sm:$0xff]   ;;  %v13003_v61 = vld [vmem:[#allocation6 + $0x18c] ss:$16 sps:$4 sm:$0xff]  }
 0x23d   :  { %14330 = vst [vmem:[#allocation20_spill] sm:$0xff] %v13001_v60  ;;  %14331 = vst [vmem:[#allocation21_spill] sm:$0xff] %v13003_v61  ;;  %v13007_v3 = vld [vmem:[#allocation6 + $0x188] ss:$16 sps:$4 sm:$0xff]   ;;  %v13017_v54 = vld [vmem:[#allocation6 + $0x160] ss:$16 sps:$4 sm:$0xff]  }
 0x23e   :  { %v1108_v49 = vmul.f32 %v1102_v63, %v12790_v0  ;;  %v1107_v56 = vmul.f32 0.5, %v1106_v55  ;;  %v12879_v0 = vld [vmem:[#allocation6 + $0xc4] ss:$16 sps:$4 sm:$0xff]   ;;  %v13005_v63 = vld [vmem:[#allocation6 + $0x180] ss:$16 sps:$4 sm:$0xff]   ;;  %14333 = vst [vmem:[#allocation22_spill] sm:$0xff] %v13007_v3 }
 0x23f   :  { %14332 = vst [vmem:[#allocation23_spill] sm:$0xff] %v13005_v63  ;;  %14336 = vst [vmem:[#allocation27_spill] sm:$0xff] %v13017_v54  ;;  %v13019_v55 = vld [vmem:[#allocation6 + $0x168] ss:$16 sps:$4 sm:$0xff]  }
 0x240   :  { %v12872_v53 = vadd.f32 %v1109_v50, %v1108_v49  ;;  %v13013_v49 = vld [vmem:[#allocation6 + $0x164] ss:$16 sps:$4 sm:$0xff]   ;;  %v13015_v50 = vld [vmem:[#allocation6 + $0x16c] ss:$16 sps:$4 sm:$0xff]   ;;  %14337 = vst [vmem:[#allocation26_spill] sm:$0xff] %v13019_v55 }
 0x241   :  { %14334 = vst [vmem:[#allocation24_spill] sm:$0xff] %v13013_v49  ;;  %14335 = vst [vmem:[#allocation25_spill] sm:$0xff] %v13015_v50 }
 0x242   :  { %11436 = vtanh.f32 %v12872_v53 }
 0x24f   :  { %v11437_v4 = vpop.eup %11436 }
 0x250   :  { %v1112_v6 = vmul.f32 %v11437_v4, %v1107_v56  ;;  %v13025_v56 = vld [vmem:[#allocation6 + $0x144] ss:$16 sps:$4 sm:$0xff]   ;;  %v13027_v4 = vld [vmem:[#allocation6 + $0x14c] ss:$16 sps:$4 sm:$0xff]  }
 0x251   :  { %14338 = vst [vmem:[#allocation28_spill] sm:$0xff] %v13025_v56  ;;  %14339 = vst [vmem:[#allocation29_spill] sm:$0xff] %v13027_v4 }
 0x252   :  { %v1113_v47 = vpack.c.bf16 %v1112_v6, %v1112_v6  ;;  %v13029_v6 = vld [vmem:[#allocation6 + $0x140] ss:$16 sps:$4 sm:$0xff]  }
 0x253   :  { %14340 = vst [vmem:[#allocation31_spill] sm:$0xff] %v13029_v6 }
 0x254   :  { %1114 = vst [vmem:[#allocation2 + $0x4] sm:$0xf] %v1113_v47  ;;  %v13031_v47 = vld [vmem:[#allocation6 + $0x148] ss:$16 sps:$4 sm:$0xff]  }
 0x255   :  { %14341 = vst [vmem:[#allocation30_spill] sm:$0xff] %v13031_v47 }
 0x25b   :  { %v1119_v5 = vld [vmem:[#allocation2] sm:$0xff] }
 0x25c   :  { %v9674_v7 = vcombine.high %v1119_v5, %v1119_v5  ;;  %v9673_v8 = vcombine.low %v1119_v5, %v1119_v5  ;;  %v13035_v5 = vld [vmem:[#allocation6 + $0x124] ss:$16 sps:$4 sm:$0xff]  }
 0x25d   :  { %14342 = vst [vmem:[#allocation32_spill] sm:$0xff] %v13035_v5 }
 0x25e   :  { %1566 = vmatprep.mubr.bf16.mxu0 %v9674_v7  ;;  %1607 = vmatprep.mubr.bf16.mxu1 %v9674_v7  ;;  %v13039_v7 = vld [vmem:[#allocation6 + $0x120] ss:$16 sps:$4 sm:$0xff]  }
 0x25f   :  { %1567 = vmatmul.mubr.bf16.vlgmr.msra.gmra.mxu0 %v9673_v8  ;;  %1608 = vmatmul.mubr.bf16.vlgmr.msra.gmra.mxu1 %v9673_v8  ;;  %14343 = vst [vmem:[#allocation33_spill] sm:$0xff] %v13039_v7  ;;  %v13041_v8 = vld [vmem:[#allocation6 + $0x128] ss:$16 sps:$4 sm:$0xff]  }
 0x260   :  { %2056 = vmatpush1.bf16.msra.mxu0 %v12875_v9  ;;  %2097 = vmatpush1.bf16.msra.mxu1 %v12877_v10  ;;  %14344 = vst [vmem:[#allocation34_spill] sm:$0xff] %v13041_v8 }
 0x261   :  { %2057 = vmatprep.subr.bf16.mxu0 %v12879_v0  ;;  %2098 = vmatprep.subr.bf16.mxu1 %v12881_v11 }
 0x264   :  { %2058 = vmatpush1.bf16.msra.mxu0 %v12885_v12  ;;  %2099 = vmatpush1.bf16.msra.mxu1 %v12887_v13 }
 0x265   :  { %2059 = vmatprep.subr.bf16.mxu0 %v12893_v14  ;;  %2100 = vmatprep.subr.bf16.mxu1 %v12895_v15 }
 0x268   :  { %2060 = vmatpush1.bf16.msra.mxu0 %v12897_v16  ;;  %2101 = vmatpush1.bf16.msra.mxu1 %v12899_v17 }
 0x269   :  { %2061 = vmatprep.subr.bf16.mxu0 %v12905_v18  ;;  %2102 = vmatprep.subr.bf16.mxu1 %v12907_v19 }
 0x26c   :  { %2062 = vmatpush1.bf16.msra.mxu0 %v12909_v20  ;;  %2103 = vmatpush1.bf16.msra.mxu1 %v12911_v21 }
 0x26d   :  { %2063 = vmatprep.subr.bf16.mxu0 %v12917_v22  ;;  %2104 = vmatprep.subr.bf16.mxu1 %v12919_v23 }
 0x270   :  { %2064 = vmatpush1.bf16.msra.mxu0 %v12921_v24  ;;  %2105 = vmatpush1.bf16.msra.mxu1 %v12923_v25 }
 0x271   :  { %2065 = vmatprep.subr.bf16.mxu0 %v12929_v26  ;;  %2106 = vmatprep.subr.bf16.mxu1 %v12931_v29 }
 0x274   :  { %2066 = vmatpush1.bf16.msra.mxu0 %v12933_v31  ;;  %2107 = vmatpush1.bf16.msra.mxu1 %v12935_v33 }
 0x275   :  { %2067 = vmatprep.subr.bf16.mxu0 %v12941_v34  ;;  %2108 = vmatprep.subr.bf16.mxu1 %v12943_v35 }
 0x278   :  { %2068 = vmatpush1.bf16.msra.mxu0 %v12945_v36  ;;  %2109 = vmatpush1.bf16.msra.mxu1 %v12947_v37 }
 0x279   :  { %2069 = vmatprep.subr.bf16.mxu0 %v12953_v38  ;;  %2110 = vmatprep.subr.bf16.mxu1 %v12955_v39 }
 0x27c   :  { %2070 = vmatpush1.bf16.msra.mxu0 %v12957_v41  ;;  %2111 = vmatpush1.bf16.msra.mxu1 %v12959_v42 }
 0x27d   :  { %2071 = vmatprep.subr.bf16.mxu0 %v12965_v43  ;;  %2112 = vmatprep.subr.bf16.mxu1 %v12967_v44 }
 0x280   :  { %2072 = vmatpush2.bf16.msra.mxu0 %v12969_v45  ;;  %2113 = vmatpush2.bf16.msra.mxu1 %v12971_v46 }
 0x281   :  { %2073 = vmatprep.subr.bf16.mxu0 %v12977_v48  ;;  %2114 = vmatprep.subr.bf16.mxu1 %v12979_v51 }
 0x284   :  { %2074 = vmatpush2.bf16.msra.mxu0 %v12981_v2  ;;  %2115 = vmatpush2.bf16.msra.mxu1 %v12983_v58 }
 0x285   :  { %2075 = vmatprep.subr.bf16.mxu0 %v12989_v1  ;;  %2116 = vmatprep.subr.bf16.mxu1 %v12991_v62 }
 0x288   :  { %2076 = vmatpush2.bf16.msra.mxu0 %v12993_v59  ;;  %2117 = vmatpush2.bf16.msra.mxu1 %v12995_v57 }
 0x289   :  { %2077 = vmatprep.subr.bf16.mxu0 %v13001_v60  ;;  %2118 = vmatprep.subr.bf16.mxu1 %v13003_v61 }
 0x28c   :  { %2078 = vmatpush2.bf16.msra.mxu0 %v13005_v63  ;;  %2119 = vmatpush2.bf16.msra.mxu1 %v13007_v3 }
 0x28d   :  { %2079 = vmatprep.subr.bf16.mxu0 %v13013_v49  ;;  %2120 = vmatprep.subr.bf16.mxu1 %v13015_v50  ;;  %v13048_v50 = vld [vmem:[#allocation6 + $0x10c] ss:$16 sps:$4 sm:$0xff]  }
 0x28e   :  { %14347 = vst [vmem:[#allocation40_spill] sm:$0xff] %v13048_v50 }
 0x290   :  { %2080 = vmatpush2.bf16.msra.mxu0 %v13017_v54  ;;  %2121 = vmatpush2.bf16.msra.mxu1 %v13019_v55  ;;  %v13043_v55 = vld [vmem:[#allocation6 + $0x12c] ss:$16 sps:$4 sm:$0xff]   ;;  %v13046_v54 = vld [vmem:[#allocation6 + $0x104] ss:$16 sps:$4 sm:$0xff]  }
 0x291   :  { %2081 = vmatprep.subr.bf16.mxu0 %v13025_v56  ;;  %2122 = vmatprep.subr.bf16.mxu1 %v13027_v4  ;;  %14345 = vst [vmem:[#allocation38_spill] sm:$0xff] %v13043_v55  ;;  %14346 = vst [vmem:[#allocation39_spill] sm:$0xff] %v13046_v54  ;;  %v9739_v4 = vld [vmem:[%s14144_s1 + $0xc] sm:$0xf] }
 0x292   :  { %1639 = vst [vmem:[#allocation2] sm:$0xf] %v9739_v4  ;;  %v1185_v4 = vld [vmem:[%s14148_s5] sm:$0xf] }
 0x294   :  { %2082 = vmatpush2.bf16.msra.mxu0 %v13029_v6  ;;  %2123 = vmatpush2.bf16.msra.mxu1 %v13031_v47  ;;  %v13056_v47 = vld [vmem:[#allocation6 + $0x100] ss:$16 sps:$4 sm:$0xff]   ;;  %v13058_v6 = vld [vmem:[#allocation6 + $0x108] ss:$16 sps:$4 sm:$0xff]  }
 0x295   :  { %2083 = vmatprep.subr.bf16.mxu0 %v13035_v5  ;;  %2124 = vmatprep.subr.bf16.mxu1 %v13043_v55  ;;  %14348 = vst [vmem:[#allocation41_spill] sm:$0xff] %v13056_v47  ;;  %14349 = vst [vmem:[#allocation42_spill] sm:$0xff] %v13058_v6 }
 0x298   :  { %2084 = vmatpush2.bf16.msra.mxu0 %v13039_v7  ;;  %2125 = vmatpush2.bf16.msra.mxu1 %v13041_v8  ;;  %v1190_v8 = vrot.slane %v1185_v4, %v14324_v30  ;;  %v1194_v7 = vrot.slane %v1185_v4, %v14325_v32  ;;  %v1202_v30 = vrot.slane %v1185_v4, %v12787_v52 }
 0x299   :  { %2085 = vmatprep.subr.bf16.mxu0 %v13046_v54  ;;  %2126 = vmatprep.subr.bf16.mxu1 %v13048_v50 }
 0x29c   :  { %2086 = vmatpush2.bf16.msra.mxu0 %v13056_v47  ;;  %2127 = vmatpush2.bf16.msra.mxu1 %v13058_v6  ;;  %v1198_v6 = vrot.slane %v1185_v4, %v14326_v40  ;;  %v14355_v4 = vld [vmem:[#allocation23_spill] sm:$0xff] }
 0x29d   :  { %2576 = vmatprep.subr.bf16.mxu0 %v12858_v27  ;;  %2617 = vmatprep.subr.bf16.mxu1 %v12860_v28 }
 0x31f   :  { %v1568_v55 = vpop.f32.mrf.mxu0  ;;  %v1609_v54 = vpop.f32.mrf.mxu1 }
 0x320   :  { %v1569_v5 = vadd.f32 %v1568_v55, %v1190_v8  ;;  %v1610_v60 = vadd.f32 %v1609_v54, %v1198_v6 }
 0x321   :  { %v1570_v50 = vpop.f32.mrf.mxu0  ;;  %v1611_v56 = vpop.f32.mrf.mxu1 }
 0x322   :  { %v1616_v47 = vmul.f32 0.5, %v1569_v5  ;;  %v1571_v49 = vadd.f32 %v1570_v50, %v1194_v7  ;;  %v1612_v32 = vadd.f32 %v1611_v56, %v1202_v30  ;;  %v14354_v7 = vld [vmem:[#allocation21_spill] sm:$0xff] }
 0x323   :  { %v1572_v27 = vpop.f32.mrf.mxu0  ;;  %v1613_v3 = vpop.f32.mrf.mxu1 }
 0x324   :  { %11438 = vtanh.f32 %v1616_v47  ;;  %v1620_v28 = vmul.f32 0.5, %v1571_v49  ;;  %v1625_v57 = vmul.f32 0.5, %v1612_v32  ;;  %v14353_v47 = vld [vmem:[#allocation20_spill] sm:$0xff] }
 0x325   :  { %v1573_v63 = vpop.f32.mrf.mxu0  ;;  %v1614_v61 = vpop.f32.mrf.mxu1 }
 0x326   :  { %11440 = vtanh.f32 %v1620_v28 }
 0x327   :  { %11442 = vtanh.f32 %v1610_v60 }
 0x328   :  { %11444 = vtanh.f32 %v1625_v57  ;;  %v14352_v57 = vld [vmem:[#allocation19_spill] sm:$0xff] }
 0x331   :  { %v11439_v55 = vpop.eup %11438 }
 0x332   :  { %v1618_v8 = vadd.f32 1.0, %v11439_v55  ;;  %v14356_v55 = vld [vmem:[#allocation22_spill] sm:$0xff] }
 0x333   :  { %v11441_v59 = vpop.eup %11440 }
 0x334   :  { %v1619_v5 = vmul.f32 0.5, %v1618_v8  ;;  %v1622_v62 = vadd.f32 1.0, %v11441_v59  ;;  %v11443_v27 = vpop.eup %11442  ;;  %v14357_v8 = vld [vmem:[#allocation24_spill] sm:$0xff] }
 0x335   :  { %v11445_v28 = vpop.eup %11444 }
 0x336   :  { %v1623_v50 = vmul.f32 0.5, %v1622_v62  ;;  %v1630_v49 = vmul.f32 %v11443_v27, %v1619_v5  ;;  %v1627_v61 = vadd.f32 1.0, %v11445_v28  ;;  %v14351_v62 = vld [vmem:[#allocation18_spill] sm:$0xff]  ;;  %v14358_v5 = vld [vmem:[#allocation25_spill] sm:$0xff]  ;;  %v14363_v28 = vld [vmem:[#allocation31_spill] sm:$0xff] }
 0x337   :  { %v14360_v27 = vld [vmem:[#allocation26_spill] sm:$0xff] }
 0x338   :  { %v1629_v3 = vmul.f32 %v1623_v50, %v12872_v53  ;;  %v1628_v60 = vmul.f32 0.5, %v1627_v61  ;;  %v14350_v53 = vld [vmem:[#allocation16_spill] sm:$0xff]  ;;  %v14359_v50 = vld [vmem:[#allocation27_spill] sm:$0xff]  ;;  %v14364_v61 = vld [vmem:[#allocation30_spill] sm:$0xff] }
 0x33a   :  { %v13074_v63 = vadd.f32 %v1630_v49, %v1629_v3  ;;  %v14361_v3 = vld [vmem:[#allocation28_spill] sm:$0xff]  ;;  %v14362_v49 = vld [vmem:[#allocation29_spill] sm:$0xff] }
 0x33c   :  { %11446 = vtanh.f32 %v13074_v63 }
 0x349   :  { %v11447_v30 = vpop.eup %11446 }
 0x34a   :  { %v1633_v32 = vmul.f32 %v11447_v30, %v1628_v60  ;;  %v14365_v60 = vld [vmem:[#allocation32_spill] sm:$0xff]  ;;  %v14366_v30 = vld [vmem:[#allocation38_spill] sm:$0xff] }
 0x34c   :  { %v1634_v54 = vpack.c.bf16 %v1633_v32, %v1633_v32  ;;  %v14367_v32 = vld [vmem:[#allocation33_spill] sm:$0xff] }
 0x34e   :  { %1635 = vst [vmem:[#allocation2 + $0x4] sm:$0xf] %v1634_v54  ;;  %v14368_v54 = vld [vmem:[#allocation34_spill] sm:$0xff] }
 0x355   :  { %v1640_v56 = vld [vmem:[#allocation2] sm:$0xff] }
 0x356   :  { %v9741_v6 = vcombine.high %v1640_v56, %v1640_v56  ;;  %v9740_v59 = vcombine.low %v1640_v56, %v1640_v56  ;;  %v14369_v56 = vld [vmem:[#allocation39_spill] sm:$0xff] }
 0x358   :  { %2087 = vmatprep.mubr.bf16.mxu0 %v9741_v6  ;;  %2128 = vmatprep.mubr.bf16.mxu1 %v9741_v6  ;;  %v14370_v6 = vld [vmem:[#allocation40_spill] sm:$0xff] }
 0x359   :  { %2088 = vmatmul.mubr.bf16.vlgmr.msra.gmra.mxu0 %v9740_v59  ;;  %2129 = vmatmul.mubr.bf16.vlgmr.msra.gmra.mxu1 %v9740_v59  ;;  %v14371_v59 = vld [vmem:[#allocation41_spill] sm:$0xff] }
 0x35a   :  { %2577 = vmatpush1.bf16.msra.mxu0 %v12875_v9  ;;  %2618 = vmatpush1.bf16.msra.mxu1 %v12877_v10 }
 0x35b   :  { %2578 = vmatprep.subr.bf16.mxu0 %v12879_v0  ;;  %2619 = vmatprep.subr.bf16.mxu1 %v12881_v11 }
 0x35e   :  { %2579 = vmatpush1.bf16.msra.mxu0 %v12885_v12  ;;  %2620 = vmatpush1.bf16.msra.mxu1 %v12887_v13 }
 0x35f   :  { %2580 = vmatprep.subr.bf16.mxu0 %v12893_v14  ;;  %2621 = vmatprep.subr.bf16.mxu1 %v12895_v15 }
 0x362   :  { %2581 = vmatpush1.bf16.msra.mxu0 %v12897_v16  ;;  %2622 = vmatpush1.bf16.msra.mxu1 %v12899_v17 }
 0x363   :  { %2582 = vmatprep.subr.bf16.mxu0 %v12905_v18  ;;  %2623 = vmatprep.subr.bf16.mxu1 %v12907_v19 }
 0x366   :  { %2583 = vmatpush1.bf16.msra.mxu0 %v12909_v20  ;;  %2624 = vmatpush1.bf16.msra.mxu1 %v12911_v21 }
 0x367   :  { %2584 = vmatprep.subr.bf16.mxu0 %v12917_v22  ;;  %2625 = vmatprep.subr.bf16.mxu1 %v12919_v23 }
 0x36a   :  { %2585 = vmatpush1.bf16.msra.mxu0 %v12921_v24  ;;  %2626 = vmatpush1.bf16.msra.mxu1 %v12923_v25 }
 0x36b   :  { %2586 = vmatprep.subr.bf16.mxu0 %v12929_v26  ;;  %2627 = vmatprep.subr.bf16.mxu1 %v12931_v29 }
 0x36e   :  { %2587 = vmatpush1.bf16.msra.mxu0 %v12933_v31  ;;  %2628 = vmatpush1.bf16.msra.mxu1 %v12935_v33 }
 0x36f   :  { %2588 = vmatprep.subr.bf16.mxu0 %v12941_v34  ;;  %2629 = vmatprep.subr.bf16.mxu1 %v12943_v35 }
 0x372   :  { %2589 = vmatpush1.bf16.msra.mxu0 %v12945_v36  ;;  %2630 = vmatpush1.bf16.msra.mxu1 %v12947_v37 }
 0x373   :  { %2590 = vmatprep.subr.bf16.mxu0 %v12953_v38  ;;  %2631 = vmatprep.subr.bf16.mxu1 %v12955_v39 }
 0x376   :  { %2591 = vmatpush1.bf16.msra.mxu0 %v12957_v41  ;;  %2632 = vmatpush1.bf16.msra.mxu1 %v12959_v42 }
 0x377   :  { %2592 = vmatprep.subr.bf16.mxu0 %v12965_v43  ;;  %2633 = vmatprep.subr.bf16.mxu1 %v12967_v44 }
 0x37a   :  { %2593 = vmatpush2.bf16.msra.mxu0 %v12969_v45  ;;  %2634 = vmatpush2.bf16.msra.mxu1 %v12971_v46 }
 0x37b   :  { %2594 = vmatprep.subr.bf16.mxu0 %v12977_v48  ;;  %2635 = vmatprep.subr.bf16.mxu1 %v12979_v51 }
 0x37e   :  { %2595 = vmatpush2.bf16.msra.mxu0 %v12981_v2  ;;  %2636 = vmatpush2.bf16.msra.mxu1 %v12983_v58 }
 0x37f   :  { %2596 = vmatprep.subr.bf16.mxu0 %v12989_v1  ;;  %2637 = vmatprep.subr.bf16.mxu1 %v14350_v53 }
 0x382   :  { %2597 = vmatpush2.bf16.msra.mxu0 %v14351_v62  ;;  %2638 = vmatpush2.bf16.msra.mxu1 %v14352_v57 }
 0x383   :  { %2598 = vmatprep.subr.bf16.mxu0 %v14353_v47  ;;  %2639 = vmatprep.subr.bf16.mxu1 %v14354_v7 }
 0x386   :  { %2599 = vmatpush2.bf16.msra.mxu0 %v14355_v4  ;;  %2640 = vmatpush2.bf16.msra.mxu1 %v14356_v55 }
 0x387   :  { %2600 = vmatprep.subr.bf16.mxu0 %v14357_v8  ;;  %2641 = vmatprep.subr.bf16.mxu1 %v14358_v5 }
 0x38a   :  { %2601 = vmatpush2.bf16.msra.mxu0 %v14359_v50  ;;  %2642 = vmatpush2.bf16.msra.mxu1 %v14360_v27 }
 0x38b   :  { %2602 = vmatprep.subr.bf16.mxu0 %v14361_v3  ;;  %2643 = vmatprep.subr.bf16.mxu1 %v14362_v49  ;;  %v14372_v3 = vld [vmem:[#allocation42_spill] sm:$0xff]  ;;  %v14373_v49 = vld [vmem:[#allocation15_spill] sm:$0xff] }
 0x38e   :  { %2603 = vmatpush2.bf16.msra.mxu0 %v14363_v28  ;;  %2644 = vmatpush2.bf16.msra.mxu1 %v14364_v61  ;;  %v14374_v28 = vld [vmem:[#allocation17_spill] sm:$0xff] }
 0x38f   :  { %2604 = vmatprep.subr.bf16.mxu0 %v14365_v60  ;;  %2645 = vmatprep.subr.bf16.mxu1 %v14366_v30  ;;  %v9806_v30 = vld [vmem:[%s14144_s1 + $0x10] sm:$0xf] }
 0x390   :  { %2160 = vst [vmem:[#allocation2] sm:$0xf] %v9806_v30 }
 0x392   :  { %2605 = vmatpush2.bf16.msra.mxu0 %v14367_v32  ;;  %2646 = vmatpush2.bf16.msra.mxu1 %v14368_v54  ;;  %v1706_v54 = vld [vmem:[%s14148_s5] sm:$0xf] }
 0x393   :  { %2606 = vmatprep.subr.bf16.mxu0 %v14369_v56  ;;  %2647 = vmatprep.subr.bf16.mxu1 %v14370_v6  ;;  %v14375_v56 = vld [vmem:[#allocation35_spill] sm:$0xff]  ;;  %v14376_v6 = vld [vmem:[#allocation36_spill] sm:$0xff] }
 0x394   :  { %v1711_v32 = vrot.slane %v1706_v54, %v14375_v56  ;;  %v1715_v60 = vrot.slane %v1706_v54, %v14376_v6  ;;  %v1723_v56 = vrot.slane %v1706_v54, %v12787_v52 }
 0x396   :  { %2607 = vmatpush2.bf16.msra.mxu0 %v14371_v59  ;;  %2648 = vmatpush2.bf16.msra.mxu1 %v14372_v3 }
 0x397   :  { %3097 = vmatprep.subr.bf16.mxu0 %v14373_v49  ;;  %3138 = vmatprep.subr.bf16.mxu1 %v14374_v28  ;;  %v1719_v28 = vrot.slane %v1706_v54, %v14326_v40 }
 0x419   :  { %v2089_v59 = vpop.f32.mrf.mxu0  ;;  %v2130_v61 = vpop.f32.mrf.mxu1 }
 0x41a   :  { %v2090_v3 = vadd.f32 %v2089_v59, %v1711_v32  ;;  %v2131_v47 = vadd.f32 %v2130_v61, %v1719_v28 }
 0x41b   :  { %v2091_v27 = vpop.f32.mrf.mxu0  ;;  %v2132_v49 = vpop.f32.mrf.mxu1 }
 0x41c   :  { %v2137_v50 = vmul.f32 0.5, %v2090_v3  ;;  %v2092_v5 = vadd.f32 %v2091_v27, %v1715_v60  ;;  %v2133_v6 = vadd.f32 %v2132_v49, %v1723_v56 }
 0x41d   :  { %v2093_v8 = vpop.f32.mrf.mxu0  ;;  %v2134_v55 = vpop.f32.mrf.mxu1 }
 0x41e   :  { %11448 = vtanh.f32 %v2137_v50  ;;  %v2141_v30 = vmul.f32 0.5, %v2092_v5  ;;  %v2146_v57 = vmul.f32 0.5, %v2133_v6 }
 0x41f   :  { %v2094_v4 = vpop.f32.mrf.mxu0  ;;  %v2135_v7 = vpop.f32.mrf.mxu1 }
 0x420   :  { %11450 = vtanh.f32 %v2141_v30 }
 0x421   :  { %11452 = vtanh.f32 %v2131_v47 }
 0x422   :  { %11454 = vtanh.f32 %v2146_v57 }
 0x42b   :  { %v11449_v32 = vpop.eup %11448 }
 0x42c   :  { %v2139_v59 = vadd.f32 1.0, %v11449_v32 }
 0x42d   :  { %v11451_v62 = vpop.eup %11450 }
 0x42e   :  { %v2140_v3 = vmul.f32 0.5, %v2139_v59  ;;  %v2143_v53 = vadd.f32 1.0, %v11451_v62  ;;  %v11453_v8 = vpop.eup %11452  ;;  %v9873_v62 = vld [vmem:[%s14144_s1 + $0x14] sm:$0xf] }
 0x42f   :  { %v11455_v7 = vpop.eup %11454 }
 0x430   :  { %v2144_v27 = vmul.f32 0.5, %v2143_v53  ;;  %v2151_v5 = vmul.f32 %v11453_v8, %v2140_v3  ;;  %v2148_v50 = vadd.f32 1.0, %v11455_v7 }
 0x432   :  { %v2150_v55 = vmul.f32 %v2144_v27, %v13074_v63  ;;  %v2149_v47 = vmul.f32 0.5, %v2148_v50 }
 0x434   :  { %v13152_v4 = vadd.f32 %v2151_v5, %v2150_v55 }
 0x436   :  { %11456 = vtanh.f32 %v13152_v4 }
 0x443   :  { %v11457_v61 = vpop.eup %11456 }
 0x444   :  { %v2154_v60 = vmul.f32 %v11457_v61, %v2149_v47 }
 0x446   :  { %v2155_v54 = vpack.c.bf16 %v2154_v60, %v2154_v60 }
 0x448   :  { %2156 = vst [vmem:[#allocation2 + $0x4] sm:$0xf] %v2155_v54 }
 0x44f   :  { %v2161_v53 = vld [vmem:[#allocation2] sm:$0xff] }
 0x450   :  { %v9808_v57 = vcombine.high %v2161_v53, %v2161_v53  ;;  %2681 = vst [vmem:[#allocation2] sm:$0xf] %v9873_v62  ;;  %v9807_v63 = vcombine.low %v2161_v53, %v2161_v53 }
 0x452   :  { %2608 = vmatprep.mubr.bf16.mxu0 %v9808_v57  ;;  %2649 = vmatprep.mubr.bf16.mxu1 %v9808_v57 }
 0x453   :  { %2609 = vmatmul.mubr.bf16.vlgmr.msra.gmra.mxu0 %v9807_v63  ;;  %2650 = vmatmul.mubr.bf16.vlgmr.msra.gmra.mxu1 %v9807_v63 }
 0x454   :  { %3098 = vmatpush1.bf16.msra.mxu0 %v12875_v9  ;;  %3139 = vmatpush1.bf16.msra.mxu1 %v12877_v10  ;;  %v14377_v9 = vld [vmem:[#allocation16_spill] sm:$0xff]  ;;  %v14378_v10 = vld [vmem:[#allocation18_spill] sm:$0xff] }
 0x455   :  { %3099 = vmatprep.subr.bf16.mxu0 %v12879_v0  ;;  %3140 = vmatprep.subr.bf16.mxu1 %v12881_v11  ;;  %v14379_v0 = vld [vmem:[#allocation19_spill] sm:$0xff]  ;;  %v14380_v11 = vld [vmem:[#allocation20_spill] sm:$0xff] }
 0x458   :  { %3100 = vmatpush1.bf16.msra.mxu0 %v12885_v12  ;;  %3141 = vmatpush1.bf16.msra.mxu1 %v12887_v13  ;;  %v14381_v12 = vld [vmem:[#allocation21_spill] sm:$0xff]  ;;  %v14382_v13 = vld [vmem:[#allocation23_spill] sm:$0xff] }
 0x459   :  { %3101 = vmatprep.subr.bf16.mxu0 %v12893_v14  ;;  %3142 = vmatprep.subr.bf16.mxu1 %v12895_v15  ;;  %v14383_v14 = vld [vmem:[#allocation22_spill] sm:$0xff]  ;;  %v14384_v15 = vld [vmem:[#allocation24_spill] sm:$0xff] }
 0x45c   :  { %3102 = vmatpush1.bf16.msra.mxu0 %v12897_v16  ;;  %3143 = vmatpush1.bf16.msra.mxu1 %v12899_v17  ;;  %v14385_v16 = vld [vmem:[#allocation25_spill] sm:$0xff]  ;;  %v14386_v17 = vld [vmem:[#allocation27_spill] sm:$0xff] }
 0x45d   :  { %3103 = vmatprep.subr.bf16.mxu0 %v12905_v18  ;;  %3144 = vmatprep.subr.bf16.mxu1 %v12907_v19  ;;  %v14387_v18 = vld [vmem:[#allocation26_spill] sm:$0xff]  ;;  %v14388_v19 = vld [vmem:[#allocation28_spill] sm:$0xff] }
 0x460   :  { %3104 = vmatpush1.bf16.msra.mxu0 %v12909_v20  ;;  %3145 = vmatpush1.bf16.msra.mxu1 %v12911_v21  ;;  %v14389_v20 = vld [vmem:[#allocation29_spill] sm:$0xff]  ;;  %v14390_v21 = vld [vmem:[#allocation31_spill] sm:$0xff] }
 0x461   :  { %3105 = vmatprep.subr.bf16.mxu0 %v12917_v22  ;;  %3146 = vmatprep.subr.bf16.mxu1 %v12919_v23  ;;  %v14391_v22 = vld [vmem:[#allocation30_spill] sm:$0xff]  ;;  %v14392_v23 = vld [vmem:[#allocation32_spill] sm:$0xff] }
 0x464   :  { %3106 = vmatpush1.bf16.msra.mxu0 %v12921_v24  ;;  %3147 = vmatpush1.bf16.msra.mxu1 %v12923_v25  ;;  %v14393_v24 = vld [vmem:[#allocation38_spill] sm:$0xff]  ;;  %v14394_v25 = vld [vmem:[#allocation33_spill] sm:$0xff] }
 0x465   :  { %3107 = vmatprep.subr.bf16.mxu0 %v12929_v26  ;;  %3148 = vmatprep.subr.bf16.mxu1 %v12931_v29  ;;  %v14395_v26 = vld [vmem:[#allocation34_spill] sm:$0xff]  ;;  %v14396_v29 = vld [vmem:[#allocation39_spill] sm:$0xff] }
 0x468   :  { %3108 = vmatpush1.bf16.msra.mxu0 %v12933_v31  ;;  %3149 = vmatpush1.bf16.msra.mxu1 %v12935_v33  ;;  %v14397_v31 = vld [vmem:[#allocation40_spill] sm:$0xff]  ;;  %v14398_v33 = vld [vmem:[#allocation41_spill] sm:$0xff] }
 0x469   :  { %3109 = vmatprep.subr.bf16.mxu0 %v12941_v34  ;;  %3150 = vmatprep.subr.bf16.mxu1 %v12943_v35  ;;  %v14399_v34 = vld [vmem:[#allocation42_spill] sm:$0xff]  ;;  %v13220_v35 = vld [vmem:[#allocation6 + $0xe4] ss:$16 sps:$4 sm:$0xff]  }
 0x46c   :  { %3110 = vmatpush1.bf16.msra.mxu0 %v12945_v36  ;;  %3151 = vmatpush1.bf16.msra.mxu1 %v12947_v37  ;;  %v13222_v36 = vld [vmem:[#allocation6 + $0xec] ss:$16 sps:$4 sm:$0xff]   ;;  %v2227_v37 = vld [vmem:[%s14148_s5] sm:$0xf] }
 0x46d   :  { %3111 = vmatprep.subr.bf16.mxu0 %v12953_v38  ;;  %3152 = vmatprep.subr.bf16.mxu1 %v12955_v39  ;;  %v14400_v38 = vld [vmem:[#allocation35_spill] sm:$0xff]  ;;  %v2244_v32 = vrot.slane %v2227_v37, %v12787_v52 }
 0x46e   :  { %v2232_v39 = vrot.slane %v2227_v37, %v14400_v38 }
 0x470   :  { %3112 = vmatpush1.bf16.msra.mxu0 %v12957_v41  ;;  %3153 = vmatpush1.bf16.msra.mxu1 %v12959_v42  ;;  %v14401_v41 = vld [vmem:[#allocation36_spill] sm:$0xff] }
 0x471   :  { %3113 = vmatprep.subr.bf16.mxu0 %v12965_v43  ;;  %3154 = vmatprep.subr.bf16.mxu1 %v12967_v44  ;;  %v2236_v42 = vrot.slane %v2227_v37, %v14401_v41 }
 0x474   :  { %3114 = vmatpush2.bf16.msra.mxu0 %v12969_v45  ;;  %3155 = vmatpush2.bf16.msra.mxu1 %v12971_v46 }
 0x475   :  { %3115 = vmatprep.subr.bf16.mxu0 %v12977_v48  ;;  %3156 = vmatprep.subr.bf16.mxu1 %v12979_v51 }
 0x478   :  { %3116 = vmatpush2.bf16.msra.mxu0 %v12981_v2  ;;  %3157 = vmatpush2.bf16.msra.mxu1 %v12983_v58  ;;  %v2240_v2 = vrot.slane %v2227_v37, %v14326_v40  ;;  %v13294_v37 = vld [vmem:[#allocation6 + $0x44] ss:$16 sps:$4 sm:$0xff]  }
 0x479   :  { %3117 = vmatprep.subr.bf16.mxu0 %v12989_v1  ;;  %3158 = vmatprep.subr.bf16.mxu1 %v14377_v9 }
 0x47c   :  { %3118 = vmatpush2.bf16.msra.mxu0 %v14378_v10  ;;  %3159 = vmatpush2.bf16.msra.mxu1 %v14379_v0  ;;  %v9940_v0 = vld [vmem:[%s14144_s1 + $0x18] sm:$0xf] }
 0x47d   :  { %3119 = vmatprep.subr.bf16.mxu0 %v14380_v11  ;;  %3160 = vmatprep.subr.bf16.mxu1 %v14381_v12 }
 0x480   :  { %3120 = vmatpush2.bf16.msra.mxu0 %v14382_v13  ;;  %3161 = vmatpush2.bf16.msra.mxu1 %v14383_v14  ;;  %v13240_v13 = vld [vmem:[#allocation6 + $0xe0] ss:$16 sps:$4 sm:$0xff]   ;;  %v13242_v14 = vld [vmem:[#allocation6 + $0xe8] ss:$16 sps:$4 sm:$0xff]  }
 0x481   :  { %3121 = vmatprep.subr.bf16.mxu0 %v14384_v15  ;;  %3162 = vmatprep.subr.bf16.mxu1 %v14385_v16  ;;  %v13244_v15 = vld [vmem:[#allocation6 + $0xc4] ss:$16 sps:$4 sm:$0xff]   ;;  %v13246_v16 = vld [vmem:[#allocation6 + $0xcc] ss:$16 sps:$4 sm:$0xff]  }
 0x484   :  { %3122 = vmatpush2.bf16.msra.mxu0 %v14386_v17  ;;  %3163 = vmatpush2.bf16.msra.mxu1 %v14387_v18  ;;  %v13250_v17 = vld [vmem:[#allocation6 + $0xc0] ss:$16 sps:$4 sm:$0xff]   ;;  %v13252_v18 = vld [vmem:[#allocation6 + $0xc8] ss:$16 sps:$4 sm:$0xff]  }
 0x485   :  { %3123 = vmatprep.subr.bf16.mxu0 %v14388_v19  ;;  %3164 = vmatprep.subr.bf16.mxu1 %v14389_v20  ;;  %v13258_v19 = vld [vmem:[#allocation6 + $0xa4] ss:$16 sps:$4 sm:$0xff]   ;;  %v13260_v20 = vld [vmem:[#allocation6 + $0xac] ss:$16 sps:$4 sm:$0xff]  }
 0x488   :  { %3124 = vmatpush2.bf16.msra.mxu0 %v14390_v21  ;;  %3165 = vmatpush2.bf16.msra.mxu1 %v14391_v22  ;;  %v13262_v21 = vld [vmem:[#allocation6 + $0xa0] ss:$16 sps:$4 sm:$0xff]   ;;  %v13264_v22 = vld [vmem:[#allocation6 + $0xa8] ss:$16 sps:$4 sm:$0xff]  }
 0x489   :  { %3125 = vmatprep.subr.bf16.mxu0 %v14392_v23  ;;  %3166 = vmatprep.subr.bf16.mxu1 %v14393_v24  ;;  %v13270_v23 = vld [vmem:[#allocation6 + $0x84] ss:$16 sps:$4 sm:$0xff]   ;;  %v13272_v24 = vld [vmem:[#allocation6 + $0x8c] ss:$16 sps:$4 sm:$0xff]  }
 0x48c   :  { %3126 = vmatpush2.bf16.msra.mxu0 %v14394_v25  ;;  %3167 = vmatpush2.bf16.msra.mxu1 %v14395_v26  ;;  %v13274_v25 = vld [vmem:[#allocation6 + $0x80] ss:$16 sps:$4 sm:$0xff]   ;;  %v13276_v26 = vld [vmem:[#allocation6 + $0x88] ss:$16 sps:$4 sm:$0xff]  }
 0x48d   :  { %3127 = vmatprep.subr.bf16.mxu0 %v14396_v29  ;;  %3168 = vmatprep.subr.bf16.mxu1 %v14397_v31  ;;  %v13282_v29 = vld [vmem:[#allocation6 + $0x64] ss:$16 sps:$4 sm:$0xff]   ;;  %v13284_v31 = vld [vmem:[#allocation6 + $0x6c] ss:$16 sps:$4 sm:$0xff]  }
 0x490   :  { %3128 = vmatpush2.bf16.msra.mxu0 %v14398_v33  ;;  %3169 = vmatpush2.bf16.msra.mxu1 %v14399_v34  ;;  %v13286_v33 = vld [vmem:[#allocation6 + $0x60] ss:$16 sps:$4 sm:$0xff]   ;;  %v13288_v34 = vld [vmem:[#allocation6 + $0x68] ss:$16 sps:$4 sm:$0xff]  }
 0x491   :  { %3618 = vmatprep.subr.bf16.mxu0 %v13220_v35  ;;  %3659 = vmatprep.subr.bf16.mxu1 %v13222_v36 }
 0x513   :  { %v2610_v43 = vpop.f32.mrf.mxu0  ;;  %v2651_v44 = vpop.f32.mrf.mxu1 }
 0x514   :  { %v2611_v45 = vadd.f32 %v2610_v43, %v2232_v39  ;;  %v2652_v30 = vadd.f32 %v2651_v44, %v2240_v2  ;;  %v13296_v39 = vld [vmem:[#allocation6 + $0x4c] ss:$16 sps:$4 sm:$0xff]   ;;  %v13300_v43 = vld [vmem:[#allocation6 + $0x48] ss:$16 sps:$4 sm:$0xff]   ;;  %v13306_v44 = vld [vmem:[#allocation6 + $0x24] ss:$16 sps:$4 sm:$0xff]  }
 0x515   :  { %v2612_v46 = vpop.f32.mrf.mxu0  ;;  %v2653_v48 = vpop.f32.mrf.mxu1  ;;  %v13320_v2 = vld [vmem:[#allocation6 + $0xc] ss:$16 sps:$4 sm:$0xff]  }
 0x516   :  { %v2658_v51 = vmul.f32 0.5, %v2611_v45  ;;  %v2613_v58 = vadd.f32 %v2612_v46, %v2236_v42  ;;  %v2654_v59 = vadd.f32 %v2653_v48, %v2244_v32  ;;  %v13298_v42 = vld [vmem:[#allocation6 + $0x40] ss:$16 sps:$4 sm:$0xff]   ;;  %v13308_v45 = vld [vmem:[#allocation6 + $0x2c] ss:$16 sps:$4 sm:$0xff]  }
 0x517   :  { %v2614_v1 = vpop.f32.mrf.mxu0  ;;  %v2655_v56 = vpop.f32.mrf.mxu1  ;;  %v13310_v46 = vld [vmem:[#allocation6 + $0x20] ss:$16 sps:$4 sm:$0xff]   ;;  %v13312_v48 = vld [vmem:[#allocation6 + $0x28] ss:$16 sps:$4 sm:$0xff]   ;;  %v13344_v32 = vld [vmem:[#allocation6 + $0x1cc] ss:$16 sps:$4 sm:$0xff]  }
 0x518   :  { %11458 = vtanh.f32 %v2658_v51  ;;  %v2662_v6 = vmul.f32 0.5, %v2613_v58  ;;  %v2667_v3 = vmul.f32 0.5, %v2654_v59  ;;  %v13318_v51 = vld [vmem:[#allocation6 + $0x4] ss:$16 sps:$4 sm:$0xff]   ;;  %v13322_v58 = vld [vmem:[#allocation6] ss:$16 sps:$4 sm:$0xff]  }
 0x519   :  { %v2615_v49 = vpop.f32.mrf.mxu0  ;;  %v2656_v28 = vpop.f32.mrf.mxu1  ;;  %v13324_v1 = vld [vmem:[#allocation6 + $0x8] ss:$16 sps:$4 sm:$0xff]   ;;  %v13330_v56 = vld [vmem:[#allocation6 + $0x1e4] ss:$16 sps:$4 sm:$0xff]   ;;  %v13346_v59 = vld [vmem:[#allocation6 + $0x1c0] ss:$16 sps:$4 sm:$0xff]  }
 0x51a   :  { %11460 = vtanh.f32 %v2662_v6  ;;  %v13332_v6 = vld [vmem:[#allocation6 + $0x1ec] ss:$16 sps:$4 sm:$0xff]   ;;  %v13334_v49 = vld [vmem:[#allocation6 + $0x1e0] ss:$16 sps:$4 sm:$0xff]   ;;  %v13336_v28 = vld [vmem:[#allocation6 + $0x1e8] ss:$16 sps:$4 sm:$0xff]  }
 0x51b   :  { %11462 = vtanh.f32 %v2652_v30  ;;  %v13342_v30 = vld [vmem:[#allocation6 + $0x1c4] ss:$16 sps:$4 sm:$0xff]  }
 0x51c   :  { %11464 = vtanh.f32 %v2667_v3  ;;  %v13348_v3 = vld [vmem:[#allocation6 + $0x1c8] ss:$16 sps:$4 sm:$0xff]  }
 0x525   :  { %v11459_v27 = vpop.eup %11458 }
 0x526   :  { %v2660_v8 = vadd.f32 1.0, %v11459_v27  ;;  %v13354_v27 = vld [vmem:[#allocation6 + $0x1a4] ss:$16 sps:$4 sm:$0xff]  }
 0x527   :  { %v11461_v55 = vpop.eup %11460 }
 0x528   :  { %v2661_v5 = vmul.f32 0.5, %v2660_v8  ;;  %v2664_v7 = vadd.f32 1.0, %v11461_v55  ;;  %v11463_v47 = vpop.eup %11462  ;;  %v13356_v8 = vld [vmem:[#allocation6 + $0x1ac] ss:$16 sps:$4 sm:$0xff]   ;;  %v13358_v55 = vld [vmem:[#allocation6 + $0x1a0] ss:$16 sps:$4 sm:$0xff]  }
 0x529   :  { %v11465_v62 = vpop.eup %11464  ;;  %14402 = vst [vmem:[#allocation15_spill] sm:$0xff] %v13356_v8  ;;  %14403 = vst [vmem:[#allocation17_spill] sm:$0xff] %v13358_v55 }
 0x52a   :  { %v2665_v50 = vmul.f32 0.5, %v2664_v7  ;;  %v2672_v60 = vmul.f32 %v11463_v47, %v2661_v5  ;;  %v2669_v53 = vadd.f32 1.0, %v11465_v62  ;;  %v13360_v5 = vld [vmem:[#allocation6 + $0x1a8] ss:$16 sps:$4 sm:$0xff]   ;;  %v13366_v7 = vld [vmem:[#allocation6 + $0x184] ss:$16 sps:$4 sm:$0xff]  }
 0x52b   :  { %14404 = vst [vmem:[#allocation16_spill] sm:$0xff] %v13360_v5  ;;  %14405 = vst [vmem:[#allocation18_spill] sm:$0xff] %v13366_v7  ;;  %v13370_v47 = vld [vmem:[#allocation6 + $0x180] ss:$16 sps:$4 sm:$0xff]   ;;  %v13380_v62 = vld [vmem:[#allocation6 + $0x16c] ss:$16 sps:$4 sm:$0xff]  }
 0x52c   :  { %v2671_v61 = vmul.f32 %v2665_v50, %v13152_v4  ;;  %v2670_v57 = vmul.f32 0.5, %v2669_v53  ;;  %v13368_v50 = vld [vmem:[#allocation6 + $0x18c] ss:$16 sps:$4 sm:$0xff]   ;;  %14407 = vst [vmem:[#allocation20_spill] sm:$0xff] %v13370_v47  ;;  %14410 = vst [vmem:[#allocation22_spill] sm:$0xff] %v13380_v62 }
 0x52d   :  { %14406 = vst [vmem:[#allocation19_spill] sm:$0xff] %v13368_v50  ;;  %v13382_v53 = vld [vmem:[#allocation6 + $0x160] ss:$16 sps:$4 sm:$0xff]  }
 0x52e   :  { %v13234_v54 = vadd.f32 %v2672_v60, %v2671_v61  ;;  %v13372_v61 = vld [vmem:[#allocation6 + $0x188] ss:$16 sps:$4 sm:$0xff]   ;;  %v13378_v60 = vld [vmem:[#allocation6 + $0x164] ss:$16 sps:$4 sm:$0xff]   ;;  %14411 = vst [vmem:[#allocation24_spill] sm:$0xff] %v13382_v53 }
 0x52f   :  { %14408 = vst [vmem:[#allocation21_spill] sm:$0xff] %v13372_v61  ;;  %14409 = vst [vmem:[#allocation23_spill] sm:$0xff] %v13378_v60 }
 0x530   :  { %11466 = vtanh.f32 %v13234_v54 }
 0x53d   :  { %v11467_v63 = vpop.eup %11466 }
 0x53e   :  { %v2675_v9 = vmul.f32 %v11467_v63, %v2670_v57  ;;  %v13384_v57 = vld [vmem:[#allocation6 + $0x168] ss:$16 sps:$4 sm:$0xff]   ;;  %v13390_v63 = vld [vmem:[#allocation6 + $0x144] ss:$16 sps:$4 sm:$0xff]  }
 0x53f   :  { %14412 = vst [vmem:[#allocation25_spill] sm:$0xff] %v13384_v57  ;;  %14413 = vst [vmem:[#allocation27_spill] sm:$0xff] %v13390_v63 }
 0x540   :  { %v2676_v10 = vpack.c.bf16 %v2675_v9, %v2675_v9  ;;  %v13392_v9 = vld [vmem:[#allocation6 + $0x14c] ss:$16 sps:$4 sm:$0xff]  }
 0x541   :  { %14414 = vst [vmem:[#allocation26_spill] sm:$0xff] %v13392_v9 }
 0x542   :  { %2677 = vst [vmem:[#allocation2 + $0x4] sm:$0xf] %v2676_v10  ;;  %v13394_v10 = vld [vmem:[#allocation6 + $0x140] ss:$16 sps:$4 sm:$0xff]  }
 0x543   :  { %14415 = vst [vmem:[#allocation28_spill] sm:$0xff] %v13394_v10 }
 0x549   :  { %v2682_v11 = vld [vmem:[#allocation2] sm:$0xff] }
 0x54a   :  { %v9875_v12 = vcombine.high %v2682_v11, %v2682_v11  ;;  %3202 = vst [vmem:[#allocation2] sm:$0xf] %v9940_v0  ;;  %v9874_v4 = vcombine.low %v2682_v11, %v2682_v11  ;;  %v13396_v0 = vld [vmem:[#allocation6 + $0x148] ss:$16 sps:$4 sm:$0xff]   ;;  %v13400_v11 = vld [vmem:[#allocation6 + $0x124] ss:$16 sps:$4 sm:$0xff]  }
 0x54b   :  { %14416 = vst [vmem:[#allocation29_spill] sm:$0xff] %v13396_v0  ;;  %14417 = vst [vmem:[#allocation31_spill] sm:$0xff] %v13400_v11 }
 0x54c   :  { %3129 = vmatprep.mubr.bf16.mxu0 %v9875_v12  ;;  %3170 = vmatprep.mubr.bf16.mxu1 %v9875_v12  ;;  %v13404_v12 = vld [vmem:[#allocation6 + $0x120] ss:$16 sps:$4 sm:$0xff]  }
 0x54d   :  { %3130 = vmatmul.mubr.bf16.vlgmr.msra.gmra.mxu0 %v9874_v4  ;;  %3171 = vmatmul.mubr.bf16.vlgmr.msra.gmra.mxu1 %v9874_v4  ;;  %14418 = vst [vmem:[#allocation30_spill] sm:$0xff] %v13404_v12  ;;  %v13406_v4 = vld [vmem:[#allocation6 + $0x128] ss:$16 sps:$4 sm:$0xff]  }
 0x54e   :  { %3619 = vmatpush1.bf16.msra.mxu0 %v13240_v13  ;;  %3660 = vmatpush1.bf16.msra.mxu1 %v13242_v14  ;;  %14419 = vst [vmem:[#allocation32_spill] sm:$0xff] %v13406_v4 }
 0x54f   :  { %3620 = vmatprep.subr.bf16.mxu0 %v13244_v15  ;;  %3661 = vmatprep.subr.bf16.mxu1 %v13246_v16 }
 0x552   :  { %3621 = vmatpush1.bf16.msra.mxu0 %v13250_v17  ;;  %3662 = vmatpush1.bf16.msra.mxu1 %v13252_v18 }
 0x553   :  { %3622 = vmatprep.subr.bf16.mxu0 %v13258_v19  ;;  %3663 = vmatprep.subr.bf16.mxu1 %v13260_v20 }
 0x556   :  { %3623 = vmatpush1.bf16.msra.mxu0 %v13262_v21  ;;  %3664 = vmatpush1.bf16.msra.mxu1 %v13264_v22 }
 0x557   :  { %3624 = vmatprep.subr.bf16.mxu0 %v13270_v23  ;;  %3665 = vmatprep.subr.bf16.mxu1 %v13272_v24 }
 0x55a   :  { %3625 = vmatpush1.bf16.msra.mxu0 %v13274_v25  ;;  %3666 = vmatpush1.bf16.msra.mxu1 %v13276_v26 }
 0x55b   :  { %3626 = vmatprep.subr.bf16.mxu0 %v13282_v29  ;;  %3667 = vmatprep.subr.bf16.mxu1 %v13284_v31 }
 0x55e   :  { %3627 = vmatpush1.bf16.msra.mxu0 %v13286_v33  ;;  %3668 = vmatpush1.bf16.msra.mxu1 %v13288_v34 }
 0x55f   :  { %3628 = vmatprep.subr.bf16.mxu0 %v13294_v37  ;;  %3669 = vmatprep.subr.bf16.mxu1 %v13296_v39 }
 0x562   :  { %3629 = vmatpush1.bf16.msra.mxu0 %v13298_v42  ;;  %3670 = vmatpush1.bf16.msra.mxu1 %v13300_v43 }
 0x563   :  { %3630 = vmatprep.subr.bf16.mxu0 %v13306_v44  ;;  %3671 = vmatprep.subr.bf16.mxu1 %v13308_v45 }
 0x566   :  { %3631 = vmatpush1.bf16.msra.mxu0 %v13310_v46  ;;  %3672 = vmatpush1.bf16.msra.mxu1 %v13312_v48 }
 0x567   :  { %3632 = vmatprep.subr.bf16.mxu0 %v13318_v51  ;;  %3673 = vmatprep.subr.bf16.mxu1 %v13320_v2 }
 0x56a   :  { %3633 = vmatpush1.bf16.msra.mxu0 %v13322_v58  ;;  %3674 = vmatpush1.bf16.msra.mxu1 %v13324_v1 }
 0x56b   :  { %3634 = vmatprep.subr.bf16.mxu0 %v13330_v56  ;;  %3675 = vmatprep.subr.bf16.mxu1 %v13332_v6 }
 0x56e   :  { %3635 = vmatpush2.bf16.msra.mxu0 %v13334_v49  ;;  %3676 = vmatpush2.bf16.msra.mxu1 %v13336_v28 }
 0x56f   :  { %3636 = vmatprep.subr.bf16.mxu0 %v13342_v30  ;;  %3677 = vmatprep.subr.bf16.mxu1 %v13344_v32 }
 0x572   :  { %3637 = vmatpush2.bf16.msra.mxu0 %v13346_v59  ;;  %3678 = vmatpush2.bf16.msra.mxu1 %v13348_v3 }
 0x573   :  { %3638 = vmatprep.subr.bf16.mxu0 %v13354_v27  ;;  %3679 = vmatprep.subr.bf16.mxu1 %v13356_v8 }
 0x576   :  { %3639 = vmatpush2.bf16.msra.mxu0 %v13358_v55  ;;  %3680 = vmatpush2.bf16.msra.mxu1 %v13360_v5 }
 0x577   :  { %3640 = vmatprep.subr.bf16.mxu0 %v13366_v7  ;;  %3681 = vmatprep.subr.bf16.mxu1 %v13368_v50 }
 0x57a   :  { %3641 = vmatpush2.bf16.msra.mxu0 %v13370_v47  ;;  %3682 = vmatpush2.bf16.msra.mxu1 %v13372_v61 }
 0x57b   :  { %3642 = vmatprep.subr.bf16.mxu0 %v13378_v60  ;;  %3683 = vmatprep.subr.bf16.mxu1 %v13380_v62  ;;  %v13413_v62 = vld [vmem:[#allocation6 + $0x10c] ss:$16 sps:$4 sm:$0xff]  }
 0x57c   :  { %14422 = vst [vmem:[#allocation34_spill] sm:$0xff] %v13413_v62 }
 0x57e   :  { %3643 = vmatpush2.bf16.msra.mxu0 %v13382_v53  ;;  %3684 = vmatpush2.bf16.msra.mxu1 %v13384_v57  ;;  %v13408_v57 = vld [vmem:[#allocation6 + $0x12c] ss:$16 sps:$4 sm:$0xff]   ;;  %v13411_v53 = vld [vmem:[#allocation6 + $0x104] ss:$16 sps:$4 sm:$0xff]  }
 0x57f   :  { %3644 = vmatprep.subr.bf16.mxu0 %v13390_v63  ;;  %3685 = vmatprep.subr.bf16.mxu1 %v13392_v9  ;;  %14420 = vst [vmem:[#allocation38_spill] sm:$0xff] %v13408_v57  ;;  %14421 = vst [vmem:[#allocation33_spill] sm:$0xff] %v13411_v53 }
 0x582   :  { %3645 = vmatpush2.bf16.msra.mxu0 %v13394_v10  ;;  %3686 = vmatpush2.bf16.msra.mxu1 %v13396_v0  ;;  %v13418_v10 = vld [vmem:[#allocation6 + $0x100] ss:$16 sps:$4 sm:$0xff]   ;;  %v13420_v0 = vld [vmem:[#allocation6 + $0x108] ss:$16 sps:$4 sm:$0xff]  }
 0x583   :  { %3646 = vmatprep.subr.bf16.mxu0 %v13400_v11  ;;  %3687 = vmatprep.subr.bf16.mxu1 %v13408_v57  ;;  %14423 = vst [vmem:[#allocation39_spill] sm:$0xff] %v13418_v10  ;;  %14424 = vst [vmem:[#allocation40_spill] sm:$0xff] %v13420_v0 }
 0x586   :  { %3647 = vmatpush2.bf16.msra.mxu0 %v13404_v12  ;;  %3688 = vmatpush2.bf16.msra.mxu1 %v13406_v4  ;;  %v2748_v4 = vld [vmem:[%s14148_s5] sm:$0xf] }
 0x587   :  { %3648 = vmatprep.subr.bf16.mxu0 %v13411_v53  ;;  %3689 = vmatprep.subr.bf16.mxu1 %v13413_v62  ;;  %v2753_v12 = vrot.slane %v2748_v4, %v14400_v38  ;;  %v2757_v57 = vrot.slane %v2748_v4, %v14401_v41  ;;  %v2765_v38 = vrot.slane %v2748_v4, %v12787_v52 }
 0x58a   :  { %3649 = vmatpush2.bf16.msra.mxu0 %v13418_v10  ;;  %3690 = vmatpush2.bf16.msra.mxu1 %v13420_v0  ;;  %v2761_v0 = vrot.slane %v2748_v4, %v14326_v40 }
 0x58b   :  { %4139 = vmatprep.subr.bf16.mxu0 %v13220_v35  ;;  %4180 = vmatprep.subr.bf16.mxu1 %v13222_v36 }
 0x60d   :  { %v3131_v11 = vpop.f32.mrf.mxu0  ;;  %v3172_v53 = vpop.f32.mrf.mxu1 }
 0x60e   :  { %v3132_v9 = vadd.f32 %v3131_v11, %v2753_v12  ;;  %v3173_v7 = vadd.f32 %v3172_v53, %v2761_v0 }
 0x60f   :  { %v3133_v62 = vpop.f32.mrf.mxu0  ;;  %v3174_v63 = vpop.f32.mrf.mxu1 }
 0x610   :  { %v3179_v10 = vmul.f32 0.5, %v3132_v9  ;;  %v3134_v60 = vadd.f32 %v3133_v62, %v2757_v57  ;;  %v3175_v41 = vadd.f32 %v3174_v63, %v2765_v38 }
 0x611   :  { %v3135_v35 = vpop.f32.mrf.mxu0  ;;  %v3176_v61 = vpop.f32.mrf.mxu1 }
 0x612   :  { %11468 = vtanh.f32 %v3179_v10  ;;  %v3183_v36 = vmul.f32 0.5, %v3134_v60  ;;  %v3188_v5 = vmul.f32 0.5, %v3175_v41 }
 0x613   :  { %v3136_v47 = vpop.f32.mrf.mxu0  ;;  %v3177_v50 = vpop.f32.mrf.mxu1 }
 0x614   :  { %11470 = vtanh.f32 %v3183_v36 }
 0x615   :  { %11472 = vtanh.f32 %v3173_v7 }
 0x616   :  { %11474 = vtanh.f32 %v3188_v5 }
 0x61f   :  { %v11469_v11 = vpop.eup %11468 }
 0x620   :  { %v3181_v12 = vadd.f32 1.0, %v11469_v11 }
 0x621   :  { %v11471_v55 = vpop.eup %11470 }
 0x622   :  { %v3182_v9 = vmul.f32 0.5, %v3181_v12  ;;  %v3185_v8 = vadd.f32 1.0, %v11471_v55  ;;  %v11473_v57 = vpop.eup %11472  ;;  %v10007_v55 = vld [vmem:[%s14144_s1 + $0x1c] sm:$0xf] }
 0x623   :  { %v11475_v50 = vpop.eup %11474 }
 0x624   :  { %v3186_v62 = vmul.f32 0.5, %v3185_v8  ;;  %v3193_v60 = vmul.f32 %v11473_v57, %v3182_v9  ;;  %v3190_v53 = vadd.f32 1.0, %v11475_v50 }
 0x626   :  { %v3192_v61 = vmul.f32 %v3186_v62, %v13234_v54  ;;  %v3191_v7 = vmul.f32 0.5, %v3190_v53 }
 0x628   :  { %v13436_v47 = vadd.f32 %v3193_v60, %v3192_v61 }
 0x62a   :  { %11476 = vtanh.f32 %v13436_v47 }
 0x637   :  { %v11477_v38 = vpop.eup %11476 }
 0x638   :  { %v3196_v41 = vmul.f32 %v11477_v38, %v3191_v7 }
 0x63a   :  { %v3197_v63 = vpack.c.bf16 %v3196_v41, %v3196_v41 }
 0x63c   :  { %3198 = vst [vmem:[#allocation2 + $0x4] sm:$0xf] %v3197_v63 }
 0x643   :  { %v3203_v8 = vld [vmem:[#allocation2] sm:$0xff] }
 0x644   :  { %v9942_v5 = vcombine.high %v3203_v8, %v3203_v8  ;;  %3723 = vst [vmem:[#allocation2] sm:$0xf] %v10007_v55  ;;  %v9941_v54 = vcombine.low %v3203_v8, %v3203_v8 }
 0x646   :  { %3650 = vmatprep.mubr.bf16.mxu0 %v9942_v5  ;;  %3691 = vmatprep.mubr.bf16.mxu1 %v9942_v5 }
 0x647   :  { %3651 = vmatmul.mubr.bf16.vlgmr.msra.gmra.mxu0 %v9941_v54  ;;  %3692 = vmatmul.mubr.bf16.vlgmr.msra.gmra.mxu1 %v9941_v54 }
 0x648   :  { %4140 = vmatpush1.bf16.msra.mxu0 %v13240_v13  ;;  %4181 = vmatpush1.bf16.msra.mxu1 %v13242_v14  ;;  %v14425_v13 = vld [vmem:[#allocation15_spill] sm:$0xff]  ;;  %v14426_v14 = vld [vmem:[#allocation17_spill] sm:$0xff] }
 0x649   :  { %4141 = vmatprep.subr.bf16.mxu0 %v13244_v15  ;;  %4182 = vmatprep.subr.bf16.mxu1 %v13246_v16  ;;  %v14427_v15 = vld [vmem:[#allocation16_spill] sm:$0xff]  ;;  %v14428_v16 = vld [vmem:[#allocation18_spill] sm:$0xff] }
 0x64c   :  { %4142 = vmatpush1.bf16.msra.mxu0 %v13250_v17  ;;  %4183 = vmatpush1.bf16.msra.mxu1 %v13252_v18  ;;  %v14429_v17 = vld [vmem:[#allocation19_spill] sm:$0xff]  ;;  %v14430_v18 = vld [vmem:[#allocation20_spill] sm:$0xff] }
 0x64d   :  { %4143 = vmatprep.subr.bf16.mxu0 %v13258_v19  ;;  %4184 = vmatprep.subr.bf16.mxu1 %v13260_v20  ;;  %v14431_v19 = vld [vmem:[#allocation21_spill] sm:$0xff]  ;;  %v14432_v20 = vld [vmem:[#allocation23_spill] sm:$0xff] }
 0x650   :  { %4144 = vmatpush1.bf16.msra.mxu0 %v13262_v21  ;;  %4185 = vmatpush1.bf16.msra.mxu1 %v13264_v22  ;;  %v14433_v21 = vld [vmem:[#allocation22_spill] sm:$0xff]  ;;  %v14434_v22 = vld [vmem:[#allocation24_spill] sm:$0xff] }
 0x651   :  { %4145 = vmatprep.subr.bf16.mxu0 %v13270_v23  ;;  %4186 = vmatprep.subr.bf16.mxu1 %v13272_v24  ;;  %v14435_v23 = vld [vmem:[#allocation25_spill] sm:$0xff]  ;;  %v14436_v24 = vld [vmem:[#allocation27_spill] sm:$0xff] }
 0x654   :  { %4146 = vmatpush1.bf16.msra.mxu0 %v13274_v25  ;;  %4187 = vmatpush1.bf16.msra.mxu1 %v13276_v26  ;;  %v14437_v25 = vld [vmem:[#allocation26_spill] sm:$0xff]  ;;  %v14438_v26 = vld [vmem:[#allocation28_spill] sm:$0xff] }
 0x655   :  { %4147 = vmatprep.subr.bf16.mxu0 %v13282_v29  ;;  %4188 = vmatprep.subr.bf16.mxu1 %v13284_v31  ;;  %v14439_v29 = vld [vmem:[#allocation29_spill] sm:$0xff]  ;;  %v14440_v31 = vld [vmem:[#allocation31_spill] sm:$0xff] }
 0x658   :  { %4148 = vmatpush1.bf16.msra.mxu0 %v13286_v33  ;;  %4189 = vmatpush1.bf16.msra.mxu1 %v13288_v34  ;;  %v14441_v33 = vld [vmem:[#allocation38_spill] sm:$0xff] }
 0x659   :  { %4149 = vmatprep.subr.bf16.mxu0 %v13294_v37  ;;  %4190 = vmatprep.subr.bf16.mxu1 %v13296_v39  ;;  %v14442_v34 = vld [vmem:[#allocation30_spill] sm:$0xff]  ;;  %v14443_v37 = vld [vmem:[#allocation32_spill] sm:$0xff]  ;;  %v14444_v39 = vld [vmem:[#allocation33_spill] sm:$0xff] }
 0x65c   :  { %4150 = vmatpush1.bf16.msra.mxu0 %v13298_v42  ;;  %4191 = vmatpush1.bf16.msra.mxu1 %v13300_v43  ;;  %v14445_v42 = vld [vmem:[#allocation34_spill] sm:$0xff]  ;;  %v14446_v43 = vld [vmem:[#allocation39_spill] sm:$0xff] }
 0x65d   :  { %4151 = vmatprep.subr.bf16.mxu0 %v13306_v44  ;;  %4192 = vmatprep.subr.bf16.mxu1 %v13308_v45  ;;  %v14447_v44 = vld [vmem:[#allocation40_spill] sm:$0xff]  ;;  %v3269_v45 = vld [vmem:[%s14148_s5] sm:$0xf] }
 0x65e   :  { %v3286_v35 = vrot.slane %v3269_v45, %v12787_v52 }
 0x660   :  { %4152 = vmatpush1.bf16.msra.mxu0 %v13310_v46  ;;  %4193 = vmatpush1.bf16.msra.mxu1 %v13312_v48  ;;  %v14448_v46 = vld [vmem:[#allocation35_spill] sm:$0xff] }
 0x661   :  { %4153 = vmatprep.subr.bf16.mxu0 %v13318_v51  ;;  %4194 = vmatprep.subr.bf16.mxu1 %v13320_v2  ;;  %v3274_v48 = vrot.slane %v3269_v45, %v14448_v46  ;;  %v14449_v51 = vld [vmem:[#allocation36_spill] sm:$0xff] }
 0x662   :  { %v3278_v2 = vrot.slane %v3269_v45, %v14449_v51 }
 0x664   :  { %4154 = vmatpush1.bf16.msra.mxu0 %v13322_v58  ;;  %4195 = vmatpush1.bf16.msra.mxu1 %v13324_v1 }
 0x665   :  { %4155 = vmatprep.subr.bf16.mxu0 %v13330_v56  ;;  %4196 = vmatprep.subr.bf16.mxu1 %v13332_v6 }
 0x668   :  { %4156 = vmatpush2.bf16.msra.mxu0 %v13334_v49  ;;  %4197 = vmatpush2.bf16.msra.mxu1 %v13336_v28 }
 0x669   :  { %4157 = vmatprep.subr.bf16.mxu0 %v13342_v30  ;;  %4198 = vmatprep.subr.bf16.mxu1 %v13344_v32  ;;  %v3282_v30 = vrot.slane %v3269_v45, %v14326_v40 }
 0x66c   :  { %4158 = vmatpush2.bf16.msra.mxu0 %v13346_v59  ;;  %4199 = vmatpush2.bf16.msra.mxu1 %v13348_v3 }
 0x66d   :  { %4159 = vmatprep.subr.bf16.mxu0 %v13354_v27  ;;  %4200 = vmatprep.subr.bf16.mxu1 %v14425_v13 }
 0x670   :  { %4160 = vmatpush2.bf16.msra.mxu0 %v14426_v14  ;;  %4201 = vmatpush2.bf16.msra.mxu1 %v14427_v15 }
 0x671   :  { %4161 = vmatprep.subr.bf16.mxu0 %v14428_v16  ;;  %4202 = vmatprep.subr.bf16.mxu1 %v14429_v17 }
 0x674   :  { %4162 = vmatpush2.bf16.msra.mxu0 %v14430_v18  ;;  %4203 = vmatpush2.bf16.msra.mxu1 %v14431_v19 }
 0x675   :  { %4163 = vmatprep.subr.bf16.mxu0 %v14432_v20  ;;  %4204 = vmatprep.subr.bf16.mxu1 %v14433_v21 }
 0x678   :  { %4164 = vmatpush2.bf16.msra.mxu0 %v14434_v22  ;;  %4205 = vmatpush2.bf16.msra.mxu1 %v14435_v23 }
 0x679   :  { %4165 = vmatprep.subr.bf16.mxu0 %v14436_v24  ;;  %4206 = vmatprep.subr.bf16.mxu1 %v14437_v25 }
 0x67c   :  { %4166 = vmatpush2.bf16.msra.mxu0 %v14438_v26  ;;  %4207 = vmatpush2.bf16.msra.mxu1 %v14439_v29 }
 0x67d   :  { %4167 = vmatprep.subr.bf16.mxu0 %v14440_v31  ;;  %4208 = vmatprep.subr.bf16.mxu1 %v14441_v33 }
 0x680   :  { %4168 = vmatpush2.bf16.msra.mxu0 %v14442_v34  ;;  %4209 = vmatpush2.bf16.msra.mxu1 %v14443_v37 }
 0x681   :  { %4169 = vmatprep.subr.bf16.mxu0 %v14444_v39  ;;  %4210 = vmatprep.subr.bf16.mxu1 %v14445_v42 }
 0x684   :  { %4170 = vmatpush2.bf16.msra.mxu0 %v14446_v43  ;;  %4211 = vmatpush2.bf16.msra.mxu1 %v14447_v44 }
 0x707   :  { %v3652_v58 = vpop.f32.mrf.mxu0  ;;  %v3693_v1 = vpop.f32.mrf.mxu1 }
 0x708   :  { %v3653_v56 = vadd.f32 %v3652_v58, %v3274_v48  ;;  %v3694_v4 = vadd.f32 %v3693_v1, %v3282_v30 }
 0x709   :  { %v3654_v6 = vpop.f32.mrf.mxu0  ;;  %v3695_v49 = vpop.f32.mrf.mxu1 }
 0x70a   :  { %v3700_v28 = vmul.f32 0.5, %v3653_v56  ;;  %v3655_v32 = vadd.f32 %v3654_v6, %v3278_v2  ;;  %v3696_v36 = vadd.f32 %v3695_v49, %v3286_v35 }
 0x70b   :  { %v3656_v59 = vpop.f32.mrf.mxu0  ;;  %v3697_v3 = vpop.f32.mrf.mxu1 }
 0x70c   :  { %11478 = vtanh.f32 %v3700_v28  ;;  %v3704_v27 = vmul.f32 0.5, %v3655_v32  ;;  %v3709_v11 = vmul.f32 0.5, %v3696_v36 }
 0x70d   :  { %v3657_v10 = vpop.f32.mrf.mxu0  ;;  %v3698_v0 = vpop.f32.mrf.mxu1 }
 0x70e   :  { %11480 = vtanh.f32 %v3704_v27 }
 0x70f   :  { %11482 = vtanh.f32 %v3694_v4 }
 0x710   :  { %11484 = vtanh.f32 %v3709_v11 }
 0x719   :  { %v11479_v12 = vpop.eup %11478 }
 0x71a   :  { %v3702_v9 = vadd.f32 1.0, %v11479_v12 }
 0x71b   :  { %v11481_v62 = vpop.eup %11480 }
 0x71c   :  { %v3703_v57 = vmul.f32 0.5, %v3702_v9  ;;  %v3706_v61 = vadd.f32 1.0, %v11481_v62  ;;  %v11483_v50 = vpop.eup %11482 }
 0x71d   :  { %v11485_v41 = vpop.eup %11484 }
 0x71e   :  { %v3707_v60 = vmul.f32 0.5, %v3706_v61  ;;  %v3714_v7 = vmul.f32 %v11483_v50, %v3703_v57  ;;  %v3711_v63 = vadd.f32 1.0, %v11485_v41 }
 0x720   :  { %v3713_v53 = vmul.f32 %v3707_v60, %v13436_v47  ;;  %v3712_v55 = vmul.f32 0.5, %v3711_v63  ;;  %v3790_v47 = vld [vmem:[%s14148_s5] sm:$0xf] }
 0x721   :  { %v3795_v16 = vrot.slane %v3790_v47, %v14448_v46  ;;  %v3799_v17 = vrot.slane %v3790_v47, %v14449_v51  ;;  %v3803_v24 = vrot.slane %v3790_v47, %v14326_v40  ;;  %v3807_v39 = vrot.slane %v3790_v47, %v12787_v52 }
 0x722   :  { %v3715_v38 = vadd.f32 %v3714_v7, %v3713_v53 }
 0x724   :  { %11486 = vtanh.f32 %v3715_v38 }
 0x731   :  { %v11487_v8 = vpop.eup %11486 }
 0x732   :  { %v3717_v5 = vmul.f32 %v11487_v8, %v3712_v55 }
 0x734   :  { %v3718_v54 = vpack.c.bf16 %v3717_v5, %v3717_v5 }
 0x736   :  { %3719 = vst [vmem:[#allocation2 + $0x4] sm:$0xf] %v3718_v54 }
 0x73d   :  { %v3724_v13 = vld [vmem:[#allocation2] sm:$0xff] }
 0x73e   :  { %v10009_v14 = vcombine.high %v3724_v13, %v3724_v13  ;;  %v10008_v15 = vcombine.low %v3724_v13, %v3724_v13 }
 0x740   :  { %4171 = vmatprep.mubr.bf16.mxu0 %v10009_v14  ;;  %4212 = vmatprep.mubr.bf16.mxu1 %v10009_v14 }
 0x741   :  { %4172 = vmatmul.mubr.bf16.vlgmr.msra.gmra.mxu0 %v10008_v15  ;;  %4213 = vmatmul.mubr.bf16.vlgmr.msra.gmra.mxu1 %v10008_v15 }
 0x801   :  { %v4173_v18 = vpop.f32.mrf.mxu0  ;;  %v4214_v19 = vpop.f32.mrf.mxu1 }
 0x802   :  { %v4174_v20 = vadd.f32 %v4173_v18, %v3795_v16  ;;  %v4215_v37 = vadd.f32 %v4214_v19, %v3803_v24 }
 0x803   :  { %v4175_v21 = vpop.f32.mrf.mxu0  ;;  %v4216_v22 = vpop.f32.mrf.mxu1 }
 0x804   :  { %v4221_v23 = vmul.f32 0.5, %v4174_v20  ;;  %v4176_v25 = vadd.f32 %v4175_v21, %v3799_v17  ;;  %v4217_v42 = vadd.f32 %v4216_v22, %v3807_v39 }
 0x805   :  { %v4177_v26 = vpop.f32.mrf.mxu0  ;;  %v4218_v29 = vpop.f32.mrf.mxu1 }
 0x806   :  { %11488 = vtanh.f32 %v4221_v23  ;;  %v4225_v31 = vmul.f32 0.5, %v4176_v25  ;;  %v4230_v43 = vmul.f32 0.5, %v4217_v42 }
 0x807   :  { %v4178_v33 = vpop.f32.mrf.mxu0  ;;  %v4219_v34 = vpop.f32.mrf.mxu1 }
 0x808   :  { %11490 = vtanh.f32 %v4225_v31 }
 0x809   :  { %11492 = vtanh.f32 %v4215_v37 }
 0x80a   :  { %11494 = vtanh.f32 %v4230_v43 }
 0x813   :  { %v11489_v44 = vpop.eup %11488 }
 0x814   :  { %v4223_v45 = vadd.f32 1.0, %v11489_v44 }
 0x815   :  { %v11491_v46 = vpop.eup %11490 }
 0x816   :  { %v4224_v48 = vmul.f32 0.5, %v4223_v45  ;;  %v4227_v51 = vadd.f32 1.0, %v11491_v46  ;;  %v11493_v2 = vpop.eup %11492 }
 0x817   :  { %v11495_v6 = vpop.eup %11494 }
 0x818   :  { %v4228_v40 = vmul.f32 0.5, %v4227_v51  ;;  %v4235_v1 = vmul.f32 %v11493_v2, %v4224_v48  ;;  %v4232_v49 = vadd.f32 1.0, %v11495_v6 }
 0x81a   :  { %v4234_v58 = vmul.f32 %v4228_v40, %v3715_v38  ;;  %v4233_v28 = vmul.f32 0.5, %v4232_v49 }
 0x81c   :  { %v4236_v56 = vadd.f32 %v4235_v1, %v4234_v58 }
 0x81e   :  { %11496 = vtanh.f32 %v4236_v56  ;;  %4241 = vst [vmem:[#allocation3] sm:$0xff] %v4236_v56 }
 0x82b   :  { %v11497_v30 = vpop.eup %11496 }
 0x82c   :  { %v4238_v32 = vmul.f32 %v11497_v30, %v4233_v28  ;;  %4246 = sbr.rel (%p10074_p1) target bundleno = 2099 (0x833), region = 49 }
 0x82e   :  { %v4239_v59 = vpack.c.bf16 %v4238_v32, %v4238_v32 }
 0x830   :  { %4240 = vst [vmem:[#allocation2 + $0x4] sm:$0xf] %v4239_v59 }
 0x831   :  { %v4247_v3 = vld [vmem:[%s14145_s2] sm:$0xf] }
 0x832   :  { %4248 = vst [vmem:[#allocation2] sm:$0xf] %v4247_v3 }
 0x833 PF:  { %v11498_v27 = vld [vmem:[#allocation8 + $0xe4] ss:$16 sps:$4 sm:$0xff]   ;;  %v11500_v10 = vld [vmem:[#allocation8 + $0xe0] ss:$16 sps:$4 sm:$0xff]   ;;  %v11501_v0 = vld [vmem:[#allocation8 + $0xec] ss:$16 sps:$4 sm:$0xff]  }
 0x834   :  { %4664 = vmatprep.subr.bf16.mxu0 %v11498_v27  ;;  %v11503_v4 = vld [vmem:[#allocation8 + $0xe8] ss:$16 sps:$4 sm:$0xff]   ;;  %v11504_v35 = vld [vmem:[#allocation8 + $0xc4] ss:$16 sps:$4 sm:$0xff]   ;;  %v11506_v36 = vld [vmem:[#allocation8 + $0xc0] ss:$16 sps:$4 sm:$0xff]   ;;  %4705 = vmatprep.subr.bf16.mxu1 %v11501_v0 }
 0x835   :  { %4665 = vmatpush1.bf16.msra.mxu0 %v11500_v10  ;;  %v11507_v11 = vld [vmem:[#allocation8 + $0xcc] ss:$16 sps:$4 sm:$0xff]   ;;  %4706 = vmatpush1.bf16.msra.mxu1 %v11503_v4  ;;  %v11509_v12 = vld [vmem:[#allocation8 + $0xc8] ss:$16 sps:$4 sm:$0xff]   ;;  %v11510_v9 = vld [vmem:[#allocation8 + $0xa4] ss:$16 sps:$4 sm:$0xff]  }
 0x836   :  { %4666 = vmatprep.subr.bf16.mxu0 %v11504_v35  ;;  %4707 = vmatprep.subr.bf16.mxu1 %v11507_v11  ;;  %v11512_v62 = vld [vmem:[#allocation8 + $0xa0] ss:$16 sps:$4 sm:$0xff]   ;;  %v11513_v57 = vld [vmem:[#allocation8 + $0xac] ss:$16 sps:$4 sm:$0xff]   ;;  %v11516_v61 = vld [vmem:[#allocation8 + $0x84] ss:$16 sps:$4 sm:$0xff]  }
 0x837   :  { %v11515_v60 = vld [vmem:[#allocation8 + $0xa8] ss:$16 sps:$4 sm:$0xff]   ;;  %v11519_v50 = vld [vmem:[#allocation8 + $0x8c] ss:$16 sps:$4 sm:$0xff]   ;;  %v11518_v53 = vld [vmem:[#allocation8 + $0x80] ss:$16 sps:$4 sm:$0xff]  }
 0x838   :  { %v11522_v7 = vld [vmem:[#allocation8 + $0x64] ss:$16 sps:$4 sm:$0xff]   ;;  %v11521_v38 = vld [vmem:[#allocation8 + $0x88] ss:$16 sps:$4 sm:$0xff]   ;;  %v11525_v41 = vld [vmem:[#allocation8 + $0x6c] ss:$16 sps:$4 sm:$0xff]  }
 0x839   :  { %4667 = vmatpush1.bf16.msra.mxu0 %v11506_v36  ;;  %4708 = vmatpush1.bf16.msra.mxu1 %v11509_v12  ;;  %v11524_v63 = vld [vmem:[#allocation8 + $0x60] ss:$16 sps:$4 sm:$0xff]   ;;  %v11528_v55 = vld [vmem:[#allocation8 + $0x44] ss:$16 sps:$4 sm:$0xff]   ;;  %v11527_v8 = vld [vmem:[#allocation8 + $0x68] ss:$16 sps:$4 sm:$0xff]  }
 0x83a   :  { %4668 = vmatprep.subr.bf16.mxu0 %v11510_v9  ;;  %4709 = vmatprep.subr.bf16.mxu1 %v11513_v57  ;;  %v11531_v5 = vld [vmem:[#allocation8 + $0x4c] ss:$16 sps:$4 sm:$0xff]   ;;  %v11530_v54 = vld [vmem:[#allocation8 + $0x40] ss:$16 sps:$4 sm:$0xff]   ;;  %v11534_v13 = vld [vmem:[#allocation8 + $0x24] ss:$16 sps:$4 sm:$0xff]  }
 0x83b   :  { %v11533_v14 = vld [vmem:[#allocation8 + $0x48] ss:$16 sps:$4 sm:$0xff]   ;;  %v11537_v15 = vld [vmem:[#allocation8 + $0x2c] ss:$16 sps:$4 sm:$0xff]   ;;  %v11536_v47 = vld [vmem:[#allocation8 + $0x20] ss:$16 sps:$4 sm:$0xff]  }
 0x83c   :  { %v11540_v16 = vld [vmem:[#allocation8 + $0x4] ss:$16 sps:$4 sm:$0xff]   ;;  %v11539_v17 = vld [vmem:[#allocation8 + $0x28] ss:$16 sps:$4 sm:$0xff]   ;;  %v11543_v18 = vld [vmem:[#allocation8 + $0xc] ss:$16 sps:$4 sm:$0xff]  }
 0x83d   :  { %4669 = vmatpush1.bf16.msra.mxu0 %v11512_v62  ;;  %4710 = vmatpush1.bf16.msra.mxu1 %v11515_v60  ;;  %v11542_v19 = vld [vmem:[#allocation8] ss:$16 sps:$4 sm:$0xff]   ;;  %v11546_v20 = vld [vmem:[#allocation8 + $0x1e4] ss:$16 sps:$4 sm:$0xff]   ;;  %v11545_v21 = vld [vmem:[#allocation8 + $0x8] ss:$16 sps:$4 sm:$0xff]  }
 0x83e   :  { %4670 = vmatprep.subr.bf16.mxu0 %v11516_v61  ;;  %4711 = vmatprep.subr.bf16.mxu1 %v11519_v50  ;;  %v11549_v22 = vld [vmem:[#allocation8 + $0x1ec] ss:$16 sps:$4 sm:$0xff]   ;;  %v11548_v23 = vld [vmem:[#allocation8 + $0x1e0] ss:$16 sps:$4 sm:$0xff]   ;;  %v11552_v24 = vld [vmem:[#allocation8 + $0x1c4] ss:$16 sps:$4 sm:$0xff]  }
 0x83f   :  { %v11551_v25 = vld [vmem:[#allocation8 + $0x1e8] ss:$16 sps:$4 sm:$0xff]   ;;  %v11555_v26 = vld [vmem:[#allocation8 + $0x1cc] ss:$16 sps:$4 sm:$0xff]   ;;  %v11554_v29 = vld [vmem:[#allocation8 + $0x1c0] ss:$16 sps:$4 sm:$0xff]  }
 0x840   :  { %v11558_v31 = vld [vmem:[#allocation8 + $0x1a4] ss:$16 sps:$4 sm:$0xff]   ;;  %v11557_v33 = vld [vmem:[#allocation8 + $0x1c8] ss:$16 sps:$4 sm:$0xff]   ;;  %v11561_v34 = vld [vmem:[#allocation8 + $0x1ac] ss:$16 sps:$4 sm:$0xff]  }
 0x841   :  { %4671 = vmatpush1.bf16.msra.mxu0 %v11518_v53  ;;  %4712 = vmatpush1.bf16.msra.mxu1 %v11521_v38  ;;  %v11560_v37 = vld [vmem:[#allocation8 + $0x1a0] ss:$16 sps:$4 sm:$0xff]   ;;  %v11564_v39 = vld [vmem:[#allocation8 + $0x184] ss:$16 sps:$4 sm:$0xff]   ;;  %v11563_v42 = vld [vmem:[#allocation8 + $0x1a8] ss:$16 sps:$4 sm:$0xff]  }
 0x842   :  { %4672 = vmatprep.subr.bf16.mxu0 %v11522_v7  ;;  %4713 = vmatprep.subr.bf16.mxu1 %v11525_v41  ;;  %v11566_v43 = vld [vmem:[#allocation8 + $0x180] ss:$16 sps:$4 sm:$0xff]   ;;  %v11567_v44 = vld [vmem:[#allocation8 + $0x18c] ss:$16 sps:$4 sm:$0xff]   ;;  %v11569_v46 = vld [vmem:[#allocation8 + $0x188] ss:$16 sps:$4 sm:$0xff]  }
 0x843   :  { %v4249_v45 = vld [vmem:[#allocation2] sm:$0xff]  ;;  %v11573_v40 = vld [vmem:[#allocation8 + $0x16c] ss:$16 sps:$4 sm:$0xff]   ;;  %v11575_v1 = vld [vmem:[#allocation8 + $0x168] ss:$16 sps:$4 sm:$0xff]   ;;  %v14450_v35 = vmov 0.0  }
 0x844   :  { %v11570_v48 = vld [vmem:[#allocation8 + $0x164] ss:$16 sps:$4 sm:$0xff]   ;;  %v10076_v51 = vcombine.high %v4249_v45, %v4249_v45  ;;  %v11572_v2 = vld [vmem:[#allocation8 + $0x160] ss:$16 sps:$4 sm:$0xff]   ;;  %v11579_v56 = vld [vmem:[#allocation8 + $0x14c] ss:$16 sps:$4 sm:$0xff]   ;;  %v10075_v4 = vcombine.low %v4249_v45, %v4249_v45 }
 0x845   :  { %4673 = vmatpush1.bf16.msra.mxu0 %v11524_v63  ;;  %4714 = vmatpush1.bf16.msra.mxu1 %v11527_v8  ;;  %v11576_v58 = vld [vmem:[#allocation8 + $0x144] ss:$16 sps:$4 sm:$0xff]   ;;  %v11578_v6 = vld [vmem:[#allocation8 + $0x140] ss:$16 sps:$4 sm:$0xff]   ;;  %v11581_v28 = vld [vmem:[#allocation8 + $0x148] ss:$16 sps:$4 sm:$0xff]  }
 0x846   :  { %4674 = vmatprep.subr.bf16.mxu0 %v11528_v55  ;;  %4715 = vmatprep.subr.bf16.mxu1 %v11531_v5  ;;  %v11582_v49 = vld [vmem:[#allocation8 + $0x124] ss:$16 sps:$4 sm:$0xff]   ;;  %v11585_v30 = vld [vmem:[#allocation8 + $0x12c] ss:$16 sps:$4 sm:$0xff]   ;;  %v11584_v32 = vld [vmem:[#allocation8 + $0x120] ss:$16 sps:$4 sm:$0xff]  }
 0x847   :  { %4696 = vmatprep.mubr.bf16.mxu0 %v10076_v51  ;;  %4737 = vmatprep.mubr.bf16.mxu1 %v10076_v51  ;;  %v11588_v59 = vld [vmem:[#allocation8 + $0x104] ss:$16 sps:$4 sm:$0xff]   ;;  %v11587_v3 = vld [vmem:[#allocation8 + $0x128] ss:$16 sps:$4 sm:$0xff]   ;;  %v11591_v27 = vld [vmem:[#allocation8 + $0x10c] ss:$16 sps:$4 sm:$0xff]  }
 0x848   :  { %v11590_v10 = vld [vmem:[#allocation8 + $0x100] ss:$16 sps:$4 sm:$0xff]   ;;  %v11594_v0 = vld [vmem:[#allocation8 + $0x108] ss:$16 sps:$4 sm:$0xff]   ;;  %vm12431_vm1 = vmmov 0   ;;  %s10162_s30 = sld [smem:[#allocation5 + $0x1]] }
 0x849   :  { %4675 = vmatpush1.bf16.msra.mxu0 %v11530_v54  ;;  %4716 = vmatpush1.bf16.msra.mxu1 %v11533_v14  ;;  %v11596_v36 = vld [vmem:[%s14151_s8 + $0x38] sm:$0xff]   ;;  %v11597_v11 = vld [vmem:[%s14151_s8 + $0x30] sm:$0xff]   ;;  %v11598_v12 = vld [vmem:[%s14151_s8 + $0x28] sm:$0xff]  }
 0x84a   :  { %4676 = vmatprep.subr.bf16.mxu0 %v11534_v13  ;;  %4717 = vmatprep.subr.bf16.mxu1 %v11537_v15  ;;  %v11599_v9 = vld [vmem:[%s14151_s8 + $0x20] sm:$0xff]   ;;  %v11600_v62 = vld [vmem:[%s14151_s8 + $0x18] sm:$0xff]   ;;  %v11601_v57 = vld [vmem:[%s14151_s8 + $0x10] sm:$0xff]  }
 0x84b   :  { %v11602_v61 = vld [vmem:[%s14151_s8 + $0x8] sm:$0xff]   ;;  %v11603_v60 = vld [vmem:[%s14151_s8] sm:$0xff]   ;;  %v14453_v8 = vld [vmem:[#allocation37_spill] sm:$0xff] }
 0x84c   :  { %v4315_v50 = vld [vmem:[%s14150_s7] sm:$0xf]  ;;  %v14452_v38 = vld [vmem:[#allocation36_spill] sm:$0xff] }
 0x84d   :  { %4677 = vmatpush1.bf16.msra.mxu0 %v11536_v47  ;;  %4718 = vmatpush1.bf16.msra.mxu1 %v11539_v17  ;;  %v14451_v53 = vld [vmem:[#allocation35_spill] sm:$0xff]  ;;  %v4324_v41 = vrot.slane %v4315_v50, %v14452_v38  ;;  %v4328_v5 = vrot.slane %v4315_v50, %v14453_v8 }
 0x84e   :  { %4678 = vmatprep.subr.bf16.mxu0 %v11540_v16  ;;  %4719 = vmatprep.subr.bf16.mxu1 %v11543_v18  ;;  %v4320_v7 = vrot.slane %v4315_v50, %v14451_v53  ;;  %p10163_p2 = scmp.eq.s32.totalorder %s10162_s30, 0 }
 0x851   :  { %4679 = vmatpush1.bf16.msra.mxu0 %v11542_v19  ;;  %4720 = vmatpush1.bf16.msra.mxu1 %v11545_v21 }
 0x852   :  { %4680 = vmatprep.subr.bf16.mxu0 %v11546_v20  ;;  %4721 = vmatprep.subr.bf16.mxu1 %v11549_v22  ;;  %v4332_v22 = vrot.slane %v4315_v50, %v12787_v52 }
 0x855   :  { %4681 = vmatpush2.bf16.msra.mxu0 %v11548_v23  ;;  %4722 = vmatpush2.bf16.msra.mxu1 %v11551_v25 }
 0x856   :  { %4682 = vmatprep.subr.bf16.mxu0 %v11552_v24  ;;  %4723 = vmatprep.subr.bf16.mxu1 %v11555_v26 }
 0x859   :  { %4683 = vmatpush2.bf16.msra.mxu0 %v11554_v29  ;;  %4724 = vmatpush2.bf16.msra.mxu1 %v11557_v33 }
 0x85a   :  { %4684 = vmatprep.subr.bf16.mxu0 %v11558_v31  ;;  %4725 = vmatprep.subr.bf16.mxu1 %v11561_v34 }
 0x85d   :  { %4685 = vmatpush2.bf16.msra.mxu0 %v11560_v37  ;;  %4726 = vmatpush2.bf16.msra.mxu1 %v11563_v42  ;;  %v4250_v37 = vld [vmem:[#allocation3] sm:$0xff] }
 0x85e   :  { %4686 = vmatprep.subr.bf16.mxu0 %v11564_v39  ;;  %4727 = vmatprep.subr.bf16.mxu1 %v11567_v44 }
 0x861   :  { %4687 = vmatpush2.bf16.msra.mxu0 %v11566_v43  ;;  %4728 = vmatpush2.bf16.msra.mxu1 %v11569_v46 }
 0x862   :  { %4688 = vmatprep.subr.bf16.mxu0 %v11570_v48  ;;  %4729 = vmatprep.subr.bf16.mxu1 %v11573_v40 }
 0x865   :  { %4689 = vmatpush2.bf16.msra.mxu0 %v11572_v2  ;;  %4730 = vmatpush2.bf16.msra.mxu1 %v11575_v1 }
 0x866   :  { %4690 = vmatprep.subr.bf16.mxu0 %v11576_v58  ;;  %4731 = vmatprep.subr.bf16.mxu1 %v11579_v56  ;;  %v10141_v58 = vld [vmem:[%s14152_s9] ss:$0 sm:$0xff] }
 0x869   :  { %4691 = vmatpush2.bf16.msra.mxu0 %v11578_v6  ;;  %4732 = vmatpush2.bf16.msra.mxu1 %v11581_v28 }
 0x86a   :  { %4692 = vmatprep.subr.bf16.mxu0 %v11582_v49  ;;  %4733 = vmatprep.subr.bf16.mxu1 %v11585_v30 }
 0x86d   :  { %4693 = vmatpush2.bf16.msra.mxu0 %v11584_v32  ;;  %4734 = vmatpush2.bf16.msra.mxu1 %v11587_v3  ;;  %v11605_v3 = vld [vmem:[%s14146_s3 + $0x30] sm:$0xff]  }
 0x86e   :  { %4694 = vmatprep.subr.bf16.mxu0 %v11588_v59  ;;  %4735 = vmatprep.subr.bf16.mxu1 %v11591_v27  ;;  %v11604_v59 = vld [vmem:[%s14146_s3 + $0x38] sm:$0xff]   ;;  %v11606_v27 = vld [vmem:[%s14146_s3 + $0x28] sm:$0xff]  }
 0x871   :  { %4695 = vmatpush2.bf16.msra.mxu0 %v11590_v10  ;;  %4736 = vmatpush2.bf16.msra.mxu1 %v11594_v0  ;;  %v11607_v10 = vld [vmem:[%s14146_s3 + $0x20] sm:$0xff]   ;;  %v11608_v0 = vld [vmem:[%s14146_s3 + $0x18] sm:$0xff]  }
 0x872   :  { %10828 = vmatprep.subr.bf16.mxu0 %v14450_v35  ;;  %10848 = vmatprep.subr.bf16.mxu1 %v14450_v35 }
 0x874   :  { %4697 = vmatmul.mubr.bf16.vlgmr.msra.gmra.mxu0 %v10075_v4  ;;  %4738 = vmatmul.mubr.bf16.vlgmr.msra.gmra.mxu1 %v10075_v4  ;;  %v11609_v4 = vld [vmem:[%s14146_s3 + $0x10] sm:$0xff]  }
 0x875   :  { %10829 = vmatpush3.bf16.msra.mxu0 %v11596_v36  ;;  %10844 = vmatprep.mubr.msk.bf16.mxu0 %vm12431_vm1, %v14450_v35  ;;  %v11610_v36 = vld [vmem:[%s14146_s3 + $0x8] sm:$0xff]  }
 0x876   :  { %10830 = vmatprep.subr.bf16.mxu0 %v14450_v35  ;;  %10864 = vmatprep.mubr.msk.bf16.mxu1 %vm12431_vm1, %v14450_v35 }
 0x877   :  { %10849 = vmatpush3.bf16.msra.mxu1 %v11604_v59 }
 0x878   :  { %10850 = vmatprep.subr.bf16.mxu1 %v14450_v35 }
 0x879   :  { %10831 = vmatpush3.bf16.msra.mxu0 %v11597_v11  ;;  %v11611_v11 = vld [vmem:[%s14146_s3] sm:$0xff]  }
 0x87a   :  { %10832 = vmatprep.subr.bf16.mxu0 %v14450_v35 }
 0x87b   :  { %10851 = vmatpush3.bf16.msra.mxu1 %v11605_v3 }
 0x87c   :  { %10852 = vmatprep.subr.bf16.mxu1 %v14450_v35 }
 0x87d   :  { %10833 = vmatpush3.bf16.msra.mxu0 %v11598_v12 }
 0x87e   :  { %10834 = vmatprep.subr.bf16.mxu0 %v14450_v35 }
 0x87f   :  { %10853 = vmatpush3.bf16.msra.mxu1 %v11606_v27 }
 0x880   :  { %10854 = vmatprep.subr.bf16.mxu1 %v14450_v35 }
 0x881   :  { %10835 = vmatpush3.bf16.msra.mxu0 %v11599_v9  ;;  %v14455_v9 = vld [vmem:[#allocation14_spill] sm:$0xff] }
 0x882   :  { %10836 = vmatprep.subr.bf16.mxu0 %v14450_v35 }
 0x883   :  { %10855 = vmatpush3.bf16.msra.mxu1 %v11607_v10 }
 0x884   :  { %10856 = vmatprep.subr.bf16.mxu1 %v14450_v35 }
 0x885   :  { %10837 = vmatpush3.bf16.msra.mxu0 %v11600_v62 }
 0x886   :  { %10838 = vmatprep.subr.bf16.mxu0 %v14450_v35 }
 0x887   :  { %10857 = vmatpush3.bf16.msra.mxu1 %v11608_v0 }
 0x888   :  { %10858 = vmatprep.subr.bf16.mxu1 %v14450_v35 }
 0x889   :  { %10839 = vmatpush3.bf16.msra.mxu0 %v11601_v57 }
 0x88a   :  { %10840 = vmatprep.subr.bf16.mxu0 %v14450_v35 }
 0x88b   :  { %10859 = vmatpush3.bf16.msra.mxu1 %v11609_v4 }
 0x88c   :  { %10860 = vmatprep.subr.bf16.mxu1 %v14450_v35 }
 0x88d   :  { %10841 = vmatpush3.bf16.msra.mxu0 %v11602_v61  ;;  %v12432_v61 = vmov 1.0|1.0  }
 0x88e   :  { %10842 = vmatprep.subr.bf16.mxu0 %v14450_v35 }
 0x88f   :  { %10861 = vmatpush3.bf16.msra.mxu1 %v11610_v36 }
 0x890   :  { %10862 = vmatprep.subr.bf16.mxu1 %v14450_v35 }
 0x891   :  { %10843 = vmatpush3.bf16.msra.mxu0 %v11603_v60 }
 0x893   :  { %10863 = vmatpush3.bf16.msra.mxu1 %v11611_v11 }
 0x934   :  { %v4698_v63 = vpop.f32.mrf.mxu0  ;;  %v4739_v13 = vpop.f32.mrf.mxu1 }
 0x935   :  { %v4699_v55 = vadd.f32 %v4698_v63, %v4320_v7  ;;  %v4740_v18 = vadd.f32 %v4739_v13, %v4328_v5 }
 0x936   :  { %v4700_v54 = vpop.f32.mrf.mxu0  ;;  %v4741_v16 = vpop.f32.mrf.mxu1 }
 0x937   :  { %v4746_v14 = vmul.f32 0.5, %v4699_v55  ;;  %v4701_v15 = vadd.f32 %v4700_v54, %v4324_v41  ;;  %v4742_v23 = vadd.f32 %v4741_v16, %v4332_v22 }
 0x938   :  { %v4702_v47 = vpop.f32.mrf.mxu0  ;;  %v4743_v20 = vpop.f32.mrf.mxu1 }
 0x939   :  { %11612 = vtanh.f32 %v4746_v14  ;;  %v4750_v17 = vmul.f32 0.5, %v4701_v15  ;;  %v4755_v24 = vmul.f32 0.5, %v4742_v23 }
 0x93a   :  { %v4703_v19 = vpop.f32.mrf.mxu0  ;;  %v4744_v21 = vpop.f32.mrf.mxu1 }
 0x93b   :  { %11614 = vtanh.f32 %v4750_v17 }
 0x93c   :  { %11616 = vtanh.f32 %v4740_v18 }
 0x93d   :  { %11618 = vtanh.f32 %v4755_v24 }
 0x946   :  { %v11613_v25 = vpop.eup %11612 }
 0x947   :  { %v4748_v26 = vadd.f32 1.0, %v11613_v25 }
 0x948   :  { %v11615_v29 = vpop.eup %11614 }
 0x949   :  { %v4749_v31 = vmul.f32 0.5, %v4748_v26  ;;  %v4752_v33 = vadd.f32 1.0, %v11615_v29  ;;  %v11617_v34 = vpop.eup %11616 }
 0x94a   :  { %v11619_v45 = vpop.eup %11618 }
 0x94b   :  { %v4753_v39 = vmul.f32 0.5, %v4752_v33  ;;  %v4760_v43 = vmul.f32 %v11617_v34, %v4749_v31  ;;  %v4757_v46 = vadd.f32 1.0, %v11619_v45 }
 0x94d   :  { %v4759_v42 = vmul.f32 %v4753_v39, %v4250_v37  ;;  %v4758_v48 = vmul.f32 0.5, %v4757_v46 }
 0x94f   :  { %v4761_v44 = vadd.f32 %v4760_v43, %v4759_v42 }
 0x951   :  { %11620 = vtanh.f32 %v4761_v44  ;;  %4766 = vst [vmem:[#allocation3] sm:$0xff] %v4761_v44 }
 0x95e   :  { %v11621_v51 = vpop.eup %11620 }
 0x95f   :  { %v4763_v40 = vmul.f32 %v11621_v51, %v4758_v48 }
 0x961   :  { %v4764_v2 = vpack.c.bf16 %v4763_v40, %v4763_v40 }
 0x963   :  { %4765 = vst [vmem:[#allocation2 + $0x4] sm:$0xf] %v4764_v2  ;;  %10845 = vmatmul.mubr.bf16.vlgmr.msra.gmra.mxu0 %v4764_v2 }
 0xa23   :  { %v4872_v1 = vpop.f32.mrf.mxu0 }
 0xa24   :  { %v4873_v56 = vadd.f32 %v10141_v58, %v4872_v1 }
 0xa25   :  { %v10846_v6 = vpop.f32.mrf.mxu0 }
 0xa26   :  { %10150 = vst [vmem:[%s14153_s10 + $0x8] sm:$0xff] %v4873_v56  ;;  %v4880_v28 = vsel %vm71_vm0, %v4873_v56, -3e+38 }
 0xa27   :  { %4881 = vmax.xlane.f32.xlu0 %v4880_v28  ;;  %v4875_v30 = vpop.f32.mrf.mxu0 }
 0xa29   :  { %v10847_v32 = vpop.f32.mrf.mxu0 }
 0xab0   :  { %v4882_v12 = vpop.xlane.xlu0 %4881 }
 0xab1   :  { %vm4883_vm2 = vcmp.eq.f32.partialorder %v4880_v28, %v4882_v12 }
 0xab2   :  { %v4884_v62 = vsel %vm4883_vm2, %v14455_v9, 128.0 }
 0xab3   :  { %4885 = vmin.xlane.f32.xlu0 %v4884_v62 }
 0xb3c   :  { %v4886_v57 = vpop.xlane.xlu0 %4885 }
 0xb3d   :  { %vm4887_vm3 = vcmp.eq.f32.partialorder %v14455_v9, %v4886_v57 }
 0xb3e   :  { %vm10160_vm4 = vmpackc.low %vm4887_vm3, %vm4887_vm3 }
 0xb3f   :  { %10865 = vmatmul.mubr.msk.bf16.vlgmr.msra.gmra.mxu1 %vm10160_vm4, %v12432_v61 }
 0xbff   :  { %v4989_v60 = vpop.f32.mrf.mxu1 }
 0xc00   :  { %v4995_v50 = vpack.c.bf16 %v4989_v60, %v4989_v60 }
 0xc01   :  { %v10866_v53 = vpop.f32.mrf.mxu1  ;;  %5001 = sbr.rel (%p10163_p2) target bundleno = 3080 (0xc08), region = 53 }
 0xc02   :  { %4996 = vst [vmem:[#allocation2] sm:$0xf] %v4995_v50 }
 0xc03   :  { %v4992_v7 = vpop.f32.mrf.mxu1 }
 0xc05   :  { %v10867_v35 = vpop.f32.mrf.mxu1 }
 0xc06   :  { %v10164_v38 = vld [vmem:[%s14145_s2 + $0x4] sm:$0xf] }
 0xc07   :  { %5004 = vst [vmem:[#allocation2] sm:$0xf] %v10164_v38 }
 0xc08 PF:  { %v11622_v41 = vld [vmem:[#allocation8 + $0xe4] ss:$16 sps:$4 sm:$0xff]   ;;  %v11624_v63 = vld [vmem:[#allocation8 + $0xe0] ss:$16 sps:$4 sm:$0xff]   ;;  %v11625_v55 = vld [vmem:[#allocation8 + $0xec] ss:$16 sps:$4 sm:$0xff]  }
 0xc09   :  { %5420 = vmatprep.subr.bf16.mxu0 %v11622_v41  ;;  %v11627_v8 = vld [vmem:[#allocation8 + $0xe8] ss:$16 sps:$4 sm:$0xff]   ;;  %v11628_v5 = vld [vmem:[#allocation8 + $0xc4] ss:$16 sps:$4 sm:$0xff]   ;;  %v11630_v54 = vld [vmem:[#allocation8 + $0xc0] ss:$16 sps:$4 sm:$0xff]   ;;  %5461 = vmatprep.subr.bf16.mxu1 %v11625_v55 }
 0xc0a   :  { %5421 = vmatpush1.bf16.msra.mxu0 %v11624_v63  ;;  %v11631_v13 = vld [vmem:[#allocation8 + $0xcc] ss:$16 sps:$4 sm:$0xff]   ;;  %5462 = vmatpush1.bf16.msra.mxu1 %v11627_v8  ;;  %v11633_v14 = vld [vmem:[#allocation8 + $0xc8] ss:$16 sps:$4 sm:$0xff]   ;;  %v11634_v15 = vld [vmem:[#allocation8 + $0xa4] ss:$16 sps:$4 sm:$0xff]  }
 0xc0b   :  { %5422 = vmatprep.subr.bf16.mxu0 %v11628_v5  ;;  %5463 = vmatprep.subr.bf16.mxu1 %v11631_v13  ;;  %v11636_v47 = vld [vmem:[#allocation8 + $0xa0] ss:$16 sps:$4 sm:$0xff]   ;;  %v11637_v16 = vld [vmem:[#allocation8 + $0xac] ss:$16 sps:$4 sm:$0xff]   ;;  %v11640_v17 = vld [vmem:[#allocation8 + $0x84] ss:$16 sps:$4 sm:$0xff]  }
 0xc0c   :  { %v11639_v18 = vld [vmem:[#allocation8 + $0xa8] ss:$16 sps:$4 sm:$0xff]   ;;  %v11643_v19 = vld [vmem:[#allocation8 + $0x8c] ss:$16 sps:$4 sm:$0xff]   ;;  %v11642_v20 = vld [vmem:[#allocation8 + $0x80] ss:$16 sps:$4 sm:$0xff]  }
 0xc0d   :  { %v11646_v21 = vld [vmem:[#allocation8 + $0x64] ss:$16 sps:$4 sm:$0xff]   ;;  %v11645_v22 = vld [vmem:[#allocation8 + $0x88] ss:$16 sps:$4 sm:$0xff]   ;;  %v11649_v23 = vld [vmem:[#allocation8 + $0x6c] ss:$16 sps:$4 sm:$0xff]  }
 0xc0e   :  { %5423 = vmatpush1.bf16.msra.mxu0 %v11630_v54  ;;  %5464 = vmatpush1.bf16.msra.mxu1 %v11633_v14  ;;  %v11648_v24 = vld [vmem:[#allocation8 + $0x60] ss:$16 sps:$4 sm:$0xff]   ;;  %v11652_v25 = vld [vmem:[#allocation8 + $0x44] ss:$16 sps:$4 sm:$0xff]   ;;  %v11651_v26 = vld [vmem:[#allocation8 + $0x68] ss:$16 sps:$4 sm:$0xff]  }
 0xc0f   :  { %5424 = vmatprep.subr.bf16.mxu0 %v11634_v15  ;;  %5465 = vmatprep.subr.bf16.mxu1 %v11637_v16  ;;  %v11655_v29 = vld [vmem:[#allocation8 + $0x4c] ss:$16 sps:$4 sm:$0xff]   ;;  %v11654_v31 = vld [vmem:[#allocation8 + $0x40] ss:$16 sps:$4 sm:$0xff]   ;;  %v11658_v33 = vld [vmem:[#allocation8 + $0x24] ss:$16 sps:$4 sm:$0xff]  }
 0xc10   :  { %v11657_v34 = vld [vmem:[#allocation8 + $0x48] ss:$16 sps:$4 sm:$0xff]   ;;  %v11661_v37 = vld [vmem:[#allocation8 + $0x2c] ss:$16 sps:$4 sm:$0xff]   ;;  %v11660_v39 = vld [vmem:[#allocation8 + $0x20] ss:$16 sps:$4 sm:$0xff]  }
 0xc11   :  { %v11664_v42 = vld [vmem:[#allocation8 + $0x4] ss:$16 sps:$4 sm:$0xff]   ;;  %v11663_v43 = vld [vmem:[#allocation8 + $0x28] ss:$16 sps:$4 sm:$0xff]   ;;  %v11667_v44 = vld [vmem:[#allocation8 + $0xc] ss:$16 sps:$4 sm:$0xff]  }
 0xc12   :  { %5425 = vmatpush1.bf16.msra.mxu0 %v11636_v47  ;;  %5466 = vmatpush1.bf16.msra.mxu1 %v11639_v18  ;;  %v11666_v45 = vld [vmem:[#allocation8] ss:$16 sps:$4 sm:$0xff]   ;;  %v11670_v46 = vld [vmem:[#allocation8 + $0x1e4] ss:$16 sps:$4 sm:$0xff]   ;;  %v11669_v48 = vld [vmem:[#allocation8 + $0x8] ss:$16 sps:$4 sm:$0xff]  }
 0xc13   :  { %5426 = vmatprep.subr.bf16.mxu0 %v11640_v17  ;;  %5467 = vmatprep.subr.bf16.mxu1 %v11643_v19  ;;  %v11673_v51 = vld [vmem:[#allocation8 + $0x1ec] ss:$16 sps:$4 sm:$0xff]   ;;  %v11672_v40 = vld [vmem:[#allocation8 + $0x1e0] ss:$16 sps:$4 sm:$0xff]   ;;  %v11676_v2 = vld [vmem:[#allocation8 + $0x1c4] ss:$16 sps:$4 sm:$0xff]  }
 0xc14   :  { %v11675_v58 = vld [vmem:[#allocation8 + $0x1e8] ss:$16 sps:$4 sm:$0xff]   ;;  %v11679_v1 = vld [vmem:[#allocation8 + $0x1cc] ss:$16 sps:$4 sm:$0xff]   ;;  %v11678_v56 = vld [vmem:[#allocation8 + $0x1c0] ss:$16 sps:$4 sm:$0xff]  }
 0xc15   :  { %v11682_v6 = vld [vmem:[#allocation8 + $0x1a4] ss:$16 sps:$4 sm:$0xff]   ;;  %v11681_v49 = vld [vmem:[#allocation8 + $0x1c8] ss:$16 sps:$4 sm:$0xff]   ;;  %v11685_v28 = vld [vmem:[#allocation8 + $0x1ac] ss:$16 sps:$4 sm:$0xff]  }
 0xc16   :  { %5427 = vmatpush1.bf16.msra.mxu0 %v11642_v20  ;;  %5468 = vmatpush1.bf16.msra.mxu1 %v11645_v22  ;;  %v11684_v30 = vld [vmem:[#allocation8 + $0x1a0] ss:$16 sps:$4 sm:$0xff]   ;;  %v11688_v32 = vld [vmem:[#allocation8 + $0x184] ss:$16 sps:$4 sm:$0xff]   ;;  %v11687_v59 = vld [vmem:[#allocation8 + $0x1a8] ss:$16 sps:$4 sm:$0xff]  }
 0xc17   :  { %5428 = vmatprep.subr.bf16.mxu0 %v11646_v21  ;;  %5469 = vmatprep.subr.bf16.mxu1 %v11649_v23  ;;  %v11690_v3 = vld [vmem:[#allocation8 + $0x180] ss:$16 sps:$4 sm:$0xff]   ;;  %v11691_v27 = vld [vmem:[#allocation8 + $0x18c] ss:$16 sps:$4 sm:$0xff]   ;;  %v11693_v0 = vld [vmem:[#allocation8 + $0x188] ss:$16 sps:$4 sm:$0xff]  }
 0xc18   :  { %v5005_v10 = vld [vmem:[#allocation2] sm:$0xff]  ;;  %v11697_v11 = vld [vmem:[#allocation8 + $0x16c] ss:$16 sps:$4 sm:$0xff]   ;;  %v11699_v62 = vld [vmem:[#allocation8 + $0x168] ss:$16 sps:$4 sm:$0xff]   ;;  %v14456_v54 = vmov 0.0  }
 0xc19   :  { %v11694_v4 = vld [vmem:[#allocation8 + $0x164] ss:$16 sps:$4 sm:$0xff]   ;;  %v10166_v36 = vcombine.high %v5005_v10, %v5005_v10  ;;  %v11696_v12 = vld [vmem:[#allocation8 + $0x160] ss:$16 sps:$4 sm:$0xff]   ;;  %v11703_v57 = vld [vmem:[#allocation8 + $0x14c] ss:$16 sps:$4 sm:$0xff]   ;;  %v10165_v5 = vcombine.low %v5005_v10, %v5005_v10 }
 0xc1a   :  { %5429 = vmatpush1.bf16.msra.mxu0 %v11648_v24  ;;  %5470 = vmatpush1.bf16.msra.mxu1 %v11651_v26  ;;  %v11700_v9 = vld [vmem:[#allocation8 + $0x144] ss:$16 sps:$4 sm:$0xff]   ;;  %v11702_v60 = vld [vmem:[#allocation8 + $0x140] ss:$16 sps:$4 sm:$0xff]   ;;  %v11705_v53 = vld [vmem:[#allocation8 + $0x148] ss:$16 sps:$4 sm:$0xff]  }
 0xc1b   :  { %5430 = vmatprep.subr.bf16.mxu0 %v11652_v25  ;;  %5471 = vmatprep.subr.bf16.mxu1 %v11655_v29  ;;  %v11706_v50 = vld [vmem:[#allocation8 + $0x124] ss:$16 sps:$4 sm:$0xff]   ;;  %v11709_v7 = vld [vmem:[#allocation8 + $0x12c] ss:$16 sps:$4 sm:$0xff]   ;;  %v11708_v35 = vld [vmem:[#allocation8 + $0x120] ss:$16 sps:$4 sm:$0xff]  }
 0xc1c   :  { %5452 = vmatprep.mubr.bf16.mxu0 %v10166_v36  ;;  %5493 = vmatprep.mubr.bf16.mxu1 %v10166_v36  ;;  %v11712_v38 = vld [vmem:[#allocation8 + $0x104] ss:$16 sps:$4 sm:$0xff]   ;;  %v11711_v41 = vld [vmem:[#allocation8 + $0x128] ss:$16 sps:$4 sm:$0xff]   ;;  %v11715_v63 = vld [vmem:[#allocation8 + $0x10c] ss:$16 sps:$4 sm:$0xff]  }
 0xc1d   :  { %v11714_v55 = vld [vmem:[#allocation8 + $0x100] ss:$16 sps:$4 sm:$0xff]   ;;  %v11718_v8 = vld [vmem:[#allocation8 + $0x108] ss:$16 sps:$4 sm:$0xff]   ;;  %s10252_s22 = sld [smem:[#allocation5 + $0x2]] }
 0xc1e   :  { %5431 = vmatpush1.bf16.msra.mxu0 %v11654_v31  ;;  %5472 = vmatpush1.bf16.msra.mxu1 %v11657_v34  ;;  %v11720_v13 = vld [vmem:[%s14151_s8 + $0x38] sm:$0xff]   ;;  %v11721_v14 = vld [vmem:[%s14151_s8 + $0x30] sm:$0xff]   ;;  %v11722_v15 = vld [vmem:[%s14151_s8 + $0x28] sm:$0xff]  }
 0xc1f   :  { %5432 = vmatprep.subr.bf16.mxu0 %v11658_v33  ;;  %5473 = vmatprep.subr.bf16.mxu1 %v11661_v37  ;;  %v11723_v47 = vld [vmem:[%s14151_s8 + $0x20] sm:$0xff]   ;;  %v11724_v16 = vld [vmem:[%s14151_s8 + $0x18] sm:$0xff]   ;;  %v11725_v17 = vld [vmem:[%s14151_s8 + $0x10] sm:$0xff]  }
 0xc20   :  { %v11726_v18 = vld [vmem:[%s14151_s8 + $0x8] sm:$0xff]   ;;  %v11727_v19 = vld [vmem:[%s14151_s8] sm:$0xff]   ;;  %v14459_v29 = vld [vmem:[#allocation37_spill] sm:$0xff] }
 0xc21   :  { %v5071_v20 = vld [vmem:[%s14150_s7] sm:$0xf]  ;;  %v14458_v23 = vld [vmem:[#allocation36_spill] sm:$0xff] }
 0xc22   :  { %5433 = vmatpush1.bf16.msra.mxu0 %v11660_v39  ;;  %5474 = vmatpush1.bf16.msra.mxu1 %v11663_v43  ;;  %v14457_v21 = vld [vmem:[#allocation35_spill] sm:$0xff]  ;;  %v5080_v24 = vrot.slane %v5071_v20, %v14458_v23  ;;  %v5084_v31 = vrot.slane %v5071_v20, %v14459_v29 }
 0xc23   :  { %5434 = vmatprep.subr.bf16.mxu0 %v11664_v42  ;;  %5475 = vmatprep.subr.bf16.mxu1 %v11667_v44  ;;  %v5076_v22 = vrot.slane %v5071_v20, %v14457_v21  ;;  %p10253_p3 = scmp.eq.s32.totalorder %s10252_s22, 0 }
 0xc26   :  { %5435 = vmatpush1.bf16.msra.mxu0 %v11666_v45  ;;  %5476 = vmatpush1.bf16.msra.mxu1 %v11669_v48 }
 0xc27   :  { %5436 = vmatprep.subr.bf16.mxu0 %v11670_v46  ;;  %5477 = vmatprep.subr.bf16.mxu1 %v11673_v51 }
 0xc2a   :  { %5437 = vmatpush2.bf16.msra.mxu0 %v11672_v40  ;;  %5478 = vmatpush2.bf16.msra.mxu1 %v11675_v58  ;;  %v5088_v40 = vrot.slane %v5071_v20, %v12787_v52 }
 0xc2b   :  { %5438 = vmatprep.subr.bf16.mxu0 %v11676_v2  ;;  %5479 = vmatprep.subr.bf16.mxu1 %v11679_v1 }
 0xc2e   :  { %5439 = vmatpush2.bf16.msra.mxu0 %v11678_v56  ;;  %5480 = vmatpush2.bf16.msra.mxu1 %v11681_v49 }
 0xc2f   :  { %5440 = vmatprep.subr.bf16.mxu0 %v11682_v6  ;;  %5481 = vmatprep.subr.bf16.mxu1 %v11685_v28 }
 0xc32   :  { %5441 = vmatpush2.bf16.msra.mxu0 %v11684_v30  ;;  %5482 = vmatpush2.bf16.msra.mxu1 %v11687_v59 }
 0xc33   :  { %5442 = vmatprep.subr.bf16.mxu0 %v11688_v32  ;;  %5483 = vmatprep.subr.bf16.mxu1 %v11691_v27  ;;  %v5006_v32 = vld [vmem:[#allocation3] sm:$0xff] }
 0xc36   :  { %5443 = vmatpush2.bf16.msra.mxu0 %v11690_v3  ;;  %5484 = vmatpush2.bf16.msra.mxu1 %v11693_v0 }
 0xc37   :  { %5444 = vmatprep.subr.bf16.mxu0 %v11694_v4  ;;  %5485 = vmatprep.subr.bf16.mxu1 %v11697_v11 }
 0xc3a   :  { %5445 = vmatpush2.bf16.msra.mxu0 %v11696_v12  ;;  %5486 = vmatpush2.bf16.msra.mxu1 %v11699_v62  ;;  %v10231_v62 = vld [vmem:[%s14152_s9] ss:$0 sm:$0xff] }
 0xc3b   :  { %5446 = vmatprep.subr.bf16.mxu0 %v11700_v9  ;;  %5487 = vmatprep.subr.bf16.mxu1 %v11703_v57 }
 0xc3e   :  { %5447 = vmatpush2.bf16.msra.mxu0 %v11702_v60  ;;  %5488 = vmatpush2.bf16.msra.mxu1 %v11705_v53 }
 0xc3f   :  { %5448 = vmatprep.subr.bf16.mxu0 %v11706_v50  ;;  %5489 = vmatprep.subr.bf16.mxu1 %v11709_v7 }
 0xc42   :  { %5449 = vmatpush2.bf16.msra.mxu0 %v11708_v35  ;;  %5490 = vmatpush2.bf16.msra.mxu1 %v11711_v41  ;;  %v11728_v41 = vld [vmem:[%s14146_s3 + $0x38] sm:$0xff]  }
 0xc43   :  { %5450 = vmatprep.subr.bf16.mxu0 %v11712_v38  ;;  %5491 = vmatprep.subr.bf16.mxu1 %v11715_v63  ;;  %v11729_v63 = vld [vmem:[%s14146_s3 + $0x30] sm:$0xff]  }
 0xc46   :  { %5451 = vmatpush2.bf16.msra.mxu0 %v11714_v55  ;;  %5492 = vmatpush2.bf16.msra.mxu1 %v11718_v8  ;;  %v11730_v55 = vld [vmem:[%s14146_s3 + $0x28] sm:$0xff]   ;;  %v11731_v8 = vld [vmem:[%s14146_s3 + $0x20] sm:$0xff]  }
 0xc47   :  { %10868 = vmatprep.subr.bf16.mxu0 %v14456_v54  ;;  %10888 = vmatprep.subr.bf16.mxu1 %v14456_v54 }
 0xc49   :  { %5453 = vmatmul.mubr.bf16.vlgmr.msra.gmra.mxu0 %v10165_v5  ;;  %5494 = vmatmul.mubr.bf16.vlgmr.msra.gmra.mxu1 %v10165_v5  ;;  %v11732_v5 = vld [vmem:[%s14146_s3 + $0x18] sm:$0xff]  }
 0xc4a   :  { %10884 = vmatprep.mubr.msk.bf16.mxu0 %vm12431_vm1, %v14456_v54  ;;  %10904 = vmatprep.mubr.msk.bf16.mxu1 %vm12431_vm1, %v14456_v54 }
 0xc4b   :  { %10869 = vmatpush3.bf16.msra.mxu0 %v11720_v13  ;;  %10889 = vmatpush3.bf16.msra.mxu1 %v11728_v41  ;;  %v11733_v13 = vld [vmem:[%s14146_s3 + $0x10] sm:$0xff]  }
 0xc4c   :  { %10870 = vmatprep.subr.bf16.mxu0 %v14456_v54  ;;  %10890 = vmatprep.subr.bf16.mxu1 %v14456_v54 }
 0xc4f   :  { %10871 = vmatpush3.bf16.msra.mxu0 %v11721_v14  ;;  %10891 = vmatpush3.bf16.msra.mxu1 %v11729_v63  ;;  %v11734_v14 = vld [vmem:[%s14146_s3 + $0x8] sm:$0xff]  }
 0xc50   :  { %10872 = vmatprep.subr.bf16.mxu0 %v14456_v54  ;;  %10892 = vmatprep.subr.bf16.mxu1 %v14456_v54 }
 0xc53   :  { %10873 = vmatpush3.bf16.msra.mxu0 %v11722_v15  ;;  %10893 = vmatpush3.bf16.msra.mxu1 %v11730_v55  ;;  %v11735_v15 = vld [vmem:[%s14146_s3] sm:$0xff]  }
 0xc54   :  { %10874 = vmatprep.subr.bf16.mxu0 %v14456_v54  ;;  %10894 = vmatprep.subr.bf16.mxu1 %v14456_v54 }
 0xc57   :  { %10875 = vmatpush3.bf16.msra.mxu0 %v11723_v47  ;;  %10895 = vmatpush3.bf16.msra.mxu1 %v11731_v8 }
 0xc58   :  { %10876 = vmatprep.subr.bf16.mxu0 %v14456_v54  ;;  %10896 = vmatprep.subr.bf16.mxu1 %v14456_v54 }
 0xc5b   :  { %10877 = vmatpush3.bf16.msra.mxu0 %v11724_v16  ;;  %10897 = vmatpush3.bf16.msra.mxu1 %v11732_v5  ;;  %v14461_v16 = vld [vmem:[#allocation14_spill] sm:$0xff] }
 0xc5c   :  { %10878 = vmatprep.subr.bf16.mxu0 %v14456_v54  ;;  %10898 = vmatprep.subr.bf16.mxu1 %v14456_v54 }
 0xc5f   :  { %10879 = vmatpush3.bf16.msra.mxu0 %v11725_v17  ;;  %10899 = vmatpush3.bf16.msra.mxu1 %v11733_v13 }
 0xc60   :  { %10880 = vmatprep.subr.bf16.mxu0 %v14456_v54  ;;  %10900 = vmatprep.subr.bf16.mxu1 %v14456_v54 }
 0xc63   :  { %10881 = vmatpush3.bf16.msra.mxu0 %v11726_v18  ;;  %10901 = vmatpush3.bf16.msra.mxu1 %v11734_v14 }
 0xc64   :  { %10882 = vmatprep.subr.bf16.mxu0 %v14456_v54  ;;  %10902 = vmatprep.subr.bf16.mxu1 %v14456_v54 }
 0xc67   :  { %10883 = vmatpush3.bf16.msra.mxu0 %v11727_v19  ;;  %10903 = vmatpush3.bf16.msra.mxu1 %v11735_v15 }
 0xd09   :  { %v5454_v25 = vpop.f32.mrf.mxu0  ;;  %v5495_v34 = vpop.f32.mrf.mxu1 }
 0xd0a   :  { %v5455_v26 = vadd.f32 %v5454_v25, %v5076_v22  ;;  %v5496_v45 = vadd.f32 %v5495_v34, %v5084_v31 }
 0xd0b   :  { %v5456_v33 = vpop.f32.mrf.mxu0  ;;  %v5497_v43 = vpop.f32.mrf.mxu1 }
 0xd0c   :  { %v5502_v37 = vmul.f32 0.5, %v5455_v26  ;;  %v5457_v39 = vadd.f32 %v5456_v33, %v5080_v24  ;;  %v5498_v2 = vadd.f32 %v5497_v43, %v5088_v40 }
 0xd0d   :  { %v5458_v42 = vpop.f32.mrf.mxu0  ;;  %v5499_v48 = vpop.f32.mrf.mxu1 }
 0xd0e   :  { %11736 = vtanh.f32 %v5502_v37  ;;  %v5506_v44 = vmul.f32 0.5, %v5457_v39  ;;  %v5511_v58 = vmul.f32 0.5, %v5498_v2 }
 0xd0f   :  { %v5459_v46 = vpop.f32.mrf.mxu0  ;;  %v5500_v51 = vpop.f32.mrf.mxu1 }
 0xd10   :  { %11738 = vtanh.f32 %v5506_v44 }
 0xd11   :  { %11740 = vtanh.f32 %v5496_v45 }
 0xd12   :  { %11742 = vtanh.f32 %v5511_v58 }
 0xd1b   :  { %v11737_v1 = vpop.eup %11736 }
 0xd1c   :  { %v5504_v56 = vadd.f32 1.0, %v11737_v1 }
 0xd1d   :  { %v11739_v6 = vpop.eup %11738 }
 0xd1e   :  { %v5505_v49 = vmul.f32 0.5, %v5504_v56  ;;  %v5508_v28 = vadd.f32 1.0, %v11739_v6  ;;  %v11741_v30 = vpop.eup %11740 }
 0xd1f   :  { %v11743_v0 = vpop.eup %11742 }
 0xd20   :  { %v5509_v59 = vmul.f32 0.5, %v5508_v28  ;;  %v5516_v27 = vmul.f32 %v11741_v30, %v5505_v49  ;;  %v5513_v4 = vadd.f32 1.0, %v11743_v0 }
 0xd22   :  { %v5515_v3 = vmul.f32 %v5509_v59, %v5006_v32  ;;  %v5514_v36 = vmul.f32 0.5, %v5513_v4 }
 0xd24   :  { %v5517_v10 = vadd.f32 %v5516_v27, %v5515_v3 }
 0xd26   :  { %11744 = vtanh.f32 %v5517_v10  ;;  %5522 = vst [vmem:[#allocation3] sm:$0xff] %v5517_v10 }
 0xd33   :  { %v11745_v11 = vpop.eup %11744 }
 0xd34   :  { %v5519_v12 = vmul.f32 %v11745_v11, %v5514_v36 }
 0xd36   :  { %v5520_v9 = vpack.c.bf16 %v5519_v12, %v5519_v12 }
 0xd38   :  { %5521 = vst [vmem:[#allocation2 + $0x4] sm:$0xf] %v5520_v9  ;;  %10885 = vmatmul.mubr.bf16.vlgmr.msra.gmra.mxu0 %v5520_v9 }
 0xdf8   :  { %v5628_v57 = vpop.f32.mrf.mxu0 }
 0xdf9   :  { %v5629_v60 = vadd.f32 %v10231_v62, %v5628_v57 }
 0xdfa   :  { %v10886_v50 = vpop.f32.mrf.mxu0 }
 0xdfb   :  { %10240 = vst [vmem:[%s14153_s10 + $0x10] sm:$0xff] %v5629_v60  ;;  %v5636_v7 = vsel %vm71_vm0, %v5629_v60, -3e+38 }
 0xdfc   :  { %5637 = vmax.xlane.f32.xlu0 %v5636_v7  ;;  %v5631_v35 = vpop.f32.mrf.mxu0 }
 0xdfe   :  { %v10887_v38 = vpop.f32.mrf.mxu0 }
 0xe85   :  { %v5638_v47 = vpop.xlane.xlu0 %5637 }
 0xe86   :  { %vm5639_vm5 = vcmp.eq.f32.partialorder %v5636_v7, %v5638_v47 }
 0xe87   :  { %v5640_v17 = vsel %vm5639_vm5, %v14461_v16, 128.0 }
 0xe88   :  { %5641 = vmin.xlane.f32.xlu0 %v5640_v17 }
 0xf11   :  { %v5642_v18 = vpop.xlane.xlu0 %5641 }
 0xf12   :  { %vm5643_vm6 = vcmp.eq.f32.partialorder %v14461_v16, %v5642_v18 }
 0xf13   :  { %vm10250_vm7 = vmpackc.low %vm5643_vm6, %vm5643_vm6 }
 0xf14   :  { %10905 = vmatmul.mubr.msk.bf16.vlgmr.msra.gmra.mxu1 %vm10250_vm7, %v12432_v61 }
 0xfd4   :  { %v5745_v19 = vpop.f32.mrf.mxu1 }
 0xfd5   :  { %v5751_v20 = vpack.c.bf16 %v5745_v19, %v5745_v19 }
 0xfd6   :  { %v10906_v21 = vpop.f32.mrf.mxu1  ;;  %5757 = sbr.rel (%p10253_p3) target bundleno = 4061 (0xfdd), region = 57 }
 0xfd7   :  { %5752 = vst [vmem:[#allocation2] sm:$0xf] %v5751_v20 }
 0xfd8   :  { %v5748_v22 = vpop.f32.mrf.mxu1 }
 0xfda   :  { %v10907_v23 = vpop.f32.mrf.mxu1 }
 0xfdb   :  { %v10254_v54 = vld [vmem:[%s14145_s2 + $0x8] sm:$0xf] }
 0xfdc   :  { %5760 = vst [vmem:[#allocation2] sm:$0xf] %v10254_v54 }
 0xfdd PF:  { %v11746_v24 = vld [vmem:[#allocation8 + $0xe4] ss:$16 sps:$4 sm:$0xff]   ;;  %v11748_v25 = vld [vmem:[#allocation8 + $0xe0] ss:$16 sps:$4 sm:$0xff]   ;;  %v11749_v26 = vld [vmem:[#allocation8 + $0xec] ss:$16 sps:$4 sm:$0xff]  }
 0xfde   :  { %6176 = vmatprep.subr.bf16.mxu0 %v11746_v24  ;;  %v11751_v29 = vld [vmem:[#allocation8 + $0xe8] ss:$16 sps:$4 sm:$0xff]   ;;  %v11752_v31 = vld [vmem:[#allocation8 + $0xc4] ss:$16 sps:$4 sm:$0xff]   ;;  %v11754_v33 = vld [vmem:[#allocation8 + $0xc0] ss:$16 sps:$4 sm:$0xff]   ;;  %6217 = vmatprep.subr.bf16.mxu1 %v11749_v26 }
 0xfdf   :  { %6177 = vmatpush1.bf16.msra.mxu0 %v11748_v25  ;;  %v11755_v34 = vld [vmem:[#allocation8 + $0xcc] ss:$16 sps:$4 sm:$0xff]   ;;  %6218 = vmatpush1.bf16.msra.mxu1 %v11751_v29  ;;  %v11757_v37 = vld [vmem:[#allocation8 + $0xc8] ss:$16 sps:$4 sm:$0xff]   ;;  %v11758_v39 = vld [vmem:[#allocation8 + $0xa4] ss:$16 sps:$4 sm:$0xff]  }
 0xfe0   :  { %6178 = vmatprep.subr.bf16.mxu0 %v11752_v31  ;;  %6219 = vmatprep.subr.bf16.mxu1 %v11755_v34  ;;  %v11760_v42 = vld [vmem:[#allocation8 + $0xa0] ss:$16 sps:$4 sm:$0xff]   ;;  %v11761_v43 = vld [vmem:[#allocation8 + $0xac] ss:$16 sps:$4 sm:$0xff]   ;;  %v11764_v44 = vld [vmem:[#allocation8 + $0x84] ss:$16 sps:$4 sm:$0xff]  }
 0xfe1   :  { %v11763_v45 = vld [vmem:[#allocation8 + $0xa8] ss:$16 sps:$4 sm:$0xff]   ;;  %v11767_v46 = vld [vmem:[#allocation8 + $0x8c] ss:$16 sps:$4 sm:$0xff]   ;;  %v11766_v48 = vld [vmem:[#allocation8 + $0x80] ss:$16 sps:$4 sm:$0xff]  }
 0xfe2   :  { %v11770_v51 = vld [vmem:[#allocation8 + $0x64] ss:$16 sps:$4 sm:$0xff]   ;;  %v11769_v40 = vld [vmem:[#allocation8 + $0x88] ss:$16 sps:$4 sm:$0xff]   ;;  %v11773_v2 = vld [vmem:[#allocation8 + $0x6c] ss:$16 sps:$4 sm:$0xff]  }
 0xfe3   :  { %6179 = vmatpush1.bf16.msra.mxu0 %v11754_v33  ;;  %6220 = vmatpush1.bf16.msra.mxu1 %v11757_v37  ;;  %v11772_v58 = vld [vmem:[#allocation8 + $0x60] ss:$16 sps:$4 sm:$0xff]   ;;  %v11776_v1 = vld [vmem:[#allocation8 + $0x44] ss:$16 sps:$4 sm:$0xff]   ;;  %v11775_v56 = vld [vmem:[#allocation8 + $0x68] ss:$16 sps:$4 sm:$0xff]  }
 0xfe4   :  { %6180 = vmatprep.subr.bf16.mxu0 %v11758_v39  ;;  %6221 = vmatprep.subr.bf16.mxu1 %v11761_v43  ;;  %v11779_v6 = vld [vmem:[#allocation8 + $0x4c] ss:$16 sps:$4 sm:$0xff]   ;;  %v11778_v49 = vld [vmem:[#allocation8 + $0x40] ss:$16 sps:$4 sm:$0xff]   ;;  %v11782_v28 = vld [vmem:[#allocation8 + $0x24] ss:$16 sps:$4 sm:$0xff]  }
 0xfe5   :  { %v11781_v30 = vld [vmem:[#allocation8 + $0x48] ss:$16 sps:$4 sm:$0xff]   ;;  %v11785_v32 = vld [vmem:[#allocation8 + $0x2c] ss:$16 sps:$4 sm:$0xff]   ;;  %v11784_v59 = vld [vmem:[#allocation8 + $0x20] ss:$16 sps:$4 sm:$0xff]  }
 0xfe6   :  { %v11788_v3 = vld [vmem:[#allocation8 + $0x4] ss:$16 sps:$4 sm:$0xff]   ;;  %v11787_v27 = vld [vmem:[#allocation8 + $0x28] ss:$16 sps:$4 sm:$0xff]   ;;  %v11791_v10 = vld [vmem:[#allocation8 + $0xc] ss:$16 sps:$4 sm:$0xff]  }
 0xfe7   :  { %6181 = vmatpush1.bf16.msra.mxu0 %v11760_v42  ;;  %6222 = vmatpush1.bf16.msra.mxu1 %v11763_v45  ;;  %v11790_v0 = vld [vmem:[#allocation8] ss:$16 sps:$4 sm:$0xff]   ;;  %v11794_v4 = vld [vmem:[#allocation8 + $0x1e4] ss:$16 sps:$4 sm:$0xff]   ;;  %v11793_v36 = vld [vmem:[#allocation8 + $0x8] ss:$16 sps:$4 sm:$0xff]  }
 0xfe8   :  { %6182 = vmatprep.subr.bf16.mxu0 %v11764_v44  ;;  %6223 = vmatprep.subr.bf16.mxu1 %v11767_v46  ;;  %v11797_v11 = vld [vmem:[#allocation8 + $0x1ec] ss:$16 sps:$4 sm:$0xff]   ;;  %v11796_v12 = vld [vmem:[#allocation8 + $0x1e0] ss:$16 sps:$4 sm:$0xff]   ;;  %v11800_v9 = vld [vmem:[#allocation8 + $0x1c4] ss:$16 sps:$4 sm:$0xff]  }
 0xfe9   :  { %v11799_v62 = vld [vmem:[#allocation8 + $0x1e8] ss:$16 sps:$4 sm:$0xff]   ;;  %v11803_v57 = vld [vmem:[#allocation8 + $0x1cc] ss:$16 sps:$4 sm:$0xff]   ;;  %v11802_v60 = vld [vmem:[#allocation8 + $0x1c0] ss:$16 sps:$4 sm:$0xff]  }
 0xfea   :  { %v11806_v50 = vld [vmem:[#allocation8 + $0x1a4] ss:$16 sps:$4 sm:$0xff]   ;;  %v11805_v53 = vld [vmem:[#allocation8 + $0x1c8] ss:$16 sps:$4 sm:$0xff]   ;;  %v11809_v7 = vld [vmem:[#allocation8 + $0x1ac] ss:$16 sps:$4 sm:$0xff]  }
 0xfeb   :  { %6183 = vmatpush1.bf16.msra.mxu0 %v11766_v48  ;;  %6224 = vmatpush1.bf16.msra.mxu1 %v11769_v40  ;;  %v11808_v35 = vld [vmem:[#allocation8 + $0x1a0] ss:$16 sps:$4 sm:$0xff]   ;;  %v11812_v38 = vld [vmem:[#allocation8 + $0x184] ss:$16 sps:$4 sm:$0xff]   ;;  %v11811_v41 = vld [vmem:[#allocation8 + $0x1a8] ss:$16 sps:$4 sm:$0xff]  }
 0xfec   :  { %6184 = vmatprep.subr.bf16.mxu0 %v11770_v51  ;;  %6225 = vmatprep.subr.bf16.mxu1 %v11773_v2  ;;  %v11814_v63 = vld [vmem:[#allocation8 + $0x180] ss:$16 sps:$4 sm:$0xff]   ;;  %v11815_v55 = vld [vmem:[#allocation8 + $0x18c] ss:$16 sps:$4 sm:$0xff]   ;;  %v11817_v5 = vld [vmem:[#allocation8 + $0x188] ss:$16 sps:$4 sm:$0xff]  }
 0xfed   :  { %v5761_v8 = vld [vmem:[#allocation2] sm:$0xff]  ;;  %v11821_v15 = vld [vmem:[#allocation8 + $0x16c] ss:$16 sps:$4 sm:$0xff]   ;;  %v11823_v17 = vld [vmem:[#allocation8 + $0x168] ss:$16 sps:$4 sm:$0xff]   ;;  %v14462_v33 = vmov 0.0  }
 0xfee   :  { %v11818_v13 = vld [vmem:[#allocation8 + $0x164] ss:$16 sps:$4 sm:$0xff]   ;;  %v10256_v14 = vcombine.high %v5761_v8, %v5761_v8  ;;  %v11820_v47 = vld [vmem:[#allocation8 + $0x160] ss:$16 sps:$4 sm:$0xff]   ;;  %v11827_v18 = vld [vmem:[#allocation8 + $0x14c] ss:$16 sps:$4 sm:$0xff]   ;;  %v10255_v31 = vcombine.low %v5761_v8, %v5761_v8 }
 0xfef   :  { %6185 = vmatpush1.bf16.msra.mxu0 %v11772_v58  ;;  %6226 = vmatpush1.bf16.msra.mxu1 %v11775_v56  ;;  %v11824_v16 = vld [vmem:[#allocation8 + $0x144] ss:$16 sps:$4 sm:$0xff]   ;;  %v11826_v19 = vld [vmem:[#allocation8 + $0x140] ss:$16 sps:$4 sm:$0xff]   ;;  %v11829_v21 = vld [vmem:[#allocation8 + $0x148] ss:$16 sps:$4 sm:$0xff]  }
 0xff0   :  { %6186 = vmatprep.subr.bf16.mxu0 %v11776_v1  ;;  %6227 = vmatprep.subr.bf16.mxu1 %v11779_v6  ;;  %v11830_v20 = vld [vmem:[#allocation8 + $0x124] ss:$16 sps:$4 sm:$0xff]   ;;  %v11833_v22 = vld [vmem:[#allocation8 + $0x12c] ss:$16 sps:$4 sm:$0xff]   ;;  %v11832_v23 = vld [vmem:[#allocation8 + $0x120] ss:$16 sps:$4 sm:$0xff]  }
 0xff1   :  { %6208 = vmatprep.mubr.bf16.mxu0 %v10256_v14  ;;  %6249 = vmatprep.mubr.bf16.mxu1 %v10256_v14  ;;  %v11836_v54 = vld [vmem:[#allocation8 + $0x104] ss:$16 sps:$4 sm:$0xff]   ;;  %v11835_v24 = vld [vmem:[#allocation8 + $0x128] ss:$16 sps:$4 sm:$0xff]   ;;  %v11839_v25 = vld [vmem:[#allocation8 + $0x10c] ss:$16 sps:$4 sm:$0xff]  }
 0xff2   :  { %v11838_v26 = vld [vmem:[#allocation8 + $0x100] ss:$16 sps:$4 sm:$0xff]   ;;  %v11842_v29 = vld [vmem:[#allocation8 + $0x108] ss:$16 sps:$4 sm:$0xff]   ;;  %s10342_s16 = sld [smem:[#allocation5 + $0x3]] }
 0xff3   :  { %6187 = vmatpush1.bf16.msra.mxu0 %v11778_v49  ;;  %6228 = vmatpush1.bf16.msra.mxu1 %v11781_v30  ;;  %v11844_v34 = vld [vmem:[%s14151_s8 + $0x38] sm:$0xff]   ;;  %v11845_v37 = vld [vmem:[%s14151_s8 + $0x30] sm:$0xff]   ;;  %v11846_v39 = vld [vmem:[%s14151_s8 + $0x28] sm:$0xff]  }
 0xff4   :  { %6188 = vmatprep.subr.bf16.mxu0 %v11782_v28  ;;  %6229 = vmatprep.subr.bf16.mxu1 %v11785_v32  ;;  %v11847_v42 = vld [vmem:[%s14151_s8 + $0x20] sm:$0xff]   ;;  %v11848_v43 = vld [vmem:[%s14151_s8 + $0x18] sm:$0xff]   ;;  %v11849_v44 = vld [vmem:[%s14151_s8 + $0x10] sm:$0xff]  }
 0xff5   :  { %v11850_v45 = vld [vmem:[%s14151_s8 + $0x8] sm:$0xff]   ;;  %v11851_v46 = vld [vmem:[%s14151_s8] sm:$0xff]   ;;  %v14465_v6 = vld [vmem:[#allocation37_spill] sm:$0xff] }
 0xff6   :  { %v5827_v48 = vld [vmem:[%s14150_s7] sm:$0xf]  ;;  %v14464_v2 = vld [vmem:[#allocation36_spill] sm:$0xff] }
 0xff7   :  { %6189 = vmatpush1.bf16.msra.mxu0 %v11784_v59  ;;  %6230 = vmatpush1.bf16.msra.mxu1 %v11787_v27  ;;  %v14463_v51 = vld [vmem:[#allocation35_spill] sm:$0xff]  ;;  %v5836_v58 = vrot.slane %v5827_v48, %v14464_v2  ;;  %v5840_v49 = vrot.slane %v5827_v48, %v14465_v6 }
 0xff8   :  { %6190 = vmatprep.subr.bf16.mxu0 %v11788_v3  ;;  %6231 = vmatprep.subr.bf16.mxu1 %v11791_v10  ;;  %v5832_v40 = vrot.slane %v5827_v48, %v14463_v51  ;;  %p10343_p4 = scmp.eq.s32.totalorder %s10342_s16, 0 }
 0xffb   :  { %6191 = vmatpush1.bf16.msra.mxu0 %v11790_v0  ;;  %6232 = vmatpush1.bf16.msra.mxu1 %v11793_v36 }
 0xffc   :  { %6192 = vmatprep.subr.bf16.mxu0 %v11794_v4  ;;  %6233 = vmatprep.subr.bf16.mxu1 %v11797_v11 }
 0xfff   :  { %6193 = vmatpush2.bf16.msra.mxu0 %v11796_v12  ;;  %6234 = vmatpush2.bf16.msra.mxu1 %v11799_v62  ;;  %v5844_v12 = vrot.slane %v5827_v48, %v12787_v52 }
0x1000   :  { %6194 = vmatprep.subr.bf16.mxu0 %v11800_v9  ;;  %6235 = vmatprep.subr.bf16.mxu1 %v11803_v57 }
0x1003   :  { %6195 = vmatpush2.bf16.msra.mxu0 %v11802_v60  ;;  %6236 = vmatpush2.bf16.msra.mxu1 %v11805_v53 }
0x1004   :  { %6196 = vmatprep.subr.bf16.mxu0 %v11806_v50  ;;  %6237 = vmatprep.subr.bf16.mxu1 %v11809_v7 }
0x1007   :  { %6197 = vmatpush2.bf16.msra.mxu0 %v11808_v35  ;;  %6238 = vmatpush2.bf16.msra.mxu1 %v11811_v41 }
0x1008   :  { %6198 = vmatprep.subr.bf16.mxu0 %v11812_v38  ;;  %6239 = vmatprep.subr.bf16.mxu1 %v11815_v55  ;;  %v5762_v38 = vld [vmem:[#allocation3] sm:$0xff] }
0x100b   :  { %6199 = vmatpush2.bf16.msra.mxu0 %v11814_v63  ;;  %6240 = vmatpush2.bf16.msra.mxu1 %v11817_v5 }
0x100c   :  { %6200 = vmatprep.subr.bf16.mxu0 %v11818_v13  ;;  %6241 = vmatprep.subr.bf16.mxu1 %v11821_v15 }
0x100f   :  { %6201 = vmatpush2.bf16.msra.mxu0 %v11820_v47  ;;  %6242 = vmatpush2.bf16.msra.mxu1 %v11823_v17  ;;  %v10321_v17 = vld [vmem:[%s14152_s9] ss:$0 sm:$0xff] }
0x1010   :  { %6202 = vmatprep.subr.bf16.mxu0 %v11824_v16  ;;  %6243 = vmatprep.subr.bf16.mxu1 %v11827_v18 }
0x1013   :  { %6203 = vmatpush2.bf16.msra.mxu0 %v11826_v19  ;;  %6244 = vmatpush2.bf16.msra.mxu1 %v11829_v21 }
0x1014   :  { %6204 = vmatprep.subr.bf16.mxu0 %v11830_v20  ;;  %6245 = vmatprep.subr.bf16.mxu1 %v11833_v22 }
0x1017   :  { %6205 = vmatpush2.bf16.msra.mxu0 %v11832_v23  ;;  %6246 = vmatpush2.bf16.msra.mxu1 %v11835_v24  ;;  %v11852_v24 = vld [vmem:[%s14146_s3 + $0x38] sm:$0xff]  }
0x1018   :  { %6206 = vmatprep.subr.bf16.mxu0 %v11836_v54  ;;  %6247 = vmatprep.subr.bf16.mxu1 %v11839_v25  ;;  %v11853_v25 = vld [vmem:[%s14146_s3 + $0x30] sm:$0xff]  }
0x101b   :  { %6207 = vmatpush2.bf16.msra.mxu0 %v11838_v26  ;;  %6248 = vmatpush2.bf16.msra.mxu1 %v11842_v29  ;;  %v11854_v26 = vld [vmem:[%s14146_s3 + $0x28] sm:$0xff]   ;;  %v11855_v29 = vld [vmem:[%s14146_s3 + $0x20] sm:$0xff]  }
0x101c   :  { %10908 = vmatprep.subr.bf16.mxu0 %v14462_v33  ;;  %10928 = vmatprep.subr.bf16.mxu1 %v14462_v33 }
0x101e   :  { %6209 = vmatmul.mubr.bf16.vlgmr.msra.gmra.mxu0 %v10255_v31  ;;  %6250 = vmatmul.mubr.bf16.vlgmr.msra.gmra.mxu1 %v10255_v31  ;;  %v11856_v31 = vld [vmem:[%s14146_s3 + $0x18] sm:$0xff]  }
0x101f   :  { %10924 = vmatprep.mubr.msk.bf16.mxu0 %vm12431_vm1, %v14462_v33  ;;  %10944 = vmatprep.mubr.msk.bf16.mxu1 %vm12431_vm1, %v14462_v33 }
0x1020   :  { %10909 = vmatpush3.bf16.msra.mxu0 %v11844_v34  ;;  %10929 = vmatpush3.bf16.msra.mxu1 %v11852_v24  ;;  %v11857_v34 = vld [vmem:[%s14146_s3 + $0x10] sm:$0xff]  }
0x1021   :  { %10910 = vmatprep.subr.bf16.mxu0 %v14462_v33  ;;  %10930 = vmatprep.subr.bf16.mxu1 %v14462_v33 }
0x1024   :  { %10911 = vmatpush3.bf16.msra.mxu0 %v11845_v37  ;;  %10931 = vmatpush3.bf16.msra.mxu1 %v11853_v25  ;;  %v11858_v37 = vld [vmem:[%s14146_s3 + $0x8] sm:$0xff]  }
0x1025   :  { %10912 = vmatprep.subr.bf16.mxu0 %v14462_v33  ;;  %10932 = vmatprep.subr.bf16.mxu1 %v14462_v33 }
0x1028   :  { %10913 = vmatpush3.bf16.msra.mxu0 %v11846_v39  ;;  %10933 = vmatpush3.bf16.msra.mxu1 %v11854_v26  ;;  %v11859_v39 = vld [vmem:[%s14146_s3] sm:$0xff]  }
0x1029   :  { %10914 = vmatprep.subr.bf16.mxu0 %v14462_v33  ;;  %10934 = vmatprep.subr.bf16.mxu1 %v14462_v33 }
0x102c   :  { %10915 = vmatpush3.bf16.msra.mxu0 %v11847_v42  ;;  %10935 = vmatpush3.bf16.msra.mxu1 %v11855_v29 }
0x102d   :  { %10916 = vmatprep.subr.bf16.mxu0 %v14462_v33  ;;  %10936 = vmatprep.subr.bf16.mxu1 %v14462_v33 }
0x1030   :  { %10917 = vmatpush3.bf16.msra.mxu0 %v11848_v43  ;;  %10937 = vmatpush3.bf16.msra.mxu1 %v11856_v31  ;;  %v14467_v43 = vld [vmem:[#allocation14_spill] sm:$0xff] }
0x1031   :  { %10918 = vmatprep.subr.bf16.mxu0 %v14462_v33  ;;  %10938 = vmatprep.subr.bf16.mxu1 %v14462_v33 }
0x1034   :  { %10919 = vmatpush3.bf16.msra.mxu0 %v11849_v44  ;;  %10939 = vmatpush3.bf16.msra.mxu1 %v11857_v34 }
0x1035   :  { %10920 = vmatprep.subr.bf16.mxu0 %v14462_v33  ;;  %10940 = vmatprep.subr.bf16.mxu1 %v14462_v33 }
0x1038   :  { %10921 = vmatpush3.bf16.msra.mxu0 %v11850_v45  ;;  %10941 = vmatpush3.bf16.msra.mxu1 %v11858_v37 }
0x1039   :  { %10922 = vmatprep.subr.bf16.mxu0 %v14462_v33  ;;  %10942 = vmatprep.subr.bf16.mxu1 %v14462_v33 }
0x103c   :  { %10923 = vmatpush3.bf16.msra.mxu0 %v11851_v46  ;;  %10943 = vmatpush3.bf16.msra.mxu1 %v11859_v39 }
0x10de   :  { %v6210_v1 = vpop.f32.mrf.mxu0  ;;  %v6251_v30 = vpop.f32.mrf.mxu1 }
0x10df   :  { %v6211_v56 = vadd.f32 %v6210_v1, %v5832_v40  ;;  %v6252_v0 = vadd.f32 %v6251_v30, %v5840_v49 }
0x10e0   :  { %v6212_v28 = vpop.f32.mrf.mxu0  ;;  %v6253_v27 = vpop.f32.mrf.mxu1 }
0x10e1   :  { %v6258_v32 = vmul.f32 0.5, %v6211_v56  ;;  %v6213_v59 = vadd.f32 %v6212_v28, %v5836_v58  ;;  %v6254_v9 = vadd.f32 %v6253_v27, %v5844_v12 }
0x10e2   :  { %v6214_v3 = vpop.f32.mrf.mxu0  ;;  %v6255_v36 = vpop.f32.mrf.mxu1 }
0x10e3   :  { %11860 = vtanh.f32 %v6258_v32  ;;  %v6262_v10 = vmul.f32 0.5, %v6213_v59  ;;  %v6267_v62 = vmul.f32 0.5, %v6254_v9 }
0x10e4   :  { %v6215_v4 = vpop.f32.mrf.mxu0  ;;  %v6256_v11 = vpop.f32.mrf.mxu1 }
0x10e5   :  { %11862 = vtanh.f32 %v6262_v10 }
0x10e6   :  { %11864 = vtanh.f32 %v6252_v0 }
0x10e7   :  { %11866 = vtanh.f32 %v6267_v62 }
0x10f0   :  { %v11861_v57 = vpop.eup %11860 }
0x10f1   :  { %v6260_v60 = vadd.f32 1.0, %v11861_v57 }
0x10f2   :  { %v11863_v50 = vpop.eup %11862 }
0x10f3   :  { %v6261_v53 = vmul.f32 0.5, %v6260_v60  ;;  %v6264_v7 = vadd.f32 1.0, %v11863_v50  ;;  %v11865_v35 = vpop.eup %11864 }
0x10f4   :  { %v11867_v5 = vpop.eup %11866 }
0x10f5   :  { %v6265_v41 = vmul.f32 0.5, %v6264_v7  ;;  %v6272_v55 = vmul.f32 %v11865_v35, %v6261_v53  ;;  %v6269_v13 = vadd.f32 1.0, %v11867_v5 }
0x10f7   :  { %v6271_v63 = vmul.f32 %v6265_v41, %v5762_v38  ;;  %v6270_v14 = vmul.f32 0.5, %v6269_v13 }
0x10f9   :  { %v6273_v8 = vadd.f32 %v6272_v55, %v6271_v63 }
0x10fb   :  { %11868 = vtanh.f32 %v6273_v8  ;;  %6278 = vst [vmem:[#allocation3] sm:$0xff] %v6273_v8 }
0x1108   :  { %v11869_v15 = vpop.eup %11868 }
0x1109   :  { %v6275_v47 = vmul.f32 %v11869_v15, %v6270_v14 }
0x110b   :  { %v6276_v16 = vpack.c.bf16 %v6275_v47, %v6275_v47 }
0x110d   :  { %6277 = vst [vmem:[#allocation2 + $0x4] sm:$0xf] %v6276_v16  ;;  %10925 = vmatmul.mubr.bf16.vlgmr.msra.gmra.mxu0 %v6276_v16 }
0x11cd   :  { %v6384_v18 = vpop.f32.mrf.mxu0 }
0x11ce   :  { %v6385_v19 = vadd.f32 %v10321_v17, %v6384_v18 }
0x11cf   :  { %v10926_v20 = vpop.f32.mrf.mxu0 }
0x11d0   :  { %10330 = vst [vmem:[%s14153_s10 + $0x18] sm:$0xff] %v6385_v19  ;;  %v6392_v22 = vsel %vm71_vm0, %v6385_v19, -3e+38 }
0x11d1   :  { %6393 = vmax.xlane.f32.xlu0 %v6392_v22  ;;  %v6387_v23 = vpop.f32.mrf.mxu0 }
0x11d3   :  { %v10927_v54 = vpop.f32.mrf.mxu0 }
0x125a   :  { %v6394_v42 = vpop.xlane.xlu0 %6393 }
0x125b   :  { %vm6395_vm8 = vcmp.eq.f32.partialorder %v6392_v22, %v6394_v42 }
0x125c   :  { %v6396_v44 = vsel %vm6395_vm8, %v14467_v43, 128.0 }
0x125d   :  { %6397 = vmin.xlane.f32.xlu0 %v6396_v44 }
0x12e6   :  { %v6398_v45 = vpop.xlane.xlu0 %6397 }
0x12e7   :  { %vm6399_vm9 = vcmp.eq.f32.partialorder %v14467_v43, %v6398_v45 }
0x12e8   :  { %vm10340_vm10 = vmpackc.low %vm6399_vm9, %vm6399_vm9 }
0x12e9   :  { %10945 = vmatmul.mubr.msk.bf16.vlgmr.msra.gmra.mxu1 %vm10340_vm10, %v12432_v61 }
0x13a9   :  { %v6501_v46 = vpop.f32.mrf.mxu1 }
0x13aa   :  { %v6507_v48 = vpack.c.bf16 %v6501_v46, %v6501_v46 }
0x13ab   :  { %v10946_v51 = vpop.f32.mrf.mxu1  ;;  %6513 = sbr.rel (%p10343_p4) target bundleno = 5042 (0x13b2), region = 61 }
0x13ac   :  { %6508 = vst [vmem:[#allocation2] sm:$0xf] %v6507_v48 }
0x13ad   :  { %v6504_v40 = vpop.f32.mrf.mxu1 }
0x13af   :  { %v10947_v2 = vpop.f32.mrf.mxu1 }
0x13b0   :  { %v10344_v33 = vld [vmem:[%s14145_s2 + $0xc] sm:$0xf] }
0x13b1   :  { %6516 = vst [vmem:[#allocation2] sm:$0xf] %v10344_v33 }
0x13b2 PF:  { %v11870_v58 = vld [vmem:[#allocation8 + $0xe4] ss:$16 sps:$4 sm:$0xff]   ;;  %v11872_v1 = vld [vmem:[#allocation8 + $0xe0] ss:$16 sps:$4 sm:$0xff]   ;;  %v11873_v56 = vld [vmem:[#allocation8 + $0xec] ss:$16 sps:$4 sm:$0xff]  }
0x13b3   :  { %6932 = vmatprep.subr.bf16.mxu0 %v11870_v58  ;;  %v11875_v6 = vld [vmem:[#allocation8 + $0xe8] ss:$16 sps:$4 sm:$0xff]   ;;  %v11876_v49 = vld [vmem:[#allocation8 + $0xc4] ss:$16 sps:$4 sm:$0xff]   ;;  %v11878_v28 = vld [vmem:[#allocation8 + $0xc0] ss:$16 sps:$4 sm:$0xff]   ;;  %6973 = vmatprep.subr.bf16.mxu1 %v11873_v56 }
0x13b4   :  { %6933 = vmatpush1.bf16.msra.mxu0 %v11872_v1  ;;  %v11879_v30 = vld [vmem:[#allocation8 + $0xcc] ss:$16 sps:$4 sm:$0xff]   ;;  %6974 = vmatpush1.bf16.msra.mxu1 %v11875_v6  ;;  %v11881_v32 = vld [vmem:[#allocation8 + $0xc8] ss:$16 sps:$4 sm:$0xff]   ;;  %v11882_v59 = vld [vmem:[#allocation8 + $0xa4] ss:$16 sps:$4 sm:$0xff]  }
0x13b5   :  { %6934 = vmatprep.subr.bf16.mxu0 %v11876_v49  ;;  %6975 = vmatprep.subr.bf16.mxu1 %v11879_v30  ;;  %v11884_v3 = vld [vmem:[#allocation8 + $0xa0] ss:$16 sps:$4 sm:$0xff]   ;;  %v11885_v27 = vld [vmem:[#allocation8 + $0xac] ss:$16 sps:$4 sm:$0xff]   ;;  %v11888_v10 = vld [vmem:[#allocation8 + $0x84] ss:$16 sps:$4 sm:$0xff]  }
0x13b6   :  { %v11887_v0 = vld [vmem:[#allocation8 + $0xa8] ss:$16 sps:$4 sm:$0xff]   ;;  %v11891_v4 = vld [vmem:[#allocation8 + $0x8c] ss:$16 sps:$4 sm:$0xff]   ;;  %v11890_v36 = vld [vmem:[#allocation8 + $0x80] ss:$16 sps:$4 sm:$0xff]  }
0x13b7   :  { %v11894_v11 = vld [vmem:[#allocation8 + $0x64] ss:$16 sps:$4 sm:$0xff]   ;;  %v11893_v12 = vld [vmem:[#allocation8 + $0x88] ss:$16 sps:$4 sm:$0xff]   ;;  %v11897_v9 = vld [vmem:[#allocation8 + $0x6c] ss:$16 sps:$4 sm:$0xff]  }
0x13b8   :  { %6935 = vmatpush1.bf16.msra.mxu0 %v11878_v28  ;;  %6976 = vmatpush1.bf16.msra.mxu1 %v11881_v32  ;;  %v11896_v62 = vld [vmem:[#allocation8 + $0x60] ss:$16 sps:$4 sm:$0xff]   ;;  %v11900_v57 = vld [vmem:[#allocation8 + $0x44] ss:$16 sps:$4 sm:$0xff]   ;;  %v11899_v60 = vld [vmem:[#allocation8 + $0x68] ss:$16 sps:$4 sm:$0xff]  }
0x13b9   :  { %6936 = vmatprep.subr.bf16.mxu0 %v11882_v59  ;;  %6977 = vmatprep.subr.bf16.mxu1 %v11885_v27  ;;  %v11903_v50 = vld [vmem:[#allocation8 + $0x4c] ss:$16 sps:$4 sm:$0xff]   ;;  %v11902_v53 = vld [vmem:[#allocation8 + $0x40] ss:$16 sps:$4 sm:$0xff]   ;;  %v11906_v7 = vld [vmem:[#allocation8 + $0x24] ss:$16 sps:$4 sm:$0xff]  }
0x13ba   :  { %v11905_v35 = vld [vmem:[#allocation8 + $0x48] ss:$16 sps:$4 sm:$0xff]   ;;  %v11909_v38 = vld [vmem:[#allocation8 + $0x2c] ss:$16 sps:$4 sm:$0xff]   ;;  %v11908_v41 = vld [vmem:[#allocation8 + $0x20] ss:$16 sps:$4 sm:$0xff]  }
0x13bb   :  { %v11912_v63 = vld [vmem:[#allocation8 + $0x4] ss:$16 sps:$4 sm:$0xff]   ;;  %v11911_v55 = vld [vmem:[#allocation8 + $0x28] ss:$16 sps:$4 sm:$0xff]   ;;  %v11915_v8 = vld [vmem:[#allocation8 + $0xc] ss:$16 sps:$4 sm:$0xff]  }
0x13bc   :  { %6937 = vmatpush1.bf16.msra.mxu0 %v11884_v3  ;;  %6978 = vmatpush1.bf16.msra.mxu1 %v11887_v0  ;;  %v11914_v5 = vld [vmem:[#allocation8] ss:$16 sps:$4 sm:$0xff]   ;;  %v11918_v13 = vld [vmem:[#allocation8 + $0x1e4] ss:$16 sps:$4 sm:$0xff]   ;;  %v11917_v14 = vld [vmem:[#allocation8 + $0x8] ss:$16 sps:$4 sm:$0xff]  }
0x13bd   :  { %6938 = vmatprep.subr.bf16.mxu0 %v11888_v10  ;;  %6979 = vmatprep.subr.bf16.mxu1 %v11891_v4  ;;  %v11921_v15 = vld [vmem:[#allocation8 + $0x1ec] ss:$16 sps:$4 sm:$0xff]   ;;  %v11920_v47 = vld [vmem:[#allocation8 + $0x1e0] ss:$16 sps:$4 sm:$0xff]   ;;  %v11924_v16 = vld [vmem:[#allocation8 + $0x1c4] ss:$16 sps:$4 sm:$0xff]  }
0x13be   :  { %v11923_v17 = vld [vmem:[#allocation8 + $0x1e8] ss:$16 sps:$4 sm:$0xff]   ;;  %v11927_v18 = vld [vmem:[#allocation8 + $0x1cc] ss:$16 sps:$4 sm:$0xff]   ;;  %v11926_v19 = vld [vmem:[#allocation8 + $0x1c0] ss:$16 sps:$4 sm:$0xff]  }
0x13bf   :  { %v11930_v20 = vld [vmem:[#allocation8 + $0x1a4] ss:$16 sps:$4 sm:$0xff]   ;;  %v11929_v21 = vld [vmem:[#allocation8 + $0x1c8] ss:$16 sps:$4 sm:$0xff]   ;;  %v11933_v22 = vld [vmem:[#allocation8 + $0x1ac] ss:$16 sps:$4 sm:$0xff]  }
0x13c0   :  { %6939 = vmatpush1.bf16.msra.mxu0 %v11890_v36  ;;  %6980 = vmatpush1.bf16.msra.mxu1 %v11893_v12  ;;  %v11932_v23 = vld [vmem:[#allocation8 + $0x1a0] ss:$16 sps:$4 sm:$0xff]   ;;  %v11936_v54 = vld [vmem:[#allocation8 + $0x184] ss:$16 sps:$4 sm:$0xff]   ;;  %v11935_v24 = vld [vmem:[#allocation8 + $0x1a8] ss:$16 sps:$4 sm:$0xff]  }
0x13c1   :  { %6940 = vmatprep.subr.bf16.mxu0 %v11894_v11  ;;  %6981 = vmatprep.subr.bf16.mxu1 %v11897_v9  ;;  %v11938_v25 = vld [vmem:[#allocation8 + $0x180] ss:$16 sps:$4 sm:$0xff]   ;;  %v11939_v26 = vld [vmem:[#allocation8 + $0x18c] ss:$16 sps:$4 sm:$0xff]   ;;  %v11941_v31 = vld [vmem:[#allocation8 + $0x188] ss:$16 sps:$4 sm:$0xff]  }
0x13c2   :  { %v6517_v29 = vld [vmem:[#allocation2] sm:$0xff]  ;;  %v11945_v39 = vld [vmem:[#allocation8 + $0x16c] ss:$16 sps:$4 sm:$0xff]   ;;  %v11947_v44 = vld [vmem:[#allocation8 + $0x168] ss:$16 sps:$4 sm:$0xff]   ;;  %v14468_v28 = vmov 0.0  }
0x13c3   :  { %v11942_v34 = vld [vmem:[#allocation8 + $0x164] ss:$16 sps:$4 sm:$0xff]   ;;  %v10346_v37 = vcombine.high %v6517_v29, %v6517_v29  ;;  %v11944_v42 = vld [vmem:[#allocation8 + $0x160] ss:$16 sps:$4 sm:$0xff]   ;;  %v11951_v45 = vld [vmem:[#allocation8 + $0x14c] ss:$16 sps:$4 sm:$0xff]   ;;  %v10345_v49 = vcombine.low %v6517_v29, %v6517_v29 }
0x13c4   :  { %6941 = vmatpush1.bf16.msra.mxu0 %v11896_v62  ;;  %6982 = vmatpush1.bf16.msra.mxu1 %v11899_v60  ;;  %v11948_v43 = vld [vmem:[#allocation8 + $0x144] ss:$16 sps:$4 sm:$0xff]   ;;  %v11950_v46 = vld [vmem:[#allocation8 + $0x140] ss:$16 sps:$4 sm:$0xff]   ;;  %v11953_v51 = vld [vmem:[#allocation8 + $0x148] ss:$16 sps:$4 sm:$0xff]  }
0x13c5   :  { %6942 = vmatprep.subr.bf16.mxu0 %v11900_v57  ;;  %6983 = vmatprep.subr.bf16.mxu1 %v11903_v50  ;;  %v11954_v48 = vld [vmem:[#allocation8 + $0x124] ss:$16 sps:$4 sm:$0xff]   ;;  %v11957_v40 = vld [vmem:[#allocation8 + $0x12c] ss:$16 sps:$4 sm:$0xff]   ;;  %v11956_v2 = vld [vmem:[#allocation8 + $0x120] ss:$16 sps:$4 sm:$0xff]  }
0x13c6   :  { %6964 = vmatprep.mubr.bf16.mxu0 %v10346_v37  ;;  %7005 = vmatprep.mubr.bf16.mxu1 %v10346_v37  ;;  %v11960_v33 = vld [vmem:[#allocation8 + $0x104] ss:$16 sps:$4 sm:$0xff]   ;;  %v11959_v58 = vld [vmem:[#allocation8 + $0x128] ss:$16 sps:$4 sm:$0xff]   ;;  %v11963_v1 = vld [vmem:[#allocation8 + $0x10c] ss:$16 sps:$4 sm:$0xff]  }
0x13c7   :  { %v11962_v56 = vld [vmem:[#allocation8 + $0x100] ss:$16 sps:$4 sm:$0xff]   ;;  %v11966_v6 = vld [vmem:[#allocation8 + $0x108] ss:$16 sps:$4 sm:$0xff]   ;;  %s10432_s6 = sld [smem:[#allocation5 + $0x4]] }
0x13c8   :  { %6943 = vmatpush1.bf16.msra.mxu0 %v11902_v53  ;;  %6984 = vmatpush1.bf16.msra.mxu1 %v11905_v35  ;;  %v11968_v30 = vld [vmem:[%s14151_s8 + $0x38] sm:$0xff]   ;;  %v11969_v32 = vld [vmem:[%s14151_s8 + $0x30] sm:$0xff]   ;;  %v11970_v59 = vld [vmem:[%s14151_s8 + $0x28] sm:$0xff]  }
0x13c9   :  { %6944 = vmatprep.subr.bf16.mxu0 %v11906_v7  ;;  %6985 = vmatprep.subr.bf16.mxu1 %v11909_v38  ;;  %v11971_v3 = vld [vmem:[%s14151_s8 + $0x20] sm:$0xff]   ;;  %v11972_v27 = vld [vmem:[%s14151_s8 + $0x18] sm:$0xff]   ;;  %v11973_v10 = vld [vmem:[%s14151_s8 + $0x10] sm:$0xff]  }
0x13ca   :  { %v11974_v0 = vld [vmem:[%s14151_s8 + $0x8] sm:$0xff]   ;;  %v11975_v4 = vld [vmem:[%s14151_s8] sm:$0xff]   ;;  %v14471_v50 = vld [vmem:[#allocation37_spill] sm:$0xff] }
0x13cb   :  { %v6583_v36 = vld [vmem:[%s14150_s7] sm:$0xf]  ;;  %v14470_v9 = vld [vmem:[#allocation36_spill] sm:$0xff] }
0x13cc   :  { %6945 = vmatpush1.bf16.msra.mxu0 %v11908_v41  ;;  %6986 = vmatpush1.bf16.msra.mxu1 %v11911_v55  ;;  %v14469_v11 = vld [vmem:[#allocation35_spill] sm:$0xff]  ;;  %v6592_v62 = vrot.slane %v6583_v36, %v14470_v9  ;;  %v6596_v53 = vrot.slane %v6583_v36, %v14471_v50 }
0x13cd   :  { %6946 = vmatprep.subr.bf16.mxu0 %v11912_v63  ;;  %6987 = vmatprep.subr.bf16.mxu1 %v11915_v8  ;;  %v6588_v12 = vrot.slane %v6583_v36, %v14469_v11  ;;  %p10433_p5 = scmp.eq.s32.totalorder %s10432_s6, 0 }
0x13d0   :  { %6947 = vmatpush1.bf16.msra.mxu0 %v11914_v5  ;;  %6988 = vmatpush1.bf16.msra.mxu1 %v11917_v14 }
0x13d1   :  { %6948 = vmatprep.subr.bf16.mxu0 %v11918_v13  ;;  %6989 = vmatprep.subr.bf16.mxu1 %v11921_v15 }
0x13d4   :  { %6949 = vmatpush2.bf16.msra.mxu0 %v11920_v47  ;;  %6990 = vmatpush2.bf16.msra.mxu1 %v11923_v17  ;;  %v6600_v47 = vrot.slane %v6583_v36, %v12787_v52 }
0x13d5   :  { %6950 = vmatprep.subr.bf16.mxu0 %v11924_v16  ;;  %6991 = vmatprep.subr.bf16.mxu1 %v11927_v18 }
0x13d8   :  { %6951 = vmatpush2.bf16.msra.mxu0 %v11926_v19  ;;  %6992 = vmatpush2.bf16.msra.mxu1 %v11929_v21 }
0x13d9   :  { %6952 = vmatprep.subr.bf16.mxu0 %v11930_v20  ;;  %6993 = vmatprep.subr.bf16.mxu1 %v11933_v22 }
0x13dc   :  { %6953 = vmatpush2.bf16.msra.mxu0 %v11932_v23  ;;  %6994 = vmatpush2.bf16.msra.mxu1 %v11935_v24 }
0x13dd   :  { %6954 = vmatprep.subr.bf16.mxu0 %v11936_v54  ;;  %6995 = vmatprep.subr.bf16.mxu1 %v11939_v26  ;;  %v6518_v54 = vld [vmem:[#allocation3] sm:$0xff] }
0x13e0   :  { %6955 = vmatpush2.bf16.msra.mxu0 %v11938_v25  ;;  %6996 = vmatpush2.bf16.msra.mxu1 %v11941_v31 }
0x13e1   :  { %6956 = vmatprep.subr.bf16.mxu0 %v11942_v34  ;;  %6997 = vmatprep.subr.bf16.mxu1 %v11945_v39 }
0x13e4   :  { %6957 = vmatpush2.bf16.msra.mxu0 %v11944_v42  ;;  %6998 = vmatpush2.bf16.msra.mxu1 %v11947_v44  ;;  %v10411_v44 = vld [vmem:[%s14152_s9] ss:$0 sm:$0xff] }
0x13e5   :  { %6958 = vmatprep.subr.bf16.mxu0 %v11948_v43  ;;  %6999 = vmatprep.subr.bf16.mxu1 %v11951_v45 }
0x13e8   :  { %6959 = vmatpush2.bf16.msra.mxu0 %v11950_v46  ;;  %7000 = vmatpush2.bf16.msra.mxu1 %v11953_v51 }
0x13e9   :  { %6960 = vmatprep.subr.bf16.mxu0 %v11954_v48  ;;  %7001 = vmatprep.subr.bf16.mxu1 %v11957_v40 }
0x13ec   :  { %6961 = vmatpush2.bf16.msra.mxu0 %v11956_v2  ;;  %7002 = vmatpush2.bf16.msra.mxu1 %v11959_v58  ;;  %v11976_v58 = vld [vmem:[%s14146_s3 + $0x38] sm:$0xff]  }
0x13ed   :  { %6962 = vmatprep.subr.bf16.mxu0 %v11960_v33  ;;  %7003 = vmatprep.subr.bf16.mxu1 %v11963_v1  ;;  %v11977_v1 = vld [vmem:[%s14146_s3 + $0x30] sm:$0xff]  }
0x13f0   :  { %6963 = vmatpush2.bf16.msra.mxu0 %v11962_v56  ;;  %7004 = vmatpush2.bf16.msra.mxu1 %v11966_v6  ;;  %v11978_v56 = vld [vmem:[%s14146_s3 + $0x28] sm:$0xff]   ;;  %v11979_v6 = vld [vmem:[%s14146_s3 + $0x20] sm:$0xff]  }
0x13f1   :  { %10948 = vmatprep.subr.bf16.mxu0 %v14468_v28  ;;  %10968 = vmatprep.subr.bf16.mxu1 %v14468_v28 }
0x13f3   :  { %6965 = vmatmul.mubr.bf16.vlgmr.msra.gmra.mxu0 %v10345_v49  ;;  %7006 = vmatmul.mubr.bf16.vlgmr.msra.gmra.mxu1 %v10345_v49  ;;  %v11980_v49 = vld [vmem:[%s14146_s3 + $0x18] sm:$0xff]  }
0x13f4   :  { %10964 = vmatprep.mubr.msk.bf16.mxu0 %vm12431_vm1, %v14468_v28  ;;  %10984 = vmatprep.mubr.msk.bf16.mxu1 %vm12431_vm1, %v14468_v28 }
0x13f5   :  { %10949 = vmatpush3.bf16.msra.mxu0 %v11968_v30  ;;  %10969 = vmatpush3.bf16.msra.mxu1 %v11976_v58  ;;  %v11981_v30 = vld [vmem:[%s14146_s3 + $0x10] sm:$0xff]  }
0x13f6   :  { %10950 = vmatprep.subr.bf16.mxu0 %v14468_v28  ;;  %10970 = vmatprep.subr.bf16.mxu1 %v14468_v28 }
0x13f9   :  { %10951 = vmatpush3.bf16.msra.mxu0 %v11969_v32  ;;  %10971 = vmatpush3.bf16.msra.mxu1 %v11977_v1  ;;  %v11982_v32 = vld [vmem:[%s14146_s3 + $0x8] sm:$0xff]  }
0x13fa   :  { %10952 = vmatprep.subr.bf16.mxu0 %v14468_v28  ;;  %10972 = vmatprep.subr.bf16.mxu1 %v14468_v28 }
0x13fd   :  { %10953 = vmatpush3.bf16.msra.mxu0 %v11970_v59  ;;  %10973 = vmatpush3.bf16.msra.mxu1 %v11978_v56  ;;  %v11983_v59 = vld [vmem:[%s14146_s3] sm:$0xff]  }
0x13fe   :  { %10954 = vmatprep.subr.bf16.mxu0 %v14468_v28  ;;  %10974 = vmatprep.subr.bf16.mxu1 %v14468_v28 }
0x1401   :  { %10955 = vmatpush3.bf16.msra.mxu0 %v11971_v3  ;;  %10975 = vmatpush3.bf16.msra.mxu1 %v11979_v6 }
0x1402   :  { %10956 = vmatprep.subr.bf16.mxu0 %v14468_v28  ;;  %10976 = vmatprep.subr.bf16.mxu1 %v14468_v28 }
0x1405   :  { %10957 = vmatpush3.bf16.msra.mxu0 %v11972_v27  ;;  %10977 = vmatpush3.bf16.msra.mxu1 %v11980_v49  ;;  %v14473_v27 = vld [vmem:[#allocation14_spill] sm:$0xff] }
0x1406   :  { %10958 = vmatprep.subr.bf16.mxu0 %v14468_v28  ;;  %10978 = vmatprep.subr.bf16.mxu1 %v14468_v28 }
0x1409   :  { %10959 = vmatpush3.bf16.msra.mxu0 %v11973_v10  ;;  %10979 = vmatpush3.bf16.msra.mxu1 %v11981_v30 }
0x140a   :  { %10960 = vmatprep.subr.bf16.mxu0 %v14468_v28  ;;  %10980 = vmatprep.subr.bf16.mxu1 %v14468_v28 }
0x140d   :  { %10961 = vmatpush3.bf16.msra.mxu0 %v11974_v0  ;;  %10981 = vmatpush3.bf16.msra.mxu1 %v11982_v32 }
0x140e   :  { %10962 = vmatprep.subr.bf16.mxu0 %v14468_v28  ;;  %10982 = vmatprep.subr.bf16.mxu1 %v14468_v28 }
0x1411   :  { %10963 = vmatpush3.bf16.msra.mxu0 %v11975_v4  ;;  %10983 = vmatpush3.bf16.msra.mxu1 %v11983_v59 }
0x14b3   :  { %v6966_v57 = vpop.f32.mrf.mxu0  ;;  %v7007_v35 = vpop.f32.mrf.mxu1 }
0x14b4   :  { %v6967_v60 = vadd.f32 %v6966_v57, %v6588_v12  ;;  %v7008_v5 = vadd.f32 %v7007_v35, %v6596_v53 }
0x14b5   :  { %v6968_v7 = vpop.f32.mrf.mxu0  ;;  %v7009_v55 = vpop.f32.mrf.mxu1 }
0x14b6   :  { %v7014_v38 = vmul.f32 0.5, %v6967_v60  ;;  %v6969_v41 = vadd.f32 %v6968_v7, %v6592_v62  ;;  %v7010_v16 = vadd.f32 %v7009_v55, %v6600_v47 }
0x14b7   :  { %v6970_v63 = vpop.f32.mrf.mxu0  ;;  %v7011_v14 = vpop.f32.mrf.mxu1 }
0x14b8   :  { %11984 = vtanh.f32 %v7014_v38  ;;  %v7018_v8 = vmul.f32 0.5, %v6969_v41  ;;  %v7023_v17 = vmul.f32 0.5, %v7010_v16 }
0x14b9   :  { %v6971_v13 = vpop.f32.mrf.mxu0  ;;  %v7012_v15 = vpop.f32.mrf.mxu1 }
0x14ba   :  { %11986 = vtanh.f32 %v7018_v8 }
0x14bb   :  { %11988 = vtanh.f32 %v7008_v5 }
0x14bc   :  { %11990 = vtanh.f32 %v7023_v17 }
0x14c5   :  { %v11985_v18 = vpop.eup %11984 }
0x14c6   :  { %v7016_v19 = vadd.f32 1.0, %v11985_v18 }
0x14c7   :  { %v11987_v20 = vpop.eup %11986 }
0x14c8   :  { %v7017_v21 = vmul.f32 0.5, %v7016_v19  ;;  %v7020_v22 = vadd.f32 1.0, %v11987_v20  ;;  %v11989_v23 = vpop.eup %11988 }
0x14c9   :  { %v11991_v31 = vpop.eup %11990 }
0x14ca   :  { %v7021_v24 = vmul.f32 0.5, %v7020_v22  ;;  %v7028_v26 = vmul.f32 %v11989_v23, %v7017_v21  ;;  %v7025_v34 = vadd.f32 1.0, %v11991_v31 }
0x14cc   :  { %v7027_v25 = vmul.f32 %v7021_v24, %v6518_v54  ;;  %v7026_v37 = vmul.f32 0.5, %v7025_v34 }
0x14ce   :  { %v7029_v29 = vadd.f32 %v7028_v26, %v7027_v25 }
0x14d0   :  { %11992 = vtanh.f32 %v7029_v29  ;;  %7034 = vst [vmem:[#allocation3] sm:$0xff] %v7029_v29 }
0x14dd   :  { %v11993_v39 = vpop.eup %11992 }
0x14de   :  { %v7031_v42 = vmul.f32 %v11993_v39, %v7026_v37 }
0x14e0   :  { %v7032_v43 = vpack.c.bf16 %v7031_v42, %v7031_v42 }
0x14e2   :  { %7033 = vst [vmem:[#allocation2 + $0x4] sm:$0xf] %v7032_v43  ;;  %10965 = vmatmul.mubr.bf16.vlgmr.msra.gmra.mxu0 %v7032_v43 }
0x15a2   :  { %v7140_v45 = vpop.f32.mrf.mxu0 }
0x15a3   :  { %v7141_v46 = vadd.f32 %v10411_v44, %v7140_v45 }
0x15a4   :  { %v10966_v48 = vpop.f32.mrf.mxu0 }
0x15a5   :  { %10420 = vst [vmem:[%s14153_s10 + $0x20] sm:$0xff] %v7141_v46  ;;  %v7148_v40 = vsel %vm71_vm0, %v7141_v46, -3e+38 }
0x15a6   :  { %7149 = vmax.xlane.f32.xlu0 %v7148_v40  ;;  %v7143_v2 = vpop.f32.mrf.mxu0 }
0x15a8   :  { %v10967_v33 = vpop.f32.mrf.mxu0 }
0x162f   :  { %v7150_v3 = vpop.xlane.xlu0 %7149 }
0x1630   :  { %vm7151_vm11 = vcmp.eq.f32.partialorder %v7148_v40, %v7150_v3 }
0x1631   :  { %v7152_v10 = vsel %vm7151_vm11, %v14473_v27, 128.0 }
0x1632   :  { %7153 = vmin.xlane.f32.xlu0 %v7152_v10 }
0x16bb   :  { %v7154_v0 = vpop.xlane.xlu0 %7153 }
0x16bc   :  { %vm7155_vm12 = vcmp.eq.f32.partialorder %v14473_v27, %v7154_v0 }
0x16bd   :  { %vm10430_vm13 = vmpackc.low %vm7155_vm12, %vm7155_vm12 }
0x16be   :  { %10985 = vmatmul.mubr.msk.bf16.vlgmr.msra.gmra.mxu1 %vm10430_vm13, %v12432_v61 }
0x177e   :  { %v7257_v4 = vpop.f32.mrf.mxu1 }
0x177f   :  { %v7263_v36 = vpack.c.bf16 %v7257_v4, %v7257_v4 }
0x1780   :  { %v10986_v11 = vpop.f32.mrf.mxu1  ;;  %7269 = sbr.rel (%p10433_p5) target bundleno = 6023 (0x1787), region = 65 }
0x1781   :  { %7264 = vst [vmem:[#allocation2] sm:$0xf] %v7263_v36 }
0x1782   :  { %v7260_v12 = vpop.f32.mrf.mxu1 }
0x1784   :  { %v10987_v9 = vpop.f32.mrf.mxu1 }
0x1785   :  { %v10434_v28 = vld [vmem:[%s14145_s2 + $0x10] sm:$0xf] }
0x1786   :  { %7272 = vst [vmem:[#allocation2] sm:$0xf] %v10434_v28 }
0x1787 PF:  { %v11994_v62 = vld [vmem:[#allocation8 + $0xe4] ss:$16 sps:$4 sm:$0xff]   ;;  %v11996_v57 = vld [vmem:[#allocation8 + $0xe0] ss:$16 sps:$4 sm:$0xff]   ;;  %v11997_v60 = vld [vmem:[#allocation8 + $0xec] ss:$16 sps:$4 sm:$0xff]  }
0x1788   :  { %7688 = vmatprep.subr.bf16.mxu0 %v11994_v62  ;;  %v11999_v50 = vld [vmem:[#allocation8 + $0xe8] ss:$16 sps:$4 sm:$0xff]   ;;  %v12000_v53 = vld [vmem:[#allocation8 + $0xc4] ss:$16 sps:$4 sm:$0xff]   ;;  %v12002_v7 = vld [vmem:[#allocation8 + $0xc0] ss:$16 sps:$4 sm:$0xff]   ;;  %7729 = vmatprep.subr.bf16.mxu1 %v11997_v60 }
0x1789   :  { %7689 = vmatpush1.bf16.msra.mxu0 %v11996_v57  ;;  %v12003_v35 = vld [vmem:[#allocation8 + $0xcc] ss:$16 sps:$4 sm:$0xff]   ;;  %7730 = vmatpush1.bf16.msra.mxu1 %v11999_v50  ;;  %v12005_v38 = vld [vmem:[#allocation8 + $0xc8] ss:$16 sps:$4 sm:$0xff]   ;;  %v12006_v41 = vld [vmem:[#allocation8 + $0xa4] ss:$16 sps:$4 sm:$0xff]  }
0x178a   :  { %7690 = vmatprep.subr.bf16.mxu0 %v12000_v53  ;;  %7731 = vmatprep.subr.bf16.mxu1 %v12003_v35  ;;  %v12008_v63 = vld [vmem:[#allocation8 + $0xa0] ss:$16 sps:$4 sm:$0xff]   ;;  %v12009_v55 = vld [vmem:[#allocation8 + $0xac] ss:$16 sps:$4 sm:$0xff]   ;;  %v12012_v8 = vld [vmem:[#allocation8 + $0x84] ss:$16 sps:$4 sm:$0xff]  }
0x178b   :  { %v12011_v5 = vld [vmem:[#allocation8 + $0xa8] ss:$16 sps:$4 sm:$0xff]   ;;  %v12015_v13 = vld [vmem:[#allocation8 + $0x8c] ss:$16 sps:$4 sm:$0xff]   ;;  %v12014_v14 = vld [vmem:[#allocation8 + $0x80] ss:$16 sps:$4 sm:$0xff]  }
0x178c   :  { %v12018_v15 = vld [vmem:[#allocation8 + $0x64] ss:$16 sps:$4 sm:$0xff]   ;;  %v12017_v47 = vld [vmem:[#allocation8 + $0x88] ss:$16 sps:$4 sm:$0xff]   ;;  %v12021_v16 = vld [vmem:[#allocation8 + $0x6c] ss:$16 sps:$4 sm:$0xff]  }
0x178d   :  { %7691 = vmatpush1.bf16.msra.mxu0 %v12002_v7  ;;  %7732 = vmatpush1.bf16.msra.mxu1 %v12005_v38  ;;  %v12020_v17 = vld [vmem:[#allocation8 + $0x60] ss:$16 sps:$4 sm:$0xff]   ;;  %v12024_v18 = vld [vmem:[#allocation8 + $0x44] ss:$16 sps:$4 sm:$0xff]   ;;  %v12023_v19 = vld [vmem:[#allocation8 + $0x68] ss:$16 sps:$4 sm:$0xff]  }
0x178e   :  { %7692 = vmatprep.subr.bf16.mxu0 %v12006_v41  ;;  %7733 = vmatprep.subr.bf16.mxu1 %v12009_v55  ;;  %v12027_v20 = vld [vmem:[#allocation8 + $0x4c] ss:$16 sps:$4 sm:$0xff]   ;;  %v12026_v21 = vld [vmem:[#allocation8 + $0x40] ss:$16 sps:$4 sm:$0xff]   ;;  %v12030_v22 = vld [vmem:[#allocation8 + $0x24] ss:$16 sps:$4 sm:$0xff]  }
0x178f   :  { %v12029_v23 = vld [vmem:[#allocation8 + $0x48] ss:$16 sps:$4 sm:$0xff]   ;;  %v12033_v54 = vld [vmem:[#allocation8 + $0x2c] ss:$16 sps:$4 sm:$0xff]   ;;  %v12032_v24 = vld [vmem:[#allocation8 + $0x20] ss:$16 sps:$4 sm:$0xff]  }
0x1790   :  { %v12036_v25 = vld [vmem:[#allocation8 + $0x4] ss:$16 sps:$4 sm:$0xff]   ;;  %v12035_v26 = vld [vmem:[#allocation8 + $0x28] ss:$16 sps:$4 sm:$0xff]   ;;  %v12039_v29 = vld [vmem:[#allocation8 + $0xc] ss:$16 sps:$4 sm:$0xff]  }
0x1791   :  { %7693 = vmatpush1.bf16.msra.mxu0 %v12008_v63  ;;  %7734 = vmatpush1.bf16.msra.mxu1 %v12011_v5  ;;  %v12038_v31 = vld [vmem:[#allocation8] ss:$16 sps:$4 sm:$0xff]   ;;  %v12042_v34 = vld [vmem:[#allocation8 + $0x1e4] ss:$16 sps:$4 sm:$0xff]   ;;  %v12041_v37 = vld [vmem:[#allocation8 + $0x8] ss:$16 sps:$4 sm:$0xff]  }
0x1792   :  { %7694 = vmatprep.subr.bf16.mxu0 %v12012_v8  ;;  %7735 = vmatprep.subr.bf16.mxu1 %v12015_v13  ;;  %v12045_v39 = vld [vmem:[#allocation8 + $0x1ec] ss:$16 sps:$4 sm:$0xff]   ;;  %v12044_v42 = vld [vmem:[#allocation8 + $0x1e0] ss:$16 sps:$4 sm:$0xff]   ;;  %v12048_v43 = vld [vmem:[#allocation8 + $0x1c4] ss:$16 sps:$4 sm:$0xff]  }
0x1793   :  { %v12047_v44 = vld [vmem:[#allocation8 + $0x1e8] ss:$16 sps:$4 sm:$0xff]   ;;  %v12051_v45 = vld [vmem:[#allocation8 + $0x1cc] ss:$16 sps:$4 sm:$0xff]   ;;  %v12050_v46 = vld [vmem:[#allocation8 + $0x1c0] ss:$16 sps:$4 sm:$0xff]  }
0x1794   :  { %v12054_v48 = vld [vmem:[#allocation8 + $0x1a4] ss:$16 sps:$4 sm:$0xff]   ;;  %v12053_v51 = vld [vmem:[#allocation8 + $0x1c8] ss:$16 sps:$4 sm:$0xff]   ;;  %v12057_v40 = vld [vmem:[#allocation8 + $0x1ac] ss:$16 sps:$4 sm:$0xff]  }
0x1795   :  { %7695 = vmatpush1.bf16.msra.mxu0 %v12014_v14  ;;  %7736 = vmatpush1.bf16.msra.mxu1 %v12017_v47  ;;  %v12056_v2 = vld [vmem:[#allocation8 + $0x1a0] ss:$16 sps:$4 sm:$0xff]   ;;  %v12060_v33 = vld [vmem:[#allocation8 + $0x184] ss:$16 sps:$4 sm:$0xff]   ;;  %v12059_v58 = vld [vmem:[#allocation8 + $0x1a8] ss:$16 sps:$4 sm:$0xff]  }
0x1796   :  { %7696 = vmatprep.subr.bf16.mxu0 %v12018_v15  ;;  %7737 = vmatprep.subr.bf16.mxu1 %v12021_v16  ;;  %v12062_v1 = vld [vmem:[#allocation8 + $0x180] ss:$16 sps:$4 sm:$0xff]   ;;  %v12063_v56 = vld [vmem:[#allocation8 + $0x18c] ss:$16 sps:$4 sm:$0xff]   ;;  %v12065_v49 = vld [vmem:[#allocation8 + $0x188] ss:$16 sps:$4 sm:$0xff]  }
0x1797   :  { %v7273_v6 = vld [vmem:[#allocation2] sm:$0xff]  ;;  %v12069_v59 = vld [vmem:[#allocation8 + $0x16c] ss:$16 sps:$4 sm:$0xff]   ;;  %v12071_v10 = vld [vmem:[#allocation8 + $0x168] ss:$16 sps:$4 sm:$0xff]   ;;  %v14474_v7 = vmov 0.0  }
0x1798   :  { %v12066_v30 = vld [vmem:[#allocation8 + $0x164] ss:$16 sps:$4 sm:$0xff]   ;;  %v10436_v32 = vcombine.high %v7273_v6, %v7273_v6  ;;  %v12068_v3 = vld [vmem:[#allocation8 + $0x160] ss:$16 sps:$4 sm:$0xff]   ;;  %v12075_v0 = vld [vmem:[#allocation8 + $0x14c] ss:$16 sps:$4 sm:$0xff]   ;;  %v10435_v53 = vcombine.low %v7273_v6, %v7273_v6 }
0x1799   :  { %7697 = vmatpush1.bf16.msra.mxu0 %v12020_v17  ;;  %7738 = vmatpush1.bf16.msra.mxu1 %v12023_v19  ;;  %v12072_v27 = vld [vmem:[#allocation8 + $0x144] ss:$16 sps:$4 sm:$0xff]   ;;  %v12074_v4 = vld [vmem:[#allocation8 + $0x140] ss:$16 sps:$4 sm:$0xff]   ;;  %v12077_v11 = vld [vmem:[#allocation8 + $0x148] ss:$16 sps:$4 sm:$0xff]  }
0x179a   :  { %7698 = vmatprep.subr.bf16.mxu0 %v12024_v18  ;;  %7739 = vmatprep.subr.bf16.mxu1 %v12027_v20  ;;  %v12078_v36 = vld [vmem:[#allocation8 + $0x124] ss:$16 sps:$4 sm:$0xff]   ;;  %v12081_v12 = vld [vmem:[#allocation8 + $0x12c] ss:$16 sps:$4 sm:$0xff]   ;;  %v12080_v9 = vld [vmem:[#allocation8 + $0x120] ss:$16 sps:$4 sm:$0xff]  }
0x179b   :  { %7720 = vmatprep.mubr.bf16.mxu0 %v10436_v32  ;;  %7761 = vmatprep.mubr.bf16.mxu1 %v10436_v32  ;;  %v12084_v28 = vld [vmem:[#allocation8 + $0x104] ss:$16 sps:$4 sm:$0xff]   ;;  %v12083_v62 = vld [vmem:[#allocation8 + $0x128] ss:$16 sps:$4 sm:$0xff]   ;;  %v12087_v57 = vld [vmem:[#allocation8 + $0x10c] ss:$16 sps:$4 sm:$0xff]  }
0x179c   :  { %v12086_v60 = vld [vmem:[#allocation8 + $0x100] ss:$16 sps:$4 sm:$0xff]   ;;  %v12090_v50 = vld [vmem:[#allocation8 + $0x108] ss:$16 sps:$4 sm:$0xff]   ;;  %s10522_s0 = sld [smem:[#allocation5 + $0x5]] }
0x179d   :  { %7699 = vmatpush1.bf16.msra.mxu0 %v12026_v21  ;;  %7740 = vmatpush1.bf16.msra.mxu1 %v12029_v23  ;;  %v12092_v35 = vld [vmem:[%s14151_s8 + $0x38] sm:$0xff]   ;;  %v12093_v38 = vld [vmem:[%s14151_s8 + $0x30] sm:$0xff]   ;;  %v12094_v41 = vld [vmem:[%s14151_s8 + $0x28] sm:$0xff]  }
0x179e   :  { %7700 = vmatprep.subr.bf16.mxu0 %v12030_v22  ;;  %7741 = vmatprep.subr.bf16.mxu1 %v12033_v54  ;;  %v12095_v63 = vld [vmem:[%s14151_s8 + $0x20] sm:$0xff]   ;;  %v12096_v55 = vld [vmem:[%s14151_s8 + $0x18] sm:$0xff]   ;;  %v12097_v8 = vld [vmem:[%s14151_s8 + $0x10] sm:$0xff]  }
0x179f   :  { %v12098_v5 = vld [vmem:[%s14151_s8 + $0x8] sm:$0xff]   ;;  %v12099_v13 = vld [vmem:[%s14151_s8] sm:$0xff]   ;;  %v14477_v20 = vld [vmem:[#allocation37_spill] sm:$0xff] }
0x17a0   :  { %v7339_v14 = vld [vmem:[%s14150_s7] sm:$0xf]  ;;  %v14476_v16 = vld [vmem:[#allocation36_spill] sm:$0xff] }
0x17a1   :  { %7701 = vmatpush1.bf16.msra.mxu0 %v12032_v24  ;;  %7742 = vmatpush1.bf16.msra.mxu1 %v12035_v26  ;;  %v14475_v15 = vld [vmem:[#allocation35_spill] sm:$0xff]  ;;  %v7348_v17 = vrot.slane %v7339_v14, %v14476_v16  ;;  %v7352_v21 = vrot.slane %v7339_v14, %v14477_v20 }
0x17a2   :  { %7702 = vmatprep.subr.bf16.mxu0 %v12036_v25  ;;  %7743 = vmatprep.subr.bf16.mxu1 %v12039_v29  ;;  %v7344_v47 = vrot.slane %v7339_v14, %v14475_v15  ;;  %p10523_p6 = scmp.eq.s32.totalorder %s10522_s0, 0 }
0x17a5   :  { %7703 = vmatpush1.bf16.msra.mxu0 %v12038_v31  ;;  %7744 = vmatpush1.bf16.msra.mxu1 %v12041_v37 }
0x17a6   :  { %7704 = vmatprep.subr.bf16.mxu0 %v12042_v34  ;;  %7745 = vmatprep.subr.bf16.mxu1 %v12045_v39 }
0x17a9   :  { %7705 = vmatpush2.bf16.msra.mxu0 %v12044_v42  ;;  %7746 = vmatpush2.bf16.msra.mxu1 %v12047_v44  ;;  %v7356_v42 = vrot.slane %v7339_v14, %v12787_v52 }
0x17aa   :  { %7706 = vmatprep.subr.bf16.mxu0 %v12048_v43  ;;  %7747 = vmatprep.subr.bf16.mxu1 %v12051_v45 }
0x17ad   :  { %7707 = vmatpush2.bf16.msra.mxu0 %v12050_v46  ;;  %7748 = vmatpush2.bf16.msra.mxu1 %v12053_v51 }
0x17ae   :  { %7708 = vmatprep.subr.bf16.mxu0 %v12054_v48  ;;  %7749 = vmatprep.subr.bf16.mxu1 %v12057_v40 }
0x17b1   :  { %7709 = vmatpush2.bf16.msra.mxu0 %v12056_v2  ;;  %7750 = vmatpush2.bf16.msra.mxu1 %v12059_v58 }
0x17b2   :  { %7710 = vmatprep.subr.bf16.mxu0 %v12060_v33  ;;  %7751 = vmatprep.subr.bf16.mxu1 %v12063_v56  ;;  %v7274_v33 = vld [vmem:[#allocation3] sm:$0xff] }
0x17b5   :  { %7711 = vmatpush2.bf16.msra.mxu0 %v12062_v1  ;;  %7752 = vmatpush2.bf16.msra.mxu1 %v12065_v49 }
0x17b6   :  { %7712 = vmatprep.subr.bf16.mxu0 %v12066_v30  ;;  %7753 = vmatprep.subr.bf16.mxu1 %v12069_v59 }
0x17b9   :  { %7713 = vmatpush2.bf16.msra.mxu0 %v12068_v3  ;;  %7754 = vmatpush2.bf16.msra.mxu1 %v12071_v10  ;;  %v10501_v10 = vld [vmem:[%s14152_s9] ss:$0 sm:$0xff] }
0x17ba   :  { %7714 = vmatprep.subr.bf16.mxu0 %v12072_v27  ;;  %7755 = vmatprep.subr.bf16.mxu1 %v12075_v0 }
0x17bd   :  { %7715 = vmatpush2.bf16.msra.mxu0 %v12074_v4  ;;  %7756 = vmatpush2.bf16.msra.mxu1 %v12077_v11 }
0x17be   :  { %7716 = vmatprep.subr.bf16.mxu0 %v12078_v36  ;;  %7757 = vmatprep.subr.bf16.mxu1 %v12081_v12 }
0x17c1   :  { %7717 = vmatpush2.bf16.msra.mxu0 %v12080_v9  ;;  %7758 = vmatpush2.bf16.msra.mxu1 %v12083_v62  ;;  %v12100_v62 = vld [vmem:[%s14146_s3 + $0x38] sm:$0xff]  }
0x17c2   :  { %7718 = vmatprep.subr.bf16.mxu0 %v12084_v28  ;;  %7759 = vmatprep.subr.bf16.mxu1 %v12087_v57  ;;  %v12101_v57 = vld [vmem:[%s14146_s3 + $0x30] sm:$0xff]  }
0x17c5   :  { %7719 = vmatpush2.bf16.msra.mxu0 %v12086_v60  ;;  %7760 = vmatpush2.bf16.msra.mxu1 %v12090_v50  ;;  %v12102_v60 = vld [vmem:[%s14146_s3 + $0x28] sm:$0xff]   ;;  %v12103_v50 = vld [vmem:[%s14146_s3 + $0x20] sm:$0xff]  }
0x17c6   :  { %10988 = vmatprep.subr.bf16.mxu0 %v14474_v7  ;;  %11008 = vmatprep.subr.bf16.mxu1 %v14474_v7 }
0x17c8   :  { %7721 = vmatmul.mubr.bf16.vlgmr.msra.gmra.mxu0 %v10435_v53  ;;  %7762 = vmatmul.mubr.bf16.vlgmr.msra.gmra.mxu1 %v10435_v53  ;;  %v12104_v53 = vld [vmem:[%s14146_s3 + $0x18] sm:$0xff]  }
0x17c9   :  { %11004 = vmatprep.mubr.msk.bf16.mxu0 %vm12431_vm1, %v14474_v7  ;;  %11024 = vmatprep.mubr.msk.bf16.mxu1 %vm12431_vm1, %v14474_v7 }
0x17ca   :  { %10989 = vmatpush3.bf16.msra.mxu0 %v12092_v35  ;;  %11009 = vmatpush3.bf16.msra.mxu1 %v12100_v62  ;;  %v12105_v35 = vld [vmem:[%s14146_s3 + $0x10] sm:$0xff]  }
0x17cb   :  { %10990 = vmatprep.subr.bf16.mxu0 %v14474_v7  ;;  %11010 = vmatprep.subr.bf16.mxu1 %v14474_v7 }
0x17ce   :  { %10991 = vmatpush3.bf16.msra.mxu0 %v12093_v38  ;;  %11011 = vmatpush3.bf16.msra.mxu1 %v12101_v57  ;;  %v12106_v38 = vld [vmem:[%s14146_s3 + $0x8] sm:$0xff]  }
0x17cf   :  { %10992 = vmatprep.subr.bf16.mxu0 %v14474_v7  ;;  %11012 = vmatprep.subr.bf16.mxu1 %v14474_v7 }
0x17d2   :  { %10993 = vmatpush3.bf16.msra.mxu0 %v12094_v41  ;;  %11013 = vmatpush3.bf16.msra.mxu1 %v12102_v60  ;;  %v12107_v41 = vld [vmem:[%s14146_s3] sm:$0xff]  }
0x17d3   :  { %10994 = vmatprep.subr.bf16.mxu0 %v14474_v7  ;;  %11014 = vmatprep.subr.bf16.mxu1 %v14474_v7 }
0x17d6   :  { %10995 = vmatpush3.bf16.msra.mxu0 %v12095_v63  ;;  %11015 = vmatpush3.bf16.msra.mxu1 %v12103_v50 }
0x17d7   :  { %10996 = vmatprep.subr.bf16.mxu0 %v14474_v7  ;;  %11016 = vmatprep.subr.bf16.mxu1 %v14474_v7 }
0x17da   :  { %10997 = vmatpush3.bf16.msra.mxu0 %v12096_v55  ;;  %11017 = vmatpush3.bf16.msra.mxu1 %v12104_v53  ;;  %v14479_v55 = vld [vmem:[#allocation14_spill] sm:$0xff] }
0x17db   :  { %10998 = vmatprep.subr.bf16.mxu0 %v14474_v7  ;;  %11018 = vmatprep.subr.bf16.mxu1 %v14474_v7 }
0x17de   :  { %10999 = vmatpush3.bf16.msra.mxu0 %v12097_v8  ;;  %11019 = vmatpush3.bf16.msra.mxu1 %v12105_v35 }
0x17df   :  { %11000 = vmatprep.subr.bf16.mxu0 %v14474_v7  ;;  %11020 = vmatprep.subr.bf16.mxu1 %v14474_v7 }
0x17e2   :  { %11001 = vmatpush3.bf16.msra.mxu0 %v12098_v5  ;;  %11021 = vmatpush3.bf16.msra.mxu1 %v12106_v38 }
0x17e3   :  { %11002 = vmatprep.subr.bf16.mxu0 %v14474_v7  ;;  %11022 = vmatprep.subr.bf16.mxu1 %v14474_v7 }
0x17e6   :  { %11003 = vmatpush3.bf16.msra.mxu0 %v12099_v13  ;;  %11023 = vmatpush3.bf16.msra.mxu1 %v12107_v41 }
0x1888   :  { %v7722_v18 = vpop.f32.mrf.mxu0  ;;  %v7763_v23 = vpop.f32.mrf.mxu1 }
0x1889   :  { %v7723_v19 = vadd.f32 %v7722_v18, %v7344_v47  ;;  %v7764_v31 = vadd.f32 %v7763_v23, %v7352_v21 }
0x188a   :  { %v7724_v22 = vpop.f32.mrf.mxu0  ;;  %v7765_v26 = vpop.f32.mrf.mxu1 }
0x188b   :  { %v7770_v54 = vmul.f32 0.5, %v7723_v19  ;;  %v7725_v24 = vadd.f32 %v7724_v22, %v7348_v17  ;;  %v7766_v43 = vadd.f32 %v7765_v26, %v7356_v42 }
0x188c   :  { %v7726_v25 = vpop.f32.mrf.mxu0  ;;  %v7767_v37 = vpop.f32.mrf.mxu1 }
0x188d   :  { %12108 = vtanh.f32 %v7770_v54  ;;  %v7774_v29 = vmul.f32 0.5, %v7725_v24  ;;  %v7779_v44 = vmul.f32 0.5, %v7766_v43 }
0x188e   :  { %v7727_v34 = vpop.f32.mrf.mxu0  ;;  %v7768_v39 = vpop.f32.mrf.mxu1 }
0x188f   :  { %12110 = vtanh.f32 %v7774_v29 }
0x1890   :  { %12112 = vtanh.f32 %v7764_v31 }
0x1891   :  { %12114 = vtanh.f32 %v7779_v44 }
0x189a   :  { %v12109_v45 = vpop.eup %12108 }
0x189b   :  { %v7772_v46 = vadd.f32 1.0, %v12109_v45 }
0x189c   :  { %v12111_v48 = vpop.eup %12110 }
0x189d   :  { %v7773_v51 = vmul.f32 0.5, %v7772_v46  ;;  %v7776_v40 = vadd.f32 1.0, %v12111_v48  ;;  %v12113_v2 = vpop.eup %12112 }
0x189e   :  { %v12115_v49 = vpop.eup %12114 }
0x189f   :  { %v7777_v58 = vmul.f32 0.5, %v7776_v40  ;;  %v7784_v56 = vmul.f32 %v12113_v2, %v7773_v51  ;;  %v7781_v30 = vadd.f32 1.0, %v12115_v49 }
0x18a1   :  { %v7783_v1 = vmul.f32 %v7777_v58, %v7274_v33  ;;  %v7782_v32 = vmul.f32 0.5, %v7781_v30 }
0x18a3   :  { %v7785_v6 = vadd.f32 %v7784_v56, %v7783_v1 }
0x18a5   :  { %12116 = vtanh.f32 %v7785_v6  ;;  %7790 = vst [vmem:[#allocation3] sm:$0xff] %v7785_v6 }
0x18b2   :  { %v12117_v59 = vpop.eup %12116 }
0x18b3   :  { %v7787_v3 = vmul.f32 %v12117_v59, %v7782_v32 }
0x18b5   :  { %v7788_v27 = vpack.c.bf16 %v7787_v3, %v7787_v3 }
0x18b7   :  { %7789 = vst [vmem:[#allocation2 + $0x4] sm:$0xf] %v7788_v27  ;;  %11005 = vmatmul.mubr.bf16.vlgmr.msra.gmra.mxu0 %v7788_v27 }
0x1977   :  { %v7896_v0 = vpop.f32.mrf.mxu0 }
0x1978   :  { %v7897_v4 = vadd.f32 %v10501_v10, %v7896_v0 }
0x1979   :  { %v11006_v36 = vpop.f32.mrf.mxu0 }
0x197a   :  { %10510 = vst [vmem:[%s14153_s10 + $0x28] sm:$0xff] %v7897_v4  ;;  %v7904_v12 = vsel %vm71_vm0, %v7897_v4, -3e+38 }
0x197b   :  { %7905 = vmax.xlane.f32.xlu0 %v7904_v12  ;;  %v7899_v9 = vpop.f32.mrf.mxu0 }
0x197d   :  { %v11007_v28 = vpop.f32.mrf.mxu0 }
0x1a04   :  { %v7906_v63 = vpop.xlane.xlu0 %7905 }
0x1a05   :  { %vm7907_vm14 = vcmp.eq.f32.partialorder %v7904_v12, %v7906_v63 }
0x1a06   :  { %v7908_v8 = vsel %vm7907_vm14, %v14479_v55, 128.0 }
0x1a07   :  { %7909 = vmin.xlane.f32.xlu0 %v7908_v8 }
0x1a90   :  { %v7910_v5 = vpop.xlane.xlu0 %7909 }
0x1a91   :  { %vm7911_vm15 = vcmp.eq.f32.partialorder %v14479_v55, %v7910_v5 }
0x1a92   :  { %vm10520_vm2 = vmpackc.low %vm7911_vm15, %vm7911_vm15 }
0x1a93   :  { %11025 = vmatmul.mubr.msk.bf16.vlgmr.msra.gmra.mxu1 %vm10520_vm2, %v12432_v61 }
0x1b53   :  { %v8013_v13 = vpop.f32.mrf.mxu1 }
0x1b54   :  { %v8019_v14 = vpack.c.bf16 %v8013_v13, %v8013_v13 }
0x1b55   :  { %v11026_v15 = vpop.f32.mrf.mxu1  ;;  %8025 = sbr.rel (%p10523_p6) target bundleno = 7004 (0x1b5c), region = 69 }
0x1b56   :  { %8020 = vst [vmem:[#allocation2] sm:$0xf] %v8019_v14 }
0x1b57   :  { %v8016_v47 = vpop.f32.mrf.mxu1 }
0x1b59   :  { %v11027_v16 = vpop.f32.mrf.mxu1 }
0x1b5a   :  { %v10524_v7 = vld [vmem:[%s14145_s2 + $0x14] sm:$0xf] }
0x1b5b   :  { %8028 = vst [vmem:[#allocation2] sm:$0xf] %v10524_v7 }
0x1b5c PF:  { %v12118_v17 = vld [vmem:[#allocation8 + $0xe4] ss:$16 sps:$4 sm:$0xff]   ;;  %v12120_v18 = vld [vmem:[#allocation8 + $0xe0] ss:$16 sps:$4 sm:$0xff]   ;;  %v12121_v19 = vld [vmem:[#allocation8 + $0xec] ss:$16 sps:$4 sm:$0xff]  }
0x1b5d   :  { %8444 = vmatprep.subr.bf16.mxu0 %v12118_v17  ;;  %v12123_v20 = vld [vmem:[#allocation8 + $0xe8] ss:$16 sps:$4 sm:$0xff]   ;;  %v12124_v21 = vld [vmem:[#allocation8 + $0xc4] ss:$16 sps:$4 sm:$0xff]   ;;  %v12126_v22 = vld [vmem:[#allocation8 + $0xc0] ss:$16 sps:$4 sm:$0xff]   ;;  %8485 = vmatprep.subr.bf16.mxu1 %v12121_v19 }
0x1b5e   :  { %8445 = vmatpush1.bf16.msra.mxu0 %v12120_v18  ;;  %v12127_v23 = vld [vmem:[#allocation8 + $0xcc] ss:$16 sps:$4 sm:$0xff]   ;;  %8486 = vmatpush1.bf16.msra.mxu1 %v12123_v20  ;;  %v12129_v54 = vld [vmem:[#allocation8 + $0xc8] ss:$16 sps:$4 sm:$0xff]   ;;  %v12130_v24 = vld [vmem:[#allocation8 + $0xa4] ss:$16 sps:$4 sm:$0xff]  }
0x1b5f   :  { %8446 = vmatprep.subr.bf16.mxu0 %v12124_v21  ;;  %8487 = vmatprep.subr.bf16.mxu1 %v12127_v23  ;;  %v12132_v25 = vld [vmem:[#allocation8 + $0xa0] ss:$16 sps:$4 sm:$0xff]   ;;  %v12133_v26 = vld [vmem:[#allocation8 + $0xac] ss:$16 sps:$4 sm:$0xff]   ;;  %v12136_v29 = vld [vmem:[#allocation8 + $0x84] ss:$16 sps:$4 sm:$0xff]  }
0x1b60   :  { %v12135_v31 = vld [vmem:[#allocation8 + $0xa8] ss:$16 sps:$4 sm:$0xff]   ;;  %v12139_v34 = vld [vmem:[#allocation8 + $0x8c] ss:$16 sps:$4 sm:$0xff]   ;;  %v12138_v37 = vld [vmem:[#allocation8 + $0x80] ss:$16 sps:$4 sm:$0xff]  }
0x1b61   :  { %v12142_v39 = vld [vmem:[#allocation8 + $0x64] ss:$16 sps:$4 sm:$0xff]   ;;  %v12141_v42 = vld [vmem:[#allocation8 + $0x88] ss:$16 sps:$4 sm:$0xff]   ;;  %v12145_v43 = vld [vmem:[#allocation8 + $0x6c] ss:$16 sps:$4 sm:$0xff]  }
0x1b62   :  { %8447 = vmatpush1.bf16.msra.mxu0 %v12126_v22  ;;  %8488 = vmatpush1.bf16.msra.mxu1 %v12129_v54  ;;  %v12144_v44 = vld [vmem:[#allocation8 + $0x60] ss:$16 sps:$4 sm:$0xff]   ;;  %v12148_v45 = vld [vmem:[#allocation8 + $0x44] ss:$16 sps:$4 sm:$0xff]   ;;  %v12147_v46 = vld [vmem:[#allocation8 + $0x68] ss:$16 sps:$4 sm:$0xff]  }
0x1b63   :  { %8448 = vmatprep.subr.bf16.mxu0 %v12130_v24  ;;  %8489 = vmatprep.subr.bf16.mxu1 %v12133_v26  ;;  %v12151_v48 = vld [vmem:[#allocation8 + $0x4c] ss:$16 sps:$4 sm:$0xff]   ;;  %v12150_v51 = vld [vmem:[#allocation8 + $0x40] ss:$16 sps:$4 sm:$0xff]   ;;  %v12154_v40 = vld [vmem:[#allocation8 + $0x24] ss:$16 sps:$4 sm:$0xff]  }
0x1b64   :  { %v12153_v2 = vld [vmem:[#allocation8 + $0x48] ss:$16 sps:$4 sm:$0xff]   ;;  %v12157_v33 = vld [vmem:[#allocation8 + $0x2c] ss:$16 sps:$4 sm:$0xff]   ;;  %v12156_v58 = vld [vmem:[#allocation8 + $0x20] ss:$16 sps:$4 sm:$0xff]  }
0x1b65   :  { %v12160_v1 = vld [vmem:[#allocation8 + $0x4] ss:$16 sps:$4 sm:$0xff]   ;;  %v12159_v56 = vld [vmem:[#allocation8 + $0x28] ss:$16 sps:$4 sm:$0xff]   ;;  %v12163_v6 = vld [vmem:[#allocation8 + $0xc] ss:$16 sps:$4 sm:$0xff]  }
0x1b66   :  { %8449 = vmatpush1.bf16.msra.mxu0 %v12132_v25  ;;  %8490 = vmatpush1.bf16.msra.mxu1 %v12135_v31  ;;  %v12162_v49 = vld [vmem:[#allocation8] ss:$16 sps:$4 sm:$0xff]   ;;  %v12166_v30 = vld [vmem:[#allocation8 + $0x1e4] ss:$16 sps:$4 sm:$0xff]   ;;  %v12165_v32 = vld [vmem:[#allocation8 + $0x8] ss:$16 sps:$4 sm:$0xff]  }
0x1b67   :  { %8450 = vmatprep.subr.bf16.mxu0 %v12136_v29  ;;  %8491 = vmatprep.subr.bf16.mxu1 %v12139_v34  ;;  %v12169_v59 = vld [vmem:[#allocation8 + $0x1ec] ss:$16 sps:$4 sm:$0xff]   ;;  %v12168_v3 = vld [vmem:[#allocation8 + $0x1e0] ss:$16 sps:$4 sm:$0xff]   ;;  %v12172_v27 = vld [vmem:[#allocation8 + $0x1c4] ss:$16 sps:$4 sm:$0xff]  }
0x1b68   :  { %v12171_v10 = vld [vmem:[#allocation8 + $0x1e8] ss:$16 sps:$4 sm:$0xff]   ;;  %v12175_v0 = vld [vmem:[#allocation8 + $0x1cc] ss:$16 sps:$4 sm:$0xff]   ;;  %v12174_v4 = vld [vmem:[#allocation8 + $0x1c0] ss:$16 sps:$4 sm:$0xff]  }
0x1b69   :  { %v12178_v36 = vld [vmem:[#allocation8 + $0x1a4] ss:$16 sps:$4 sm:$0xff]   ;;  %v12177_v11 = vld [vmem:[#allocation8 + $0x1c8] ss:$16 sps:$4 sm:$0xff]   ;;  %v12181_v12 = vld [vmem:[#allocation8 + $0x1ac] ss:$16 sps:$4 sm:$0xff]  }
0x1b6a   :  { %8451 = vmatpush1.bf16.msra.mxu0 %v12138_v37  ;;  %8492 = vmatpush1.bf16.msra.mxu1 %v12141_v42  ;;  %v12180_v9 = vld [vmem:[#allocation8 + $0x1a0] ss:$16 sps:$4 sm:$0xff]   ;;  %v12184_v28 = vld [vmem:[#allocation8 + $0x184] ss:$16 sps:$4 sm:$0xff]   ;;  %v12183_v62 = vld [vmem:[#allocation8 + $0x1a8] ss:$16 sps:$4 sm:$0xff]  }
0x1b6b   :  { %8452 = vmatprep.subr.bf16.mxu0 %v12142_v39  ;;  %8493 = vmatprep.subr.bf16.mxu1 %v12145_v43  ;;  %v12186_v57 = vld [vmem:[#allocation8 + $0x180] ss:$16 sps:$4 sm:$0xff]   ;;  %v12187_v60 = vld [vmem:[#allocation8 + $0x18c] ss:$16 sps:$4 sm:$0xff]   ;;  %v12189_v53 = vld [vmem:[#allocation8 + $0x188] ss:$16 sps:$4 sm:$0xff]  }
0x1b6c   :  { %v8029_v50 = vld [vmem:[#allocation2] sm:$0xff]  ;;  %v12193_v41 = vld [vmem:[#allocation8 + $0x16c] ss:$16 sps:$4 sm:$0xff]   ;;  %v12195_v8 = vld [vmem:[#allocation8 + $0x168] ss:$16 sps:$4 sm:$0xff]   ;;  %v14480_v22 = vmov 0.0  }
0x1b6d   :  { %v12190_v35 = vld [vmem:[#allocation8 + $0x164] ss:$16 sps:$4 sm:$0xff]   ;;  %v10526_v38 = vcombine.high %v8029_v50, %v8029_v50  ;;  %v12192_v63 = vld [vmem:[#allocation8 + $0x160] ss:$16 sps:$4 sm:$0xff]   ;;  %v12199_v5 = vld [vmem:[#allocation8 + $0x14c] ss:$16 sps:$4 sm:$0xff]   ;;  %v10525_v21 = vcombine.low %v8029_v50, %v8029_v50 }
0x1b6e   :  { %8453 = vmatpush1.bf16.msra.mxu0 %v12144_v44  ;;  %8494 = vmatpush1.bf16.msra.mxu1 %v12147_v46  ;;  %v12196_v55 = vld [vmem:[#allocation8 + $0x144] ss:$16 sps:$4 sm:$0xff]   ;;  %v12198_v13 = vld [vmem:[#allocation8 + $0x140] ss:$16 sps:$4 sm:$0xff]   ;;  %v12201_v15 = vld [vmem:[#allocation8 + $0x148] ss:$16 sps:$4 sm:$0xff]  }
0x1b6f   :  { %8454 = vmatprep.subr.bf16.mxu0 %v12148_v45  ;;  %8495 = vmatprep.subr.bf16.mxu1 %v12151_v48  ;;  %v12202_v14 = vld [vmem:[#allocation8 + $0x124] ss:$16 sps:$4 sm:$0xff]   ;;  %v12205_v47 = vld [vmem:[#allocation8 + $0x12c] ss:$16 sps:$4 sm:$0xff]   ;;  %v12204_v16 = vld [vmem:[#allocation8 + $0x120] ss:$16 sps:$4 sm:$0xff]  }
0x1b70   :  { %8476 = vmatprep.mubr.bf16.mxu0 %v10526_v38  ;;  %8517 = vmatprep.mubr.bf16.mxu1 %v10526_v38  ;;  %v12208_v7 = vld [vmem:[#allocation8 + $0x104] ss:$16 sps:$4 sm:$0xff]   ;;  %v12207_v17 = vld [vmem:[#allocation8 + $0x128] ss:$16 sps:$4 sm:$0xff]   ;;  %v12211_v18 = vld [vmem:[#allocation8 + $0x10c] ss:$16 sps:$4 sm:$0xff]  }
0x1b71   :  { %v12210_v19 = vld [vmem:[#allocation8 + $0x100] ss:$16 sps:$4 sm:$0xff]   ;;  %v12214_v20 = vld [vmem:[#allocation8 + $0x108] ss:$16 sps:$4 sm:$0xff]   ;;  %s10612_s15 = sld [smem:[#allocation5 + $0x6]] }
0x1b72   :  { %8455 = vmatpush1.bf16.msra.mxu0 %v12150_v51  ;;  %8496 = vmatpush1.bf16.msra.mxu1 %v12153_v2  ;;  %v12216_v23 = vld [vmem:[%s14151_s8 + $0x38] sm:$0xff]   ;;  %v12217_v54 = vld [vmem:[%s14151_s8 + $0x30] sm:$0xff]   ;;  %v12218_v24 = vld [vmem:[%s14151_s8 + $0x28] sm:$0xff]  }
0x1b73   :  { %8456 = vmatprep.subr.bf16.mxu0 %v12154_v40  ;;  %8497 = vmatprep.subr.bf16.mxu1 %v12157_v33  ;;  %v12219_v25 = vld [vmem:[%s14151_s8 + $0x20] sm:$0xff]   ;;  %v12220_v26 = vld [vmem:[%s14151_s8 + $0x18] sm:$0xff]   ;;  %v12221_v29 = vld [vmem:[%s14151_s8 + $0x10] sm:$0xff]  }
0x1b74   :  { %v12222_v31 = vld [vmem:[%s14151_s8 + $0x8] sm:$0xff]   ;;  %v12223_v34 = vld [vmem:[%s14151_s8] sm:$0xff]   ;;  %v14483_v48 = vld [vmem:[#allocation37_spill] sm:$0xff] }
0x1b75   :  { %v8095_v37 = vld [vmem:[%s14150_s7] sm:$0xf]  ;;  %v14482_v43 = vld [vmem:[#allocation36_spill] sm:$0xff] }
0x1b76   :  { %8457 = vmatpush1.bf16.msra.mxu0 %v12156_v58  ;;  %8498 = vmatpush1.bf16.msra.mxu1 %v12159_v56  ;;  %v14481_v39 = vld [vmem:[#allocation35_spill] sm:$0xff]  ;;  %v8104_v44 = vrot.slane %v8095_v37, %v14482_v43  ;;  %v8108_v51 = vrot.slane %v8095_v37, %v14483_v48 }
0x1b77   :  { %8458 = vmatprep.subr.bf16.mxu0 %v12160_v1  ;;  %8499 = vmatprep.subr.bf16.mxu1 %v12163_v6  ;;  %v8100_v42 = vrot.slane %v8095_v37, %v14481_v39  ;;  %p10613_p7 = scmp.eq.s32.totalorder %s10612_s15, 0 }
0x1b7a   :  { %8459 = vmatpush1.bf16.msra.mxu0 %v12162_v49  ;;  %8500 = vmatpush1.bf16.msra.mxu1 %v12165_v32 }
0x1b7b   :  { %8460 = vmatprep.subr.bf16.mxu0 %v12166_v30  ;;  %8501 = vmatprep.subr.bf16.mxu1 %v12169_v59 }
0x1b7e   :  { %8461 = vmatpush2.bf16.msra.mxu0 %v12168_v3  ;;  %8502 = vmatpush2.bf16.msra.mxu1 %v12171_v10  ;;  %v8112_v3 = vrot.slane %v8095_v37, %v12787_v52 }
0x1b7f   :  { %8462 = vmatprep.subr.bf16.mxu0 %v12172_v27  ;;  %8503 = vmatprep.subr.bf16.mxu1 %v12175_v0 }
0x1b82   :  { %8463 = vmatpush2.bf16.msra.mxu0 %v12174_v4  ;;  %8504 = vmatpush2.bf16.msra.mxu1 %v12177_v11 }
0x1b83   :  { %8464 = vmatprep.subr.bf16.mxu0 %v12178_v36  ;;  %8505 = vmatprep.subr.bf16.mxu1 %v12181_v12 }
0x1b86   :  { %8465 = vmatpush2.bf16.msra.mxu0 %v12180_v9  ;;  %8506 = vmatpush2.bf16.msra.mxu1 %v12183_v62 }
0x1b87   :  { %8466 = vmatprep.subr.bf16.mxu0 %v12184_v28  ;;  %8507 = vmatprep.subr.bf16.mxu1 %v12187_v60  ;;  %v8030_v28 = vld [vmem:[#allocation3] sm:$0xff] }
0x1b8a   :  { %8467 = vmatpush2.bf16.msra.mxu0 %v12186_v57  ;;  %8508 = vmatpush2.bf16.msra.mxu1 %v12189_v53 }
0x1b8b   :  { %8468 = vmatprep.subr.bf16.mxu0 %v12190_v35  ;;  %8509 = vmatprep.subr.bf16.mxu1 %v12193_v41 }
0x1b8e   :  { %8469 = vmatpush2.bf16.msra.mxu0 %v12192_v63  ;;  %8510 = vmatpush2.bf16.msra.mxu1 %v12195_v8  ;;  %v10591_v8 = vld [vmem:[%s14152_s9] ss:$0 sm:$0xff] }
0x1b8f   :  { %8470 = vmatprep.subr.bf16.mxu0 %v12196_v55  ;;  %8511 = vmatprep.subr.bf16.mxu1 %v12199_v5 }
0x1b92   :  { %8471 = vmatpush2.bf16.msra.mxu0 %v12198_v13  ;;  %8512 = vmatpush2.bf16.msra.mxu1 %v12201_v15 }
0x1b93   :  { %8472 = vmatprep.subr.bf16.mxu0 %v12202_v14  ;;  %8513 = vmatprep.subr.bf16.mxu1 %v12205_v47 }
0x1b96   :  { %8473 = vmatpush2.bf16.msra.mxu0 %v12204_v16  ;;  %8514 = vmatpush2.bf16.msra.mxu1 %v12207_v17  ;;  %v12224_v17 = vld [vmem:[%s14146_s3 + $0x38] sm:$0xff]  }
0x1b97   :  { %8474 = vmatprep.subr.bf16.mxu0 %v12208_v7  ;;  %8515 = vmatprep.subr.bf16.mxu1 %v12211_v18  ;;  %v12225_v18 = vld [vmem:[%s14146_s3 + $0x30] sm:$0xff]  }
0x1b9a   :  { %8475 = vmatpush2.bf16.msra.mxu0 %v12210_v19  ;;  %8516 = vmatpush2.bf16.msra.mxu1 %v12214_v20  ;;  %v12226_v19 = vld [vmem:[%s14146_s3 + $0x28] sm:$0xff]   ;;  %v12227_v20 = vld [vmem:[%s14146_s3 + $0x20] sm:$0xff]  }
0x1b9b   :  { %11028 = vmatprep.subr.bf16.mxu0 %v14480_v22  ;;  %11048 = vmatprep.subr.bf16.mxu1 %v14480_v22 }
0x1b9d   :  { %8477 = vmatmul.mubr.bf16.vlgmr.msra.gmra.mxu0 %v10525_v21  ;;  %8518 = vmatmul.mubr.bf16.vlgmr.msra.gmra.mxu1 %v10525_v21  ;;  %v12228_v21 = vld [vmem:[%s14146_s3 + $0x18] sm:$0xff]  }
0x1b9e   :  { %11044 = vmatprep.mubr.msk.bf16.mxu0 %vm12431_vm1, %v14480_v22  ;;  %11064 = vmatprep.mubr.msk.bf16.mxu1 %vm12431_vm1, %v14480_v22 }
0x1b9f   :  { %11029 = vmatpush3.bf16.msra.mxu0 %v12216_v23  ;;  %11049 = vmatpush3.bf16.msra.mxu1 %v12224_v17  ;;  %v12229_v23 = vld [vmem:[%s14146_s3 + $0x10] sm:$0xff]  }
0x1ba0   :  { %11030 = vmatprep.subr.bf16.mxu0 %v14480_v22  ;;  %11050 = vmatprep.subr.bf16.mxu1 %v14480_v22 }
0x1ba3   :  { %11031 = vmatpush3.bf16.msra.mxu0 %v12217_v54  ;;  %11051 = vmatpush3.bf16.msra.mxu1 %v12225_v18  ;;  %v12230_v54 = vld [vmem:[%s14146_s3 + $0x8] sm:$0xff]  }
0x1ba4   :  { %11032 = vmatprep.subr.bf16.mxu0 %v14480_v22  ;;  %11052 = vmatprep.subr.bf16.mxu1 %v14480_v22 }
0x1ba7   :  { %11033 = vmatpush3.bf16.msra.mxu0 %v12218_v24  ;;  %11053 = vmatpush3.bf16.msra.mxu1 %v12226_v19  ;;  %v12231_v24 = vld [vmem:[%s14146_s3] sm:$0xff]  }
0x1ba8   :  { %11034 = vmatprep.subr.bf16.mxu0 %v14480_v22  ;;  %11054 = vmatprep.subr.bf16.mxu1 %v14480_v22 }
0x1bab   :  { %11035 = vmatpush3.bf16.msra.mxu0 %v12219_v25  ;;  %11055 = vmatpush3.bf16.msra.mxu1 %v12227_v20 }
0x1bac   :  { %11036 = vmatprep.subr.bf16.mxu0 %v14480_v22  ;;  %11056 = vmatprep.subr.bf16.mxu1 %v14480_v22 }
0x1baf   :  { %11037 = vmatpush3.bf16.msra.mxu0 %v12220_v26  ;;  %11057 = vmatpush3.bf16.msra.mxu1 %v12228_v21  ;;  %v14485_v26 = vld [vmem:[#allocation14_spill] sm:$0xff] }
0x1bb0   :  { %11038 = vmatprep.subr.bf16.mxu0 %v14480_v22  ;;  %11058 = vmatprep.subr.bf16.mxu1 %v14480_v22 }
0x1bb3   :  { %11039 = vmatpush3.bf16.msra.mxu0 %v12221_v29  ;;  %11059 = vmatpush3.bf16.msra.mxu1 %v12229_v23 }
0x1bb4   :  { %11040 = vmatprep.subr.bf16.mxu0 %v14480_v22  ;;  %11060 = vmatprep.subr.bf16.mxu1 %v14480_v22 }
0x1bb7   :  { %11041 = vmatpush3.bf16.msra.mxu0 %v12222_v31  ;;  %11061 = vmatpush3.bf16.msra.mxu1 %v12230_v54 }
0x1bb8   :  { %11042 = vmatprep.subr.bf16.mxu0 %v14480_v22  ;;  %11062 = vmatprep.subr.bf16.mxu1 %v14480_v22 }
0x1bbb   :  { %11043 = vmatpush3.bf16.msra.mxu0 %v12223_v34  ;;  %11063 = vmatpush3.bf16.msra.mxu1 %v12231_v24 }
0x1c5d   :  { %v8478_v45 = vpop.f32.mrf.mxu0  ;;  %v8519_v2 = vpop.f32.mrf.mxu1 }
0x1c5e   :  { %v8479_v46 = vadd.f32 %v8478_v45, %v8100_v42  ;;  %v8520_v49 = vadd.f32 %v8519_v2, %v8108_v51 }
0x1c5f   :  { %v8480_v40 = vpop.f32.mrf.mxu0  ;;  %v8521_v56 = vpop.f32.mrf.mxu1 }
0x1c60   :  { %v8526_v33 = vmul.f32 0.5, %v8479_v46  ;;  %v8481_v58 = vadd.f32 %v8480_v40, %v8104_v44  ;;  %v8522_v27 = vadd.f32 %v8521_v56, %v8112_v3 }
0x1c61   :  { %v8482_v1 = vpop.f32.mrf.mxu0  ;;  %v8523_v32 = vpop.f32.mrf.mxu1 }
0x1c62   :  { %12232 = vtanh.f32 %v8526_v33  ;;  %v8530_v6 = vmul.f32 0.5, %v8481_v58  ;;  %v8535_v10 = vmul.f32 0.5, %v8522_v27 }
0x1c63   :  { %v8483_v30 = vpop.f32.mrf.mxu0  ;;  %v8524_v59 = vpop.f32.mrf.mxu1 }
0x1c64   :  { %12234 = vtanh.f32 %v8530_v6 }
0x1c65   :  { %12236 = vtanh.f32 %v8520_v49 }
0x1c66   :  { %12238 = vtanh.f32 %v8535_v10 }
0x1c6f   :  { %v12233_v0 = vpop.eup %12232 }
0x1c70   :  { %v8528_v4 = vadd.f32 1.0, %v12233_v0 }
0x1c71   :  { %v12235_v36 = vpop.eup %12234 }
0x1c72   :  { %v8529_v11 = vmul.f32 0.5, %v8528_v4  ;;  %v8532_v12 = vadd.f32 1.0, %v12235_v36  ;;  %v12237_v9 = vpop.eup %12236 }
0x1c73   :  { %v12239_v53 = vpop.eup %12238 }
0x1c74   :  { %v8533_v62 = vmul.f32 0.5, %v8532_v12  ;;  %v8540_v60 = vmul.f32 %v12237_v9, %v8529_v11  ;;  %v8537_v35 = vadd.f32 1.0, %v12239_v53 }
0x1c76   :  { %v8539_v57 = vmul.f32 %v8533_v62, %v8030_v28  ;;  %v8538_v38 = vmul.f32 0.5, %v8537_v35 }
0x1c78   :  { %v8541_v50 = vadd.f32 %v8540_v60, %v8539_v57 }
0x1c7a   :  { %12240 = vtanh.f32 %v8541_v50  ;;  %8546 = vst [vmem:[#allocation3] sm:$0xff] %v8541_v50 }
0x1c87   :  { %v12241_v41 = vpop.eup %12240 }
0x1c88   :  { %v8543_v63 = vmul.f32 %v12241_v41, %v8538_v38 }
0x1c8a   :  { %v8544_v55 = vpack.c.bf16 %v8543_v63, %v8543_v63 }
0x1c8c   :  { %8545 = vst [vmem:[#allocation2 + $0x4] sm:$0xf] %v8544_v55  ;;  %11045 = vmatmul.mubr.bf16.vlgmr.msra.gmra.mxu0 %v8544_v55 }
0x1d4c   :  { %v8652_v5 = vpop.f32.mrf.mxu0 }
0x1d4d   :  { %v8653_v13 = vadd.f32 %v10591_v8, %v8652_v5 }
0x1d4e   :  { %v11046_v14 = vpop.f32.mrf.mxu0 }
0x1d4f   :  { %10600 = vst [vmem:[%s14153_s10 + $0x30] sm:$0xff] %v8653_v13  ;;  %v8660_v47 = vsel %vm71_vm0, %v8653_v13, -3e+38 }
0x1d50   :  { %8661 = vmax.xlane.f32.xlu0 %v8660_v47  ;;  %v8655_v16 = vpop.f32.mrf.mxu0 }
0x1d52   :  { %v11047_v7 = vpop.f32.mrf.mxu0 }
0x1dd9   :  { %v8662_v25 = vpop.xlane.xlu0 %8661 }
0x1dda   :  { %vm8663_vm3 = vcmp.eq.f32.partialorder %v8660_v47, %v8662_v25 }
0x1ddb   :  { %v8664_v29 = vsel %vm8663_vm3, %v14485_v26, 128.0 }
0x1ddc   :  { %8665 = vmin.xlane.f32.xlu0 %v8664_v29 }
0x1e65   :  { %v8666_v31 = vpop.xlane.xlu0 %8665 }
0x1e66   :  { %vm8667_vm4 = vcmp.eq.f32.partialorder %v14485_v26, %v8666_v31 }
0x1e67   :  { %vm10610_vm5 = vmpackc.low %vm8667_vm4, %vm8667_vm4 }
0x1e68   :  { %11065 = vmatmul.mubr.msk.bf16.vlgmr.msra.gmra.mxu1 %vm10610_vm5, %v12432_v61 }
0x1f28   :  { %v8769_v34 = vpop.f32.mrf.mxu1 }
0x1f29   :  { %v8775_v37 = vpack.c.bf16 %v8769_v34, %v8769_v34 }
0x1f2a   :  { %v11066_v39 = vpop.f32.mrf.mxu1  ;;  %8781 = sbr.rel (%p10613_p7) target bundleno = 7985 (0x1f31), region = 73 }
0x1f2b   :  { %8776 = vst [vmem:[#allocation2] sm:$0xf] %v8775_v37 }
0x1f2c   :  { %v8772_v42 = vpop.f32.mrf.mxu1 }
0x1f2e   :  { %v11067_v43 = vpop.f32.mrf.mxu1 }
0x1f2f   :  { %v10614_v22 = vld [vmem:[%s14145_s2 + $0x18] sm:$0xf] }
0x1f30   :  { %8784 = vst [vmem:[#allocation2] sm:$0xf] %v10614_v22 }
0x1f31 PF:  { %v12242_v44 = vld [vmem:[#allocation8 + $0xe4] ss:$16 sps:$4 sm:$0xff]   ;;  %v12244_v45 = vld [vmem:[#allocation8 + $0xe0] ss:$16 sps:$4 sm:$0xff]   ;;  %v12245_v46 = vld [vmem:[#allocation8 + $0xec] ss:$16 sps:$4 sm:$0xff]  }
0x1f32   :  { %9200 = vmatprep.subr.bf16.mxu0 %v12242_v44  ;;  %v12247_v48 = vld [vmem:[#allocation8 + $0xe8] ss:$16 sps:$4 sm:$0xff]   ;;  %v12248_v51 = vld [vmem:[#allocation8 + $0xc4] ss:$16 sps:$4 sm:$0xff]   ;;  %v12250_v40 = vld [vmem:[#allocation8 + $0xc0] ss:$16 sps:$4 sm:$0xff]   ;;  %9241 = vmatprep.subr.bf16.mxu1 %v12245_v46 }
0x1f33   :  { %9201 = vmatpush1.bf16.msra.mxu0 %v12244_v45  ;;  %v12251_v2 = vld [vmem:[#allocation8 + $0xcc] ss:$16 sps:$4 sm:$0xff]   ;;  %9242 = vmatpush1.bf16.msra.mxu1 %v12247_v48  ;;  %v12253_v33 = vld [vmem:[#allocation8 + $0xc8] ss:$16 sps:$4 sm:$0xff]   ;;  %v12254_v58 = vld [vmem:[#allocation8 + $0xa4] ss:$16 sps:$4 sm:$0xff]  }
0x1f34   :  { %9202 = vmatprep.subr.bf16.mxu0 %v12248_v51  ;;  %9243 = vmatprep.subr.bf16.mxu1 %v12251_v2  ;;  %v12256_v1 = vld [vmem:[#allocation8 + $0xa0] ss:$16 sps:$4 sm:$0xff]   ;;  %v12257_v56 = vld [vmem:[#allocation8 + $0xac] ss:$16 sps:$4 sm:$0xff]   ;;  %v12260_v6 = vld [vmem:[#allocation8 + $0x84] ss:$16 sps:$4 sm:$0xff]  }
0x1f35   :  { %v12259_v49 = vld [vmem:[#allocation8 + $0xa8] ss:$16 sps:$4 sm:$0xff]   ;;  %v12263_v30 = vld [vmem:[#allocation8 + $0x8c] ss:$16 sps:$4 sm:$0xff]   ;;  %v12262_v32 = vld [vmem:[#allocation8 + $0x80] ss:$16 sps:$4 sm:$0xff]  }
0x1f36   :  { %v12266_v59 = vld [vmem:[#allocation8 + $0x64] ss:$16 sps:$4 sm:$0xff]   ;;  %v12265_v3 = vld [vmem:[#allocation8 + $0x88] ss:$16 sps:$4 sm:$0xff]   ;;  %v12269_v27 = vld [vmem:[#allocation8 + $0x6c] ss:$16 sps:$4 sm:$0xff]  }
0x1f37   :  { %9203 = vmatpush1.bf16.msra.mxu0 %v12250_v40  ;;  %9244 = vmatpush1.bf16.msra.mxu1 %v12253_v33  ;;  %v12268_v10 = vld [vmem:[#allocation8 + $0x60] ss:$16 sps:$4 sm:$0xff]   ;;  %v12272_v0 = vld [vmem:[#allocation8 + $0x44] ss:$16 sps:$4 sm:$0xff]   ;;  %v12271_v4 = vld [vmem:[#allocation8 + $0x68] ss:$16 sps:$4 sm:$0xff]  }
0x1f38   :  { %9204 = vmatprep.subr.bf16.mxu0 %v12254_v58  ;;  %9245 = vmatprep.subr.bf16.mxu1 %v12257_v56  ;;  %v12275_v36 = vld [vmem:[#allocation8 + $0x4c] ss:$16 sps:$4 sm:$0xff]   ;;  %v12274_v11 = vld [vmem:[#allocation8 + $0x40] ss:$16 sps:$4 sm:$0xff]   ;;  %v12278_v12 = vld [vmem:[#allocation8 + $0x24] ss:$16 sps:$4 sm:$0xff]  }
0x1f39   :  { %v12277_v9 = vld [vmem:[#allocation8 + $0x48] ss:$16 sps:$4 sm:$0xff]   ;;  %v12281_v28 = vld [vmem:[#allocation8 + $0x2c] ss:$16 sps:$4 sm:$0xff]   ;;  %v12280_v62 = vld [vmem:[#allocation8 + $0x20] ss:$16 sps:$4 sm:$0xff]  }
0x1f3a   :  { %v12284_v57 = vld [vmem:[#allocation8 + $0x4] ss:$16 sps:$4 sm:$0xff]   ;;  %v12283_v60 = vld [vmem:[#allocation8 + $0x28] ss:$16 sps:$4 sm:$0xff]   ;;  %v12287_v50 = vld [vmem:[#allocation8 + $0xc] ss:$16 sps:$4 sm:$0xff]  }
0x1f3b   :  { %9205 = vmatpush1.bf16.msra.mxu0 %v12256_v1  ;;  %9246 = vmatpush1.bf16.msra.mxu1 %v12259_v49  ;;  %v12286_v53 = vld [vmem:[#allocation8] ss:$16 sps:$4 sm:$0xff]   ;;  %v12290_v35 = vld [vmem:[#allocation8 + $0x1e4] ss:$16 sps:$4 sm:$0xff]   ;;  %v12289_v38 = vld [vmem:[#allocation8 + $0x8] ss:$16 sps:$4 sm:$0xff]  }
0x1f3c   :  { %9206 = vmatprep.subr.bf16.mxu0 %v12260_v6  ;;  %9247 = vmatprep.subr.bf16.mxu1 %v12263_v30  ;;  %v12293_v41 = vld [vmem:[#allocation8 + $0x1ec] ss:$16 sps:$4 sm:$0xff]   ;;  %v12292_v63 = vld [vmem:[#allocation8 + $0x1e0] ss:$16 sps:$4 sm:$0xff]   ;;  %v12296_v55 = vld [vmem:[#allocation8 + $0x1c4] ss:$16 sps:$4 sm:$0xff]  }
0x1f3d   :  { %v12295_v8 = vld [vmem:[#allocation8 + $0x1e8] ss:$16 sps:$4 sm:$0xff]   ;;  %v12299_v5 = vld [vmem:[#allocation8 + $0x1cc] ss:$16 sps:$4 sm:$0xff]   ;;  %v12298_v13 = vld [vmem:[#allocation8 + $0x1c0] ss:$16 sps:$4 sm:$0xff]  }
0x1f3e   :  { %v12302_v14 = vld [vmem:[#allocation8 + $0x1a4] ss:$16 sps:$4 sm:$0xff]   ;;  %v12301_v15 = vld [vmem:[#allocation8 + $0x1c8] ss:$16 sps:$4 sm:$0xff]   ;;  %v12305_v47 = vld [vmem:[#allocation8 + $0x1ac] ss:$16 sps:$4 sm:$0xff]  }
0x1f3f   :  { %9207 = vmatpush1.bf16.msra.mxu0 %v12262_v32  ;;  %9248 = vmatpush1.bf16.msra.mxu1 %v12265_v3  ;;  %v12304_v16 = vld [vmem:[#allocation8 + $0x1a0] ss:$16 sps:$4 sm:$0xff]   ;;  %v12308_v7 = vld [vmem:[#allocation8 + $0x184] ss:$16 sps:$4 sm:$0xff]   ;;  %v12307_v17 = vld [vmem:[#allocation8 + $0x1a8] ss:$16 sps:$4 sm:$0xff]  }
0x1f40   :  { %9208 = vmatprep.subr.bf16.mxu0 %v12266_v59  ;;  %9249 = vmatprep.subr.bf16.mxu1 %v12269_v27  ;;  %v12310_v18 = vld [vmem:[#allocation8 + $0x180] ss:$16 sps:$4 sm:$0xff]   ;;  %v12311_v19 = vld [vmem:[#allocation8 + $0x18c] ss:$16 sps:$4 sm:$0xff]   ;;  %v12313_v21 = vld [vmem:[#allocation8 + $0x188] ss:$16 sps:$4 sm:$0xff]  }
0x1f41   :  { %v8785_v20 = vld [vmem:[#allocation2] sm:$0xff]  ;;  %v12317_v24 = vld [vmem:[#allocation8 + $0x16c] ss:$16 sps:$4 sm:$0xff]   ;;  %v12319_v29 = vld [vmem:[#allocation8 + $0x168] ss:$16 sps:$4 sm:$0xff]   ;;  %v14486_v40 = vmov 0.0  }
0x1f42   :  { %v12314_v23 = vld [vmem:[#allocation8 + $0x164] ss:$16 sps:$4 sm:$0xff]   ;;  %v10616_v54 = vcombine.high %v8785_v20, %v8785_v20  ;;  %v12316_v25 = vld [vmem:[#allocation8 + $0x160] ss:$16 sps:$4 sm:$0xff]   ;;  %v12323_v31 = vld [vmem:[#allocation8 + $0x14c] ss:$16 sps:$4 sm:$0xff]   ;;  %v10615_v51 = vcombine.low %v8785_v20, %v8785_v20 }
0x1f43   :  { %9209 = vmatpush1.bf16.msra.mxu0 %v12268_v10  ;;  %9250 = vmatpush1.bf16.msra.mxu1 %v12271_v4  ;;  %v12320_v26 = vld [vmem:[#allocation8 + $0x144] ss:$16 sps:$4 sm:$0xff]   ;;  %v12322_v34 = vld [vmem:[#allocation8 + $0x140] ss:$16 sps:$4 sm:$0xff]   ;;  %v12325_v39 = vld [vmem:[#allocation8 + $0x148] ss:$16 sps:$4 sm:$0xff]  }
0x1f44   :  { %9210 = vmatprep.subr.bf16.mxu0 %v12272_v0  ;;  %9251 = vmatprep.subr.bf16.mxu1 %v12275_v36  ;;  %v12326_v37 = vld [vmem:[#allocation8 + $0x124] ss:$16 sps:$4 sm:$0xff]   ;;  %v12329_v42 = vld [vmem:[#allocation8 + $0x12c] ss:$16 sps:$4 sm:$0xff]   ;;  %v12328_v43 = vld [vmem:[#allocation8 + $0x120] ss:$16 sps:$4 sm:$0xff]  }
0x1f45   :  { %9232 = vmatprep.mubr.bf16.mxu0 %v10616_v54  ;;  %9273 = vmatprep.mubr.bf16.mxu1 %v10616_v54  ;;  %v12332_v22 = vld [vmem:[#allocation8 + $0x104] ss:$16 sps:$4 sm:$0xff]   ;;  %v12331_v44 = vld [vmem:[#allocation8 + $0x128] ss:$16 sps:$4 sm:$0xff]   ;;  %v12335_v45 = vld [vmem:[#allocation8 + $0x10c] ss:$16 sps:$4 sm:$0xff]  }
0x1f46   :  { %v12334_v46 = vld [vmem:[#allocation8 + $0x100] ss:$16 sps:$4 sm:$0xff]   ;;  %v12338_v48 = vld [vmem:[#allocation8 + $0x108] ss:$16 sps:$4 sm:$0xff]  }
0x1f47   :  { %9211 = vmatpush1.bf16.msra.mxu0 %v12274_v11  ;;  %9252 = vmatpush1.bf16.msra.mxu1 %v12277_v9  ;;  %v12340_v2 = vld [vmem:[%s14151_s8 + $0x38] sm:$0xff]   ;;  %v12341_v33 = vld [vmem:[%s14151_s8 + $0x30] sm:$0xff]   ;;  %v12342_v58 = vld [vmem:[%s14151_s8 + $0x28] sm:$0xff]  }
0x1f48   :  { %9212 = vmatprep.subr.bf16.mxu0 %v12278_v12  ;;  %9253 = vmatprep.subr.bf16.mxu1 %v12281_v28  ;;  %v12343_v1 = vld [vmem:[%s14151_s8 + $0x20] sm:$0xff]   ;;  %v12344_v56 = vld [vmem:[%s14151_s8 + $0x18] sm:$0xff]   ;;  %v12345_v6 = vld [vmem:[%s14151_s8 + $0x10] sm:$0xff]  }
0x1f49   :  { %v12346_v49 = vld [vmem:[%s14151_s8 + $0x8] sm:$0xff]   ;;  %v12347_v30 = vld [vmem:[%s14151_s8] sm:$0xff]   ;;  %v14489_v36 = vld [vmem:[#allocation37_spill] sm:$0xff] }
0x1f4a   :  { %v8851_v32 = vld [vmem:[%s14150_s7] sm:$0xf]  ;;  %v14488_v27 = vld [vmem:[#allocation36_spill] sm:$0xff] }
0x1f4b   :  { %9213 = vmatpush1.bf16.msra.mxu0 %v12280_v62  ;;  %9254 = vmatpush1.bf16.msra.mxu1 %v12283_v60  ;;  %v14487_v59 = vld [vmem:[#allocation35_spill] sm:$0xff]  ;;  %v8860_v10 = vrot.slane %v8851_v32, %v14488_v27  ;;  %v8864_v11 = vrot.slane %v8851_v32, %v14489_v36 }
0x1f4c   :  { %9214 = vmatprep.subr.bf16.mxu0 %v12284_v57  ;;  %9255 = vmatprep.subr.bf16.mxu1 %v12287_v50  ;;  %v8856_v3 = vrot.slane %v8851_v32, %v14487_v59 }
0x1f4f   :  { %9215 = vmatpush1.bf16.msra.mxu0 %v12286_v53  ;;  %9256 = vmatpush1.bf16.msra.mxu1 %v12289_v38 }
0x1f50   :  { %9216 = vmatprep.subr.bf16.mxu0 %v12290_v35  ;;  %9257 = vmatprep.subr.bf16.mxu1 %v12293_v41 }
0x1f53   :  { %9217 = vmatpush2.bf16.msra.mxu0 %v12292_v63  ;;  %9258 = vmatpush2.bf16.msra.mxu1 %v12295_v8  ;;  %v8868_v63 = vrot.slane %v8851_v32, %v12787_v52 }
0x1f54   :  { %9218 = vmatprep.subr.bf16.mxu0 %v12296_v55  ;;  %9259 = vmatprep.subr.bf16.mxu1 %v12299_v5 }
0x1f57   :  { %9219 = vmatpush2.bf16.msra.mxu0 %v12298_v13  ;;  %9260 = vmatpush2.bf16.msra.mxu1 %v12301_v15 }
0x1f58   :  { %9220 = vmatprep.subr.bf16.mxu0 %v12302_v14  ;;  %9261 = vmatprep.subr.bf16.mxu1 %v12305_v47 }
0x1f5b   :  { %9221 = vmatpush2.bf16.msra.mxu0 %v12304_v16  ;;  %9262 = vmatpush2.bf16.msra.mxu1 %v12307_v17 }
0x1f5c   :  { %9222 = vmatprep.subr.bf16.mxu0 %v12308_v7  ;;  %9263 = vmatprep.subr.bf16.mxu1 %v12311_v19  ;;  %v8786_v7 = vld [vmem:[#allocation3] sm:$0xff] }
0x1f5f   :  { %9223 = vmatpush2.bf16.msra.mxu0 %v12310_v18  ;;  %9264 = vmatpush2.bf16.msra.mxu1 %v12313_v21 }
0x1f60   :  { %9224 = vmatprep.subr.bf16.mxu0 %v12314_v23  ;;  %9265 = vmatprep.subr.bf16.mxu1 %v12317_v24 }
0x1f63   :  { %9225 = vmatpush2.bf16.msra.mxu0 %v12316_v25  ;;  %9266 = vmatpush2.bf16.msra.mxu1 %v12319_v29 }
0x1f64   :  { %9226 = vmatprep.subr.bf16.mxu0 %v12320_v26  ;;  %9267 = vmatprep.subr.bf16.mxu1 %v12323_v31  ;;  %v10681_v26 = vld [vmem:[%s14152_s9] ss:$0 sm:$0xff] }
0x1f67   :  { %9227 = vmatpush2.bf16.msra.mxu0 %v12322_v34  ;;  %9268 = vmatpush2.bf16.msra.mxu1 %v12325_v39 }
0x1f68   :  { %9228 = vmatprep.subr.bf16.mxu0 %v12326_v37  ;;  %9269 = vmatprep.subr.bf16.mxu1 %v12329_v42 }
0x1f6b   :  { %9229 = vmatpush2.bf16.msra.mxu0 %v12328_v43  ;;  %9270 = vmatpush2.bf16.msra.mxu1 %v12331_v44  ;;  %v12349_v44 = vld [vmem:[%s14146_s3 + $0x30] sm:$0xff]  }
0x1f6c   :  { %9230 = vmatprep.subr.bf16.mxu0 %v12332_v22  ;;  %9271 = vmatprep.subr.bf16.mxu1 %v12335_v45  ;;  %v12348_v22 = vld [vmem:[%s14146_s3 + $0x38] sm:$0xff]   ;;  %v12350_v45 = vld [vmem:[%s14146_s3 + $0x28] sm:$0xff]  }
0x1f6f   :  { %9231 = vmatpush2.bf16.msra.mxu0 %v12334_v46  ;;  %9272 = vmatpush2.bf16.msra.mxu1 %v12338_v48  ;;  %v12351_v46 = vld [vmem:[%s14146_s3 + $0x20] sm:$0xff]   ;;  %v12352_v48 = vld [vmem:[%s14146_s3 + $0x18] sm:$0xff]  }
0x1f70   :  { %11068 = vmatprep.subr.bf16.mxu0 %v14486_v40  ;;  %11088 = vmatprep.subr.bf16.mxu1 %v14486_v40 }
0x1f72   :  { %9233 = vmatmul.mubr.bf16.vlgmr.msra.gmra.mxu0 %v10615_v51  ;;  %9274 = vmatmul.mubr.bf16.vlgmr.msra.gmra.mxu1 %v10615_v51  ;;  %v12353_v51 = vld [vmem:[%s14146_s3 + $0x10] sm:$0xff]  }
0x1f73   :  { %11084 = vmatprep.mubr.msk.bf16.mxu0 %vm12431_vm1, %v14486_v40  ;;  %11104 = vmatprep.mubr.msk.bf16.mxu1 %vm12431_vm1, %v14486_v40 }
0x1f74   :  { %11069 = vmatpush3.bf16.msra.mxu0 %v12340_v2  ;;  %11089 = vmatpush3.bf16.msra.mxu1 %v12348_v22  ;;  %v12354_v2 = vld [vmem:[%s14146_s3 + $0x8] sm:$0xff]  }
0x1f75   :  { %11070 = vmatprep.subr.bf16.mxu0 %v14486_v40  ;;  %11090 = vmatprep.subr.bf16.mxu1 %v14486_v40 }
0x1f78   :  { %11071 = vmatpush3.bf16.msra.mxu0 %v12341_v33  ;;  %11091 = vmatpush3.bf16.msra.mxu1 %v12349_v44  ;;  %v12355_v33 = vld [vmem:[%s14146_s3] sm:$0xff]  }
0x1f79   :  { %11072 = vmatprep.subr.bf16.mxu0 %v14486_v40  ;;  %11092 = vmatprep.subr.bf16.mxu1 %v14486_v40 }
0x1f7c   :  { %11073 = vmatpush3.bf16.msra.mxu0 %v12342_v58  ;;  %11093 = vmatpush3.bf16.msra.mxu1 %v12350_v45 }
0x1f7d   :  { %11074 = vmatprep.subr.bf16.mxu0 %v14486_v40  ;;  %11094 = vmatprep.subr.bf16.mxu1 %v14486_v40 }
0x1f80   :  { %11075 = vmatpush3.bf16.msra.mxu0 %v12343_v1  ;;  %11095 = vmatpush3.bf16.msra.mxu1 %v12351_v46  ;;  %v14491_v1 = vld [vmem:[#allocation14_spill] sm:$0xff] }
0x1f81   :  { %11076 = vmatprep.subr.bf16.mxu0 %v14486_v40  ;;  %11096 = vmatprep.subr.bf16.mxu1 %v14486_v40 }
0x1f84   :  { %11077 = vmatpush3.bf16.msra.mxu0 %v12344_v56  ;;  %11097 = vmatpush3.bf16.msra.mxu1 %v12352_v48 }
0x1f85   :  { %11078 = vmatprep.subr.bf16.mxu0 %v14486_v40  ;;  %11098 = vmatprep.subr.bf16.mxu1 %v14486_v40 }
0x1f88   :  { %11079 = vmatpush3.bf16.msra.mxu0 %v12345_v6  ;;  %11099 = vmatpush3.bf16.msra.mxu1 %v12353_v51 }
0x1f89   :  { %11080 = vmatprep.subr.bf16.mxu0 %v14486_v40  ;;  %11100 = vmatprep.subr.bf16.mxu1 %v14486_v40 }
0x1f8c   :  { %11081 = vmatpush3.bf16.msra.mxu0 %v12346_v49  ;;  %11101 = vmatpush3.bf16.msra.mxu1 %v12354_v2 }
0x1f8d   :  { %11082 = vmatprep.subr.bf16.mxu0 %v14486_v40  ;;  %11102 = vmatprep.subr.bf16.mxu1 %v14486_v40 }
0x1f90   :  { %11083 = vmatpush3.bf16.msra.mxu0 %v12347_v30  ;;  %11103 = vmatpush3.bf16.msra.mxu1 %v12355_v33 }
0x2032   :  { %v9234_v0 = vpop.f32.mrf.mxu0  ;;  %v9275_v9 = vpop.f32.mrf.mxu1 }
0x2033   :  { %v9235_v4 = vadd.f32 %v9234_v0, %v8856_v3  ;;  %v9276_v53 = vadd.f32 %v9275_v9, %v8864_v11 }
0x2034   :  { %v9236_v12 = vpop.f32.mrf.mxu0  ;;  %v9277_v60 = vpop.f32.mrf.mxu1 }
0x2035   :  { %v9282_v28 = vmul.f32 0.5, %v9235_v4  ;;  %v9237_v62 = vadd.f32 %v9236_v12, %v8860_v10  ;;  %v9278_v55 = vadd.f32 %v9277_v60, %v8868_v63 }
0x2036   :  { %v9238_v57 = vpop.f32.mrf.mxu0  ;;  %v9279_v38 = vpop.f32.mrf.mxu1 }
0x2037   :  { %12356 = vtanh.f32 %v9282_v28  ;;  %v9286_v50 = vmul.f32 0.5, %v9237_v62  ;;  %v9291_v8 = vmul.f32 0.5, %v9278_v55 }
0x2038   :  { %v9239_v35 = vpop.f32.mrf.mxu0  ;;  %v9280_v41 = vpop.f32.mrf.mxu1 }
0x2039   :  { %12358 = vtanh.f32 %v9286_v50 }
0x203a   :  { %12360 = vtanh.f32 %v9276_v53 }
0x203b   :  { %12362 = vtanh.f32 %v9291_v8 }
0x2044   :  { %v12357_v5 = vpop.eup %12356 }
0x2045   :  { %v9284_v13 = vadd.f32 1.0, %v12357_v5 }
0x2046   :  { %v12359_v14 = vpop.eup %12358 }
0x2047   :  { %v9285_v15 = vmul.f32 0.5, %v9284_v13  ;;  %v9288_v47 = vadd.f32 1.0, %v12359_v14  ;;  %v12361_v16 = vpop.eup %12360 }
0x2048   :  { %v12363_v21 = vpop.eup %12362 }
0x2049   :  { %v9289_v17 = vmul.f32 0.5, %v9288_v47  ;;  %v9296_v19 = vmul.f32 %v12361_v16, %v9285_v15  ;;  %v9293_v23 = vadd.f32 1.0, %v12363_v21 }
0x204b   :  { %v9295_v18 = vmul.f32 %v9289_v17, %v8786_v7  ;;  %v9294_v54 = vmul.f32 0.5, %v9293_v23 }
0x204d   :  { %v9297_v20 = vadd.f32 %v9296_v19, %v9295_v18 }
0x204f   :  { %12364 = vtanh.f32 %v9297_v20  ;;  %9302 = vst [vmem:[#allocation3] sm:$0xff] %v9297_v20 }
0x205c   :  { %v12365_v52 = vpop.eup %12364 }
0x205d   :  { %v9299_v24 = vmul.f32 %v12365_v52, %v9294_v54 }
0x205f   :  { %v9300_v25 = vpack.c.bf16 %v9299_v24, %v9299_v24 }
0x2061   :  { %9301 = vst [vmem:[#allocation2 + $0x4] sm:$0xf] %v9300_v25  ;;  %11085 = vmatmul.mubr.bf16.vlgmr.msra.gmra.mxu0 %v9300_v25 }
0x2121   :  { %v9408_v29 = vpop.f32.mrf.mxu0 }
0x2122   :  { %v9409_v31 = vadd.f32 %v10681_v26, %v9408_v29 }
0x2123   :  { %v11086_v34 = vpop.f32.mrf.mxu0 }
0x2124   :  { %10690 = vst [vmem:[%s14153_s10 + $0x38] sm:$0xff] %v9409_v31  ;;  %v9416_v39 = vsel %vm71_vm0, %v9409_v31, -3e+38 }
0x2125   :  { %9417 = vmax.xlane.f32.xlu0 %v9416_v39  ;;  %v9411_v42 = vpop.f32.mrf.mxu0 }
0x2127   :  { %v11087_v43 = vpop.f32.mrf.mxu0 }
0x21ae   :  { %v9418_v58 = vpop.xlane.xlu0 %9417 }
0x21af   :  { %vm9419_vm0 = vcmp.eq.f32.partialorder %v9416_v39, %v9418_v58 }
0x21b0   :  { %v9420_v56 = vsel %vm9419_vm0, %v14491_v1, 128.0 }
0x21b1   :  { %9421 = vmin.xlane.f32.xlu0 %v9420_v56 }
0x223a   :  { %v9422_v6 = vpop.xlane.xlu0 %9421 }
0x223b   :  { %vm9423_vm1 = vcmp.eq.f32.partialorder %v14491_v1, %v9422_v6 }
0x223c   :  { %vm10700_vm6 = vmpackc.low %vm9423_vm1, %vm9423_vm1 }
0x223d   :  { %11105 = vmatmul.mubr.msk.bf16.vlgmr.msra.gmra.mxu1 %vm10700_vm6, %v12432_v61 }
0x22fd   :  { %v9525_v49 = vpop.f32.mrf.mxu1 }
0x22fe   :  { %v9531_v30 = vpack.c.bf16 %v9525_v49, %v9525_v49 }
0x22ff   :  { %v11106_v32 = vpop.f32.mrf.mxu1 }
0x2300   :  { %9532 = vst [vmem:[#allocation2] sm:$0xf] %v9531_v30 }
0x2301   :  { %v9528_v59 = vpop.f32.mrf.mxu1 }
0x2303   :  { %v11107_v3 = vpop.f32.mrf.mxu1 }
0x2304   :  { %9537 = vsyncpa [#allocation7], 1 }
0x2305   :  { %9538 = vsyncpa [#allocation9], 1 }

</bundles_post_ra>
